<compile_context>
chip_gen: v5e
topology: v5e:2x2
jax: 0.10.0
libtpu: 0.0.40
codegen_flags: <defaults>
</compile_context>

<pallas_src>
import math
import functools

import jax
import jax.numpy as jnp
from jax.experimental import pallas as pl
from jax.experimental.pallas import tpu as pltpu

_VMEM_LIMIT = 48 * 1024 * 1024  # valid on v7x (64 MiB physical) and v5e/v6e (128 MiB)


# --------------------------------------------------------------------------
# Kernel 1: conv-as-matmul  (im2col rows) @ (bias-augmented weight)  + ReLU
# --------------------------------------------------------------------------
def _matmul_relu_kernel(x_ref, w_ref, o_ref, *, activation):
    y = jnp.dot(x_ref[...], w_ref[...], preferred_element_type=jnp.float32)
    if activation:
        y = jnp.maximum(y, 0.0)
    o_ref[...] = y.astype(o_ref.dtype)


def pallas_matmul_relu(x, w, activation=True):
    """x: (M, K) f32, w: (K, N) f32 -> (M, N) f32.  Bias must be pre-folded into w."""
    M, K = x.shape
    K2, N = w.shape
    assert K == K2, (K, K2)

    M_pad = ((M + 7) // 8) * 8
    if M_pad != M:
        x = jnp.pad(x, ((0, M_pad - M), (0, 0)))

    # 256-row tiles fill the 2x256x256 MXUs (v6e/v7x) and give both v7x TCs a
    # block; small problems run as a single grid step (no pipeline overhead).
    if M_pad % 256 == 0 and M_pad > 256:
        tm = 256
    else:
        tm = M_pad
    grid = (M_pad // tm,)

    out = pl.pallas_call(
        functools.partial(_matmul_relu_kernel, activation=activation),
        out_shape=jax.ShapeDtypeStruct((M_pad, N), jnp.float32),
        grid_spec=pltpu.PrefetchScalarGridSpec(
            num_scalar_prefetch=0,
            grid=grid,
            in_specs=[
                pl.BlockSpec((tm, K), lambda i: (i, 0)),   # im2col rows, tiled over M
                pl.BlockSpec((K, N), lambda i: (0, 0)),    # full (augmented) weight
            ],
            out_specs=pl.BlockSpec((tm, N), lambda i: (i, 0)),
        ),
        compiler_params=pltpu.CompilerParams(
            dimension_semantics=("parallel",),
            vmem_limit_bytes=_VMEM_LIMIT,
        ),
    )(x, w)
    return out if M_pad == M else out[:M]


# --------------------------------------------------------------------------
# Kernel 2: fused net2 + net3 + net4 (all FC weights VMEM-resident, one launch)
# --------------------------------------------------------------------------
def _fused_fc_kernel(*refs, n2, n3, k):
    """refs = [z1, (w,b)*n2, (w,b)*n3, w4_main, w4_rows, z_out, W_out]."""
    z_out_ref = refs[-2]
    W_out_ref = refs[-1]
    z1 = refs[0][...]
    idx = 1

    # net2: fc chain, ReLU on all but the last layer
    h = z1
    for li in range(n2):
        w_ref, b_ref = refs[idx], refs[idx + 1]
        idx += 2
        h = jnp.dot(h.astype(w_ref.dtype), w_ref[...],
                    preferred_element_type=jnp.float32) + b_ref[...]
        if li < n2 - 1:
            h = jnp.maximum(h, 0.0)
    z_out_ref[...] = h.astype(z_out_ref.dtype)

    # net3: fc chain, ReLU everywhere (weights may be bf16; accumulate in f32)
    g = z1
    for _ in range(n3):
        w_ref, b_ref = refs[idx], refs[idx + 1]
        idx += 2
        g = jnp.dot(g.astype(w_ref.dtype), w_ref[...],
                    preferred_element_type=jnp.float32) + b_ref[...]
        g = jnp.maximum(g, 0.0)

    # net4 with one-hot labels == selecting one extra weight row:
    #   W[:, i, :] = w1 @ w4[:128] + (w4[128+i] + b4)
    w4m_ref, w4r_ref = refs[idx], refs[idx + 1]
    base = jnp.dot(g.astype(w4m_ref.dtype), w4m_ref[...],
                   preferred_element_type=jnp.float32)
    w4r = w4r_ref[...]                                  # (k, 20), bias folded in
    for i in range(k):
        W_out_ref[i, :, :] = (base + w4r[i:i + 1, :]).astype(W_out_ref.dtype)


def fused_fc_forward(z1, net2, net3, w4_main, w4_rows, k):
    B, _ = z1.shape
    B_pad = ((B + 7) // 8) * 8
    if B_pad != B:
        z1 = jnp.pad(z1, ((0, B_pad - B), (0, 0)))
    out_dim = w4_rows.shape[1]                          # 2 * 10

    args = [z1]
    for w, b in net2:
        args += [w, b]
    for w, b in net3:
        args += [w, b]
    args += [w4_main, w4_rows]

    in_specs = [pl.BlockSpec(a.shape, lambda i: (0, 0)) for a in args]

    z_out, W_out = pl.pallas_call(
        functools.partial(_fused_fc_kernel, n2=len(net2), n3=len(net3), k=k),
        out_shape=(
            jax.ShapeDtypeStruct((B_pad, out_dim), jnp.float32),
            jax.ShapeDtypeStruct((k, B_pad, out_dim), jnp.float32),
        ),
        grid_spec=pltpu.PrefetchScalarGridSpec(
            num_scalar_prefetch=0,
            grid=(1,),
            in_specs=in_specs,
            out_specs=(
                pl.BlockSpec((B_pad, out_dim), lambda i: (0, 0)),
                pl.BlockSpec((k, B_pad, out_dim), lambda i: (0, 0, 0)),
            ),
        ),
        compiler_params=pltpu.CompilerParams(
            dimension_semantics=("arbitrary",),
            vmem_limit_bytes=_VMEM_LIMIT,
        ),
    )(*args)
    return z_out, W_out


# --------------------------------------------------------------------------
# im2col (NHWC, stride 2, pad 1).  Layout plumbing only; the matmul is Pallas.
# TODO(synk): patch extraction stays in XLA (strided in-kernel slicing is not
#             reliably lowered by Mosaic); only layout ops, no compute.
# --------------------------------------------------------------------------
def _im2col_nhwc(x_nhwc, kh=3, kw=3, stride=2, pad=1):
    B, H, W, C = x_nhwc.shape
    xp = jnp.pad(x_nhwc, ((0, 0), (pad, pad), (pad, pad), (0, 0)))
    Ho = (H + 2 * pad - kh) // stride + 1
    Wo = (W + 2 * pad - kw) // stride + 1
    patches = []
    for i in range(kh):
        for j in range(kw):
            patches.append(xp[:, i:i + stride * Ho:stride, j:j + stride * Wo:stride, :])
    cols = jnp.concatenate(patches, axis=-1)            # (B, Ho, Wo, kh*kw*C)
    return cols.reshape(B * Ho * Wo, kh * kw * C), Ho, Wo


# --------------------------------------------------------------------------
# Parameter init (PyTorch-style uniform bounds) and kernel-ready preparation
# --------------------------------------------------------------------------
def _init_linear(key, n_in, n_out):
    kw, kb = jax.random.split(key)
    bound = 1.0 / math.sqrt(n_in)
    w = jax.random.uniform(kw, (n_in, n_out), jnp.float32, -bound, bound)
    b = jax.random.uniform(kb, (n_out,), jnp.float32, -bound, bound)
    return w, b


def _init_conv(key, c_in, c_out, ksize=3):
    kw, kb = jax.random.split(key)
    fan_in = c_in * ksize * ksize
    bound = 1.0 / math.sqrt(fan_in)
    w = jax.random.uniform(kw, (c_out, c_in, ksize, ksize), jnp.float32, -bound, bound)
    b = jax.random.uniform(kb, (c_out,), jnp.float32, -bound, bound)
    return w, b


def init_encoder_params(key, filters, fc, k):
    keys = jax.random.split(key, 16)
    ki = iter(keys)
    params = {}
    params["net1"] = [_init_conv(next(ki), a, b)
                      for a, b in zip(filters[:-1], filters[1:])]
    net2_dims = list(zip(fc[:-2], fc[1:-1])) + [(fc[-2], fc[-1]), (fc[-1], 2 * 10)]
    params["net2"] = [_init_linear(next(ki), a, b) for a, b in net2_dims]
    net3_dims = [(fc[0], 2048), (2048, 1024), (1024, 128)]
    params["net3"] = [_init_linear(next(ki), a, b) for a, b in net3_dims]
    params["net4"] = _init_linear(next(ki), 128 + k, 2 * 10)
    return params


def _net3_weight_dtype():
    # bf16 weights halve HBM/VMEM traffic for the big net3 matmuls on v6e/v7x
    # (f32 accumulation via preferred_element_type); keep f32 on v5e.
    try:
        kind = jax.devices()[0].device_kind.lower()
    except Exception:
        return jnp.bfloat16
    if "v5 lite" in kind or "v5e" in kind or "v5lite" in kind:
        return jnp.float32
    return jnp.bfloat16


def prepare_params(params, k, net3_dtype):
    prepared = {}
    # conv: (C_out, C_in, 3, 3) -> (3*3*C_in + 1, C_out); column order (i, j, c)
    # matches _im2col_nhwc; bias folded as the last row.
    convs = []
    for w, b in params["net1"]:
        c_out, c_in, kh, kw = w.shape
        w2d = jnp.transpose(w, (2, 3, 1, 0)).reshape(kh * kw * c_in, c_out)
        convs.append(jnp.concatenate([w2d, b[None, :]], axis=0))
    prepared["net1"] = convs
    prepared["net2"] = [(w, b.reshape(1, -1)) for w, b in params["net2"]]
    prepared["net3"] = [(w.astype(net3_dtype), b.reshape(1, -1)) for w, b in params["net3"]]
    w4, b4 = params["net4"]
    prepared["net4_main"] = w4[:-k]                      # (128, 2*10)
    prepared["net4_rows"] = w4[-k:] + b4[None, :]        # (k, 2*10), bias folded
    return prepared


# --------------------------------------------------------------------------
# Encoder forward (mirrors Encoder.forward)
# --------------------------------------------------------------------------
@functools.partial(jax.jit, static_argnames=("k",))
def encoder_forward(prepared, x_nchw, *, k):
    B = x_nchw.shape[0]

    # net1: conv blocks.  NHWC internally: one transpose in, matmul output is
    # already NHWC, one tiny transpose at the end for the channel-major flatten.
    h = jnp.transpose(x_nchw, (0, 2, 3, 1))
    for w_aug in prepared["net1"]:
        cols, Ho, Wo = _im2col_nhwc(h)
        ones = jnp.ones((cols.shape[0], 1), cols.dtype)
        cols = jnp.concatenate([cols, ones], axis=1)              # bias column
        y = pallas_matmul_relu(cols, w_aug, activation=True)      # (B*Ho*Wo, C_out)
        h = y.reshape(B, Ho, Wo, -1)

    # Reshape(-1, filters[-1]*8*8): PyTorch flattens NCHW (channel-major)
    z1 = jnp.transpose(h, (0, 3, 1, 2)).reshape(B, -1)

    z_pad, W_pad = fused_fc_forward(z1, prepared["net2"], prepared["net3"],
                                    prepared["net4_main"], prepared["net4_rows"], k)
    z = z_pad[:B]                                       # (B, 20)
    W = jnp.transpose(W_pad[:, :B, :], (1, 0, 2))       # (B, k, 20)

    half_z = z.shape[-1] // 2
    half_w = W.shape[-1] // 2
    # Normal distributions as raw (loc, scale) tuples, as in the module.
    normal_z = (z[:, :half_z], z[:, half_z:])
    normal_W = [(W[:, i, :half_w], W[:, i, half_w:]) for i in range(k)]
    return normal_z, normal_W


# --------------------------------------------------------------------------
if __name__ == "__main__":
    key = jax.random.PRNGKey(0)
    k_param, k_input = jax.random.split(key)

    # Two stride-2 convs take 32x32 -> 8x8; fc[0] must equal filters[-1]*8*8.
    filters = [3, 4, 4]
    fc = [filters[-1] * 8 * 8, 64, 32]    # = [256, 64, 32]
    k = 3
    w_dim = 10  # unused by forward (kept for signature parity)

    raw_params = init_encoder_params(k_param, filters, fc, k)
    prepared = prepare_params(raw_params, k, _net3_weight_dtype())
    x = jax.random.normal(k_input, (2, 3, 32, 32), dtype=jnp.float32)  # NCHW

    (z_loc, z_scale), normal_W = encoder_forward(prepared, x, k=k)
    jax.block_until_ready(z_loc)
    jax.block_until_ready(z_scale)
    for loc_i, scale_i in normal_W:
        jax.block_until_ready(loc_i)
        jax.block_until_ready(scale_i)

    assert z_loc.shape == (2, 10) and z_scale.shape == (2, 10)
    assert len(normal_W) == k
    assert all(l.shape == (2, 10) and s.shape == (2, 10) for l, s in normal_W)
    assert bool(jnp.all(jnp.isfinite(z_loc))) and bool(jnp.all(jnp.isfinite(z_scale)))
    for loc_i, scale_i in normal_W:
        assert bool(jnp.all(jnp.isfinite(loc_i))) and bool(jnp.all(jnp.isfinite(scale_i)))

    print("KERNEL_OK")
</pallas_src>

<mosaic_0001>
module attributes {stable_mosaic.version = 11 : i64} {
  func.func @_matmul_relu_kernel(%arg0: i32, %arg1: memref<256x28xf32, #tpu.memory_space<vmem>>, %arg2: memref<28x4xf32, #tpu.memory_space<vmem>>, %arg3: memref<256x4xf32, #tpu.memory_space<vmem>>) attributes {dimension_semantics = [#tpu.dimension_semantics<parallel>], iteration_bounds = array<i64: 2>, scalar_prefetch = 0 : i64, scratch_operands = 0 : i64, tpu.core_type = #tpu.core_type<tc>, window_params = [{transform_indices = @transform_0, window_bounds = array<i64: 256, 28>}, {pipeline_mode = #tpu.pipeline_mode<synchronous>, transform_indices = @transform_1, window_bounds = array<i64: 28, 4>}, {transform_indices = @transform_2, window_bounds = array<i64: 256, 4>}]} {
    %c0 = arith.constant 0 : index
    %c0_0 = arith.constant 0 : index
    %0 = vector.load %arg1[%c0, %c0_0] : memref<256x28xf32, #tpu.memory_space<vmem>>, vector<256x28xf32>
    %c0_1 = arith.constant 0 : index
    %c0_2 = arith.constant 0 : index
    %1 = vector.load %arg2[%c0_1, %c0_2] : memref<28x4xf32, #tpu.memory_space<vmem>>, vector<28x4xf32>
    %cst = arith.constant dense<0.000000e+00> : vector<256x4xf32>
    %2 = tpu.matmul %0, %1, %cst {dimension_numbers = #tpu.dot_dimension_numbers<[1], [0], [0], [1], [0, 0, 1, 1], [], []>} : vector<256x28xf32>, vector<28x4xf32>, vector<256x4xf32> -> vector<256x4xf32>
    %cst_3 = arith.constant 0.000000e+00 : f32
    %3 = vector.broadcast %cst_3 : f32 to vector<256x4xf32>
    %4 = arith.maximumf %2, %3 : vector<256x4xf32>
    %c0_4 = arith.constant 0 : index
    %c0_5 = arith.constant 0 : index
    %5 = vector.load %arg3[%c0_4, %c0_5] : memref<256x4xf32, #tpu.memory_space<vmem>>, vector<256x4xf32>
    tpu.vector_store %arg3[%c0_4, %c0_5], %4 {strides = array<i32>} : memref<256x4xf32, #tpu.memory_space<vmem>>, vector<256x4xf32>,
    return
  }
  func.func @transform_0(%arg0: i32) -> (i32, i32) {
    %c0_i32 = arith.constant 0 : i32
    %c0_i32_0 = arith.constant 0 : i32
    return %arg0, %c0_i32 : i32, i32
  }
  func.func @transform_1(%arg0: i32) -> (i32, i32) {
    %c0_i32 = arith.constant 0 : i32
    %c0_i32_0 = arith.constant 0 : i32
    %c0_i32_1 = arith.constant 0 : i32
    return %c0_i32, %c0_i32_0 : i32, i32
  }
  func.func @transform_2(%arg0: i32) -> (i32, i32) {
    %c0_i32 = arith.constant 0 : i32
    %c0_i32_0 = arith.constant 0 : i32
    return %arg0, %c0_i32 : i32, i32
  }
}

module attributes {stable_mosaic.version = 11 : i64} {
  func.func @_matmul_relu_kernel(%arg0: i32, %arg1: memref<128x37xf32, #tpu.memory_space<vmem>>, %arg2: memref<37x4xf32, #tpu.memory_space<vmem>>, %arg3: memref<128x4xf32, #tpu.memory_space<vmem>>) attributes {dimension_semantics = [#tpu.dimension_semantics<parallel>], iteration_bounds = array<i64: 1>, scalar_prefetch = 0 : i64, scratch_operands = 0 : i64, tpu.core_type = #tpu.core_type<tc>, window_params = [{transform_indices = @transform_0, window_bounds = array<i64: 128, 37>}, {pipeline_mode = #tpu.pipeline_mode<synchronous>, transform_indices = @transform_1, window_bounds = array<i64: 37, 4>}, {transform_indices = @transform_2, window_bounds = array<i64: 128, 4>}]} {
    %c0 = arith.constant 0 : index
    %c0_0 = arith.constant 0 : index
    %0 = vector.load %arg1[%c0, %c0_0] : memref<128x37xf32, #tpu.memory_space<vmem>>, vector<128x37xf32>
    %c0_1 = arith.constant 0 : index
    %c0_2 = arith.constant 0 : index
    %1 = vector.load %arg2[%c0_1, %c0_2] : memref<37x4xf32, #tpu.memory_space<vmem>>, vector<37x4xf32>
    %cst = arith.constant dense<0.000000e+00> : vector<128x4xf32>
    %2 = tpu.matmul %0, %1, %cst {dimension_numbers = #tpu.dot_dimension_numbers<[1], [0], [0], [1], [0, 0, 1, 1], [], []>} : vector<128x37xf32>, vector<37x4xf32>, vector<128x4xf32> -> vector<128x4xf32>
    %cst_3 = arith.constant 0.000000e+00 : f32
    %3 = vector.broadcast %cst_3 : f32 to vector<128x4xf32>
    %4 = arith.maximumf %2, %3 : vector<128x4xf32>
    %c0_4 = arith.constant 0 : index
    %c0_5 = arith.constant 0 : index
    %5 = vector.load %arg3[%c0_4, %c0_5] : memref<128x4xf32, #tpu.memory_space<vmem>>, vector<128x4xf32>
    tpu.vector_store %arg3[%c0_4, %c0_5], %4 {strides = array<i32>} : memref<128x4xf32, #tpu.memory_space<vmem>>, vector<128x4xf32>,
    return
  }
  func.func @transform_0(%arg0: i32) -> (i32, i32) {
    %c0_i32 = arith.constant 0 : i32
    %c0_i32_0 = arith.constant 0 : i32
    return %arg0, %c0_i32 : i32, i32
  }
  func.func @transform_1(%arg0: i32) -> (i32, i32) {
    %c0_i32 = arith.constant 0 : i32
    %c0_i32_0 = arith.constant 0 : i32
    %c0_i32_1 = arith.constant 0 : i32
    return %c0_i32, %c0_i32_0 : i32, i32
  }
  func.func @transform_2(%arg0: i32) -> (i32, i32) {
    %c0_i32 = arith.constant 0 : i32
    %c0_i32_0 = arith.constant 0 : i32
    return %arg0, %c0_i32 : i32, i32
  }
}

module attributes {stable_mosaic.version = 11 : i64} {
  func.func @_fused_fc_kernel(%arg0: i32, %arg1: memref<8x256xf32, #tpu.memory_space<vmem>>, %arg2: memref<256x64xf32, #tpu.memory_space<vmem>>, %arg3: memref<1x64xf32, #tpu.memory_space<vmem>>, %arg4: memref<64x32xf32, #tpu.memory_space<vmem>>, %arg5: memref<1x32xf32, #tpu.memory_space<vmem>>, %arg6: memref<32x20xf32, #tpu.memory_space<vmem>>, %arg7: memref<1x20xf32, #tpu.memory_space<vmem>>, %arg8: memref<256x2048xbf16, #tpu.memory_space<vmem>>, %arg9: memref<1x2048xf32, #tpu.memory_space<vmem>>, %arg10: memref<2048x1024xbf16, #tpu.memory_space<vmem>>, %arg11: memref<1x1024xf32, #tpu.memory_space<vmem>>, %arg12: memref<1024x128xbf16, #tpu.memory_space<vmem>>, %arg13: memref<1x128xf32, #tpu.memory_space<vmem>>, %arg14: memref<128x20xf32, #tpu.memory_space<vmem>>, %arg15: memref<3x20xf32, #tpu.memory_space<vmem>>, %arg16: memref<8x20xf32, #tpu.memory_space<vmem>>, %arg17: memref<3x8x20xf32, #tpu.memory_space<vmem>>) attributes {dimension_semantics = [#tpu.dimension_semantics<arbitrary>], iteration_bounds = array<i64: 1>, scalar_prefetch = 0 : i64, scratch_operands = 0 : i64, tpu.core_type = #tpu.core_type<tc>, window_params = [{pipeline_mode = #tpu.pipeline_mode<synchronous>, transform_indices = @transform_0, window_bounds = array<i64: 8, 256>}, {pipeline_mode = #tpu.pipeline_mode<synchronous>, transform_indices = @transform_1, window_bounds = array<i64: 256, 64>}, {pipeline_mode = #tpu.pipeline_mode<synchronous>, transform_indices = @transform_2, window_bounds = array<i64: 1, 64>}, {pipeline_mode = #tpu.pipeline_mode<synchronous>, transform_indices = @transform_3, window_bounds = array<i64: 64, 32>}, {pipeline_mode = #tpu.pipeline_mode<synchronous>, transform_indices = @transform_4, window_bounds = array<i64: 1, 32>}, {pipeline_mode = #tpu.pipeline_mode<synchronous>, transform_indices = @transform_5, window_bounds = array<i64: 32, 20>}, {pipeline_mode = #tpu.pipeline_mode<synchronous>, transform_indices = @transform_6, window_bounds = array<i64: 1, 20>}, {pipeline_mode = #tpu.pipeline_mode<synchronous>, transform_indices = @transform_7, window_bounds = array<i64: 256, 2048>}, {pipeline_mode = #tpu.pipeline_mode<synchronous>, transform_indices = @transform_8, window_bounds = array<i64: 1, 2048>}, {pipeline_mode = #tpu.pipeline_mode<synchronous>, transform_indices = @transform_9, window_bounds = array<i64: 2048, 1024>}, {pipeline_mode = #tpu.pipeline_mode<synchronous>, transform_indices = @transform_10, window_bounds = array<i64: 1, 1024>}, {pipeline_mode = #tpu.pipeline_mode<synchronous>, transform_indices = @transform_11, window_bounds = array<i64: 1024, 128>}, {pipeline_mode = #tpu.pipeline_mode<synchronous>, transform_indices = @transform_12, window_bounds = array<i64: 1, 128>}, {pipeline_mode = #tpu.pipeline_mode<synchronous>, transform_indices = @transform_13, window_bounds = array<i64: 128, 20>}, {pipeline_mode = #tpu.pipeline_mode<synchronous>, transform_indices = @transform_14, window_bounds = array<i64: 3, 20>}, {pipeline_mode = #tpu.pipeline_mode<synchronous>, transform_indices = @transform_15, window_bounds = array<i64: 8, 20>}, {pipeline_mode = #tpu.pipeline_mode<synchronous>, transform_indices = @transform_16, window_bounds = array<i64: 3, 8, 20>}]} {
    %c0 = arith.constant 0 : index
    %c0_0 = arith.constant 0 : index
    %0 = vector.load %arg1[%c0, %c0_0] : memref<8x256xf32, #tpu.memory_space<vmem>>, vector<8x256xf32>
    %c0_1 = arith.constant 0 : index
    %c0_2 = arith.constant 0 : index
    %1 = vector.load %arg2[%c0_1, %c0_2] : memref<256x64xf32, #tpu.memory_space<vmem>>, vector<256x64xf32>
    %cst = arith.constant dense<0.000000e+00> : vector<8x64xf32>
    %2 = tpu.matmul %0, %1, %cst {dimension_numbers = #tpu.dot_dimension_numbers<[1], [0], [0], [1], [0, 0, 1, 1], [], []>} : vector<8x256xf32>, vector<256x64xf32>, vector<8x64xf32> -> vector<8x64xf32>
    %c0_3 = arith.constant 0 : index
    %c0_4 = arith.constant 0 : index
    %3 = vector.load %arg3[%c0_3, %c0_4] : memref<1x64xf32, #tpu.memory_space<vmem>>, vector<1x64xf32>
    %4 = vector.broadcast %3 : vector<1x64xf32> to vector<8x64xf32>
    %5 = arith.addf %2, %4 : vector<8x64xf32>
    %cst_5 = arith.constant 0.000000e+00 : f32
    %6 = vector.broadcast %cst_5 : f32 to vector<8x64xf32>
    %7 = arith.maximumf %5, %6 : vector<8x64xf32>
    %c0_6 = arith.constant 0 : index
    %c0_7 = arith.constant 0 : index
    %8 = vector.load %arg4[%c0_6, %c0_7] : memref<64x32xf32, #tpu.memory_space<vmem>>, vector<64x32xf32>
    %cst_8 = arith.constant dense<0.000000e+00> : vector<8x32xf32>
    %9 = tpu.matmul %7, %8, %cst_8 {dimension_numbers = #tpu.dot_dimension_numbers<[1], [0], [0], [1], [0, 0, 1, 1], [], []>} : vector<8x64xf32>, vector<64x32xf32>, vector<8x32xf32> -> vector<8x32xf32>
    %c0_9 = arith.constant 0 : index
    %c0_10 = arith.constant 0 : index
    %10 = vector.load %arg5[%c0_9, %c0_10] : memref<1x32xf32, #tpu.memory_space<vmem>>, vector<1x32xf32>
    %11 = vector.broadcast %10 : vector<1x32xf32> to vector<8x32xf32>
    %12 = arith.addf %9, %11 : vector<8x32xf32>
    %cst_11 = arith.constant 0.000000e+00 : f32
    %13 = vector.broadcast %cst_11 : f32 to vector<8x32xf32>
    %14 = arith.maximumf %12, %13 : vector<8x32xf32>
    %c0_12 = arith.constant 0 : index
    %c0_13 = arith.constant 0 : index
    %15 = vector.load %arg6[%c0_12, %c0_13] : memref<32x20xf32, #tpu.memory_space<vmem>>, vector<32x20xf32>
    %cst_14 = arith.constant dense<0.000000e+00> : vector<8x20xf32>
    %16 = tpu.matmul %14, %15, %cst_14 {dimension_numbers = #tpu.dot_dimension_numbers<[1], [0], [0], [1], [0, 0, 1, 1], [], []>} : vector<8x32xf32>, vector<32x20xf32>, vector<8x20xf32> -> vector<8x20xf32>
    %c0_15 = arith.constant 0 : index
    %c0_16 = arith.constant 0 : index
    %17 = vector.load %arg7[%c0_15, %c0_16] : memref<1x20xf32, #tpu.memory_space<vmem>>, vector<1x20xf32>
    %18 = vector.broadcast %17 : vector<1x20xf32> to vector<8x20xf32>
    %19 = arith.addf %16, %18 : vector<8x20xf32>
    %c0_17 = arith.constant 0 : index
    %c0_18 = arith.constant 0 : index
    %20 = vector.load %arg16[%c0_17, %c0_18] : memref<8x20xf32, #tpu.memory_space<vmem>>, vector<8x20xf32>
    tpu.vector_store %arg16[%c0_17, %c0_18], %19 {strides = array<i32>} : memref<8x20xf32, #tpu.memory_space<vmem>>, vector<8x20xf32>,
    %21 = arith.truncf %0 : vector<8x256xf32> to vector<8x256xbf16>
    %c0_19 = arith.constant 0 : index
    %c0_20 = arith.constant 0 : index
    %22 = vector.load %arg8[%c0_19, %c0_20] : memref<256x2048xbf16, #tpu.memory_space<vmem>>, vector<256x2048xbf16>
    %cst_21 = arith.constant dense<0.000000e+00> : vector<8x2048xf32>
    %23 = tpu.matmul %21, %22, %cst_21 {dimension_numbers = #tpu.dot_dimension_numbers<[1], [0], [0], [1], [0, 0, 1, 1], [], []>} : vector<8x256xbf16>, vector<256x2048xbf16>, vector<8x2048xf32> -> vector<8x2048xf32>
    %c0_22 = arith.constant 0 : index
    %c0_23 = arith.constant 0 : index
    %24 = vector.load %arg9[%c0_22, %c0_23] : memref<1x2048xf32, #tpu.memory_space<vmem>>, vector<1x2048xf32>
    %25 = vector.broadcast %24 : vector<1x2048xf32> to vector<8x2048xf32>
    %26 = arith.addf %23, %25 : vector<8x2048xf32>
    %cst_24 = arith.constant 0.000000e+00 : f32
    %27 = vector.broadcast %cst_24 : f32 to vector<8x2048xf32>
    %28 = arith.maximumf %26, %27 : vector<8x2048xf32>
    %29 = arith.truncf %28 : vector<8x2048xf32> to vector<8x2048xbf16>
    %c0_25 = arith.constant 0 : index
    %c0_26 = arith.constant 0 : index
    %30 = vector.load %arg10[%c0_25, %c0_26] : memref<2048x1024xbf16, #tpu.memory_space<vmem>>, vector<2048x1024xbf16>
    %cst_27 = arith.constant dense<0.000000e+00> : vector<8x1024xf32>
    %31 = tpu.matmul %29, %30, %cst_27 {dimension_numbers = #tpu.dot_dimension_numbers<[1], [0], [0], [1], [0, 0, 1, 1], [], []>} : vector<8x2048xbf16>, vector<2048x1024xbf16>, vector<8x1024xf32> -> vector<8x1024xf32>
    %c0_28 = arith.constant 0 : index
    %c0_29 = arith.constant 0 : index
    %32 = vector.load %arg11[%c0_28, %c0_29] : memref<1x1024xf32, #tpu.memory_space<vmem>>, vector<1x1024xf32>
    %33 = vector.broadcast %32 : vector<1x1024xf32> to vector<8x1024xf32>
    %34 = arith.addf %31, %33 : vector<8x1024xf32>
    %cst_30 = arith.constant 0.000000e+00 : f32
    %35 = vector.broadcast %cst_30 : f32 to vector<8x1024xf32>
    %36 = arith.maximumf %34, %35 : vector<8x1024xf32>
    %37 = arith.truncf %36 : vector<8x1024xf32> to vector<8x1024xbf16>
    %c0_31 = arith.constant 0 : index
    %c0_32 = arith.constant 0 : index
    %38 = vector.load %arg12[%c0_31, %c0_32] : memref<1024x128xbf16, #tpu.memory_space<vmem>>, vector<1024x128xbf16>
    %cst_33 = arith.constant dense<0.000000e+00> : vector<8x128xf32>
    %39 = tpu.matmul %37, %38, %cst_33 {dimension_numbers = #tpu.dot_dimension_numbers<[1], [0], [0], [1], [0, 0, 1, 1], [], []>} : vector<8x1024xbf16>, vector<1024x128xbf16>, vector<8x128xf32> -> vector<8x128xf32>
    %c0_34 = arith.constant 0 : index
    %c0_35 = arith.constant 0 : index
    %40 = vector.load %arg13[%c0_34, %c0_35] : memref<1x128xf32, #tpu.memory_space<vmem>>, vector<1x128xf32>
    %41 = vector.broadcast %40 : vector<1x128xf32> to vector<8x128xf32>
    %42 = arith.addf %39, %41 : vector<8x128xf32>
    %cst_36 = arith.constant 0.000000e+00 : f32
    %43 = vector.broadcast %cst_36 : f32 to vector<8x128xf32>
    %44 = arith.maximumf %42, %43 : vector<8x128xf32>
    %c0_37 = arith.constant 0 : index
    %c0_38 = arith.constant 0 : index
    %45 = vector.load %arg14[%c0_37, %c0_38] : memref<128x20xf32, #tpu.memory_space<vmem>>, vector<128x20xf32>
    %cst_39 = arith.constant dense<0.000000e+00> : vector<8x20xf32>
    %46 = tpu.matmul %44, %45, %cst_39 {dimension_numbers = #tpu.dot_dimension_numbers<[1], [0], [0], [1], [0, 0, 1, 1], [], []>} : vector<8x128xf32>, vector<128x20xf32>, vector<8x20xf32> -> vector<8x20xf32>
    %c0_40 = arith.constant 0 : index
    %c0_41 = arith.constant 0 : index
    %47 = vector.load %arg15[%c0_40, %c0_41] : memref<3x20xf32, #tpu.memory_space<vmem>>, vector<3x20xf32>
    %48 = vector.extract_strided_slice %47 {offsets = [0, 0], sizes = [1, 20], strides = [1, 1]} : vector<3x20xf32> to vector<1x20xf32>
    %49 = vector.broadcast %48 : vector<1x20xf32> to vector<8x20xf32>
    %50 = arith.addf %46, %49 : vector<8x20xf32>
    %c0_42 = arith.constant 0 : index
    %c0_43 = arith.constant 0 : index
    %c0_44 = arith.constant 0 : index
    %51 = vector.load %arg17[%c0_42, %c0_43, %c0_44] : memref<3x8x20xf32, #tpu.memory_space<vmem>>, vector<1x8x20xf32>
    %52 = vector.shape_cast %51 : vector<1x8x20xf32> to vector<8x20xf32>
    %53 = vector.shape_cast %50 : vector<8x20xf32> to vector<1x8x20xf32>
    tpu.vector_store %arg17[%c0_42, %c0_43, %c0_44], %53 {strides = array<i32>} : memref<3x8x20xf32, #tpu.memory_space<vmem>>, vector<1x8x20xf32>,
    %54 = vector.extract_strided_slice %47 {offsets = [1, 0], sizes = [1, 20], strides = [1, 1]} : vector<3x20xf32> to vector<1x20xf32>
    %55 = vector.broadcast %54 : vector<1x20xf32> to vector<8x20xf32>
    %56 = arith.addf %46, %55 : vector<8x20xf32>
    %c1 = arith.constant 1 : index
    %c0_45 = arith.constant 0 : index
    %c0_46 = arith.constant 0 : index
    %57 = vector.load %arg17[%c1, %c0_45, %c0_46] : memref<3x8x20xf32, #tpu.memory_space<vmem>>, vector<1x8x20xf32>
    %58 = vector.shape_cast %57 : vector<1x8x20xf32> to vector<8x20xf32>
    %59 = vector.shape_cast %56 : vector<8x20xf32> to vector<1x8x20xf32>
    tpu.vector_store %arg17[%c1, %c0_45, %c0_46], %59 {strides = array<i32>} : memref<3x8x20xf32, #tpu.memory_space<vmem>>, vector<1x8x20xf32>,
    %60 = vector.extract_strided_slice %47 {offsets = [2, 0], sizes = [1, 20], strides = [1, 1]} : vector<3x20xf32> to vector<1x20xf32>
    %61 = vector.broadcast %60 : vector<1x20xf32> to vector<8x20xf32>
    %62 = arith.addf %46, %61 : vector<8x20xf32>
    %c2 = arith.constant 2 : index
    %c0_47 = arith.constant 0 : index
    %c0_48 = arith.constant 0 : index
    %63 = vector.load %arg17[%c2, %c0_47, %c0_48] : memref<3x8x20xf32, #tpu.memory_space<vmem>>, vector<1x8x20xf32>
    %64 = vector.shape_cast %63 : vector<1x8x20xf32> to vector<8x20xf32>
    %65 = vector.shape_cast %62 : vector<8x20xf32> to vector<1x8x20xf32>
    tpu.vector_store %arg17[%c2, %c0_47, %c0_48], %65 {strides = array<i32>} : memref<3x8x20xf32, #tpu.memory_space<vmem>>, vector<1x8x20xf32>,
    return
  }
  func.func @transform_0(%arg0: i32) -> (i32, i32) {
    %c0_i32 = arith.constant 0 : i32
    %c0_i32_0 = arith.constant 0 : i32
    %c0_i32_1 = arith.constant 0 : i32
    return %c0_i32, %c0_i32_0 : i32, i32
  }
  func.func @transform_1(%arg0: i32) -> (i32, i32) {
    %c0_i32 = arith.constant 0 : i32
    %c0_i32_0 = arith.constant 0 : i32
    %c0_i32_1 = arith.constant 0 : i32
    return %c0_i32, %c0_i32_0 : i32, i32
  }
  func.func @transform_2(%arg0: i32) -> (i32, i32) {
    %c0_i32 = arith.constant 0 : i32
    %c0_i32_0 = arith.constant 0 : i32
    %c0_i32_1 = arith.constant 0 : i32
    return %c0_i32, %c0_i32_0 : i32, i32
  }
  func.func @transform_3(%arg0: i32) -> (i32, i32) {
    %c0_i32 = arith.constant 0 : i32
    %c0_i32_0 = arith.constant 0 : i32
    %c0_i32_1 = arith.constant 0 : i32
    return %c0_i32, %c0_i32_0 : i32, i32
  }
  func.func @transform_4(%arg0: i32) -> (i32, i32) {
    %c0_i32 = arith.constant 0 : i32
    %c0_i32_0 = arith.constant 0 : i32
    %c0_i32_1 = arith.constant 0 : i32
    return %c0_i32, %c0_i32_0 : i32, i32
  }
  func.func @transform_5(%arg0: i32) -> (i32, i32) {
    %c0_i32 = arith.constant 0 : i32
    %c0_i32_0 = arith.constant 0 : i32
    %c0_i32_1 = arith.constant 0 : i32
    return %c0_i32, %c0_i32_0 : i32, i32
  }
  func.func @transform_6(%arg0: i32) -> (i32, i32) {
    %c0_i32 = arith.constant 0 : i32
    %c0_i32_0 = arith.constant 0 : i32
    %c0_i32_1 = arith.constant 0 : i32
    return %c0_i32, %c0_i32_0 : i32, i32
  }
  func.func @transform_7(%arg0: i32) -> (i32, i32) {
    %c0_i32 = arith.constant 0 : i32
    %c0_i32_0 = arith.constant 0 : i32
    %c0_i32_1 = arith.constant 0 : i32
    return %c0_i32, %c0_i32_0 : i32, i32
  }
  func.func @transform_8(%arg0: i32) -> (i32, i32) {
    %c0_i32 = arith.constant 0 : i32
    %c0_i32_0 = arith.constant 0 : i32
    %c0_i32_1 = arith.constant 0 : i32
    return %c0_i32, %c0_i32_0 : i32, i32
  }
  func.func @transform_9(%arg0: i32) -> (i32, i32) {
    %c0_i32 = arith.constant 0 : i32
    %c0_i32_0 = arith.constant 0 : i32
    %c0_i32_1 = arith.constant 0 : i32
    return %c0_i32, %c0_i32_0 : i32, i32
  }
  func.func @transform_10(%arg0: i32) -> (i32, i32) {
    %c0_i32 = arith.constant 0 : i32
    %c0_i32_0 = arith.constant 0 : i32
    %c0_i32_1 = arith.constant 0 : i32
    return %c0_i32, %c0_i32_0 : i32, i32
  }
  func.func @transform_11(%arg0: i32) -> (i32, i32) {
    %c0_i32 = arith.constant 0 : i32
    %c0_i32_0 = arith.constant 0 : i32
    %c0_i32_1 = arith.constant 0 : i32
    return %c0_i32, %c0_i32_0 : i32, i32
  }
  func.func @transform_12(%arg0: i32) -> (i32, i32) {
    %c0_i32 = arith.constant 0 : i32
    %c0_i32_0 = arith.constant 0 : i32
    %c0_i32_1 = arith.constant 0 : i32
    return %c0_i32, %c0_i32_0 : i32, i32
  }
  func.func @transform_13(%arg0: i32) -> (i32, i32) {
    %c0_i32 = arith.constant 0 : i32
    %c0_i32_0 = arith.constant 0 : i32
    %c0_i32_1 = arith.constant 0 : i32
    return %c0_i32, %c0_i32_0 : i32, i32
  }
  func.func @transform_14(%arg0: i32) -> (i32, i32) {
    %c0_i32 = arith.constant 0 : i32
    %c0_i32_0 = arith.constant 0 : i32
    %c0_i32_1 = arith.constant 0 : i32
    return %c0_i32, %c0_i32_0 : i32, i32
  }
  func.func @transform_15(%arg0: i32) -> (i32, i32) {
    %c0_i32 = arith.constant 0 : i32
    %c0_i32_0 = arith.constant 0 : i32
    %c0_i32_1 = arith.constant 0 : i32
    return %c0_i32, %c0_i32_0 : i32, i32
  }
  func.func @transform_16(%arg0: i32) -> (i32, i32, i32) {
    %c0_i32 = arith.constant 0 : i32
    %c0_i32_0 = arith.constant 0 : i32
    %c0_i32_1 = arith.constant 0 : i32
    %c0_i32_2 = arith.constant 0 : i32
    return %c0_i32, %c0_i32_0, %c0_i32_1 : i32, i32, i32
  }
}

</mosaic_0001>

<bundles_post_ra>
// kernel: encoder_forward.3
= control target key start
LH: loop header
LB: loop body
LE: loop exit
PB: predicated region body
PF: predicated region fallthrough
CT: control target
= control target key end

     0   :  { %s605_s9 = smov 0   ;;  %s773_s0 = inlined_call_operand.vmem [shape: f32[512,28], index: 0, kind: input, shape index: {}]   ;;  %s774_s1 = inlined_call_operand.vmem [shape: f32[28,4], index: 1, kind: input, shape index: {}]   ;;  %s775_s2 = inlined_call_operand.vmem [shape: f32[512,4], index: 2, kind: output, shape index: {}]  }
   0x1 LB: > { %s518_s10 = sadd.s32 4294967295, %s588_s9   ;;  %p522_p0 = scmp.ge.s32.totalorder %s588_s9, 1  ;;  %s588_s9 = sphi %s605_s9, %s12_s9  }
   0x2   : > { %p113_p1 = scmp.lt.s32.totalorder %s588_s9, 3 }
   0x4   : > { %p114_p2 = pnand %p522_p0, %p113_p1 }
   0x5   : > { %s523_s15 = sshll.u32 (!%p114_p2), %s518_s10, 5 }
   0x6   : > { %117 = sbr.rel (%p114_p2) target bundleno = 211 (0xd3), region = 28  ;;  %p136_p3 = scmp.lt.s32.totalorder (!%p114_p2), %s523_s15, 63 }
   0xb   : > { %v182_v0 = vld [vmem:[%s774_s1 + $0x18] sm:$0xf]  ;;  %vm280_vm0 = vcmask 1043456   ;;  %v181_v1 = vld [vmem:[%s774_s1 + $0x10] sm:$0xff]  ;;  %v180_v2 = vld [vmem:[%s774_s1 + $0x8] sm:$0xff]  ;;  %s777_s15 = smov (!%p136_p3, %s523_s15), 63 }
   0xc   : > { %563 = vmatpush.msk.msra.mxu2 %vm280_vm0, %v182_v0  ;;  %564 = vmatpush.msk.msra.mxu3 %vm280_vm0, %v182_v0  ;;  %v179_v3 = vld [vmem:[%s774_s1] sm:$0xff]  ;;  %s524_s20 = sshll.u32 %s777_s15, 3  ;;  %vm183_vm1 = vcmask 228352   ;;  %vm429_vm2 = vcmask 31744  }
   0xd   : > { %527 = vmatpush.msk.msra.mxu0 %vm280_vm0, %v182_v0  ;;  %562 = vmatpush.msk.msra.mxu1 %vm280_vm0, %v182_v0  ;;  %s633_s23 = scalar_lea.vmem %s773_s0, %s524_s20  ;;  %s704_s26 = scalar_lea.vmem %s775_s2, %s524_s20 }
   0xe   : > { %566 = vmatpush.msra.mxu2 %v181_v1  ;;  %567 = vmatpush.msra.mxu3 %v181_v1  ;;  %v163_v4 = vld [vmem:[%s633_s23 + $0x80] sm:$0xff]  ;;  %v164_v8 = vld [vmem:[%s633_s23 + $0x88] sm:$0xff]  ;;  %v165_v12 = vld [vmem:[%s633_s23 + $0x90] sm:$0xff] }
   0xf   : > { %297 = vmatpush.msra.mxu0 %v181_v1  ;;  %565 = vmatpush.msra.mxu1 %v181_v1  ;;  %v171_v5 = vld [vmem:[%s633_s23 + $0xc0] sm:$0xff]  ;;  %v172_v9 = vld [vmem:[%s633_s23 + $0xc8] sm:$0xff]  ;;  %v173_v13 = vld [vmem:[%s633_s23 + $0xd0] sm:$0xff] }
  0x10   : > { %569 = vmatpush.msra.mxu2 %v180_v2  ;;  %570 = vmatpush.msra.mxu3 %v180_v2  ;;  %v147_v6 = vld [vmem:[%s633_s23] sm:$0xff]  ;;  %v148_v10 = vld [vmem:[%s633_s23 + $0x8] sm:$0xff]  ;;  %v149_v14 = vld [vmem:[%s633_s23 + $0x10] sm:$0xff] }
  0x11   : > { %298 = vmatpush.msra.mxu0 %v180_v2  ;;  %568 = vmatpush.msra.mxu1 %v180_v2  ;;  %v155_v7 = vld [vmem:[%s633_s23 + $0x40] sm:$0xff]  ;;  %v156_v11 = vld [vmem:[%s633_s23 + $0x48] sm:$0xff]  ;;  %v157_v15 = vld [vmem:[%s633_s23 + $0x50] sm:$0xff] }
  0x12   : > { %572 = vmatpush.msra.mxu2 %v179_v3  ;;  %573 = vmatpush.msra.mxu3 %v179_v3  ;;  %v166_v16 = vld [vmem:[%s633_s23 + $0x98] sm:$0xff]  ;;  %v167_v20 = vld [vmem:[%s633_s23 + $0xa0] sm:$0xff]  ;;  %v168_v24 = vld [vmem:[%s633_s23 + $0xa8] sm:$0xff] }
  0x13   : > { %544 = vmatmul.msk.f32.vlgmr.msra.gmra.mxu2 %vm183_vm1, %v163_v4  ;;  %552 = vmatmul.msk.f32.vlgmr.msra.gmra.mxu3 %vm183_vm1, %v171_v5  ;;  %v174_v17 = vld [vmem:[%s633_s23 + $0xd8] sm:$0xff]  ;;  %v175_v21 = vld [vmem:[%s633_s23 + $0xe0] sm:$0xff]  ;;  %v176_v25 = vld [vmem:[%s633_s23 + $0xe8] sm:$0xff] }
  0x14   : > { %299 = vmatpush.msra.mxu0 %v179_v3  ;;  %571 = vmatpush.msra.mxu1 %v179_v3  ;;  %v150_v18 = vld [vmem:[%s633_s23 + $0x18] sm:$0xff]  ;;  %v151_v22 = vld [vmem:[%s633_s23 + $0x20] sm:$0xff]  ;;  %v152_v26 = vld [vmem:[%s633_s23 + $0x28] sm:$0xff] }
  0x15   : > { %528 = vmatmul.msk.f32.vlgmr.msra.gmra.mxu0 %vm183_vm1, %v147_v6  ;;  %536 = vmatmul.msk.f32.vlgmr.msra.gmra.mxu1 %vm183_vm1, %v155_v7  ;;  %v158_v19 = vld [vmem:[%s633_s23 + $0x58] sm:$0xff]  ;;  %v159_v23 = vld [vmem:[%s633_s23 + $0x60] sm:$0xff]  ;;  %v160_v27 = vld [vmem:[%s633_s23 + $0x68] sm:$0xff] }
  0x16   : > { %v169_v28 = vld [vmem:[%s633_s23 + $0xb0] sm:$0xff]  ;;  %v170_v32 = vld [vmem:[%s633_s23 + $0xb8] sm:$0xff] }
  0x17   : > { %v177_v29 = vld [vmem:[%s633_s23 + $0xf0] sm:$0xff]  ;;  %v178_v33 = vld [vmem:[%s633_s23 + $0xf8] sm:$0xff] }
  0x18   : > { %v153_v30 = vld [vmem:[%s633_s23 + $0x30] sm:$0xff]  ;;  %v154_v34 = vld [vmem:[%s633_s23 + $0x38] sm:$0xff] }
  0x19   : > { %v161_v31 = vld [vmem:[%s633_s23 + $0x70] sm:$0xff]  ;;  %v162_v35 = vld [vmem:[%s633_s23 + $0x78] sm:$0xff] }
  0x1b   : > { %545 = vmatmul.msk.f32.gmra.mxu2 %vm183_vm1, %v164_v8  ;;  %553 = vmatmul.msk.f32.gmra.mxu3 %vm183_vm1, %v172_v9 }
  0x1d   : > { %529 = vmatmul.msk.f32.gmra.mxu0 %vm183_vm1, %v148_v10  ;;  %537 = vmatmul.msk.f32.gmra.mxu1 %vm183_vm1, %v156_v11 }
  0x23   : > { %546 = vmatmul.msk.f32.gmra.mxu2 %vm183_vm1, %v165_v12  ;;  %554 = vmatmul.msk.f32.gmra.mxu3 %vm183_vm1, %v173_v13 }
  0x25   : > { %530 = vmatmul.msk.f32.gmra.mxu0 %vm183_vm1, %v149_v14  ;;  %538 = vmatmul.msk.f32.gmra.mxu1 %vm183_vm1, %v157_v15 }
  0x2b   : > { %547 = vmatmul.msk.f32.gmra.mxu2 %vm183_vm1, %v166_v16  ;;  %555 = vmatmul.msk.f32.gmra.mxu3 %vm183_vm1, %v174_v17 }
  0x2d   : > { %531 = vmatmul.msk.f32.gmra.mxu0 %vm183_vm1, %v150_v18  ;;  %539 = vmatmul.msk.f32.gmra.mxu1 %vm183_vm1, %v158_v19 }
  0x33   : > { %548 = vmatmul.msk.f32.gmra.mxu2 %vm183_vm1, %v167_v20  ;;  %556 = vmatmul.msk.f32.gmra.mxu3 %vm183_vm1, %v175_v21 }
  0x35   : > { %532 = vmatmul.msk.f32.gmra.mxu0 %vm183_vm1, %v151_v22  ;;  %540 = vmatmul.msk.f32.gmra.mxu1 %vm183_vm1, %v159_v23 }
  0x3b   : > { %549 = vmatmul.msk.f32.gmra.mxu2 %vm183_vm1, %v168_v24  ;;  %557 = vmatmul.msk.f32.gmra.mxu3 %vm183_vm1, %v176_v25 }
  0x3d   : > { %533 = vmatmul.msk.f32.gmra.mxu0 %vm183_vm1, %v152_v26  ;;  %541 = vmatmul.msk.f32.gmra.mxu1 %vm183_vm1, %v160_v27 }
  0x43   : > { %550 = vmatmul.msk.f32.gmra.mxu2 %vm183_vm1, %v169_v28  ;;  %558 = vmatmul.msk.f32.gmra.mxu3 %vm183_vm1, %v177_v29 }
  0x45   : > { %534 = vmatmul.msk.f32.gmra.mxu0 %vm183_vm1, %v153_v30  ;;  %542 = vmatmul.msk.f32.gmra.mxu1 %vm183_vm1, %v161_v31 }
  0x4b   : > { %551 = vmatmul.msk.f32.gmra.mxu2 %vm183_vm1, %v170_v32  ;;  %559 = vmatmul.msk.f32.gmra.mxu3 %vm183_vm1, %v178_v33 }
  0x4d   : > { %535 = vmatmul.msk.f32.gmra.mxu0 %vm183_vm1, %v154_v34  ;;  %543 = vmatmul.msk.f32.gmra.mxu1 %vm183_vm1, %v162_v35 }
  0x92   : > { %v301_v36 = vpop.f32.mrf.mxu0  ;;  %v325_v37 = vpop.f32.mrf.mxu1 }
  0x93   : > { %v397_v38 = vmax.f32 %v301_v36, 0.0  ;;  %v405_v39 = vmax.f32 %v325_v37, 0.0 }
  0x95   : > { %430 = vst.msk [vmem:[%s704_s26] sm:$0xff] %vm429_vm2, %v397_v38 }
  0x96   : > { %438 = vst.msk [vmem:[%s704_s26 + $0x40] sm:$0xff] %vm429_vm2, %v405_v39  ;;  %v349_v40 = vpop.f32.mrf.mxu2  ;;  %v373_v41 = vpop.f32.mrf.mxu3 }
  0x97   : > { %v413_v42 = vmax.f32 %v349_v40, 0.0  ;;  %v421_v43 = vmax.f32 %v373_v41, 0.0 }
  0x99   : > { %446 = vst.msk [vmem:[%s704_s26 + $0x80] sm:$0xff] %vm429_vm2, %v413_v42 }
  0x9a   : > { %454 = vst.msk [vmem:[%s704_s26 + $0xc0] sm:$0xff] %vm429_vm2, %v421_v43  ;;  %v304_v44 = vpop.f32.mrf.mxu0  ;;  %v328_v45 = vpop.f32.mrf.mxu1 }
  0x9b   : > { %v398_v46 = vmax.f32 %v304_v44, 0.0  ;;  %v406_v47 = vmax.f32 %v328_v45, 0.0 }
  0x9d   : > { %431 = vst.msk [vmem:[%s704_s26 + $0x8] sm:$0xff] %vm429_vm2, %v398_v46 }
  0x9e   : > { %439 = vst.msk [vmem:[%s704_s26 + $0x48] sm:$0xff] %vm429_vm2, %v406_v47  ;;  %v352_v48 = vpop.f32.mrf.mxu2  ;;  %v376_v49 = vpop.f32.mrf.mxu3 }
  0x9f   : > { %v414_v50 = vmax.f32 %v352_v48, 0.0  ;;  %v422_v51 = vmax.f32 %v376_v49, 0.0 }
  0xa1   : > { %447 = vst.msk [vmem:[%s704_s26 + $0x88] sm:$0xff] %vm429_vm2, %v414_v50 }
  0xa2   : > { %455 = vst.msk [vmem:[%s704_s26 + $0xc8] sm:$0xff] %vm429_vm2, %v422_v51  ;;  %v307_v52 = vpop.f32.mrf.mxu0  ;;  %v331_v53 = vpop.f32.mrf.mxu1 }
  0xa3   : > { %v399_v54 = vmax.f32 %v307_v52, 0.0  ;;  %v407_v55 = vmax.f32 %v331_v53, 0.0 }
  0xa5   : > { %432 = vst.msk [vmem:[%s704_s26 + $0x10] sm:$0xff] %vm429_vm2, %v399_v54 }
  0xa6   : > { %440 = vst.msk [vmem:[%s704_s26 + $0x50] sm:$0xff] %vm429_vm2, %v407_v55  ;;  %v355_v56 = vpop.f32.mrf.mxu2  ;;  %v379_v57 = vpop.f32.mrf.mxu3 }
  0xa7   : > { %v415_v58 = vmax.f32 %v355_v56, 0.0  ;;  %v423_v59 = vmax.f32 %v379_v57, 0.0 }
  0xa9   : > { %448 = vst.msk [vmem:[%s704_s26 + $0x90] sm:$0xff] %vm429_vm2, %v415_v58 }
  0xaa   : > { %456 = vst.msk [vmem:[%s704_s26 + $0xd0] sm:$0xff] %vm429_vm2, %v423_v59  ;;  %v310_v60 = vpop.f32.mrf.mxu0  ;;  %v334_v61 = vpop.f32.mrf.mxu1 }
  0xab   : > { %v400_v62 = vmax.f32 %v310_v60, 0.0  ;;  %v408_v63 = vmax.f32 %v334_v61, 0.0 }
  0xad   : > { %433 = vst.msk [vmem:[%s704_s26 + $0x18] sm:$0xff] %vm429_vm2, %v400_v62 }
  0xae   : > { %441 = vst.msk [vmem:[%s704_s26 + $0x58] sm:$0xff] %vm429_vm2, %v408_v63  ;;  %v358_v0 = vpop.f32.mrf.mxu2  ;;  %v382_v1 = vpop.f32.mrf.mxu3 }
  0xaf   : > { %v416_v2 = vmax.f32 %v358_v0, 0.0  ;;  %v424_v3 = vmax.f32 %v382_v1, 0.0 }
  0xb1   : > { %449 = vst.msk [vmem:[%s704_s26 + $0x98] sm:$0xff] %vm429_vm2, %v416_v2 }
  0xb2   : > { %457 = vst.msk [vmem:[%s704_s26 + $0xd8] sm:$0xff] %vm429_vm2, %v424_v3  ;;  %v313_v4 = vpop.f32.mrf.mxu0  ;;  %v337_v5 = vpop.f32.mrf.mxu1 }
  0xb3   : > { %v401_v6 = vmax.f32 %v313_v4, 0.0  ;;  %v409_v7 = vmax.f32 %v337_v5, 0.0 }
  0xb5   : > { %434 = vst.msk [vmem:[%s704_s26 + $0x20] sm:$0xff] %vm429_vm2, %v401_v6 }
  0xb6   : > { %442 = vst.msk [vmem:[%s704_s26 + $0x60] sm:$0xff] %vm429_vm2, %v409_v7  ;;  %v361_v8 = vpop.f32.mrf.mxu2  ;;  %v385_v9 = vpop.f32.mrf.mxu3 }
  0xb7   : > { %v417_v10 = vmax.f32 %v361_v8, 0.0  ;;  %v425_v11 = vmax.f32 %v385_v9, 0.0 }
  0xb9   : > { %450 = vst.msk [vmem:[%s704_s26 + $0xa0] sm:$0xff] %vm429_vm2, %v417_v10 }
  0xba   : > { %458 = vst.msk [vmem:[%s704_s26 + $0xe0] sm:$0xff] %vm429_vm2, %v425_v11  ;;  %v316_v12 = vpop.f32.mrf.mxu0  ;;  %v340_v13 = vpop.f32.mrf.mxu1 }
  0xbb   : > { %v402_v14 = vmax.f32 %v316_v12, 0.0  ;;  %v410_v15 = vmax.f32 %v340_v13, 0.0 }
  0xbd   : > { %435 = vst.msk [vmem:[%s704_s26 + $0x28] sm:$0xff] %vm429_vm2, %v402_v14 }
  0xbe   : > { %443 = vst.msk [vmem:[%s704_s26 + $0x68] sm:$0xff] %vm429_vm2, %v410_v15  ;;  %v364_v16 = vpop.f32.mrf.mxu2  ;;  %v388_v17 = vpop.f32.mrf.mxu3 }
  0xbf   : > { %v418_v18 = vmax.f32 %v364_v16, 0.0  ;;  %v426_v19 = vmax.f32 %v388_v17, 0.0 }
  0xc1   : > { %451 = vst.msk [vmem:[%s704_s26 + $0xa8] sm:$0xff] %vm429_vm2, %v418_v18 }
  0xc2   : > { %459 = vst.msk [vmem:[%s704_s26 + $0xe8] sm:$0xff] %vm429_vm2, %v426_v19  ;;  %v319_v20 = vpop.f32.mrf.mxu0  ;;  %v343_v21 = vpop.f32.mrf.mxu1 }
  0xc3   : > { %v403_v22 = vmax.f32 %v319_v20, 0.0  ;;  %v411_v23 = vmax.f32 %v343_v21, 0.0 }
  0xc5   : > { %436 = vst.msk [vmem:[%s704_s26 + $0x30] sm:$0xff] %vm429_vm2, %v403_v22 }
  0xc6   : > { %444 = vst.msk [vmem:[%s704_s26 + $0x70] sm:$0xff] %vm429_vm2, %v411_v23  ;;  %v367_v24 = vpop.f32.mrf.mxu2  ;;  %v391_v25 = vpop.f32.mrf.mxu3 }
  0xc7   : > { %v419_v26 = vmax.f32 %v367_v24, 0.0  ;;  %v427_v27 = vmax.f32 %v391_v25, 0.0 }
  0xc9   : > { %452 = vst.msk [vmem:[%s704_s26 + $0xb0] sm:$0xff] %vm429_vm2, %v419_v26 }
  0xca   : > { %460 = vst.msk [vmem:[%s704_s26 + $0xf0] sm:$0xff] %vm429_vm2, %v427_v27  ;;  %v322_v28 = vpop.f32.mrf.mxu0  ;;  %v346_v29 = vpop.f32.mrf.mxu1 }
  0xcb   : > { %v404_v30 = vmax.f32 %v322_v28, 0.0  ;;  %v412_v31 = vmax.f32 %v346_v29, 0.0 }
  0xcd   : > { %437 = vst.msk [vmem:[%s704_s26 + $0x38] sm:$0xff] %vm429_vm2, %v404_v30 }
  0xce   : > { %445 = vst.msk [vmem:[%s704_s26 + $0x78] sm:$0xff] %vm429_vm2, %v412_v31  ;;  %v370_v32 = vpop.f32.mrf.mxu2  ;;  %v394_v33 = vpop.f32.mrf.mxu3 }
  0xcf   : > { %v420_v34 = vmax.f32 %v370_v32, 0.0  ;;  %v428_v35 = vmax.f32 %v394_v33, 0.0 }
  0xd1   : > { %453 = vst.msk [vmem:[%s704_s26 + $0xb8] sm:$0xff] %vm429_vm2, %v420_v34 }
  0xd2   : > { %461 = vst.msk [vmem:[%s704_s26 + $0xf8] sm:$0xff] %vm429_vm2, %v428_v35 }
  0xd3 PF: > { %s12_s9 = sadd.s32 1, %s588_s9  }
  0xd4   : > { %p9_p4 = scmp.ge.s32.totalorder %s12_s9, 4  }
  0xd6   :  { %11 = sbr.rel (!%p9_p4) target bundleno = 1 (0x1), region = 58 }

// kernel: encoder_forward.4
= control target key start
LH: loop header
LB: loop body
LE: loop exit
PB: predicated region body
PF: predicated region fallthrough
CT: control target
= control target key end

     0   :  { %vm81_vm0 = vcmask 1044480   ;;  %vm32_vm1 = vcmask 302080   ;;  %vm166_vm2 = vcmask 31744   ;;  %s377_s1 = inlined_call_operand.vmem [shape: f32[37,4], index: 1, kind: input, shape index: {}]   ;;  %s378_s0 = inlined_call_operand.vmem [shape: f32[128,37], index: 0, kind: input, shape index: {}]   ;;  %s379_s2 = inlined_call_operand.vmem [shape: f32[128,4], index: 2, kind: output, shape index: {}]  }
   0x1   :  { %v31_v0 = vld [vmem:[%s377_s1 + $0x20] sm:$0x1f]  ;;  %v30_v1 = vld [vmem:[%s377_s1 + $0x18] sm:$0xff]  ;;  %v29_v2 = vld [vmem:[%s377_s1 + $0x10] sm:$0xff] }
   0x2   :  { %205 = vmatpush.msk.msra.mxu2 %vm81_vm0, %v31_v0  ;;  %206 = vmatpush.msk.msra.mxu3 %vm81_vm0, %v31_v0  ;;  %v28_v3 = vld [vmem:[%s377_s1 + $0x8] sm:$0xff]  ;;  %v27_v4 = vld [vmem:[%s377_s1] sm:$0xff]  ;;  %v21_v13 = vld [vmem:[%s378_s0 + $0x50] sm:$0xff] }
   0x3   :  { %187 = vmatpush.msk.msra.mxu0 %vm81_vm0, %v31_v0  ;;  %204 = vmatpush.msk.msra.mxu1 %vm81_vm0, %v31_v0  ;;  %v19_v5 = vld [vmem:[%s378_s0 + $0x40] sm:$0xff]  ;;  %v20_v9 = vld [vmem:[%s378_s0 + $0x48] sm:$0xff]  ;;  %v25_v14 = vld [vmem:[%s378_s0 + $0x70] sm:$0xff] }
   0x4   :  { %208 = vmatpush.msra.mxu2 %v30_v1  ;;  %209 = vmatpush.msra.mxu3 %v30_v1  ;;  %v23_v6 = vld [vmem:[%s378_s0 + $0x60] sm:$0xff]  ;;  %v24_v10 = vld [vmem:[%s378_s0 + $0x68] sm:$0xff]  ;;  %v13_v15 = vld [vmem:[%s378_s0 + $0x10] sm:$0xff] }
   0x5   :  { %97 = vmatpush.msra.mxu0 %v30_v1  ;;  %207 = vmatpush.msra.mxu1 %v30_v1  ;;  %v11_v7 = vld [vmem:[%s378_s0] sm:$0xff]  ;;  %v12_v11 = vld [vmem:[%s378_s0 + $0x8] sm:$0xff]  ;;  %v17_v16 = vld [vmem:[%s378_s0 + $0x30] sm:$0xff] }
   0x6   :  { %211 = vmatpush.msra.mxu2 %v29_v2  ;;  %212 = vmatpush.msra.mxu3 %v29_v2  ;;  %v15_v8 = vld [vmem:[%s378_s0 + $0x20] sm:$0xff]  ;;  %v16_v12 = vld [vmem:[%s378_s0 + $0x28] sm:$0xff]  ;;  %v22_v17 = vld [vmem:[%s378_s0 + $0x58] sm:$0xff] }
   0x7   :  { %98 = vmatpush.msra.mxu0 %v29_v2  ;;  %210 = vmatpush.msra.mxu1 %v29_v2  ;;  %v26_v18 = vld [vmem:[%s378_s0 + $0x78] sm:$0xff] }
   0x8   :  { %214 = vmatpush.msra.mxu2 %v28_v3  ;;  %215 = vmatpush.msra.mxu3 %v28_v3  ;;  %v14_v19 = vld [vmem:[%s378_s0 + $0x18] sm:$0xff] }
   0x9   :  { %99 = vmatpush.msra.mxu0 %v28_v3  ;;  %213 = vmatpush.msra.mxu1 %v28_v3  ;;  %v18_v20 = vld [vmem:[%s378_s0 + $0x38] sm:$0xff] }
   0xa   :  { %217 = vmatpush.msra.mxu2 %v27_v4  ;;  %218 = vmatpush.msra.mxu3 %v27_v4 }
   0xb   :  { %196 = vmatmul.msk.f32.vlgmr.msra.gmra.mxu2 %vm32_vm1, %v19_v5  ;;  %200 = vmatmul.msk.f32.vlgmr.msra.gmra.mxu3 %vm32_vm1, %v23_v6 }
   0xc   :  { %100 = vmatpush.msra.mxu0 %v27_v4  ;;  %216 = vmatpush.msra.mxu1 %v27_v4 }
   0xd   :  { %188 = vmatmul.msk.f32.vlgmr.msra.gmra.mxu0 %vm32_vm1, %v11_v7  ;;  %192 = vmatmul.msk.f32.vlgmr.msra.gmra.mxu1 %vm32_vm1, %v15_v8 }
  0x13   :  { %197 = vmatmul.msk.f32.gmra.mxu2 %vm32_vm1, %v20_v9  ;;  %201 = vmatmul.msk.f32.gmra.mxu3 %vm32_vm1, %v24_v10 }
  0x15   :  { %189 = vmatmul.msk.f32.gmra.mxu0 %vm32_vm1, %v12_v11  ;;  %193 = vmatmul.msk.f32.gmra.mxu1 %vm32_vm1, %v16_v12 }
  0x1b   :  { %198 = vmatmul.msk.f32.gmra.mxu2 %vm32_vm1, %v21_v13  ;;  %202 = vmatmul.msk.f32.gmra.mxu3 %vm32_vm1, %v25_v14 }
  0x1d   :  { %190 = vmatmul.msk.f32.gmra.mxu0 %vm32_vm1, %v13_v15  ;;  %194 = vmatmul.msk.f32.gmra.mxu1 %vm32_vm1, %v17_v16 }
  0x23   :  { %199 = vmatmul.msk.f32.gmra.mxu2 %vm32_vm1, %v22_v17  ;;  %203 = vmatmul.msk.f32.gmra.mxu3 %vm32_vm1, %v26_v18 }
  0x25   :  { %191 = vmatmul.msk.f32.gmra.mxu0 %vm32_vm1, %v14_v19  ;;  %195 = vmatmul.msk.f32.gmra.mxu1 %vm32_vm1, %v18_v20 }
  0x8a   :  { %v102_v21 = vpop.f32.mrf.mxu0  ;;  %v114_v22 = vpop.f32.mrf.mxu1 }
  0x8b   :  { %v150_v23 = vmax.f32 %v102_v21, 0.0  ;;  %v154_v24 = vmax.f32 %v114_v22, 0.0 }
  0x8d   :  { %167 = vst.msk [vmem:[%s379_s2] sm:$0xff] %vm166_vm2, %v150_v23 }
  0x8e   :  { %171 = vst.msk [vmem:[%s379_s2 + $0x20] sm:$0xff] %vm166_vm2, %v154_v24  ;;  %v126_v25 = vpop.f32.mrf.mxu2  ;;  %v138_v26 = vpop.f32.mrf.mxu3 }
  0x8f   :  { %v158_v27 = vmax.f32 %v126_v25, 0.0  ;;  %v162_v28 = vmax.f32 %v138_v26, 0.0 }
  0x91   :  { %175 = vst.msk [vmem:[%s379_s2 + $0x40] sm:$0xff] %vm166_vm2, %v158_v27 }
  0x92   :  { %179 = vst.msk [vmem:[%s379_s2 + $0x60] sm:$0xff] %vm166_vm2, %v162_v28  ;;  %v105_v29 = vpop.f32.mrf.mxu0  ;;  %v117_v30 = vpop.f32.mrf.mxu1 }
  0x93   :  { %v151_v31 = vmax.f32 %v105_v29, 0.0  ;;  %v155_v32 = vmax.f32 %v117_v30, 0.0 }
  0x95   :  { %168 = vst.msk [vmem:[%s379_s2 + $0x8] sm:$0xff] %vm166_vm2, %v151_v31 }
  0x96   :  { %172 = vst.msk [vmem:[%s379_s2 + $0x28] sm:$0xff] %vm166_vm2, %v155_v32  ;;  %v129_v33 = vpop.f32.mrf.mxu2  ;;  %v141_v34 = vpop.f32.mrf.mxu3 }
  0x97   :  { %v159_v35 = vmax.f32 %v129_v33, 0.0  ;;  %v163_v36 = vmax.f32 %v141_v34, 0.0 }
  0x99   :  { %176 = vst.msk [vmem:[%s379_s2 + $0x48] sm:$0xff] %vm166_vm2, %v159_v35 }
  0x9a   :  { %180 = vst.msk [vmem:[%s379_s2 + $0x68] sm:$0xff] %vm166_vm2, %v163_v36  ;;  %v108_v37 = vpop.f32.mrf.mxu0  ;;  %v120_v38 = vpop.f32.mrf.mxu1 }
  0x9b   :  { %v152_v39 = vmax.f32 %v108_v37, 0.0  ;;  %v156_v40 = vmax.f32 %v120_v38, 0.0 }
  0x9d   :  { %169 = vst.msk [vmem:[%s379_s2 + $0x10] sm:$0xff] %vm166_vm2, %v152_v39 }
  0x9e   :  { %173 = vst.msk [vmem:[%s379_s2 + $0x30] sm:$0xff] %vm166_vm2, %v156_v40  ;;  %v132_v41 = vpop.f32.mrf.mxu2  ;;  %v144_v42 = vpop.f32.mrf.mxu3 }
  0x9f   :  { %v160_v43 = vmax.f32 %v132_v41, 0.0  ;;  %v164_v44 = vmax.f32 %v144_v42, 0.0 }
  0xa1   :  { %177 = vst.msk [vmem:[%s379_s2 + $0x50] sm:$0xff] %vm166_vm2, %v160_v43 }
  0xa2   :  { %181 = vst.msk [vmem:[%s379_s2 + $0x70] sm:$0xff] %vm166_vm2, %v164_v44  ;;  %v111_v45 = vpop.f32.mrf.mxu0  ;;  %v123_v46 = vpop.f32.mrf.mxu1 }
  0xa3   :  { %v153_v47 = vmax.f32 %v111_v45, 0.0  ;;  %v157_v48 = vmax.f32 %v123_v46, 0.0 }
  0xa5   :  { %170 = vst.msk [vmem:[%s379_s2 + $0x18] sm:$0xff] %vm166_vm2, %v153_v47 }
  0xa6   :  { %174 = vst.msk [vmem:[%s379_s2 + $0x38] sm:$0xff] %vm166_vm2, %v157_v48  ;;  %v135_v49 = vpop.f32.mrf.mxu2  ;;  %v147_v50 = vpop.f32.mrf.mxu3 }
  0xa7   :  { %v161_v51 = vmax.f32 %v135_v49, 0.0  ;;  %v165_v52 = vmax.f32 %v147_v50, 0.0 }
  0xa9   :  { %178 = vst.msk [vmem:[%s379_s2 + $0x58] sm:$0xff] %vm166_vm2, %v161_v51 }
  0xaa   :  { %182 = vst.msk [vmem:[%s379_s2 + $0x78] sm:$0xff] %vm166_vm2, %v165_v52 }

// kernel: encoder_forward.5
= control target key start
LH: loop header
LB: loop body
LE: loop exit
PB: predicated region body
PF: predicated region fallthrough
CT: control target
= control target key end

     0   :  { %vm143_vm0 = vcmask 523264   ;;  %vm176_vm1 = vcmask 261120   ;;  %vm200_vm2 = vcmask 162816   ;;  %s26298_s1 = inlined_call_operand.vmem [shape: f32[256,64], index: 1, kind: input, shape index: {}]   ;;  %s26299_s7 = inlined_call_operand.vmem [shape: bf16[256,2048], index: 7, kind: input, shape index: {}]   ;;  %s26300_s0 = inlined_call_operand.vmem [shape: f32[8,256], index: 0, kind: input, shape index: {}]   ;;  %s26301_s2 = inlined_call_operand.vmem [shape: f32[1,64], index: 2, kind: input, shape index: {}]   ;;  %s26302_s3 = inlined_call_operand.vmem [shape: f32[64,32], index: 3, kind: input, shape index: {}]   ;;  %s26303_s4 = inlined_call_operand.vmem [shape: f32[1,32], index: 4, kind: input, shape index: {}]   ;;  %s26304_s5 = inlined_call_operand.vmem [shape: f32[32,20], index: 5, kind: input, shape index: {}]   ;;  %s26305_s8 = inlined_call_operand.vmem [shape: f32[1,2048], index: 8, kind: input, shape index: {}]   ;;  %s26306_s9 = inlined_call_operand.vmem [shape: bf16[2048,1024], index: 9, kind: input, shape index: {}]   ;;  %s26307_s6 = inlined_call_operand.vmem [shape: f32[1,20], index: 6, kind: input, shape index: {}]   ;;  %s26308_s15 = inlined_call_operand.vmem [shape: f32[8,20], index: 15, kind: output, shape index: {0}]   ;;  %s26309_s10 = inlined_call_operand.vmem [shape: f32[1,1024], index: 10, kind: input, shape index: {}]   ;;  %s26310_s11 = inlined_call_operand.vmem [shape: bf16[1024,128], index: 11, kind: input, shape index: {}]   ;;  %s26311_s12 = inlined_call_operand.vmem [shape: f32[1,128], index: 12, kind: input, shape index: {}]   ;;  %s26312_s13 = inlined_call_operand.vmem [shape: f32[128,20], index: 13, kind: input, shape index: {}]   ;;  %s26313_s14 = inlined_call_operand.vmem [shape: f32[3,20], index: 14, kind: input, shape index: {}]   ;;  %s26314_s16 = inlined_call_operand.vmem [shape: f32[3,8,20], index: 16, kind: output, shape index: {1}]  }
   0x1   :  { %26316 = sst [smem:[#allocation2_spill]] %s26298_s1  ;;  %v16363_v29 = vld [vmem:[%s26299_s7 + $0x784] sm:$0xf]  ;;  %v17686_v41 = vld [vmem:[%s26300_s0 + $0x8] sm:$0xff] }
   0x2   :  { %s26317_s23 = sld [smem:[#allocation2_spill]]  ;;  %v11709_v30 = vld [vmem:[%s26299_s7 + $0x7c0] sm:$0xf0] }
   0x3   :  { %v16235_v32 = vld [vmem:[%s26299_s7 + $0x384] sm:$0xf]  ;;  %v11712_v36 = vor.u32 %v16363_v29, %v11709_v30 }
   0x4   :  { %v11197_v33 = vld [vmem:[%s26299_s7 + $0x3c0] sm:$0xf0] }
   0x5   :  { %v17675_v37 = vld [vmem:[%s26300_s0] sm:$0xff]  ;;  %v11200_v40 = vor.u32 %v16235_v32, %v11197_v33  ;;  %v11589_v32 = vld [vmem:[%s26299_s7 + $0x6c8] sm:$0xf0] }
   0x6   :  { %v16347_v38 = vld [vmem:[%s26299_s7 + $0x704] sm:$0xf]  ;;  %v17798_v29 = vpack.c.bf16 %v17675_v37, %v17675_v37 }
   0x7   :  { %v11645_v39 = vld [vmem:[%s26299_s7 + $0x740] sm:$0xf0] }
   0x8   :  { %v69_v0 = vld [vmem:[%s26317_s23 + $0x78] sm:$0xff]  ;;  %v68_v2 = vld [vmem:[%s26317_s23 + $0x70] sm:$0xff]  ;;  %v67_v4 = vld [vmem:[%s26317_s23 + $0x68] sm:$0xff]  ;;  %v11648_v44 = vor.u32 %v16347_v38, %v11645_v39 }
   0x9   :  { %v85_v1 = vld [vmem:[%s26317_s23 + $0xf8] sm:$0xff]  ;;  %90 = vmatpush.msra.mxu0 %v69_v0  ;;  %v84_v3 = vld [vmem:[%s26317_s23 + $0xf0] sm:$0xff]  ;;  %v83_v5 = vld [vmem:[%s26317_s23 + $0xe8] sm:$0xff] }
   0xa   :  { %110 = vmatpush.msra.mxu1 %v85_v1  ;;  %v66_v6 = vld [vmem:[%s26317_s23 + $0x60] sm:$0xff]  ;;  %v65_v8 = vld [vmem:[%s26317_s23 + $0x58] sm:$0xff]  ;;  %v64_v10 = vld [vmem:[%s26317_s23 + $0x50] sm:$0xff] }
   0xb   :  { %91 = vmatpush.msra.mxu0 %v68_v2  ;;  %v82_v7 = vld [vmem:[%s26317_s23 + $0xe0] sm:$0xff]  ;;  %v81_v9 = vld [vmem:[%s26317_s23 + $0xd8] sm:$0xff]  ;;  %v80_v11 = vld [vmem:[%s26317_s23 + $0xd0] sm:$0xff] }
   0xc   :  { %111 = vmatpush.msra.mxu1 %v84_v3  ;;  %v63_v12 = vld [vmem:[%s26317_s23 + $0x48] sm:$0xff]  ;;  %v62_v14 = vld [vmem:[%s26317_s23 + $0x40] sm:$0xff]  ;;  %v61_v16 = vld [vmem:[%s26317_s23 + $0x38] sm:$0xff] }
   0xd   :  { %92 = vmatpush.msra.mxu0 %v67_v4  ;;  %v79_v13 = vld [vmem:[%s26317_s23 + $0xc8] sm:$0xff]  ;;  %v78_v15 = vld [vmem:[%s26317_s23 + $0xc0] sm:$0xff]  ;;  %v77_v17 = vld [vmem:[%s26317_s23 + $0xb8] sm:$0xff] }
   0xe   :  { %112 = vmatpush.msra.mxu1 %v83_v5  ;;  %v60_v18 = vld [vmem:[%s26317_s23 + $0x30] sm:$0xff]  ;;  %v59_v20 = vld [vmem:[%s26317_s23 + $0x28] sm:$0xff]  ;;  %v58_v22 = vld [vmem:[%s26317_s23 + $0x20] sm:$0xff] }
   0xf   :  { %93 = vmatpush.msra.mxu0 %v66_v6  ;;  %v76_v19 = vld [vmem:[%s26317_s23 + $0xb0] sm:$0xff]  ;;  %v75_v21 = vld [vmem:[%s26317_s23 + $0xa8] sm:$0xff]  ;;  %v74_v23 = vld [vmem:[%s26317_s23 + $0xa0] sm:$0xff] }
  0x10   :  { %113 = vmatpush.msra.mxu1 %v82_v7  ;;  %v57_v24 = vld [vmem:[%s26317_s23 + $0x18] sm:$0xff]  ;;  %v56_v26 = vld [vmem:[%s26317_s23 + $0x10] sm:$0xff]  ;;  %v55_v28 = vld [vmem:[%s26317_s23 + $0x8] sm:$0xff] }
  0x11   :  { %94 = vmatpush.msra.mxu0 %v65_v8  ;;  %v73_v25 = vld [vmem:[%s26317_s23 + $0x98] sm:$0xff]  ;;  %v72_v27 = vld [vmem:[%s26317_s23 + $0x90] sm:$0xff]  ;;  %v71_v31 = vld [vmem:[%s26317_s23 + $0x88] sm:$0xff] }
  0x12   :  { %114 = vmatpush.msra.mxu1 %v81_v9  ;;  %v54_v34 = vld [vmem:[%s26317_s23] sm:$0xff]  ;;  %v11525_v38 = vld [vmem:[%s26299_s7 + $0x648] sm:$0xf0] }
  0x13   :  { %95 = vmatpush.msra.mxu0 %v64_v10  ;;  %v70_v35 = vld [vmem:[%s26317_s23 + $0x80] sm:$0xff] }
  0x14   :  { %115 = vmatpush.msra.mxu1 %v80_v11  ;;  %v16219_v42 = vld [vmem:[%s26299_s7 + $0x304] sm:$0xf] }
  0x15   :  { %96 = vmatpush.msra.mxu0 %v63_v12  ;;  %v11133_v43 = vld [vmem:[%s26299_s7 + $0x340] sm:$0xf0] }
  0x16   :  { %116 = vmatpush.msra.mxu1 %v79_v13  ;;  %v16331_v45 = vld [vmem:[%s26299_s7 + $0x684] sm:$0xf]  ;;  %v11136_v47 = vor.u32 %v16219_v42, %v11133_v43  ;;  %v16364_v13 = vld [vmem:[%s26299_s7 + $0x78c] sm:$0xf] }
  0x17   :  { %97 = vmatpush.msra.mxu0 %v62_v14  ;;  %v11581_v46 = vld [vmem:[%s26299_s7 + $0x6c0] sm:$0xf0]  ;;  %v16300_v43 = vld [vmem:[%s26299_s7 + $0x58c] sm:$0xf] }
  0x18   :  { %117 = vmatpush.msra.mxu1 %v78_v15  ;;  %v16203_v48 = vld [vmem:[%s26299_s7 + $0x284] sm:$0xf]  ;;  %v11584_v50 = vor.u32 %v16331_v45, %v11581_v46  ;;  %v11717_v15 = vld [vmem:[%s26299_s7 + $0x7c8] sm:$0xf0] }
  0x19   :  { %98 = vmatpush.msra.mxu0 %v61_v16  ;;  %v11069_v49 = vld [vmem:[%s26299_s7 + $0x2c0] sm:$0xf0]  ;;  %v16172_v46 = vld [vmem:[%s26299_s7 + $0x18c] sm:$0xf] }
  0x1a   :  { %118 = vmatpush.msra.mxu1 %v77_v17  ;;  %v16315_v51 = vld [vmem:[%s26299_s7 + $0x604] sm:$0xf]  ;;  %v11072_v53 = vor.u32 %v16203_v48, %v11069_v49  ;;  %v16284_v49 = vld [vmem:[%s26299_s7 + $0x50c] sm:$0xf] }
  0x1b   :  { %99 = vmatpush.msra.mxu0 %v60_v18  ;;  %v11517_v52 = vld [vmem:[%s26299_s7 + $0x640] sm:$0xf0]  ;;  %v16236_v18 = vld [vmem:[%s26299_s7 + $0x38c] sm:$0xf] }
  0x1c   :  { %119 = vmatpush.msra.mxu1 %v76_v19  ;;  %v16187_v54 = vld [vmem:[%s26299_s7 + $0x204] sm:$0xf]  ;;  %v11520_v56 = vor.u32 %v16315_v51, %v11517_v52  ;;  %v11205_v19 = vld [vmem:[%s26299_s7 + $0x3c8] sm:$0xf0] }
  0x1d   :  { %100 = vmatpush.msra.mxu0 %v59_v20  ;;  %v11005_v55 = vld [vmem:[%s26299_s7 + $0x240] sm:$0xf0]  ;;  %v16156_v52 = vld [vmem:[%s26299_s7 + $0x10c] sm:$0xf] }
  0x1e   :  { %120 = vmatpush.msra.mxu1 %v75_v21  ;;  %v16299_v57 = vld [vmem:[%s26299_s7 + $0x584] sm:$0xf]  ;;  %v11008_v59 = vor.u32 %v16187_v54, %v11005_v55  ;;  %v11720_v21 = vor.u32 %v16364_v13, %v11717_v15  ;;  %v16268_v55 = vld [vmem:[%s26299_s7 + $0x48c] sm:$0xf]  ;;  %v16221_v13 = vld [vmem:[%s26299_s7 + $0x314] sm:$0xf] }
  0x1f   :  { %101 = vmatpush.msra.mxu0 %v58_v22  ;;  %v11453_v58 = vld [vmem:[%s26299_s7 + $0x5c0] sm:$0xf0]  ;;  %v137_v15 = vld [vmem:[%s26302_s3 + $0x30] sm:$0xff] }
  0x20   :  { %121 = vmatpush.msra.mxu1 %v74_v23  ;;  %v16171_v60 = vld [vmem:[%s26299_s7 + $0x184] sm:$0xf]  ;;  %v11456_v62 = vor.u32 %v16299_v57, %v11453_v58  ;;  %v16348_v23 = vld [vmem:[%s26299_s7 + $0x70c] sm:$0xf] }
  0x21   :  { %102 = vmatpush.msra.mxu0 %v57_v24  ;;  %v10941_v61 = vld [vmem:[%s26299_s7 + $0x1c0] sm:$0xf0]  ;;  %v11653_v24 = vld [vmem:[%s26299_s7 + $0x748] sm:$0xf0] }
  0x22   :  { %122 = vmatpush.msra.mxu1 %v73_v25  ;;  %v16283_v63 = vld [vmem:[%s26299_s7 + $0x504] sm:$0xf]  ;;  %v10944_v1 = vor.u32 %v16171_v60, %v10941_v61  ;;  %v11208_v25 = vor.u32 %v16236_v18, %v11205_v19  ;;  %v11656_v30 = vor.u32 %v16348_v23, %v11653_v24  ;;  %v16140_v58 = vld [vmem:[%s26299_s7 + $0x8c] sm:$0xf]  ;;  %v11597_v18 = vld [vmem:[%s26299_s7 + $0x6d0] sm:$0xf0] }
  0x23   :  { %103 = vmatpush.msra.mxu0 %v56_v26  ;;  %v11389_v0 = vld [vmem:[%s26299_s7 + $0x540] sm:$0xf0]  ;;  %v17788_v26 = vpack.c.bf16 %v17686_v41, %v17686_v41  ;;  %v16252_v61 = vld [vmem:[%s26299_s7 + $0x40c] sm:$0xf] }
  0x24   :  { %123 = vmatpush.msra.mxu1 %v72_v27  ;;  %v16155_v2 = vld [vmem:[%s26299_s7 + $0x104] sm:$0xf]  ;;  %v11392_v4 = vor.u32 %v16283_v63, %v11389_v0  ;;  %v16220_v27 = vld [vmem:[%s26299_s7 + $0x30c] sm:$0xf]  ;;  %v16365_v63 = vld [vmem:[%s26299_s7 + $0x794] sm:$0xf] }
  0x25   :  { %104 = vmatpush.msra.mxu0 %v55_v28  ;;  %v10877_v3 = vld [vmem:[%s26299_s7 + $0x140] sm:$0xf0]  ;;  %v11141_v28 = vld [vmem:[%s26299_s7 + $0x348] sm:$0xf0] }
  0x26   :  { %124 = vmatpush.msra.mxu1 %v71_v31  ;;  %v16267_v5 = vld [vmem:[%s26299_s7 + $0x484] sm:$0xf]  ;;  %v10880_v7 = vor.u32 %v16155_v2, %v10877_v3  ;;  %v16332_v31 = vld [vmem:[%s26299_s7 + $0x68c] sm:$0xf]  ;;  %v11144_v33 = vor.u32 %v16220_v27, %v11141_v28  ;;  %v11533_v27 = vld [vmem:[%s26299_s7 + $0x650] sm:$0xf0] }
  0x27   :  { %105 = vmatpush.msra.mxu0 %v54_v34  ;;  %v11325_v6 = vld [vmem:[%s26299_s7 + $0x4c0] sm:$0xf0]  ;;  %v16204_v34 = vld [vmem:[%s26299_s7 + $0x28c] sm:$0xf] }
  0x28   :  { %125 = vmatpush.msra.mxu1 %v70_v35  ;;  %106 = vmatmul.f32.vlgmr.msra.gmra.mxu0 %v17675_v37  ;;  %v16139_v8 = vld [vmem:[%s26299_s7 + $0x84] sm:$0xf]  ;;  %v11328_v10 = vor.u32 %v16267_v5, %v11325_v6  ;;  %v11077_v35 = vld [vmem:[%s26299_s7 + $0x2c8] sm:$0xf0]  ;;  %v11213_v5 = vld [vmem:[%s26299_s7 + $0x3d0] sm:$0xf0] }
  0x29   :  { %126 = vmatmul.f32.vlgmr.msra.gmra.mxu1 %v17686_v41  ;;  %1802 = vmatpush.bf16.msrb.mxu0 %v11200_v40  ;;  %v10813_v9 = vld [vmem:[%s26299_s7 + $0xc0] sm:$0xf0]  ;;  %v16316_v37 = vld [vmem:[%s26299_s7 + $0x60c] sm:$0xf]  ;;  %v11080_v39 = vor.u32 %v16204_v34, %v11077_v35  ;;  %v16301_v35 = vld [vmem:[%s26299_s7 + $0x594] sm:$0xf] }
  0x2a   :  { %1815 = vmatpush.bf16.msrb.mxu1 %v11712_v36  ;;  %v16251_v11 = vld [vmem:[%s26299_s7 + $0x404] sm:$0xf]  ;;  %v10816_v14 = vor.u32 %v16139_v8, %v10813_v9  ;;  %v11592_v36 = vor.u32 %v16332_v31, %v11589_v32  ;;  %v16188_v40 = vld [vmem:[%s26299_s7 + $0x20c] sm:$0xf]  ;;  %v11528_v42 = vor.u32 %v16316_v37, %v11525_v38  ;;  %v16349_v9 = vld [vmem:[%s26299_s7 + $0x714] sm:$0xf] }
  0x2b   :  { %v11261_v12 = vld [vmem:[%s26299_s7 + $0x440] sm:$0xf0]  ;;  %v11013_v41 = vld [vmem:[%s26299_s7 + $0x248] sm:$0xf0]  ;;  %v16189_v31 = vld [vmem:[%s26299_s7 + $0x214] sm:$0xf] }
  0x2c   :  { %v16123_v16 = vld [vmem:[%s26299_s7 + $0x4] sm:$0xf]  ;;  %v11264_v20 = vor.u32 %v16251_v11, %v11261_v12  ;;  %v11016_v45 = vor.u32 %v16188_v40, %v11013_v41  ;;  %v16124_v2 = vld [vmem:[%s26299_s7 + $0xc] sm:$0xf]  ;;  %v138_v12 = vld [vmem:[%s26302_s3 + $0x38] sm:$0xff] }
  0x2d   :  { %1803 = vmatpush.bf16.msrb.mxu0 %v11136_v47  ;;  %v10749_v17 = vld [vmem:[%s26299_s7 + $0x40] sm:$0xf0]  ;;  %v10949_v47 = vld [vmem:[%s26299_s7 + $0x1c8] sm:$0xf0]  ;;  %155 = vmatpush.msra.mxu2 %v138_v12  ;;  %v11021_v32 = vld [vmem:[%s26299_s7 + $0x250] sm:$0xf0] }
  0x2e   :  { %1816 = vmatpush.bf16.msrb.mxu1 %v11648_v44  ;;  %v10752_v22 = vor.u32 %v16123_v16, %v10749_v17  ;;  %v11461_v44 = vld [vmem:[%s26299_s7 + $0x5c8] sm:$0xf0]  ;;  %v10952_v51 = vor.u32 %v16172_v46, %v10949_v47  ;;  %v16333_v17 = vld [vmem:[%s26299_s7 + $0x694] sm:$0xf]  ;;  %v135_v23 = vld [vmem:[%s26302_s3 + $0x20] sm:$0xff]  ;;  %v11024_v37 = vor.u32 %v16189_v31, %v11021_v32 }
  0x2f   :  { %v11464_v48 = vor.u32 %v16300_v43, %v11461_v44  ;;  %v10757_v3 = vld [vmem:[%s26299_s7 + $0x48] sm:$0xf0]  ;;  %156 = vmatpush.msra.mxu2 %v137_v15  ;;  %v11600_v24 = vor.u32 %v16333_v17, %v11597_v18  ;;  %v16173_v38 = vld [vmem:[%s26299_s7 + $0x194] sm:$0xf]  ;;  %v11707_v40 = vld [vmem:[%s26299_s7 + $0x780] sm:$0xf] }
  0x30   :  { %v10760_v8 = vor.u32 %v16124_v2, %v10757_v3  ;;  %v10957_v41 = vld [vmem:[%s26299_s7 + $0x1d0] sm:$0xf0]  ;;  %v16371_v43 = vld [vmem:[%s26299_s7 + $0x7bc] sm:$0xf0]  ;;  %v16366_v2 = vld [vmem:[%s26299_s7 + $0x79c] sm:$0xf] }
  0x31   :  { %1804 = vmatpush.bf16.msrb.mxu0 %v11072_v53  ;;  %v10885_v53 = vld [vmem:[%s26299_s7 + $0x148] sm:$0xf0]  ;;  %v11708_v44 = vor.u32 %v16371_v43, %v11707_v40  ;;  %v16285_v46 = vld [vmem:[%s26299_s7 + $0x514] sm:$0xf]  ;;  %v11451_v18 = vld [vmem:[%s26299_s7 + $0x580] sm:$0xf] }
  0x32   :  { %1817 = vmatpush.bf16.msrb.mxu1 %v11584_v50  ;;  %v11397_v50 = vld [vmem:[%s26299_s7 + $0x548] sm:$0xf0]  ;;  %v10888_v57 = vor.u32 %v16156_v52, %v10885_v53  ;;  %v11405_v47 = vld [vmem:[%s26299_s7 + $0x550] sm:$0xf0]  ;;  %v16206_v31 = vld [vmem:[%s26299_s7 + $0x29c] sm:$0xf] }
  0x33   :  { %v11400_v54 = vor.u32 %v16284_v49, %v11397_v50  ;;  %v11643_v49 = vld [vmem:[%s26299_s7 + $0x700] sm:$0xf]  ;;  %v10893_v52 = vld [vmem:[%s26299_s7 + $0x150] sm:$0xf0]  ;;  %v11093_v32 = vld [vmem:[%s26299_s7 + $0x2d8] sm:$0xf0] }
  0x34   :  { %v16355_v50 = vld [vmem:[%s26299_s7 + $0x73c] sm:$0xf0]  ;;  %v16190_v40 = vld [vmem:[%s26299_s7 + $0x21c] sm:$0xf] }
  0x35   :  { %1805 = vmatpush.bf16.msrb.mxu0 %v11008_v59  ;;  %v10821_v59 = vld [vmem:[%s26299_s7 + $0xc8] sm:$0xf0]  ;;  %v11644_v53 = vor.u32 %v16355_v50, %v11643_v49  ;;  %v16174_v49 = vld [vmem:[%s26299_s7 + $0x19c] sm:$0xf] }
  0x36   :  { %1818 = vmatpush.bf16.msrb.mxu1 %v11520_v56  ;;  %v11333_v56 = vld [vmem:[%s26299_s7 + $0x4c8] sm:$0xf0]  ;;  %v10824_v0 = vor.u32 %v16140_v58, %v10821_v59  ;;  %v11579_v58 = vld [vmem:[%s26299_s7 + $0x680] sm:$0xf]  ;;  %v10965_v50 = vld [vmem:[%s26299_s7 + $0x1d8] sm:$0xf0] }
  0x37   :  { %v11336_v60 = vor.u32 %v16268_v55, %v11333_v56  ;;  %v16269_v55 = vld [vmem:[%s26299_s7 + $0x494] sm:$0xf]  ;;  %v16339_v59 = vld [vmem:[%s26299_s7 + $0x6bc] sm:$0xf0] }
  0x38   :  { %v11341_v56 = vld [vmem:[%s26299_s7 + $0x4d0] sm:$0xf0] }
  0x39   :  { %1806 = vmatpush.bf16.msrb.mxu0 %v10944_v1  ;;  %v11725_v1 = vld [vmem:[%s26299_s7 + $0x7d0] sm:$0xf0] }
  0x3a   :  { %1819 = vmatpush.bf16.msrb.mxu1 %v11456_v62  ;;  %v11269_v62 = vld [vmem:[%s26299_s7 + $0x448] sm:$0xf0] }
  0x3b   :  { %v11272_v6 = vor.u32 %v16252_v61, %v11269_v62  ;;  %v10829_v61 = vld [vmem:[%s26299_s7 + $0xd0] sm:$0xf0]  ;;  %v11580_v62 = vor.u32 %v16339_v59, %v11579_v58  ;;  %v16270_v59 = vld [vmem:[%s26299_s7 + $0x49c] sm:$0xf] }
  0x3d   :  { %1807 = vmatpush.bf16.msrb.mxu0 %v10880_v7  ;;  %v11728_v7 = vor.u32 %v16365_v63, %v11725_v1  ;;  %v11344_v63 = vor.u32 %v16269_v55, %v11341_v56  ;;  %v11277_v1 = vld [vmem:[%s26299_s7 + $0x450] sm:$0xf0]  ;;  %v10968_v55 = vor.u32 %v16174_v49, %v10965_v50  ;;  %v16158_v56 = vld [vmem:[%s26299_s7 + $0x11c] sm:$0xf]  ;;  %v16287_v49 = vld [vmem:[%s26299_s7 + $0x524] sm:$0xf] }
  0x3e   :  { %1820 = vmatpush.bf16.msrb.mxu1 %v11392_v4  ;;  %v16237_v4 = vld [vmem:[%s26299_s7 + $0x394] sm:$0xf]  ;;  %v11421_v50 = vld [vmem:[%s26299_s7 + $0x560] sm:$0xf0] }
  0x3f   :  { %v11216_v11 = vor.u32 %v16237_v4, %v11213_v5  ;;  %v11515_v4 = vld [vmem:[%s26299_s7 + $0x600] sm:$0xf] }
  0x40   :  { %v16323_v5 = vld [vmem:[%s26299_s7 + $0x63c] sm:$0xf0] }
  0x41   :  { %1808 = vmatpush.bf16.msrb.mxu0 %v10816_v14  ;;  %v11149_v14 = vld [vmem:[%s26299_s7 + $0x350] sm:$0xf0] }
  0x42   :  { %1821 = vmatpush.bf16.msrb.mxu1 %v11328_v10  ;;  %v11661_v10 = vld [vmem:[%s26299_s7 + $0x750] sm:$0xf0]  ;;  %v11152_v19 = vor.u32 %v16221_v13, %v11149_v14  ;;  %v16350_v14 = vld [vmem:[%s26299_s7 + $0x71c] sm:$0xf] }
  0x43   :  { %v11664_v16 = vor.u32 %v16349_v9, %v11661_v10  ;;  %v11516_v9 = vor.u32 %v16323_v5, %v11515_v4  ;;  %v16238_v10 = vld [vmem:[%s26299_s7 + $0x39c] sm:$0xf]  ;;  %v11741_v5 = vld [vmem:[%s26299_s7 + $0x7e0] sm:$0xf0] }
  0x45   :  { %1809 = vmatpush.bf16.msrb.mxu0 %v10752_v22  ;;  %v11085_v22 = vld [vmem:[%s26299_s7 + $0x2d0] sm:$0xf0] }
  0x46   :  { %1822 = vmatpush.bf16.msrb.mxu1 %v11264_v20  ;;  %v136_v20 = vld [vmem:[%s26302_s3 + $0x28] sm:$0xff] }
  0x47   :  { %157 = vmatpush.msra.mxu2 %v136_v20  ;;  %v16222_v20 = vld [vmem:[%s26299_s7 + $0x31c] sm:$0xf] }
  0x48   :  { %1810 = vmatmul.bf16.vlgmr.msrb.gmra.mxu0 %v17798_v29 }
  0x49   :  { %1854 = vmatpush.bf16.msra.mxu0 %v11208_v25  ;;  %1823 = vmatmul.bf16.vlgmr.msrb.gmra.mxu1 %v17788_v26  ;;  %v16317_v25 = vld [vmem:[%s26299_s7 + $0x614] sm:$0xf] }
  0x4a   :  { %1867 = vmatpush.bf16.msra.mxu1 %v11720_v21  ;;  %v16205_v21 = vld [vmem:[%s26299_s7 + $0x294] sm:$0xf]  ;;  %158 = vmatpush.msra.mxu2 %v135_v23  ;;  %v11536_v34 = vor.u32 %v16317_v25, %v11533_v27  ;;  %v11605_v25 = vld [vmem:[%s26299_s7 + $0x6d8] sm:$0xf0] }
  0x4b   :  { %v11088_v28 = vor.u32 %v16205_v21, %v11085_v22  ;;  %v11157_v21 = vld [vmem:[%s26299_s7 + $0x358] sm:$0xf0] }
  0x4c   :  { %v11160_v27 = vor.u32 %v16222_v20, %v11157_v21  ;;  %v11613_v20 = vld [vmem:[%s26299_s7 + $0x6e0] sm:$0xf0] }
  0x4d   :  { %1855 = vmatpush.bf16.msra.mxu0 %v11144_v33  ;;  %v133_v33 = vld [vmem:[%s26302_s3 + $0x10] sm:$0xff] }
  0x4e   :  { %1868 = vmatpush.bf16.msra.mxu1 %v11656_v30  ;;  %v134_v30 = vld [vmem:[%s26302_s3 + $0x18] sm:$0xff] }
  0x4f   :  { %159 = vmatpush.msra.mxu2 %v134_v30  ;;  %v16291_v30 = vld [vmem:[%s26299_s7 + $0x53c] sm:$0xf0] }
  0x51   :  { %1856 = vmatpush.bf16.msra.mxu0 %v11080_v39  ;;  %160 = vmatpush.msra.mxu2 %v133_v33  ;;  %v132_v39 = vld [vmem:[%s26302_s3 + $0x8] sm:$0xff] }
  0x52   :  { %1869 = vmatpush.bf16.msra.mxu1 %v11592_v36  ;;  %v11469_v36 = vld [vmem:[%s26299_s7 + $0x5d0] sm:$0xf0] }
  0x53   :  { %161 = vmatpush.msra.mxu2 %v132_v39  ;;  %v16275_v39 = vld [vmem:[%s26299_s7 + $0x4bc] sm:$0xf0] }
  0x55   :  { %1857 = vmatpush.bf16.msra.mxu0 %v11016_v45  ;;  %v11472_v45 = vor.u32 %v16301_v35, %v11469_v36  ;;  %v16318_v35 = vld [vmem:[%s26299_s7 + $0x61c] sm:$0xf] }
  0x56   :  { %1870 = vmatpush.bf16.msra.mxu1 %v11528_v42  ;;  %v131_v42 = vld [vmem:[%s26302_s3] sm:$0xff]  ;;  %v11541_v36 = vld [vmem:[%s26299_s7 + $0x658] sm:$0xf0] }
  0x57   :  { %162 = vmatpush.msra.mxu2 %v131_v42  ;;  %v11544_v43 = vor.u32 %v16318_v35, %v11541_v36  ;;  %v11715_v35 = vld [vmem:[%s26299_s7 + $0x788] sm:$0xf]  ;;  %v16303_v36 = vld [vmem:[%s26299_s7 + $0x5a4] sm:$0xf] }
  0x59   :  { %1858 = vmatpush.bf16.msra.mxu0 %v10952_v51  ;;  %v16157_v51 = vld [vmem:[%s26299_s7 + $0x114] sm:$0xf]  ;;  %1789 = vmatpush.bf16.msrb.mxu2 %v11708_v44  ;;  %v16302_v44 = vld [vmem:[%s26299_s7 + $0x59c] sm:$0xf] }
  0x5a   :  { %1871 = vmatpush.bf16.msra.mxu1 %v11464_v48  ;;  %v10960_v48 = vor.u32 %v16173_v38, %v10957_v41  ;;  %v11323_v38 = vld [vmem:[%s26299_s7 + $0x480] sm:$0xf]  ;;  %v11029_v41 = vld [vmem:[%s26299_s7 + $0x258] sm:$0xf0] }
  0x5b   :  { %v11324_v42 = vor.u32 %v16275_v39, %v11323_v38 }
  0x5d   :  { %1859 = vmatpush.bf16.msra.mxu0 %v10888_v57  ;;  %v10896_v57 = vor.u32 %v16157_v51, %v10893_v52  ;;  %1790 = vmatpush.bf16.msrb.mxu2 %v11644_v53  ;;  %v16286_v53 = vld [vmem:[%s26299_s7 + $0x51c] sm:$0xf] }
  0x5e   :  { %1872 = vmatpush.bf16.msra.mxu1 %v11400_v54  ;;  %v11408_v54 = vor.u32 %v16285_v46, %v11405_v47  ;;  %v11032_v46 = vor.u32 %v16190_v40, %v11029_v41  ;;  %v11259_v47 = vld [vmem:[%s26299_s7 + $0x400] sm:$0xf]  ;;  %v16372_v41 = vld [vmem:[%s26299_s7 + $0x7c4] sm:$0xf0] }
  0x61   :  { %1860 = vmatpush.bf16.msra.mxu0 %v10824_v0  ;;  %v16253_v0 = vld [vmem:[%s26299_s7 + $0x414] sm:$0xf]  ;;  %1791 = vmatpush.bf16.msrb.mxu2 %v11580_v62  ;;  %v16142_v62 = vld [vmem:[%s26299_s7 + $0x9c] sm:$0xf] }
  0x62   :  { %1873 = vmatpush.bf16.msra.mxu1 %v11336_v60  ;;  %v16141_v60 = vld [vmem:[%s26299_s7 + $0x94] sm:$0xf]  ;;  %v11280_v12 = vor.u32 %v16253_v0, %v11277_v1  ;;  %v16254_v1 = vld [vmem:[%s26299_s7 + $0x41c] sm:$0xf] }
  0x63   :  { %v10832_v3 = vor.u32 %v16141_v60, %v10829_v61  ;;  %v11349_v60 = vld [vmem:[%s26299_s7 + $0x4d8] sm:$0xf0] }
  0x64   :  { %v11352_v0 = vor.u32 %v16270_v59, %v11349_v60  ;;  %v16271_v59 = vld [vmem:[%s26299_s7 + $0x4a4] sm:$0xf] }
  0x65   :  { %1861 = vmatpush.bf16.msra.mxu0 %v10760_v8  ;;  %v10765_v8 = vld [vmem:[%s26299_s7 + $0x50] sm:$0xf0]  ;;  %1792 = vmatpush.bf16.msrb.mxu2 %v11516_v9  ;;  %v11229_v9 = vld [vmem:[%s26299_s7 + $0x3e0] sm:$0xf0] }
  0x66   :  { %1874 = vmatpush.bf16.msra.mxu1 %v11272_v6  ;;  %v11733_v6 = vld [vmem:[%s26299_s7 + $0x7d8] sm:$0xf0]  ;;  %v11357_v60 = vld [vmem:[%s26299_s7 + $0x4e0] sm:$0xf0] }
  0x67   :  { %v11736_v13 = vor.u32 %v16366_v2, %v11733_v6  ;;  %v11285_v2 = vld [vmem:[%s26299_s7 + $0x458] sm:$0xf0] }
  0x68   :  { %1862 = vmatmul.bf16.vlgmr.msra.gmra.mxu0 %v17798_v29  ;;  %v16126_v6 = vld [vmem:[%s26299_s7 + $0x1c] sm:$0xf] }
  0x69   :  { %1906 = vmatpush.bf16.msrb.mxu0 %v11216_v11  ;;  %1875 = vmatmul.bf16.vlgmr.msra.gmra.mxu1 %v17788_v26  ;;  %v11221_v11 = vld [vmem:[%s26299_s7 + $0x3d8] sm:$0xf0] }
  0x6a   :  { %1919 = vmatpush.bf16.msrb.mxu1 %v11728_v7  ;;  %v16125_v7 = vld [vmem:[%s26299_s7 + $0x14] sm:$0xf]  ;;  %v11224_v17 = vor.u32 %v16238_v10, %v11221_v11  ;;  %v11288_v10 = vor.u32 %v16254_v1, %v11285_v2  ;;  %v11523_v2 = vld [vmem:[%s26299_s7 + $0x608] sm:$0xf] }
  0x6b   :  { %v10768_v15 = vor.u32 %v16125_v7, %v10765_v8  ;;  %v10773_v7 = vld [vmem:[%s26299_s7 + $0x58] sm:$0xf0]  ;;  %v16239_v8 = vld [vmem:[%s26299_s7 + $0x3a4] sm:$0xf] }
  0x6d   :  { %1907 = vmatpush.bf16.msrb.mxu0 %v11152_v19  ;;  %v16307_v19 = vld [vmem:[%s26299_s7 + $0x5bc] sm:$0xf0] }
  0x6e   :  { %1920 = vmatpush.bf16.msrb.mxu1 %v11664_v16  ;;  %v11669_v16 = vld [vmem:[%s26299_s7 + $0x758] sm:$0xf0]  ;;  %v11452_v22 = vor.u32 %v16307_v19, %v11451_v18  ;;  %v16335_v19 = vld [vmem:[%s26299_s7 + $0x6a4] sm:$0xf] }
  0x6f   :  { %v11672_v23 = vor.u32 %v16350_v14, %v11669_v16  ;;  %v11677_v14 = vld [vmem:[%s26299_s7 + $0x760] sm:$0xf0] }
  0x70   :  { %1793 = vmatpush.bf16.msrb.mxu2 %v11452_v22  ;;  %v16223_v16 = vld [vmem:[%s26299_s7 + $0x324] sm:$0xf] }
  0x71   :  { %1908 = vmatpush.bf16.msrb.mxu0 %v11088_v28  ;;  %v11387_v28 = vld [vmem:[%s26299_s7 + $0x500] sm:$0xf]  ;;  %v16207_v22 = vld [vmem:[%s26299_s7 + $0x2a4] sm:$0xf] }
  0x72   :  { %1921 = vmatpush.bf16.msrb.mxu1 %v11600_v24  ;;  %v16334_v24 = vld [vmem:[%s26299_s7 + $0x69c] sm:$0xf]  ;;  %v11388_v33 = vor.u32 %v16291_v30, %v11387_v28  ;;  %v17467_v30 = vld [vmem:[%s26301_s2] ss:$0 sm:$0xff] }
  0x74   :  { %1794 = vmatpush.bf16.msrb.mxu2 %v11388_v33 }
  0x75   :  { %1909 = vmatpush.bf16.msrb.mxu0 %v11024_v37  ;;  %v11096_v37 = vor.u32 %v16206_v31, %v11093_v32  ;;  %v16191_v31 = vld [vmem:[%s26299_s7 + $0x224] sm:$0xf] }
  0x76   :  { %1922 = vmatpush.bf16.msrb.mxu1 %v11536_v34  ;;  %v11608_v34 = vor.u32 %v16334_v24, %v11605_v25  ;;  %v11616_v24 = vor.u32 %v16335_v19, %v11613_v20  ;;  %v16319_v25 = vld [vmem:[%s26299_s7 + $0x624] sm:$0xf]  ;;  %v11685_v19 = vld [vmem:[%s26299_s7 + $0x768] sm:$0xf0] }
  0x77   :  { %v11037_v32 = vld [vmem:[%s26299_s7 + $0x260] sm:$0xf0] }
  0x78   :  { %1795 = vmatpush.bf16.msrb.mxu2 %v11324_v42  ;;  %v11040_v38 = vor.u32 %v16191_v31, %v11037_v32  ;;  %v16175_v42 = vld [vmem:[%s26299_s7 + $0x1a4] sm:$0xf]  ;;  %v11621_v31 = vld [vmem:[%s26299_s7 + $0x6e8] sm:$0xf0] }
  0x79   :  { %1910 = vmatpush.bf16.msrb.mxu0 %v10960_v48  ;;  %v16259_v48 = vld [vmem:[%s26299_s7 + $0x43c] sm:$0xf0] }
  0x7a   :  { %1923 = vmatpush.bf16.msrb.mxu1 %v11472_v45  ;;  %v11477_v45 = vld [vmem:[%s26299_s7 + $0x5d8] sm:$0xf0]  ;;  %v11260_v51 = vor.u32 %v16259_v48, %v11259_v47  ;;  %v11716_v47 = vor.u32 %v16372_v41, %v11715_v35  ;;  %v16356_v48 = vld [vmem:[%s26299_s7 + $0x744] sm:$0xf0] }
  0x7b   :  { %v11480_v52 = vor.u32 %v16302_v44, %v11477_v45 }
  0x7c   :  { %1796 = vmatpush.bf16.msrb.mxu2 %v11260_v51 }
  0x7d   :  { %1911 = vmatpush.bf16.msrb.mxu0 %v10896_v57  ;;  %v10901_v57 = vld [vmem:[%s26299_s7 + $0x158] sm:$0xf0] }
  0x7e   :  { %1924 = vmatpush.bf16.msrb.mxu1 %v11408_v54  ;;  %v11413_v54 = vld [vmem:[%s26299_s7 + $0x558] sm:$0xf0]  ;;  %v10904_v61 = vor.u32 %v16158_v56, %v10901_v57  ;;  %v11587_v56 = vld [vmem:[%s26299_s7 + $0x688] sm:$0xf] }
  0x7f   :  { %v11416_v58 = vor.u32 %v16286_v53, %v11413_v54  ;;  %v16159_v53 = vld [vmem:[%s26299_s7 + $0x124] sm:$0xf] }
  0x80   :  { %v10909_v54 = vld [vmem:[%s26299_s7 + $0x160] sm:$0xf0] }
  0x81   :  { %1912 = vmatpush.bf16.msrb.mxu0 %v10832_v3  ;;  %v16367_v3 = vld [vmem:[%s26299_s7 + $0x7a4] sm:$0xf] }
  0x82   :  { %1925 = vmatpush.bf16.msrb.mxu1 %v11344_v63  ;;  %v10837_v63 = vld [vmem:[%s26299_s7 + $0xd8] sm:$0xf0]  ;;  %v11744_v11 = vor.u32 %v16367_v3, %v11741_v5  ;;  %v16255_v3 = vld [vmem:[%s26299_s7 + $0x424] sm:$0xf] }
  0x83   :  { %v10840_v4 = vor.u32 %v16142_v62, %v10837_v63  ;;  %v16143_v62 = vld [vmem:[%s26299_s7 + $0xa4] sm:$0xf] }
  0x84   :  { %v10845_v63 = vld [vmem:[%s26299_s7 + $0xe0] sm:$0xf0] }
  0x85   :  { %1913 = vmatpush.bf16.msrb.mxu0 %v10768_v15  ;;  %v11232_v15 = vor.u32 %v16239_v8, %v11229_v9  ;;  %v10848_v5 = vor.u32 %v16143_v62, %v10845_v63  ;;  %v11749_v8 = vld [vmem:[%s26299_s7 + $0x7e8] sm:$0xf0]  ;;  %v16127_v9 = vld [vmem:[%s26299_s7 + $0x24] sm:$0xf] }
  0x86   :  { %1926 = vmatpush.bf16.msrb.mxu1 %v11280_v12  ;;  %v10776_v12 = vor.u32 %v16126_v6, %v10773_v7  ;;  %v16324_v6 = vld [vmem:[%s26299_s7 + $0x644] sm:$0xf0]  ;;  %v16368_v7 = vld [vmem:[%s26299_s7 + $0x7ac] sm:$0xf] }
  0x87   :  { %v16160_v63 = vld [vmem:[%s26299_s7 + $0x12c] sm:$0xf] }
  0x88   :  { %1914 = vmatmul.bf16.vlgmr.msrb.gmra.mxu0 %v17798_v29 }
  0x89   :  { %1958 = vmatpush.bf16.msra.mxu0 %v11224_v17  ;;  %1927 = vmatmul.bf16.vlgmr.msrb.gmra.mxu1 %v17788_v26  ;;  %v11165_v17 = vld [vmem:[%s26299_s7 + $0x360] sm:$0xf0] }
  0x8a   :  { %1971 = vmatpush.bf16.msra.mxu1 %v11736_v13  ;;  %v16351_v13 = vld [vmem:[%s26299_s7 + $0x724] sm:$0xf]  ;;  %v11168_v21 = vor.u32 %v16223_v16, %v11165_v17  ;;  %v11459_v16 = vld [vmem:[%s26299_s7 + $0x588] sm:$0xf] }
  0x8b   :  { %v11680_v18 = vor.u32 %v16351_v13, %v11677_v14  ;;  %v11237_v13 = vld [vmem:[%s26299_s7 + $0x3e8] sm:$0xf0]  ;;  %v11524_v14 = vor.u32 %v16324_v6, %v11523_v2  ;;  %v16308_v17 = vld [vmem:[%s26299_s7 + $0x5c4] sm:$0xf0]  ;;  %v16341_v6 = vld [vmem:[%s26299_s7 + $0x6cc] sm:$0xf0] }
  0x8d   :  { %1959 = vmatpush.bf16.msra.mxu0 %v11160_v27  ;;  %v11549_v27 = vld [vmem:[%s26299_s7 + $0x660] sm:$0xf0] }
  0x8e   :  { %1972 = vmatpush.bf16.msra.mxu1 %v11672_v23  ;;  %v11101_v23 = vld [vmem:[%s26299_s7 + $0x2e0] sm:$0xf0]  ;;  %v11552_v33 = vor.u32 %v16319_v25, %v11549_v27  ;;  %v11395_v27 = vld [vmem:[%s26299_s7 + $0x508] sm:$0xf] }
  0x8f   :  { %v11104_v28 = vor.u32 %v16207_v22, %v11101_v23  ;;  %v16224_v22 = vld [vmem:[%s26299_s7 + $0x32c] sm:$0xf] }
  0x90   :  { %v11173_v23 = vld [vmem:[%s26299_s7 + $0x368] sm:$0xf0] }
  0x91   :  { %1960 = vmatpush.bf16.msra.mxu0 %v11096_v37  ;;  %v11485_v37 = vld [vmem:[%s26299_s7 + $0x5e0] sm:$0xf0]  ;;  %v11176_v32 = vor.u32 %v16224_v22, %v11173_v23  ;;  %v16241_v22 = vld [vmem:[%s26299_s7 + $0x3b4] sm:$0xf] }
  0x92   :  { %1973 = vmatpush.bf16.msra.mxu1 %v11608_v34  ;;  %v11488_v45 = vor.u32 %v16303_v36, %v11485_v37  ;;  %v11331_v37 = vld [vmem:[%s26299_s7 + $0x488] sm:$0xf]  ;;  %v11245_v23 = vld [vmem:[%s26299_s7 + $0x3f0] sm:$0xf0] }
  0x95   :  { %1961 = vmatpush.bf16.msra.mxu0 %v11032_v46  ;;  %v11651_v46 = vld [vmem:[%s26299_s7 + $0x708] sm:$0xf] }
  0x96   :  { %1974 = vmatpush.bf16.msra.mxu1 %v11544_v43  ;;  %v10973_v43 = vld [vmem:[%s26299_s7 + $0x1e0] sm:$0xf0]  ;;  %v11652_v57 = vor.u32 %v16356_v48, %v11651_v46  ;;  %v11267_v46 = vld [vmem:[%s26299_s7 + $0x408] sm:$0xf]  ;;  %v16304_v48 = vld [vmem:[%s26299_s7 + $0x5ac] sm:$0xf] }
  0x97   :  { %v10976_v51 = vor.u32 %v16175_v42, %v10973_v43  ;;  %v16192_v42 = vld [vmem:[%s26299_s7 + $0x22c] sm:$0xf] }
  0x98   :  { %v11045_v43 = vld [vmem:[%s26299_s7 + $0x268] sm:$0xf0] }
  0x99   :  { %1962 = vmatpush.bf16.msra.mxu0 %v10968_v55  ;;  %v11424_v55 = vor.u32 %v16287_v49, %v11421_v50  ;;  %v11493_v49 = vld [vmem:[%s26299_s7 + $0x5e8] sm:$0xf0]  ;;  %v11723_v50 = vld [vmem:[%s26299_s7 + $0x790] sm:$0xf] }
  0x9a   :  { %1975 = vmatpush.bf16.msra.mxu1 %v11480_v52 }
  0x9d   :  { %1963 = vmatpush.bf16.msra.mxu0 %v10904_v61  ;;  %v10912_v61 = vor.u32 %v16159_v53, %v10909_v54  ;;  %v16176_v53 = vld [vmem:[%s26299_s7 + $0x1ac] sm:$0xf] }
  0x9e   :  { %1976 = vmatpush.bf16.msra.mxu1 %v11416_v58  ;;  %v16340_v58 = vld [vmem:[%s26299_s7 + $0x6c4] sm:$0xf0]  ;;  %v10981_v54 = vld [vmem:[%s26299_s7 + $0x1e8] sm:$0xf0] }
  0x9f   :  { %v11588_v1 = vor.u32 %v16340_v58, %v11587_v56  ;;  %v11496_v56 = vor.u32 %v16304_v48, %v11493_v49  ;;  %v16288_v58 = vld [vmem:[%s26299_s7 + $0x52c] sm:$0xf]  ;;  %v10984_v62 = vor.u32 %v16176_v53, %v10981_v54  ;;  %v16277_v48 = vld [vmem:[%s26299_s7 + $0x4cc] sm:$0xf0]  ;;  %v16321_v49 = vld [vmem:[%s26299_s7 + $0x634] sm:$0xf] }
  0xa0   :  { %v11053_v53 = vld [vmem:[%s26299_s7 + $0x270] sm:$0xf0] }
  0xa1   :  { %1964 = vmatpush.bf16.msra.mxu0 %v10840_v4  ;;  %v11293_v4 = vld [vmem:[%s26299_s7 + $0x460] sm:$0xf0] }
  0xa2   :  { %1977 = vmatpush.bf16.msra.mxu1 %v11352_v0  ;;  %v11360_v0 = vor.u32 %v16271_v59, %v11357_v60  ;;  %v11429_v59 = vld [vmem:[%s26299_s7 + $0x568] sm:$0xf0]  ;;  %v11659_v60 = vld [vmem:[%s26299_s7 + $0x710] sm:$0xf] }
  0xa5   :  { %1965 = vmatpush.bf16.msra.mxu0 %v10776_v12  ;;  %v107_v34 = vpop.f32.mrf.mxu0  ;;  %v16240_v12 = vld [vmem:[%s26299_s7 + $0x3ac] sm:$0xf] }
  0xa6   :  { %1978 = vmatpush.bf16.msra.mxu1 %v11288_v10  ;;  %v108_v39 = vadd.f32 %v17467_v30, %v107_v34  ;;  %v127_v40 = vpop.f32.mrf.mxu1  ;;  %v10781_v10 = vld [vmem:[%s26299_s7 + $0x60] sm:$0xf0]  ;;  %v16336_v30 = vld [vmem:[%s26299_s7 + $0x6ac] sm:$0xf] }
  0xa7   :  { %v10784_v20 = vor.u32 %v16127_v9, %v10781_v10  ;;  %v11109_v34 = vld [vmem:[%s26299_s7 + $0x2e8] sm:$0xf0]  ;;  %v11624_v36 = vor.u32 %v16336_v30, %v11621_v31  ;;  %v16353_v30 = vld [vmem:[%s26299_s7 + $0x734] sm:$0xf] }
  0xa8   :  { %1966 = vmatmul.bf16.vlgmr.msra.gmra.mxu0 %v17798_v29  ;;  %v128_v44 = vadd.f32 %v127_v40, %v108_v39  ;;  %v16320_v39 = vld [vmem:[%s26299_s7 + $0x62c] sm:$0xf]  ;;  %v11693_v31 = vld [vmem:[%s26299_s7 + $0x770] sm:$0xf0] }
  0xa9   :  { %2010 = vmatpush.bf16.msrb.mxu0 %v11232_v15  ;;  %1979 = vmatmul.bf16.vlgmr.msra.gmra.mxu1 %v17788_v26  ;;  %v11752_v15 = vor.u32 %v16368_v7, %v11749_v8  ;;  %v11557_v40 = vld [vmem:[%s26299_s7 + $0x668] sm:$0xf0] }
  0xaa   :  { %2023 = vmatpush.bf16.msrb.mxu1 %v11744_v11  ;;  %v130_v52 = vmax.f32 %v128_v44, 0.0  ;;  %v11296_v11 = vor.u32 %v16255_v3, %v11293_v4  ;;  %v16272_v3 = vld [vmem:[%s26299_s7 + $0x4ac] sm:$0xf] }
  0xab   :  { %v11365_v4 = vld [vmem:[%s26299_s7 + $0x4e8] sm:$0xf0] }
  0xac   :  { %10743 = vmatmul.msk.f32.vlgmr.msra.gmra.mxu2 %vm143_vm0, %v130_v52  ;;  %v11048_v52 = vor.u32 %v16192_v42, %v11045_v43  ;;  %v16144_v8 = vld [vmem:[%s26299_s7 + $0xac] sm:$0xf]  ;;  %v11368_v10 = vor.u32 %v16272_v3, %v11365_v4  ;;  %v16209_v43 = vld [vmem:[%s26299_s7 + $0x2b4] sm:$0xf] }
  0xad   :  { %2011 = vmatpush.bf16.msrb.mxu0 %v11168_v21  ;;  %1841 = vmatpush.bf16.msra.mxu2 %v11716_v47  ;;  %v11240_v21 = vor.u32 %v16240_v12, %v11237_v13  ;;  %v16260_v47 = vld [vmem:[%s26299_s7 + $0x444] sm:$0xf0]  ;;  %v10853_v9 = vld [vmem:[%s26299_s7 + $0xe8] sm:$0xf0]  ;;  %v11531_v12 = vld [vmem:[%s26299_s7 + $0x610] sm:$0xf] }
  0xae   :  { %2024 = vmatpush.bf16.msrb.mxu1 %v11680_v18  ;;  %v16352_v18 = vld [vmem:[%s26299_s7 + $0x72c] sm:$0xf]  ;;  %v16289_v4 = vld [vmem:[%s26299_s7 + $0x534] sm:$0xf] }
  0xaf   :  { %v11688_v25 = vor.u32 %v16352_v18, %v11685_v19  ;;  %v16256_v13 = vld [vmem:[%s26299_s7 + $0x42c] sm:$0xf]  ;;  %v10856_v18 = vor.u32 %v16144_v8, %v10853_v9  ;;  %v16161_v9 = vld [vmem:[%s26299_s7 + $0x134] sm:$0xf] }
  0xb0   :  { %v16128_v19 = vld [vmem:[%s26299_s7 + $0x2c] sm:$0xf] }
  0xb1   :  { %2012 = vmatpush.bf16.msrb.mxu0 %v11104_v28  ;;  %1842 = vmatpush.bf16.msra.mxu2 %v11652_v57  ;;  %v16292_v28 = vld [vmem:[%s26299_s7 + $0x544] sm:$0xf0] }
  0xb2   :  { %2025 = vmatpush.bf16.msrb.mxu1 %v11616_v24  ;;  %v11460_v24 = vor.u32 %v16308_v17, %v11459_v16  ;;  %v11396_v35 = vor.u32 %v16292_v28, %v11395_v27  ;;  %v16369_v16 = vld [vmem:[%s26299_s7 + $0x7b4] sm:$0xf]  ;;  %v11467_v27 = vld [vmem:[%s26299_s7 + $0x590] sm:$0xf] }
  0xb3   :  { %v11757_v17 = vld [vmem:[%s26299_s7 + $0x7f0] sm:$0xf0]  ;;  %v16309_v28 = vld [vmem:[%s26299_s7 + $0x5cc] sm:$0xf0] }
  0xb4   :  { %1797 = vmatmul.bf16.vlgmr.msrb.gmra.mxu2 %v17788_v26 }
  0xb5   :  { %2013 = vmatpush.bf16.msrb.mxu0 %v11040_v38  ;;  %1843 = vmatpush.bf16.msra.mxu2 %v11588_v1  ;;  %v16276_v38 = vld [vmem:[%s26299_s7 + $0x4c4] sm:$0xf0]  ;;  %v11432_v1 = vor.u32 %v16288_v58, %v11429_v59  ;;  %v16305_v58 = vld [vmem:[%s26299_s7 + $0x5b4] sm:$0xf] }
  0xb6   :  { %2026 = vmatpush.bf16.msrb.mxu1 %v11552_v33  ;;  %v16208_v33 = vld [vmem:[%s26299_s7 + $0x2ac] sm:$0xf]  ;;  %v11332_v44 = vor.u32 %v16276_v38, %v11331_v37  ;;  %v11696_v37 = vor.u32 %v16353_v30, %v11693_v31  ;;  %v11403_v38 = vld [vmem:[%s26299_s7 + $0x510] sm:$0xf]  ;;  %v11501_v59 = vld [vmem:[%s26299_s7 + $0x5f0] sm:$0xf0] }
  0xb7   :  { %v11112_v41 = vor.u32 %v16208_v33, %v11109_v34  ;;  %v11248_v33 = vor.u32 %v16241_v22, %v11245_v23  ;;  %v16225_v34 = vld [vmem:[%s26299_s7 + $0x334] sm:$0xf]  ;;  %v11539_v22 = vld [vmem:[%s26299_s7 + $0x618] sm:$0xf] }
  0xb8   :  { %v16257_v23 = vld [vmem:[%s26299_s7 + $0x434] sm:$0xf] }
  0xb9   :  { %2014 = vmatpush.bf16.msrb.mxu0 %v10976_v51  ;;  %1844 = vmatpush.bf16.msra.mxu2 %v11524_v14  ;;  %v16373_v51 = vld [vmem:[%s26299_s7 + $0x7cc] sm:$0xf0]  ;;  %v11301_v14 = vld [vmem:[%s26299_s7 + $0x468] sm:$0xf0]  ;;  %v16129_v31 = vld [vmem:[%s26299_s7 + $0x34] sm:$0xf] }
  0xba   :  { %2027 = vmatpush.bf16.msrb.mxu1 %v11488_v45  ;;  %v11560_v45 = vor.u32 %v16320_v39, %v11557_v40  ;;  %v11724_v57 = vor.u32 %v16373_v51, %v11723_v50  ;;  %v16293_v39 = vld [vmem:[%s26299_s7 + $0x54c] sm:$0xf0]  ;;  %v16337_v40 = vld [vmem:[%s26299_s7 + $0x6b4] sm:$0xf] }
  0xbb   :  { %v11565_v50 = vld [vmem:[%s26299_s7 + $0x670] sm:$0xf0] }
  0xbd   :  { %2015 = vmatpush.bf16.msrb.mxu0 %v10912_v61  ;;  %1845 = vmatpush.bf16.msra.mxu2 %v11460_v24  ;;  %v16357_v61 = vld [vmem:[%s26299_s7 + $0x74c] sm:$0xf0] }
  0xbe   :  { %2028 = vmatpush.bf16.msrb.mxu1 %v11424_v55  ;;  %v11268_v55 = vor.u32 %v16260_v47, %v11267_v46  ;;  %v11660_v2 = vor.u32 %v16357_v61, %v11659_v60  ;;  %v11339_v47 = vld [vmem:[%s26299_s7 + $0x490] sm:$0xf]  ;;  %v11731_v60 = vld [vmem:[%s26299_s7 + $0x798] sm:$0xf] }
  0xbf   :  { %v11340_v54 = vor.u32 %v16277_v48, %v11339_v47  ;;  %v16374_v61 = vld [vmem:[%s26299_s7 + $0x7d4] sm:$0xf0]  ;;  %v11189_v47 = vld [vmem:[%s26299_s7 + $0x378] sm:$0xf0] }
  0xc0   :  { %v11732_v3 = vor.u32 %v16374_v61, %v11731_v60  ;;  %v11125_v60 = vld [vmem:[%s26299_s7 + $0x2f8] sm:$0xf0] }
  0xc1   :  { %2016 = vmatpush.bf16.msrb.mxu0 %v10848_v5  ;;  %1846 = vmatpush.bf16.msra.mxu2 %v11396_v35  ;;  %v11595_v5 = vld [vmem:[%s26299_s7 + $0x690] sm:$0xf]  ;;  %v11181_v35 = vld [vmem:[%s26299_s7 + $0x370] sm:$0xf0] }
  0xc2   :  { %2029 = vmatpush.bf16.msrb.mxu1 %v11360_v0  ;;  %v10917_v0 = vld [vmem:[%s26299_s7 + $0x168] sm:$0xf0]  ;;  %v11184_v42 = vor.u32 %v16225_v34, %v11181_v35  ;;  %v16242_v34 = vld [vmem:[%s26299_s7 + $0x3bc] sm:$0xf] }
  0xc3   :  { %v10920_v7 = vor.u32 %v16160_v63, %v10917_v0  ;;  %v16177_v63 = vld [vmem:[%s26299_s7 + $0x1b4] sm:$0xf]  ;;  %v11253_v35 = vld [vmem:[%s26299_s7 + $0x3f8] sm:$0xf0] }
  0xc4   :  { %v10989_v0 = vld [vmem:[%s26299_s7 + $0x1f0] sm:$0xf0] }
  0xc5   :  { %2017 = vmatpush.bf16.msrb.mxu0 %v10784_v20  ;;  %1847 = vmatpush.bf16.msra.mxu2 %v11332_v44  ;;  %v10789_v20 = vld [vmem:[%s26299_s7 + $0x68] sm:$0xf0]  ;;  %v11117_v44 = vld [vmem:[%s26299_s7 + $0x2f0] sm:$0xf0]  ;;  %v10992_v8 = vor.u32 %v16177_v63, %v10989_v0  ;;  %v11347_v0 = vld [vmem:[%s26299_s7 + $0x498] sm:$0xf] }
  0xc6   :  { %2030 = vmatpush.bf16.msrb.mxu1 %v11296_v11  ;;  %v11596_v11 = vor.u32 %v16341_v6, %v11595_v5  ;;  %v11120_v51 = vor.u32 %v16209_v43, %v11117_v44  ;;  %v11437_v5 = vld [vmem:[%s26299_s7 + $0x570] sm:$0xf0]  ;;  %v11667_v6 = vld [vmem:[%s26299_s7 + $0x718] sm:$0xf]  ;;  %v11256_v44 = vor.u32 %v16242_v34, %v11253_v35  ;;  %v11003_v34 = vld [vmem:[%s26299_s7 + $0x200] sm:$0xf] }
  0xc7   :  { %v171_v43 = vld [vmem:[%s26304_s5 + $0x18] sm:$0xff]  ;;  %v16195_v35 = vld [vmem:[%s26299_s7 + $0x23c] sm:$0xf0] }
  0xc8   :  { %2018 = vmatmul.bf16.vlgmr.msrb.gmra.mxu0 %v17798_v29  ;;  %192 = vmatpush.msra.mxu3 %v171_v43  ;;  %v16274_v43 = vld [vmem:[%s26299_s7 + $0x4bc] sm:$0xf] }
  0xc9   :  { %2062 = vmatpush.bf16.msra.mxu0 %v11240_v21  ;;  %2031 = vmatmul.bf16.vlgmr.msrb.gmra.mxu1 %v17788_v26  ;;  %v11304_v21 = vor.u32 %v16256_v13, %v11301_v14  ;;  %v16273_v13 = vld [vmem:[%s26299_s7 + $0x4b4] sm:$0xf] }
  0xca   :  { %2075 = vmatpush.bf16.msra.mxu1 %v11752_v15  ;;  %1848 = vmatpush.bf16.msra.mxu2 %v11268_v55  ;;  %v16325_v15 = vld [vmem:[%s26299_s7 + $0x64c] sm:$0xf0]  ;;  %v11568_v55 = vor.u32 %v16321_v49, %v11565_v50  ;;  %v11373_v14 = vld [vmem:[%s26299_s7 + $0x4f0] sm:$0xf0]  ;;  %v11411_v50 = vld [vmem:[%s26299_s7 + $0x518] sm:$0xf] }
  0xcb   :  { %v11532_v24 = vor.u32 %v16325_v15, %v11531_v12  ;;  %v11603_v15 = vld [vmem:[%s26299_s7 + $0x698] sm:$0xf] }
  0xcd   :  { %2063 = vmatpush.bf16.msra.mxu0 %v11176_v32  ;;  %1849 = vmatmul.bf16.vlgmr.msra.gmra.mxu2 %v17788_v26  ;;  %v10792_v32 = vor.u32 %v16128_v19, %v10789_v20  ;;  %v10861_v19 = vld [vmem:[%s26299_s7 + $0xf0] sm:$0xf0]  ;;  %v11376_v20 = vor.u32 %v16273_v13, %v11373_v14  ;;  %v16262_v13 = vld [vmem:[%s26299_s7 + $0x454] sm:$0xf0]  ;;  %v16306_v14 = vld [vmem:[%s26299_s7 + $0x5bc] sm:$0xf] }
  0xce   :  { %2076 = vmatpush.bf16.msra.mxu1 %v11688_v25  ;;  %1893 = vmatpush.bf16.msrb.mxu2 %v11724_v57  ;;  %v11760_v25 = vor.u32 %v16369_v16, %v11757_v17  ;;  %v16261_v57 = vld [vmem:[%s26299_s7 + $0x44c] sm:$0xf0]  ;;  %v16342_v16 = vld [vmem:[%s26299_s7 + $0x6d4] sm:$0xf0] }
  0xd1   :  { %2064 = vmatpush.bf16.msra.mxu0 %v11112_v41  ;;  %v11629_v41 = vld [vmem:[%s26299_s7 + $0x6f0] sm:$0xf0] }
  0xd2   :  { %2077 = vmatpush.bf16.msra.mxu1 %v11624_v36  ;;  %1894 = vmatpush.bf16.msrb.mxu2 %v11660_v2  ;;  %v11468_v36 = vor.u32 %v16309_v28, %v11467_v27  ;;  %v11632_v46 = vor.u32 %v16337_v40, %v11629_v41  ;;  %v11504_v2 = vor.u32 %v16305_v58, %v11501_v59  ;;  %v16370_v27 = vld [vmem:[%s26299_s7 + $0x7bc] sm:$0xf]  ;;  %v16243_v58 = vld [vmem:[%s26299_s7 + $0x3bc] sm:$0xf0] }
  0xd3   :  { %v11765_v28 = vld [vmem:[%s26299_s7 + $0x7f8] sm:$0xf0] }
  0xd4   :  { %v16354_v40 = vld [vmem:[%s26299_s7 + $0x73c] sm:$0xf] }
  0xd5   :  { %2065 = vmatpush.bf16.msra.mxu0 %v11048_v52  ;;  %v16193_v52 = vld [vmem:[%s26299_s7 + $0x234] sm:$0xf]  ;;  %v11701_v41 = vld [vmem:[%s26299_s7 + $0x778] sm:$0xf0] }
  0xd6   :  { %2078 = vmatpush.bf16.msra.mxu1 %v11560_v45  ;;  %1895 = vmatpush.bf16.msrb.mxu2 %v11596_v11  ;;  %v11404_v45 = vor.u32 %v16293_v39, %v11403_v38  ;;  %v11440_v11 = vor.u32 %v16289_v4, %v11437_v5  ;;  %v11475_v38 = vld [vmem:[%s26299_s7 + $0x598] sm:$0xf]  ;;  %v11704_v49 = vor.u32 %v16354_v40, %v11701_v41  ;;  %v16210_v59 = vld [vmem:[%s26299_s7 + $0x2bc] sm:$0xf]  ;;  %v11131_v4 = vld [vmem:[%s26299_s7 + $0x300] sm:$0xf] }
  0xd7   :  { %v16310_v39 = vld [vmem:[%s26299_s7 + $0x5d4] sm:$0xf0]  ;;  %v16227_v5 = vld [vmem:[%s26299_s7 + $0x33c] sm:$0xf0] }
  0xd8   :  { %v11476_v48 = vor.u32 %v16310_v39, %v11475_v38  ;;  %v11004_v38 = vor.u32 %v16195_v35, %v11003_v34  ;;  %v11611_v40 = vld [vmem:[%s26299_s7 + $0x6a0] sm:$0xf] }
  0xd9   :  { %2066 = vmatpush.bf16.msra.mxu0 %v10984_v62  ;;  %v11056_v62 = vor.u32 %v16193_v52, %v11053_v53  ;;  %v16338_v52 = vld [vmem:[%s26299_s7 + $0x6bc] sm:$0xf]  ;;  %v16279_v34 = vld [vmem:[%s26299_s7 + $0x4dc] sm:$0xf0] }
  0xda   :  { %2079 = vmatpush.bf16.msra.mxu1 %v11496_v56  ;;  %1896 = vmatpush.bf16.msrb.mxu2 %v11532_v24  ;;  %v11275_v56 = vld [vmem:[%s26299_s7 + $0x410] sm:$0xf]  ;;  %v11309_v24 = vld [vmem:[%s26299_s7 + $0x470] sm:$0xf0]  ;;  %v11637_v53 = vld [vmem:[%s26299_s7 + $0x6f8] sm:$0xf0] }
  0xdb   :  { %v11640_v63 = vor.u32 %v16338_v52, %v11637_v53  ;;  %v12667_v35 = vld [vmem:[%s26306_s9 + $0x700] sm:$0xf] }
  0xdd   :  { %2067 = vmatpush.bf16.msra.mxu0 %v10920_v7  ;;  %v16358_v7 = vld [vmem:[%s26299_s7 + $0x754] sm:$0xf0] }
  0xde   :  { %2080 = vmatpush.bf16.msra.mxu1 %v11432_v1  ;;  %1897 = vmatpush.bf16.msrb.mxu2 %v11468_v36  ;;  %v11276_v1 = vor.u32 %v16261_v57, %v11275_v56  ;;  %v11668_v12 = vor.u32 %v16358_v7, %v11667_v6  ;;  %v168_v57 = vld [vmem:[%s26304_s5] sm:$0xff]  ;;  %v11128_v6 = vor.u32 %v16210_v59, %v11125_v60  ;;  %v11317_v59 = vld [vmem:[%s26299_s7 + $0x478] sm:$0xf0] }
  0xdf   :  { %v11132_v7 = vor.u32 %v16227_v5, %v11131_v4  ;;  %v12763_v60 = vld [vmem:[%s26306_s9 + $0x7c0] sm:$0xf]  ;;  %v10805_v4 = vld [vmem:[%s26299_s7 + $0x78] sm:$0xf0] }
  0xe1   :  { %2068 = vmatpush.bf16.msra.mxu0 %v10856_v18  ;;  %v16145_v18 = vld [vmem:[%s26299_s7 + $0xb4] sm:$0xf] }
  0xe2   :  { %2081 = vmatpush.bf16.msra.mxu1 %v11368_v10  ;;  %1898 = vmatpush.bf16.msrb.mxu2 %v11404_v45  ;;  %v10925_v10 = vld [vmem:[%s26299_s7 + $0x170] sm:$0xf0]  ;;  %v10864_v30 = vor.u32 %v16145_v18, %v10861_v19  ;;  %v11739_v18 = vld [vmem:[%s26299_s7 + $0x7a0] sm:$0xf] }
  0xe3   :  { %v10928_v17 = vor.u32 %v16161_v9, %v10925_v10  ;;  %v170_v45 = vld [vmem:[%s26304_s5 + $0x10] sm:$0xff]  ;;  %v11061_v9 = vld [vmem:[%s26299_s7 + $0x278] sm:$0xf0]  ;;  %v16375_v19 = vld [vmem:[%s26299_s7 + $0x7dc] sm:$0xf0] }
  0xe4   :  { %193 = vmatpush.msra.mxu3 %v170_v45 }
  0xe5   :  { %2069 = vmatpush.bf16.msra.mxu0 %v10792_v32  ;;  %v10797_v32 = vld [vmem:[%s26299_s7 + $0x70] sm:$0xf0] }
  0xe6   :  { %2082 = vmatpush.bf16.msra.mxu1 %v11304_v21  ;;  %1899 = vmatpush.bf16.msrb.mxu2 %v11340_v54  ;;  %v11604_v21 = vor.u32 %v16342_v16, %v11603_v15  ;;  %v169_v54 = vld [vmem:[%s26304_s5 + $0x8] sm:$0xff]  ;;  %v11509_v15 = vld [vmem:[%s26299_s7 + $0x5f8] sm:$0xf0]  ;;  %v11067_v16 = vld [vmem:[%s26299_s7 + $0x280] sm:$0xf] }
  0xe7   :  { %194 = vmatpush.msra.mxu3 %v169_v54 }
  0xe8   :  { %2070 = vmatmul.bf16.vlgmr.msra.gmra.mxu0 %v17798_v29 }
  0xe9   :  { %2114 = vmatpush.bf16.msrb.mxu0 %v11248_v33  ;;  %2083 = vmatmul.bf16.vlgmr.msra.gmra.mxu1 %v17788_v26  ;;  %v11312_v33 = vor.u32 %v16257_v23, %v11309_v24  ;;  %v10997_v23 = vld [vmem:[%s26299_s7 + $0x1f8] sm:$0xf0] }
  0xea   :  { %2127 = vmatpush.bf16.msrb.mxu1 %v11760_v25  ;;  %1900 = vmatpush.bf16.msrb.mxu2 %v11276_v1  ;;  %v16326_v25 = vld [vmem:[%s26299_s7 + $0x654] sm:$0xf0] }
  0xeb   :  { %v11540_v36 = vor.u32 %v16326_v25, %v11539_v22  ;;  %v16278_v1 = vld [vmem:[%s26299_s7 + $0x4d4] sm:$0xf0]  ;;  %195 = vmatpush.msra.mxu3 %v168_v57  ;;  %v16178_v22 = vld [vmem:[%s26299_s7 + $0x1bc] sm:$0xf]  ;;  %v11512_v25 = vor.u32 %v16306_v14, %v11509_v15  ;;  %v10811_v15 = vld [vmem:[%s26299_s7 + $0x80] sm:$0xf] }
  0xec   :  { %v11348_v10 = vor.u32 %v16278_v1, %v11347_v0  ;;  %v1824_v0 = vpop.f32.mrf.mxu1  ;;  %v10875_v1 = vld [vmem:[%s26299_s7 + $0x100] sm:$0xf] }
  0xed   :  { %2115 = vmatpush.bf16.msrb.mxu0 %v11184_v42  ;;  %1901 = vmatmul.bf16.vlgmr.msrb.gmra.mxu2 %v17788_v26  ;;  %v10800_v42 = vor.u32 %v16129_v31, %v10797_v32  ;;  %v11445_v31 = vld [vmem:[%s26299_s7 + $0x578] sm:$0xf0]  ;;  %v16359_v32 = vld [vmem:[%s26299_s7 + $0x75c] sm:$0xf0] }
  0xee   :  { %2128 = vmatpush.bf16.msrb.mxu1 %v11696_v37  ;;  %1945 = vmatpush.bf16.msra.mxu2 %v11732_v3  ;;  %v11768_v37 = vor.u32 %v16370_v27, %v11765_v28  ;;  %v11573_v3 = vld [vmem:[%s26299_s7 + $0x678] sm:$0xf0]  ;;  %v11740_v27 = vor.u32 %v16375_v19, %v11739_v18  ;;  %v11675_v28 = vld [vmem:[%s26299_s7 + $0x720] sm:$0xf] }
  0xef   :  { %v11676_v41 = vor.u32 %v16359_v32, %v11675_v28  ;;  %v16131_v28 = vld [vmem:[%s26299_s7 + $0x3c] sm:$0xf0] }
  0xf1   :  { %2116 = vmatpush.bf16.msrb.mxu0 %v11120_v51  ;;  %v16294_v51 = vld [vmem:[%s26299_s7 + $0x554] sm:$0xf0] }
  0xf2   :  { %2129 = vmatpush.bf16.msrb.mxu1 %v11632_v46  ;;  %1946 = vmatpush.bf16.msra.mxu2 %v11668_v12  ;;  %v16226_v46 = vld [vmem:[%s26299_s7 + $0x33c] sm:$0xf]  ;;  %v11283_v12 = vld [vmem:[%s26299_s7 + $0x418] sm:$0xf] }
  0xf3   :  { %v11192_v56 = vor.u32 %v16226_v46, %v11189_v47  ;;  %v11284_v24 = vor.u32 %v16262_v13, %v11283_v12  ;;  %v10939_v46 = vld [vmem:[%s26299_s7 + $0x180] sm:$0xf] }
  0xf4   :  { %v16179_v47 = vld [vmem:[%s26299_s7 + $0x1bc] sm:$0xf0] }
  0xf5   :  { %2117 = vmatpush.bf16.msrb.mxu0 %v11056_v62  ;;  %v11412_v62 = vor.u32 %v16294_v51, %v11411_v50  ;;  %v16146_v50 = vld [vmem:[%s26299_s7 + $0xbc] sm:$0xf]  ;;  %v10940_v52 = vor.u32 %v16179_v47, %v10939_v46  ;;  %v12731_v12 = vld [vmem:[%s26306_s9 + $0x780] sm:$0xf] }
  0xf6   :  { %2130 = vmatpush.bf16.msrb.mxu1 %v11568_v55  ;;  %1947 = vmatpush.bf16.msra.mxu2 %v11604_v21  ;;  %v11195_v55 = vld [vmem:[%s26299_s7 + $0x380] sm:$0xf]  ;;  %v10869_v51 = vld [vmem:[%s26299_s7 + $0xf8] sm:$0xf0] }
  0xf7   :  { %v11196_v61 = vor.u32 %v16243_v58, %v11195_v55  ;;  %v11547_v55 = vld [vmem:[%s26299_s7 + $0x620] sm:$0xf]  ;;  %v16258_v58 = vld [vmem:[%s26299_s7 + $0x43c] sm:$0xf] }
  0xf8   :  { %v16623_v13 = vld [vmem:[%s26306_s9 + $0x79c] sm:$0xf0] }
  0xf9   :  { %2118 = vmatpush.bf16.msrb.mxu0 %v10992_v8  ;;  %1776 = vmatpush.bf16.msrb.mxu3 %v11196_v61  ;;  %v16194_v8 = vld [vmem:[%s26299_s7 + $0x23c] sm:$0xf] }
  0xfa   :  { %2131 = vmatpush.bf16.msrb.mxu1 %v11504_v2  ;;  %1948 = vmatpush.bf16.msra.mxu2 %v11540_v36  ;;  %v16322_v2 = vld [vmem:[%s26299_s7 + $0x63c] sm:$0xf] }
  0xfb   :  { %v16162_v36 = vld [vmem:[%s26299_s7 + $0x13c] sm:$0xf] }
  0xfd   :  { %2119 = vmatpush.bf16.msrb.mxu0 %v10928_v17  ;;  %v16211_v17 = vld [vmem:[%s26299_s7 + $0x2bc] sm:$0xf0]  ;;  %1777 = vmatpush.bf16.msrb.mxu3 %v11132_v7  ;;  %v11320_v7 = vor.u32 %v16258_v58, %v11317_v59 }
  0xfe   :  { %2132 = vmatpush.bf16.msrb.mxu1 %v11440_v11  ;;  %1949 = vmatpush.bf16.msra.mxu2 %v11476_v48  ;;  %v11576_v11 = vor.u32 %v16322_v2, %v11573_v3  ;;  %v11068_v21 = vor.u32 %v16211_v17, %v11067_v16  ;;  %v18729_v48 = vld [vmem:[%s26305_s8] sm:$0xff]  ;;  %v16130_v3 = vld [vmem:[%s26299_s7 + $0x3c] sm:$0xf] }
  0xff   :  { %v465_v53 = vperm.slane %v18729_v48, 1  ;;  %v16163_v2 = vld [vmem:[%s26299_s7 + $0x13c] sm:$0xf0]  ;;  %v10808_v14 = vor.u32 %v16130_v3, %v10805_v4  ;;  %v467_v47 = vperm.slane %v18729_v48, 3  ;;  %v11555_v4 = vld [vmem:[%s26299_s7 + $0x628] sm:$0xf] }
 0x100   :  { %v16147_v16 = vld [vmem:[%s26299_s7 + $0xbc] sm:$0xf0] }
 0x101   :  { %2120 = vmatpush.bf16.msrb.mxu0 %v10864_v30  ;;  %v16290_v30 = vld [vmem:[%s26299_s7 + $0x53c] sm:$0xf]  ;;  %1778 = vmatpush.bf16.msrb.mxu3 %v11068_v21  ;;  %v10812_v18 = vor.u32 %v16147_v16, %v10811_v15  ;;  %v11419_v21 = vld [vmem:[%s26299_s7 + $0x520] sm:$0xf]  ;;  %v11491_v15 = vld [vmem:[%s26299_s7 + $0x5a8] sm:$0xf] }
 0x102   :  { %2133 = vmatpush.bf16.msrb.mxu1 %v11376_v20  ;;  %1950 = vmatpush.bf16.msra.mxu2 %v11412_v62  ;;  %v11064_v20 = vor.u32 %v16194_v8, %v11061_v9  ;;  %v11448_v39 = vor.u32 %v16290_v30, %v11445_v31  ;;  %v16631_v62 = vld [vmem:[%s26306_s9 + $0x7dc] sm:$0xf0]  ;;  %v469_v16 = vperm.slane %v18729_v48, 5 }
 0x103   :  { %v12764_v9 = vor.u32 %v16631_v62, %v12763_v60  ;;  %v12571_v59 = vld [vmem:[%s26306_s9 + $0x640] sm:$0xf]  ;;  %v11619_v62 = vld [vmem:[%s26299_s7 + $0x6a8] sm:$0xf] }
 0x104   :  { %v16583_v60 = vld [vmem:[%s26306_s9 + $0x65c] sm:$0xf0] }
 0x105   :  { %2121 = vmatpush.bf16.msrb.mxu0 %v10800_v42  ;;  %v16343_v42 = vld [vmem:[%s26299_s7 + $0x6dc] sm:$0xf0]  ;;  %1779 = vmatpush.bf16.msrb.mxu3 %v11004_v38 }
 0x106   :  { %2134 = vmatpush.bf16.msrb.mxu1 %v11312_v33  ;;  %1951 = vmatpush.bf16.msra.mxu2 %v11348_v10  ;;  %v11000_v33 = vor.u32 %v16178_v22, %v10997_v23  ;;  %v11612_v57 = vor.u32 %v16343_v42, %v11611_v40  ;;  %v11483_v10 = vld [vmem:[%s26299_s7 + $0x5a0] sm:$0xf] }
 0x107   :  { %v16295_v22 = vld [vmem:[%s26299_s7 + $0x55c] sm:$0xf0] }
 0x108   :  { %2122 = vmatmul.bf16.vlgmr.msrb.gmra.mxu0 %v17798_v29  ;;  %v12699_v23 = vld [vmem:[%s26306_s9 + $0x740] sm:$0xf]  ;;  %v11420_v31 = vor.u32 %v16295_v22, %v11419_v21 }
 0x109   :  { %2166 = vmatpush.bf16.msra.mxu0 %v11256_v44  ;;  %2135 = vmatmul.bf16.vlgmr.msrb.gmra.mxu1 %v17788_v26  ;;  %v11381_v44 = vld [vmem:[%s26299_s7 + $0x4f8] sm:$0xf0]  ;;  %v16263_v40 = vld [vmem:[%s26299_s7 + $0x45c] sm:$0xf0] }
 0x10a   :  { %2179 = vmatpush.bf16.msra.mxu1 %v11768_v37  ;;  %v10933_v37 = vld [vmem:[%s26299_s7 + $0x178] sm:$0xf0]  ;;  %1952 = vmatpush.bf16.msra.mxu2 %v11284_v24  ;;  %v11384_v54 = vor.u32 %v16274_v43, %v11381_v44  ;;  %v16615_v24 = vld [vmem:[%s26306_s9 + $0x75c] sm:$0xf0]  ;;  %v11747_v44 = vld [vmem:[%s26299_s7 + $0x7a8] sm:$0xf] }
 0x10b   :  { %v10936_v45 = vor.u32 %v16162_v36, %v10933_v37  ;;  %1780 = vmatpush.bf16.msrb.mxu3 %v10940_v52  ;;  %v12700_v32 = vor.u32 %v16615_v24, %v12699_v23  ;;  %v16607_v36 = vld [vmem:[%s26306_s9 + $0x71c] sm:$0xf0] }
 0x10c   :  { %v12668_v38 = vor.u32 %v16607_v36, %v12667_v35  ;;  %v16599_v42 = vld [vmem:[%s26306_s9 + $0x6dc] sm:$0xf0] }
 0x10d   :  { %2167 = vmatpush.bf16.msra.mxu0 %v11192_v56  ;;  %1953 = vmatmul.bf16.vlgmr.msra.gmra.mxu2 %v17788_v26  ;;  %v16327_v56 = vld [vmem:[%s26299_s7 + $0x65c] sm:$0xf0] }
 0x10e   :  { %2180 = vmatpush.bf16.msra.mxu1 %v11704_v49  ;;  %1997 = vmatpush.bf16.msrb.mxu2 %v11740_v27  ;;  %v1811_v49 = vpop.f32.mrf.mxu0  ;;  %v11548_v8 = vor.u32 %v16327_v56, %v11547_v55  ;;  %v10747_v27 = vld [vmem:[%s26299_s7] sm:$0xf]  ;;  %v16360_v55 = vld [vmem:[%s26299_s7 + $0x764] sm:$0xf0] }
 0x10f   :  { %v1812_v61 = vadd.f32 %v1811_v49, %v465_v53  ;;  %v10748_v30 = vor.u32 %v16131_v28, %v10747_v27  ;;  %v12603_v52 = vld [vmem:[%s26306_s9 + $0x680] sm:$0xf]  ;;  %v11203_v28 = vld [vmem:[%s26299_s7 + $0x388] sm:$0xf] }
 0x110   :  { %v16591_v53 = vld [vmem:[%s26306_s9 + $0x69c] sm:$0xf0] }
 0x111   :  { %2168 = vmatpush.bf16.msra.mxu0 %v11128_v6  ;;  %v18769_v5 = vadd.f32 %v1824_v0, %v1812_v61  ;;  %v10876_v6 = vor.u32 %v16163_v2, %v10875_v1  ;;  %v12572_v2 = vor.u32 %v16583_v60, %v12571_v59  ;;  %v17468_v24 = vld [vmem:[%s26303_s4] ss:$0 sm:$0xff]  ;;  %v16377_v59 = vld [vmem:[%s26299_s7 + $0x7ec] sm:$0xf0] }
 0x112   :  { %2181 = vmatpush.bf16.msra.mxu1 %v11640_v63  ;;  %1998 = vmatpush.bf16.msrb.mxu2 %v11676_v41  ;;  %v10872_v63 = vor.u32 %v16146_v50, %v10869_v51  ;;  %v12635_v41 = vld [vmem:[%s26306_s9 + $0x6c0] sm:$0xf] }
 0x113   :  { %1781 = vmatpush.bf16.msrb.mxu3 %v10876_v6  ;;  %v12636_v50 = vor.u32 %v16599_v42, %v12635_v41  ;;  %v12539_v6 = vld [vmem:[%s26306_s9 + $0x600] sm:$0xf]  ;;  %v16228_v41 = vld [vmem:[%s26299_s7 + $0x344] sm:$0xf0] }
 0x114   :  { %v13723_v35 = vld [vmem:[%s26306_s9 + $0xf40] sm:$0xf] }
 0x115   :  { %2169 = vmatpush.bf16.msra.mxu0 %v11064_v20  ;;  %v12732_v20 = vor.u32 %v16623_v13, %v12731_v12  ;;  %v16871_v36 = vld [vmem:[%s26306_s9 + $0xf5c] sm:$0xf0] }
 0x116   :  { %2182 = vmatpush.bf16.msra.mxu1 %v11576_v11  ;;  %1999 = vmatpush.bf16.msrb.mxu2 %v11612_v57  ;;  %v16311_v11 = vld [vmem:[%s26299_s7 + $0x5dc] sm:$0xf0]  ;;  %v1813_v17 = vpop.f32.mrf.mxu0  ;;  %v12604_v57 = vor.u32 %v16591_v53, %v12603_v52  ;;  %v11075_v53 = vld [vmem:[%s26299_s7 + $0x288] sm:$0xf] }
 0x117   :  { %v11484_v19 = vor.u32 %v16311_v11, %v11483_v10  ;;  %1782 = vmatpush.bf16.msrb.mxu3 %v10812_v18  ;;  %v16887_v10 = vld [vmem:[%s26306_s9 + $0xfdc] sm:$0xf0]  ;;  %v16312_v18 = vld [vmem:[%s26299_s7 + $0x5e4] sm:$0xf0] }
 0x118   :  { %v13659_v60 = vld [vmem:[%s26306_s9 + $0xec0] sm:$0xf] }
 0x119   :  { %2170 = vmatpush.bf16.msra.mxu0 %v11000_v33  ;;  %v11355_v33 = vld [vmem:[%s26299_s7 + $0x4a0] sm:$0xf] }
 0x11a   :  { %2183 = vmatpush.bf16.msra.mxu1 %v11512_v25  ;;  %2000 = vmatpush.bf16.msrb.mxu2 %v11548_v8  ;;  %v1826_v25 = vpop.f32.mrf.mxu1  ;;  %v11356_v37 = vor.u32 %v16279_v34, %v11355_v33  ;;  %v16328_v8 = vld [vmem:[%s26299_s7 + $0x664] sm:$0xf0] }
 0x11b   :  { %1783 = vmatpush.bf16.msrb.mxu3 %v10748_v30  ;;  %v11556_v13 = vor.u32 %v16328_v8, %v11555_v4  ;;  %v11492_v25 = vor.u32 %v16312_v18, %v11491_v15  ;;  %v16296_v33 = vld [vmem:[%s26299_s7 + $0x564] sm:$0xf0]  ;;  %v16345_v18 = vld [vmem:[%s26299_s7 + $0x6ec] sm:$0xf0] }
 0x11c   :  { %v10947_v15 = vld [vmem:[%s26299_s7 + $0x188] sm:$0xf] }
 0x11d   :  { %2171 = vmatpush.bf16.msra.mxu0 %v10936_v45  ;;  %v16376_v45 = vld [vmem:[%s26299_s7 + $0x7e4] sm:$0xf0] }
 0x11e   :  { %2184 = vmatpush.bf16.msra.mxu1 %v11448_v39  ;;  %2001 = vmatpush.bf16.msrb.mxu2 %v11484_v19  ;;  %v11291_v39 = vld [vmem:[%s26299_s7 + $0x420] sm:$0xf]  ;;  %v1863_v43 = vpop.f32.mrf.mxu0  ;;  %v11748_v51 = vor.u32 %v16376_v45, %v11747_v44  ;;  %v13724_v44 = vor.u32 %v16871_v36, %v13723_v35  ;;  %v11363_v45 = vld [vmem:[%s26299_s7 + $0x4a8] sm:$0xf] }
 0x11f   :  { %v11292_v49 = vor.u32 %v16263_v40, %v11291_v39  ;;  %v1864_v56 = vadd.f32 %v1863_v43, %v467_v47  ;;  %v13755_v19 = vld [vmem:[%s26306_s9 + $0xf80] sm:$0xf]  ;;  %v11139_v40 = vld [vmem:[%s26299_s7 + $0x308] sm:$0xf] }
 0x120   :  { %v13563_v35 = vld [vmem:[%s26306_s9 + $0xe00] sm:$0xf] }
 0x121   :  { %2172 = vmatpush.bf16.msra.mxu0 %v10872_v63  ;;  %v16344_v63 = vld [vmem:[%s26299_s7 + $0x6e4] sm:$0xf0]  ;;  %v16831_v36 = vld [vmem:[%s26306_s9 + $0xe1c] sm:$0xf0] }
 0x122   :  { %2185 = vmatpush.bf16.msra.mxu1 %v11384_v54  ;;  %2002 = vmatpush.bf16.msrb.mxu2 %v11420_v31  ;;  %v1876_v46 = vpop.f32.mrf.mxu1  ;;  %v11683_v54 = vld [vmem:[%s26299_s7 + $0x728] sm:$0xf]  ;;  %v11620_v3 = vor.u32 %v16344_v63, %v11619_v62 }
 0x123   :  { %v11684_v58 = vor.u32 %v16360_v55, %v11683_v54  ;;  %v1877_v1 = vadd.f32 %v1876_v46, %v1864_v56  ;;  %v16244_v31 = vld [vmem:[%s26299_s7 + $0x3c4] sm:$0xf0] }
 0x124   :  { %v16280_v46 = vld [vmem:[%s26299_s7 + $0x4e4] sm:$0xf0] }
 0x125   :  { %2173 = vmatpush.bf16.msra.mxu0 %v10808_v14  ;;  %v2195_v11 = vmax.f32 %v1877_v1, 0.0  ;;  %v11364_v52 = vor.u32 %v16280_v46, %v11363_v45  ;;  %v16212_v54 = vld [vmem:[%s26299_s7 + $0x2c4] sm:$0xf0]  ;;  %v471_v1 = vperm.slane %v18729_v48, 7  ;;  %v13627_v48 = vld [vmem:[%s26306_s9 + $0xe80] sm:$0xf] }
 0x126   :  { %2186 = vmatpush.bf16.msra.mxu1 %v11320_v7  ;;  %2003 = vmatpush.bf16.msrb.mxu2 %v11356_v37  ;;  %v1865_v61 = vpop.f32.mrf.mxu0  ;;  %v16575_v7 = vld [vmem:[%s26306_s9 + $0x61c] sm:$0xf0]  ;;  %v11299_v56 = vld [vmem:[%s26299_s7 + $0x428] sm:$0xf]  ;;  %v11076_v62 = vor.u32 %v16212_v54, %v11075_v53  ;;  %v11499_v46 = vld [vmem:[%s26299_s7 + $0x5b0] sm:$0xf] }
 0x127   :  { %v12540_v12 = vor.u32 %v16575_v7, %v12539_v6  ;;  %v18896_v22 = vpack.c.bf16 %v2195_v11, %v2195_v11  ;;  %v16855_v61 = vld [vmem:[%s26306_s9 + $0xedc] sm:$0xf0]  ;;  %v16196_v6 = vld [vmem:[%s26299_s7 + $0x244] sm:$0xf0]  ;;  %v11691_v7 = vld [vmem:[%s26299_s7 + $0x730] sm:$0xf] }
 0x128   :  { %2174 = vmatmul.bf16.vlgmr.msra.gmra.mxu0 %v17798_v29  ;;  %v13660_v4 = vor.u32 %v16855_v61, %v13659_v60 }
 0x129   :  { %2187 = vmatmul.bf16.vlgmr.msra.gmra.mxu1 %v17788_v26 }
 0x12a   :  { %8425 = vmatpush.bf16.msrb.mxu1 %v12764_v9  ;;  %2004 = vmatpush.bf16.msrb.mxu2 %v11292_v49  ;;  %v1878_v0 = vpop.f32.mrf.mxu1  ;;  %v13787_v9 = vld [vmem:[%s26306_s9 + $0xfc0] sm:$0xf] }
 0x12b   :  { %v13788_v14 = vor.u32 %v16887_v10, %v13787_v9  ;;  %v13691_v49 = vld [vmem:[%s26306_s9 + $0xf00] sm:$0xf]  ;;  %v11011_v0 = vld [vmem:[%s26299_s7 + $0x208] sm:$0xf]  ;;  %v16361_v9 = vld [vmem:[%s26299_s7 + $0x76c] sm:$0xf0] }
 0x12c   :  { %v16847_v10 = vld [vmem:[%s26306_s9 + $0xe9c] sm:$0xf0]  ;;  %v11012_v11 = vor.u32 %v16196_v6, %v11011_v0  ;;  %v16297_v0 = vld [vmem:[%s26299_s7 + $0x56c] sm:$0xf0] }
 0x12d   :  { %2005 = vmatmul.bf16.vlgmr.msrb.gmra.mxu2 %v17788_v26 }
 0x12e   :  { %8426 = vmatpush.bf16.msrb.mxu1 %v12732_v20  ;;  %2049 = vmatpush.bf16.msra.mxu2 %v11748_v51  ;;  %v1915_v17 = vpop.f32.mrf.mxu0  ;;  %v16879_v20 = vld [vmem:[%s26306_s9 + $0xf9c] sm:$0xf0]  ;;  %v11140_v51 = vor.u32 %v16228_v41, %v11139_v40 }
 0x12f   :  { %v1916_v23 = vadd.f32 %v1915_v17, %v469_v16  ;;  %v13756_v27 = vor.u32 %v16879_v20, %v13755_v19  ;;  %v164_v34 = vpop.f32.mrf.mxu2  ;;  %v16180_v16 = vld [vmem:[%s26299_s7 + $0x1c4] sm:$0xf0]  ;;  %v11627_v17 = vld [vmem:[%s26299_s7 + $0x6b0] sm:$0xf]  ;;  %v13595_v19 = vld [vmem:[%s26306_s9 + $0xe40] sm:$0xf] }
 0x130   :  { %v165_v37 = vadd.f32 %v17468_v24, %v164_v34  ;;  %v16839_v20 = vld [vmem:[%s26306_s9 + $0xe5c] sm:$0xf0]  ;;  %v16329_v34 = vld [vmem:[%s26299_s7 + $0x66c] sm:$0xf0] }
 0x132   :  { %8427 = vmatpush.bf16.msrb.mxu1 %v12700_v32  ;;  %2050 = vmatpush.bf16.msra.mxu2 %v11684_v58  ;;  %v1928_v21 = vpop.f32.mrf.mxu1  ;;  %v11427_v32 = vld [vmem:[%s26299_s7 + $0x528] sm:$0xf]  ;;  %v167_v43 = vmax.f32 %v165_v37, 0.0  ;;  %v11755_v58 = vld [vmem:[%s26299_s7 + $0x7b0] sm:$0xf] }
 0x133   :  { %v18904_v30 = vadd.f32 %v1928_v21, %v1916_v23  ;;  %v11428_v39 = vor.u32 %v16296_v33, %v11427_v32  ;;  %v10948_v21 = vor.u32 %v16180_v16, %v10947_v15  ;;  %v11563_v32 = vld [vmem:[%s26299_s7 + $0x630] sm:$0xf]  ;;  %v14811_v37 = vld [vmem:[%s26306_s9 + $0x17c0] sm:$0xf] }
 0x134   :  { %10744 = vmatmul.msk.f32.vlgmr.msra.gmra.mxu3 %vm176_vm1, %v167_v43  ;;  %v11564_v41 = vor.u32 %v16329_v34, %v11563_v32  ;;  %v10819_v43 = vld [vmem:[%s26299_s7 + $0x88] sm:$0xf]  ;;  %v11019_v34 = vld [vmem:[%s26299_s7 + $0x210] sm:$0xf] }
 0x136   :  { %8428 = vmatpush.bf16.msrb.mxu1 %v12668_v38  ;;  %2051 = vmatpush.bf16.msra.mxu2 %v11620_v3  ;;  %v11204_v38 = vor.u32 %v16244_v31, %v11203_v28  ;;  %v1917_v42 = vpop.f32.mrf.mxu0  ;;  %v11756_v3 = vor.u32 %v16377_v59, %v11755_v58  ;;  %v10883_v28 = vld [vmem:[%s26299_s7 + $0x108] sm:$0xf]  ;;  %v11211_v59 = vld [vmem:[%s26299_s7 + $0x390] sm:$0xf] }
 0x137   :  { %v16164_v31 = vld [vmem:[%s26299_s7 + $0x144] sm:$0xf0]  ;;  %v13564_v42 = vor.u32 %v16831_v36, %v13563_v35 }
 0x138   :  { %1828 = vmatpush.bf16.msra.mxu3 %v11204_v38  ;;  %v17143_v38 = vld [vmem:[%s26306_s9 + $0x17dc] sm:$0xf0]  ;;  %v16132_v58 = vld [vmem:[%s26299_s7 + $0x44] sm:$0xf0] }
 0x139   :  { %v14812_v45 = vor.u32 %v17143_v38, %v14811_v37  ;;  %v16197_v37 = vld [vmem:[%s26299_s7 + $0x24c] sm:$0xf0]  ;;  %v11699_v38 = vld [vmem:[%s26299_s7 + $0x738] sm:$0xf] }
 0x13a   :  { %8429 = vmatpush.bf16.msrb.mxu1 %v12636_v50  ;;  %2052 = vmatpush.bf16.msra.mxu2 %v11556_v13  ;;  %v1930_v47 = vpop.f32.mrf.mxu1  ;;  %v16863_v50 = vld [vmem:[%s26306_s9 + $0xf1c] sm:$0xf0]  ;;  %v11692_v13 = vor.u32 %v16361_v9, %v11691_v7  ;;  %v11147_v9 = vld [vmem:[%s26299_s7 + $0x310] sm:$0xf] }
 0x13b   :  { %v13692_v55 = vor.u32 %v16863_v50, %v13691_v49  ;;  %v16313_v47 = vld [vmem:[%s26299_s7 + $0x5ec] sm:$0xf0]  ;;  %v14779_v49 = vld [vmem:[%s26306_s9 + $0x1780] sm:$0xf] }
 0x13c   :  { %1829 = vmatpush.bf16.msra.mxu3 %v11140_v51  ;;  %v17135_v50 = vld [vmem:[%s26306_s9 + $0x179c] sm:$0xf0]  ;;  %v19048_v51 = vld [vmem:[%s26305_s8 + $0x8] sm:$0xff] }
 0x13d   :  { %1784 = vmatmul.bf16.vlgmr.msrb.gmra.mxu3 %v17798_v29  ;;  %v473_v54 = vperm.slane %v19048_v51, 1  ;;  %v14780_v61 = vor.u32 %v17135_v50, %v14779_v49  ;;  %v10955_v49 = vld [vmem:[%s26299_s7 + $0x190] sm:$0xf] }
 0x13e   :  { %8430 = vmatpush.bf16.msrb.mxu1 %v12604_v57  ;;  %2053 = vmatpush.bf16.msra.mxu2 %v11492_v25  ;;  %v16264_v57 = vld [vmem:[%s26299_s7 + $0x464] sm:$0xf0]  ;;  %v11628_v25 = vor.u32 %v16345_v18, %v11627_v17  ;;  %v11083_v18 = vld [vmem:[%s26299_s7 + $0x290] sm:$0xf] }
 0x13f   :  { %v11300_v63 = vor.u32 %v16264_v57, %v11299_v56  ;;  %v11500_v56 = vor.u32 %v16313_v47, %v11499_v46  ;;  %v10755_v57 = vld [vmem:[%s26299_s7 + $0x8] sm:$0xf]  ;;  %v16181_v50 = vld [vmem:[%s26299_s7 + $0x1cc] sm:$0xf0] }
 0x140   :  { %1830 = vmatpush.bf16.msra.mxu3 %v11076_v62  ;;  %v16245_v62 = vld [vmem:[%s26299_s7 + $0x3cc] sm:$0xf0] }
 0x141   :  { %v11212_v7 = vor.u32 %v16245_v62, %v11211_v59  ;;  %v10891_v62 = vld [vmem:[%s26299_s7 + $0x110] sm:$0xf] }
 0x142   :  { %8431 = vmatpush.bf16.msrb.mxu1 %v12572_v2  ;;  %2054 = vmatpush.bf16.msra.mxu2 %v11428_v39  ;;  %v1967_v2 = vpop.f32.mrf.mxu0  ;;  %v1980_v8 = vpop.f32.mrf.mxu1  ;;  %v10884_v39 = vor.u32 %v16164_v31, %v10883_v28  ;;  %v14683_v28 = vld [vmem:[%s26306_s9 + $0x16c0] sm:$0xf] }
 0x143   :  { %v17111_v31 = vld [vmem:[%s26306_s9 + $0x16dc] sm:$0xf0] }
 0x144   :  { %1831 = vmatpush.bf16.msra.mxu3 %v11012_v11  ;;  %v11371_v11 = vld [vmem:[%s26299_s7 + $0x4b0] sm:$0xf]  ;;  %v14684_v36 = vor.u32 %v17111_v31, %v14683_v28  ;;  %v16246_v31 = vld [vmem:[%s26299_s7 + $0x3d4] sm:$0xf0] }
 0x146   :  { %8432 = vmatpush.bf16.msrb.mxu1 %v12540_v12  ;;  %2055 = vmatpush.bf16.msra.mxu2 %v11364_v52  ;;  %v1968_v12 = vadd.f32 %v1967_v2, %v471_v1  ;;  %v14747_v2 = vld [vmem:[%s26306_s9 + $0x1740] sm:$0xf] }
 0x148   :  { %v1981_v23 = vadd.f32 %v1980_v8, %v1968_v12  ;;  %1832 = vmatpush.bf16.msra.mxu3 %v10948_v21  ;;  %v16281_v12 = vld [vmem:[%s26299_s7 + $0x4ec] sm:$0xf0] }
 0x149   :  { %8433 = vmatmul.bf16.vlgmr.msrb.gmra.mxu1 %v18896_v22  ;;  %v11372_v17 = vor.u32 %v16281_v12, %v11371_v11  ;;  %v10827_v12 = vld [vmem:[%s26299_s7 + $0x90] sm:$0xf] }
 0x14a   :  { %8477 = vmatpush.bf16.msra.mxu1 %v13788_v14  ;;  %2056 = vmatpush.bf16.msra.mxu2 %v11300_v63  ;;  %v13628_v14 = vor.u32 %v16847_v10, %v13627_v48  ;;  %v1969_v24 = vpop.f32.mrf.mxu0  ;;  %v1982_v33 = vpop.f32.mrf.mxu1  ;;  %v2199_v40 = vmax.f32 %v1981_v23, 0.0  ;;  %v11435_v63 = vld [vmem:[%s26299_s7 + $0x530] sm:$0xf] }
 0x14b   :  { %v11436_v8 = vor.u32 %v16297_v0, %v11435_v63  ;;  %v16229_v10 = vld [vmem:[%s26299_s7 + $0x34c] sm:$0xf0]  ;;  %v11571_v0 = vld [vmem:[%s26299_s7 + $0x638] sm:$0xf] }
 0x14c   :  { %1833 = vmatpush.bf16.msra.mxu3 %v10884_v39  ;;  %v19050_v53 = vpack.c.bf16 %v2199_v40, %v2199_v40  ;;  %v11148_v16 = vor.u32 %v16229_v10, %v11147_v9  ;;  %v11307_v23 = vld [vmem:[%s26299_s7 + $0x430] sm:$0xf]  ;;  %v16362_v39 = vld [vmem:[%s26299_s7 + $0x774] sm:$0xf0]  ;;  %v14651_v40 = vld [vmem:[%s26306_s9 + $0x1680] sm:$0xf] }
 0x14d   :  { %2057 = vmatmul.bf16.vlgmr.msra.gmra.mxu2 %v17788_v26  ;;  %v16265_v24 = vld [vmem:[%s26299_s7 + $0x46c] sm:$0xf0]  ;;  %v11700_v46 = vor.u32 %v16362_v39, %v11699_v38  ;;  %v11155_v39 = vld [vmem:[%s26299_s7 + $0x318] sm:$0xf] }
 0x14e   :  { %8478 = vmatpush.bf16.msra.mxu1 %v13756_v27  ;;  %2101 = vmatpush.bf16.msrb.mxu2 %v11756_v3  ;;  %v13596_v27 = vor.u32 %v16839_v20, %v13595_v19  ;;  %v17127_v3 = vld [vmem:[%s26306_s9 + $0x175c] sm:$0xf0]  ;;  %v16213_v19 = vld [vmem:[%s26299_s7 + $0x2cc] sm:$0xf0]  ;;  %v11308_v33 = vor.u32 %v16265_v24, %v11307_v23 }
 0x14f   :  { %v14748_v48 = vor.u32 %v17127_v3, %v14747_v2  ;;  %v11084_v32 = vor.u32 %v16213_v19, %v11083_v18  ;;  %v16165_v63 = vld [vmem:[%s26299_s7 + $0x14c] sm:$0xf0]  ;;  %v14587_v2 = vld [vmem:[%s26306_s9 + $0x1600] sm:$0xf] }
 0x150   :  { %v17087_v3 = vld [vmem:[%s26306_s9 + $0x161c] sm:$0xf0]  ;;  %v10892_v9 = vor.u32 %v16165_v63, %v10891_v62  ;;  %v10763_v24 = vld [vmem:[%s26299_s7 + $0x10] sm:$0xf] }
 0x151   :  { %v14588_v11 = vor.u32 %v17087_v3, %v14587_v2  ;;  %v15803_v18 = vld [vmem:[%s26306_s9 + $0x1f80] sm:$0xf]  ;;  %v11027_v2 = vld [vmem:[%s26299_s7 + $0x218] sm:$0xf] }
 0x152   :  { %8479 = vmatpush.bf16.msra.mxu1 %v13724_v44  ;;  %2102 = vmatpush.bf16.msrb.mxu2 %v11692_v13  ;;  %v16148_v44 = vld [vmem:[%s26299_s7 + $0xc4] sm:$0xf0]  ;;  %v2032_v60 = vpop.f32.mrf.mxu1  ;;  %v14715_v13 = vld [vmem:[%s26306_s9 + $0x1700] sm:$0xf]  ;;  %v16198_v3 = vld [vmem:[%s26299_s7 + $0x254] sm:$0xf0] }
 0x153   :  { %v10820_v52 = vor.u32 %v16148_v44, %v10819_v43  ;;  %v11020_v44 = vor.u32 %v16197_v37, %v11019_v34  ;;  %v17391_v19 = vld [vmem:[%s26306_s9 + $0x1f9c] sm:$0xf0] }
 0x154   :  { %v15804_v28 = vor.u32 %v17391_v19, %v15803_v18  ;;  %v15771_v34 = vld [vmem:[%s26306_s9 + $0x1f40] sm:$0xf] }
 0x155   :  { %1834 = vmatpush.bf16.msra.mxu3 %v10820_v52  ;;  %v11635_v52 = vld [vmem:[%s26299_s7 + $0x6b8] sm:$0xf]  ;;  %v16487_v18 = vld [vmem:[%s26306_s9 + $0x35c] sm:$0xf0] }
 0x156   :  { %8480 = vmatpush.bf16.msra.mxu1 %v13692_v55  ;;  %2103 = vmatpush.bf16.msrb.mxu2 %v11628_v25  ;;  %v2019_v55 = vpop.f32.mrf.mxu0  ;;  %v11763_v25 = vld [vmem:[%s26299_s7 + $0x7b8] sm:$0xf]  ;;  %v15643_v19 = vld [vmem:[%s26306_s9 + $0x1e40] sm:$0xf] }
 0x157   :  { %v2020_v1 = vadd.f32 %v2019_v55, %v473_v54  ;;  %v16346_v55 = vld [vmem:[%s26299_s7 + $0x6f4] sm:$0xf0] }
 0x159   :  { %v19078_v6 = vadd.f32 %v2032_v60, %v2020_v1  ;;  %v11636_v60 = vor.u32 %v16346_v55, %v11635_v52  ;;  %v16330_v1 = vld [vmem:[%s26299_s7 + $0x674] sm:$0xf0] }
 0x15a   :  { %8481 = vmatpush.bf16.msra.mxu1 %v13660_v4  ;;  %2104 = vmatpush.bf16.msrb.mxu2 %v11564_v41  ;;  %v10756_v4 = vor.u32 %v16132_v58, %v10755_v57  ;;  %v2034_v20 = vpop.f32.mrf.mxu1  ;;  %v17103_v41 = vld [vmem:[%s26306_s9 + $0x169c] sm:$0xf0]  ;;  %v10956_v58 = vor.u32 %v16181_v50, %v10955_v49  ;;  %v11572_v10 = vor.u32 %v16330_v1, %v11571_v0  ;;  %v11091_v49 = vld [vmem:[%s26299_s7 + $0x298] sm:$0xf] }
 0x15b   :  { %v14652_v47 = vor.u32 %v17103_v41, %v14651_v40  ;;  %v17095_v57 = vld [vmem:[%s26306_s9 + $0x165c] sm:$0xf0]  ;;  %v16230_v41 = vld [vmem:[%s26299_s7 + $0x354] sm:$0xf0] }
 0x15c   :  { %1835 = vmatpush.bf16.msra.mxu3 %v10756_v4  ;;  %v15835_v4 = vld [vmem:[%s26306_s9 + $0x1fc0] sm:$0xf]  ;;  %v16214_v50 = vld [vmem:[%s26299_s7 + $0x2d4] sm:$0xf0] }
 0x15d   :  { %v16266_v55 = vld [vmem:[%s26299_s7 + $0x474] sm:$0xf0]  ;;  %v11092_v62 = vor.u32 %v16214_v50, %v11091_v49 }
 0x15e   :  { %8482 = vmatpush.bf16.msra.mxu1 %v13628_v14  ;;  %2105 = vmatpush.bf16.msrb.mxu2 %v11500_v56  ;;  %v17119_v14 = vld [vmem:[%s26306_s9 + $0x171c] sm:$0xf0]  ;;  %v2021_v15 = vpop.f32.mrf.mxu0 }
 0x15f   :  { %v14716_v21 = vor.u32 %v17119_v14, %v14715_v13  ;;  %1836 = vmatmul.bf16.vlgmr.msra.gmra.mxu3 %v17798_v29  ;;  %v14619_v56 = vld [vmem:[%s26306_s9 + $0x1640] sm:$0xf]  ;;  %v16149_v13 = vld [vmem:[%s26299_s7 + $0xcc] sm:$0xf0] }
 0x160   :  { %1880 = vmatpush.bf16.msrb.mxu3 %v11212_v7  ;;  %v17399_v7 = vld [vmem:[%s26306_s9 + $0x1fdc] sm:$0xf0]  ;;  %v10828_v20 = vor.u32 %v16149_v13, %v10827_v12 }
 0x161   :  { %v15836_v15 = vor.u32 %v17399_v7, %v15835_v4  ;;  %v12219_v4 = vld [vmem:[%s26306_s9 + $0x380] sm:$0xf] }
 0x162   :  { %8483 = vmatpush.bf16.msra.mxu1 %v13596_v27  ;;  %2106 = vmatpush.bf16.msrb.mxu2 %v11436_v8  ;;  %v16378_v27 = vld [vmem:[%s26299_s7 + $0x7f4] sm:$0xf0]  ;;  %v16495_v7 = vld [vmem:[%s26306_s9 + $0x39c] sm:$0xf0] }
 0x163   :  { %v11764_v35 = vor.u32 %v16378_v27, %v11763_v25  ;;  %v16133_v25 = vld [vmem:[%s26299_s7 + $0x4c] sm:$0xf0]  ;;  %v11219_v27 = vld [vmem:[%s26299_s7 + $0x398] sm:$0xf]  ;;  %v12220_v12 = vor.u32 %v16495_v7, %v12219_v4  ;;  %v12059_v4 = vld [vmem:[%s26306_s9 + $0x240] sm:$0xf] }
 0x164   :  { %1881 = vmatpush.bf16.msrb.mxu3 %v11148_v16  ;;  %v11507_v16 = vld [vmem:[%s26299_s7 + $0x5b8] sm:$0xf]  ;;  %v11220_v37 = vor.u32 %v16246_v31, %v11219_v27  ;;  %v16455_v7 = vld [vmem:[%s26306_s9 + $0x25c] sm:$0xf0] }
 0x165   :  { %v16166_v31 = vld [vmem:[%s26299_s7 + $0x154] sm:$0xf0] }
 0x166   :  { %8484 = vmatpush.bf16.msra.mxu1 %v13564_v42  ;;  %2107 = vmatpush.bf16.msrb.mxu2 %v11372_v17  ;;  %v475_v42 = vperm.slane %v19048_v51, 3  ;;  %v2071_v43 = vpop.f32.mrf.mxu0  ;;  %v2084_v54 = vpop.f32.mrf.mxu1  ;;  %v16314_v17 = vld [vmem:[%s26299_s7 + $0x5f4] sm:$0xf0] }
 0x167   :  { %v11508_v23 = vor.u32 %v16314_v17, %v11507_v16  ;;  %v12187_v16 = vld [vmem:[%s26306_s9 + $0x340] sm:$0xf] }
 0x168   :  { %1882 = vmatpush.bf16.msrb.mxu3 %v11084_v32  ;;  %v11443_v32 = vld [vmem:[%s26299_s7 + $0x538] sm:$0xf] }
 0x169   :  { %8485 = vmatmul.bf16.vlgmr.msra.gmra.mxu1 %v19050_v53 }
 0x16a   :  { %8529 = vmatpush.bf16.msrb.mxu1 %v14812_v45  ;;  %2108 = vmatpush.bf16.msrb.mxu2 %v11308_v33  ;;  %v2072_v45 = vadd.f32 %v2071_v43, %v475_v42  ;;  %v16298_v33 = vld [vmem:[%s26299_s7 + $0x574] sm:$0xf0] }
 0x16b   :  { %v11444_v38 = vor.u32 %v16298_v33, %v11443_v32  ;;  %v11379_v42 = vld [vmem:[%s26299_s7 + $0x4b8] sm:$0xf]  ;;  %v12155_v32 = vld [vmem:[%s26306_s9 + $0x300] sm:$0xf] }
 0x16c   :  { %1883 = vmatpush.bf16.msrb.mxu3 %v11020_v44  ;;  %v2085_v59 = vadd.f32 %v2084_v54, %v2072_v45  ;;  %v16282_v43 = vld [vmem:[%s26299_s7 + $0x4f4] sm:$0xf0]  ;;  %v15739_v44 = vld [vmem:[%s26306_s9 + $0x1f00] sm:$0xf] }
 0x16d   :  { %2109 = vmatmul.bf16.vlgmr.msrb.gmra.mxu2 %v17788_v26  ;;  %v17375_v45 = vld [vmem:[%s26306_s9 + $0x1f1c] sm:$0xf0]  ;;  %v11315_v54 = vld [vmem:[%s26299_s7 + $0x438] sm:$0xf] }
 0x16e   :  { %8530 = vmatpush.bf16.msrb.mxu1 %v14780_v61  ;;  %2153 = vmatpush.bf16.msra.mxu2 %v11764_v35  ;;  %v14620_v61 = vor.u32 %v17095_v57, %v14619_v56  ;;  %v2073_v8 = vpop.f32.mrf.mxu0  ;;  %v2086_v14 = vpop.f32.mrf.mxu1  ;;  %v17383_v35 = vld [vmem:[%s26306_s9 + $0x1f5c] sm:$0xf0]  ;;  %v15740_v52 = vor.u32 %v17375_v45, %v15739_v44  ;;  %v11316_v63 = vor.u32 %v16266_v55, %v11315_v54  ;;  %v16134_v54 = vld [vmem:[%s26299_s7 + $0x54] sm:$0xf0] }
 0x16f   :  { %v15772_v40 = vor.u32 %v17383_v35, %v15771_v34  ;;  %v12251_v56 = vld [vmem:[%s26306_s9 + $0x3c0] sm:$0xf]  ;;  %v10963_v14 = vld [vmem:[%s26299_s7 + $0x198] sm:$0xf] }
 0x170   :  { %1884 = vmatpush.bf16.msrb.mxu3 %v10956_v58  ;;  %v16503_v57 = vld [vmem:[%s26306_s9 + $0x3dc] sm:$0xf0] }
 0x171   :  { %v15707_v58 = vld [vmem:[%s26306_s9 + $0x1ec0] sm:$0xf]  ;;  %v12252_v0 = vor.u32 %v16503_v57, %v12251_v56 }
 0x172   :  { %8531 = vmatpush.bf16.msrb.mxu1 %v14748_v48  ;;  %2154 = vmatpush.bf16.msra.mxu2 %v11700_v46  ;;  %v2203_v48 = vmax.f32 %v2085_v59, 0.0  ;;  %v11156_v46 = vor.u32 %v16230_v41, %v11155_v39  ;;  %v17367_v59 = vld [vmem:[%s26306_s9 + $0x1edc] sm:$0xf0]  ;;  %v10835_v41 = vld [vmem:[%s26299_s7 + $0x98] sm:$0xf] }
 0x173   :  { %v15708_v1 = vor.u32 %v17367_v59, %v15707_v58  ;;  %v15675_v8 = vld [vmem:[%s26306_s9 + $0x1e80] sm:$0xf] }
 0x174   :  { %1885 = vmatpush.bf16.msrb.mxu3 %v10892_v9  ;;  %v17359_v9 = vld [vmem:[%s26306_s9 + $0x1e9c] sm:$0xf0] }
 0x175   :  { %v15676_v13 = vor.u32 %v17359_v9, %v15675_v8  ;;  %v15611_v33 = vld [vmem:[%s26306_s9 + $0x1e00] sm:$0xf]  ;;  %v16603_v8 = vld [vmem:[%s26306_s9 + $0x704] sm:$0xf] }
 0x176   :  { %8532 = vmatpush.bf16.msrb.mxu1 %v14716_v21  ;;  %2155 = vmatpush.bf16.msra.mxu2 %v11636_v60  ;;  %v19203_v21 = vpack.c.bf16 %v2203_v48, %v2203_v48  ;;  %v477_v60 = vperm.slane %v19048_v51, 5  ;;  %v17343_v34 = vld [vmem:[%s26306_s9 + $0x1e1c] sm:$0xf0]  ;;  %v12669_v9 = vld [vmem:[%s26306_s9 + $0x720] sm:$0xf0] }
 0x177   :  { %v12123_v44 = vld [vmem:[%s26306_s9 + $0x2c0] sm:$0xf] }
 0x178   :  { %1886 = vmatpush.bf16.msrb.mxu3 %v10828_v20  ;;  %v17351_v20 = vld [vmem:[%s26306_s9 + $0x1e5c] sm:$0xf0] }
 0x179   :  { %v15644_v27 = vor.u32 %v17351_v20, %v15643_v19  ;;  %v16471_v45 = vld [vmem:[%s26306_s9 + $0x2dc] sm:$0xf0]  ;;  %v16595_v19 = vld [vmem:[%s26306_s9 + $0x6c4] sm:$0xf] }
 0x17a   :  { %8533 = vmatpush.bf16.msrb.mxu1 %v14684_v36  ;;  %2156 = vmatpush.bf16.msra.mxu2 %v11572_v10  ;;  %v10764_v36 = vor.u32 %v16133_v25, %v10763_v24  ;;  %v12188_v25 = vor.u32 %v16487_v18, %v12187_v16  ;;  %v12124_v50 = vor.u32 %v16471_v45, %v12123_v44  ;;  %v11227_v55 = vld [vmem:[%s26299_s7 + $0x3a0] sm:$0xf]  ;;  %v12637_v20 = vld [vmem:[%s26306_s9 + $0x6e0] sm:$0xf0] }
 0x17b   :  { %v16247_v57 = vld [vmem:[%s26299_s7 + $0x3dc] sm:$0xf0] }
 0x17c   :  { %1887 = vmatpush.bf16.msrb.mxu3 %v10764_v36  ;;  %v16627_v36 = vld [vmem:[%s26306_s9 + $0x7c4] sm:$0xf]  ;;  %v12091_v58 = vld [vmem:[%s26306_s9 + $0x280] sm:$0xf] }
 0x17d   :  { %v16463_v59 = vld [vmem:[%s26306_s9 + $0x29c] sm:$0xf0] }
 0x17e   :  { %8534 = vmatpush.bf16.msrb.mxu1 %v14652_v47  ;;  %2157 = vmatpush.bf16.msra.mxu2 %v11508_v23  ;;  %v11380_v47 = vor.u32 %v16282_v43, %v11379_v42  ;;  %v16150_v42 = vld [vmem:[%s26299_s7 + $0xd4] sm:$0xf0]  ;;  %v13275_v16 = vld [vmem:[%s26306_s9 + $0xbc0] sm:$0xf] }
 0x17f   :  { %1888 = vmatmul.bf16.vlgmr.msrb.gmra.mxu3 %v17798_v29  ;;  %v10836_v49 = vor.u32 %v16150_v42, %v10835_v41  ;;  %v16759_v18 = vld [vmem:[%s26306_s9 + $0xbdc] sm:$0xf0] }
 0x180   :  { %1932 = vmatpush.bf16.msra.mxu3 %v11220_v37  ;;  %v12765_v37 = vld [vmem:[%s26306_s9 + $0x7e0] sm:$0xf0]  ;;  %v16183_v44 = vld [vmem:[%s26299_s7 + $0x1dc] sm:$0xf0] }
 0x181   :  { %v12768_v43 = vor.u32 %v16627_v36, %v12765_v37  ;;  %v12605_v36 = vld [vmem:[%s26306_s9 + $0x6a0] sm:$0xf0]  ;;  %v13211_v45 = vld [vmem:[%s26306_s9 + $0xb40] sm:$0xf] }
 0x182   :  { %8535 = vmatpush.bf16.msrb.mxu1 %v14620_v61  ;;  %2158 = vmatpush.bf16.msra.mxu2 %v11444_v38 }
 0x184   :  { %1933 = vmatpush.bf16.msra.mxu3 %v11156_v46  ;;  %v16619_v46 = vld [vmem:[%s26306_s9 + $0x784] sm:$0xf] }
 0x185   :  { %v2123_v48 = vpop.f32.mrf.mxu0 }
 0x186   :  { %8536 = vmatpush.bf16.msrb.mxu1 %v14588_v11  ;;  %v2136_v61 = vpop.f32.mrf.mxu1  ;;  %2159 = vmatpush.bf16.msra.mxu2 %v11380_v47  ;;  %v2124_v10 = vadd.f32 %v2123_v48, %v477_v60  ;;  %v11028_v11 = vor.u32 %v16198_v3, %v11027_v2  ;;  %v12733_v47 = vld [vmem:[%s26306_s9 + $0x7a0] sm:$0xf0]  ;;  %v16231_v3 = vld [vmem:[%s26299_s7 + $0x35c] sm:$0xf0] }
 0x187   :  { %v12736_v56 = vor.u32 %v16619_v46, %v12733_v47  ;;  %v16611_v60 = vld [vmem:[%s26306_s9 + $0x744] sm:$0xf]  ;;  %v16743_v46 = vld [vmem:[%s26306_s9 + $0xb5c] sm:$0xf0] }
 0x188   :  { %1934 = vmatpush.bf16.msra.mxu3 %v11092_v62  ;;  %v19301_v17 = vadd.f32 %v2136_v61, %v2124_v10  ;;  %v12701_v61 = vld [vmem:[%s26306_s9 + $0x760] sm:$0xf0]  ;;  %v12060_v10 = vor.u32 %v16455_v7, %v12059_v4 }
 0x189   :  { %8537 = vmatmul.bf16.vlgmr.msrb.gmra.mxu1 %v19203_v21  ;;  %v12704_v2 = vor.u32 %v16611_v60, %v12701_v61  ;;  %v16579_v47 = vld [vmem:[%s26306_s9 + $0x644] sm:$0xf]  ;;  %v13179_v60 = vld [vmem:[%s26306_s9 + $0xb00] sm:$0xf] }
 0x18a   :  { %8581 = vmatpush.bf16.msra.mxu1 %v15836_v15  ;;  %2160 = vmatpush.bf16.msra.mxu2 %v11316_v63  ;;  %v16182_v15 = vld [vmem:[%s26299_s7 + $0x1d4] sm:$0xf0]  ;;  %v11228_v63 = vor.u32 %v16247_v57, %v11227_v55  ;;  %v16735_v61 = vld [vmem:[%s26306_s9 + $0xb1c] sm:$0xf0] }
 0x18b   :  { %v10964_v24 = vor.u32 %v16182_v15, %v10963_v14  ;;  %v12027_v14 = vld [vmem:[%s26306_s9 + $0x200] sm:$0xf]  ;;  %v13180_v4 = vor.u32 %v16735_v61, %v13179_v60  ;;  %v11043_v60 = vld [vmem:[%s26299_s7 + $0x228] sm:$0xf] }
 0x18c   :  { %1935 = vmatpush.bf16.msra.mxu3 %v11028_v11  ;;  %v11099_v11 = vld [vmem:[%s26299_s7 + $0x2a0] sm:$0xf]  ;;  %v16200_v61 = vld [vmem:[%s26299_s7 + $0x264] sm:$0xf0] }
 0x18d   :  { %2161 = vmatmul.bf16.vlgmr.msra.gmra.mxu2 %v17788_v26  ;;  %v16479_v26 = vld [vmem:[%s26306_s9 + $0x31c] sm:$0xf0]  ;;  %v2125_v35 = vpop.f32.mrf.mxu0 }
 0x18e   :  { %8582 = vmatpush.bf16.msra.mxu1 %v15804_v28  ;;  %8399 = vmatpush.bf16.msrb.mxu2 %v12252_v0  ;;  %v2138_v23 = vpop.f32.mrf.mxu1  ;;  %v10899_v28 = vld [vmem:[%s26299_s7 + $0x118] sm:$0xf]  ;;  %v12156_v39 = vor.u32 %v16479_v26, %v12155_v32  ;;  %v12092_v0 = vor.u32 %v16463_v59, %v12091_v58  ;;  %v16447_v15 = vld [vmem:[%s26306_s9 + $0x21c] sm:$0xf0]  ;;  %v12640_v32 = vor.u32 %v16595_v19, %v12637_v20  ;;  %v16587_v35 = vld [vmem:[%s26306_s9 + $0x684] sm:$0xf] }
 0x18f   :  { %v10900_v38 = vor.u32 %v16166_v31, %v10899_v28  ;;  %v2193_v23 = vmax.f32 %v18769_v5, 0.0  ;;  %v12028_v28 = vor.u32 %v16447_v15, %v12027_v14  ;;  %v13276_v31 = vor.u32 %v16759_v18, %v13275_v16  ;;  %v11035_v26 = vld [vmem:[%s26299_s7 + $0x220] sm:$0xf]  ;;  %v11235_v19 = vld [vmem:[%s26299_s7 + $0x3a8] sm:$0xf] }
 0x190   :  { %1936 = vmatpush.bf16.msra.mxu3 %v10964_v24  ;;  %v479_v24 = vperm.slane %v19048_v51, 7  ;;  %v13243_v5 = vld [vmem:[%s26306_s9 + $0xb80] sm:$0xf]  ;;  %v12608_v41 = vor.u32 %v16587_v35, %v12605_v36  ;;  %v16859_v36 = vld [vmem:[%s26306_s9 + $0xf04] sm:$0xf] }
 0x191   :  { %v19442_v37 = vpack.c.bf16 %v2193_v23, %v2193_v23  ;;  %v10907_v58 = vld [vmem:[%s26299_s7 + $0x120] sm:$0xf]  ;;  %v16248_v23 = vld [vmem:[%s26299_s7 + $0x3e4] sm:$0xf0] }
 0x192   :  { %8583 = vmatpush.bf16.msra.mxu1 %v15772_v40  ;;  %8400 = vmatpush.bf16.msrb.mxu2 %v12220_v12  ;;  %v15612_v40 = vor.u32 %v17343_v34, %v15611_v33  ;;  %v16215_v12 = vld [vmem:[%s26299_s7 + $0x2dc] sm:$0xf0] }
 0x193   :  { %v16199_v33 = vld [vmem:[%s26299_s7 + $0x25c] sm:$0xf0] }
 0x194   :  { %1937 = vmatpush.bf16.msra.mxu3 %v10900_v38  ;;  %v16751_v34 = vld [vmem:[%s26306_s9 + $0xb9c] sm:$0xf0] }
 0x195   :  { %v16167_v59 = vld [vmem:[%s26299_s7 + $0x15c] sm:$0xf0] }
 0x196   :  { %8584 = vmatpush.bf16.msra.mxu1 %v15740_v52  ;;  %8401 = vmatpush.bf16.msrb.mxu2 %v12188_v25  ;;  %v10771_v52 = vld [vmem:[%s26299_s7 + $0x18] sm:$0xf]  ;;  %v10779_v16 = vld [vmem:[%s26299_s7 + $0x20] sm:$0xf] }
 0x197   :  { %v10772_v62 = vor.u32 %v16134_v54, %v10771_v52  ;;  %v16135_v18 = vld [vmem:[%s26299_s7 + $0x5c] sm:$0xf0] }
 0x198   :  { %1938 = vmatpush.bf16.msra.mxu3 %v10836_v49  ;;  %v12573_v49 = vld [vmem:[%s26306_s9 + $0x660] sm:$0xf0]  ;;  %v16711_v35 = vld [vmem:[%s26306_s9 + $0xa5c] sm:$0xf0] }
 0x199   :  { %v12576_v57 = vor.u32 %v16579_v47, %v12573_v49  ;;  %v17015_v47 = vld [vmem:[%s26306_s9 + $0x13dc] sm:$0xf0]  ;;  %v16851_v49 = vld [vmem:[%s26306_s9 + $0xec4] sm:$0xf] }
 0x19a   :  { %8585 = vmatpush.bf16.msra.mxu1 %v15708_v1  ;;  %8402 = vmatpush.bf16.msrb.mxu2 %v12156_v39  ;;  %v11163_v1 = vld [vmem:[%s26299_s7 + $0x320] sm:$0xf]  ;;  %v11036_v39 = vor.u32 %v16199_v33, %v11035_v26  ;;  %v11171_v33 = vld [vmem:[%s26299_s7 + $0x328] sm:$0xf] }
 0x19b   :  { %v11164_v48 = vor.u32 %v16231_v3, %v11163_v1  ;;  %v16883_v1 = vld [vmem:[%s26306_s9 + $0xfc4] sm:$0xf]  ;;  %v10908_v3 = vor.u32 %v16167_v59, %v10907_v58 }
 0x19c   :  { %1939 = vmatpush.bf16.msra.mxu3 %v10772_v62  ;;  %v16571_v62 = vld [vmem:[%s26306_s9 + $0x604] sm:$0xf] }
 0x19e   :  { %8586 = vmatpush.bf16.msra.mxu1 %v15676_v13  ;;  %8403 = vmatpush.bf16.msrb.mxu2 %v12124_v50  ;;  %v12672_v13 = vor.u32 %v16603_v8, %v12669_v9  ;;  %v10843_v8 = vld [vmem:[%s26299_s7 + $0xa0] sm:$0xf] }
 0x19f   :  { %1940 = vmatmul.bf16.vlgmr.msra.gmra.mxu3 %v17798_v29  ;;  %v16151_v9 = vld [vmem:[%s26299_s7 + $0xdc] sm:$0xf0] }
 0x1a0   :  { %1984 = vmatpush.bf16.msrb.mxu3 %v11228_v63  ;;  %v12541_v63 = vld [vmem:[%s26306_s9 + $0x620] sm:$0xf0]  ;;  %v10844_v14 = vor.u32 %v16151_v9, %v10843_v8  ;;  %v10979_v9 = vld [vmem:[%s26299_s7 + $0x1a8] sm:$0xf] }
 0x1a1   :  { %v12544_v7 = vor.u32 %v16571_v62, %v12541_v63  ;;  %v14267_v62 = vld [vmem:[%s26306_s9 + $0x1380] sm:$0xf]  ;;  %v16843_v63 = vld [vmem:[%s26306_s9 + $0xe84] sm:$0xf] }
 0x1a2   :  { %8587 = vmatpush.bf16.msra.mxu1 %v15644_v27  ;;  %8404 = vmatpush.bf16.msrb.mxu2 %v12092_v0  ;;  %v11100_v27 = vor.u32 %v16215_v12, %v11099_v11  ;;  %v16727_v11 = vld [vmem:[%s26306_s9 + $0xadc] sm:$0xf0]  ;;  %v16875_v12 = vld [vmem:[%s26306_s9 + $0xf84] sm:$0xf] }
 0x1a4   :  { %1985 = vmatpush.bf16.msrb.mxu3 %v11164_v48 }
 0x1a5   :  { %v2175_v51 = vpop.f32.mrf.mxu0 }
 0x1a6   :  { %8588 = vmatpush.bf16.msra.mxu1 %v15612_v40  ;;  %v2188_v25 = vpop.f32.mrf.mxu1  ;;  %8405 = vmatpush.bf16.msrb.mxu2 %v12060_v10  ;;  %v2176_v38 = vadd.f32 %v2175_v51, %v479_v24  ;;  %v13244_v40 = vor.u32 %v16751_v34, %v13243_v5  ;;  %v13147_v10 = vld [vmem:[%s26306_s9 + $0xac0] sm:$0xf]  ;;  %v16232_v51 = vld [vmem:[%s26299_s7 + $0x364] sm:$0xf0] }
 0x1a7   :  { %v13148_v15 = vor.u32 %v16727_v11, %v13147_v10  ;;  %v13115_v24 = vld [vmem:[%s26306_s9 + $0xa80] sm:$0xf] }
 0x1a8   :  { %1986 = vmatpush.bf16.msrb.mxu3 %v11100_v27  ;;  %v2189_v42 = vadd.f32 %v2188_v25, %v2176_v38  ;;  %v16719_v25 = vld [vmem:[%s26306_s9 + $0xa9c] sm:$0xf0]  ;;  %v16867_v27 = vld [vmem:[%s26306_s9 + $0xf44] sm:$0xf] }
 0x1a9   :  { %v13116_v26 = vor.u32 %v16719_v25, %v13115_v24  ;;  %v13083_v34 = vld [vmem:[%s26306_s9 + $0xa40] sm:$0xf]  ;;  %v13693_v38 = vld [vmem:[%s26306_s9 + $0xf20] sm:$0xf0]  ;;  %v10915_v25 = vld [vmem:[%s26299_s7 + $0x128] sm:$0xf] }
 0x1aa   :  { %8633 = vmatpush.bf16.msrb.mxu1 %v12768_v43  ;;  %8406 = vmatpush.bf16.msrb.mxu2 %v12028_v28  ;;  %v10971_v43 = vld [vmem:[%s26299_s7 + $0x1a0] sm:$0xf]  ;;  %v2207_v50 = vmax.f32 %v2189_v42, 0.0  ;;  %v13725_v28 = vld [vmem:[%s26306_s9 + $0xf60] sm:$0xf0] }
 0x1ab   :  { %v10972_v54 = vor.u32 %v16183_v44, %v10971_v43  ;;  %v13728_v5 = vor.u32 %v16867_v27, %v13725_v28  ;;  %v16216_v42 = vld [vmem:[%s26299_s7 + $0x2e4] sm:$0xf0]  ;;  %v13696_v43 = vor.u32 %v16859_v36, %v13693_v38  ;;  %v13051_v44 = vld [vmem:[%s26306_s9 + $0xa00] sm:$0xf] }
 0x1ac   :  { %1987 = vmatpush.bf16.msrb.mxu3 %v11036_v39  ;;  %v19463_v55 = vpack.c.bf16 %v2207_v50, %v2207_v50  ;;  %v11172_v39 = vor.u32 %v16232_v51, %v11171_v33  ;;  %v13661_v50 = vld [vmem:[%s26306_s9 + $0xee0] sm:$0xf0]  ;;  %v14235_v10 = vld [vmem:[%s26306_s9 + $0x1340] sm:$0xf]  ;;  %v16168_v27 = vld [vmem:[%s26299_s7 + $0x164] sm:$0xf0] }
 0x1ad   :  { %8407 = vmatmul.bf16.vlgmr.msrb.gmra.mxu2 %v19442_v37  ;;  %v2177_v0 = vpop.f32.mrf.mxu0  ;;  %v13664_v59 = vor.u32 %v16851_v49, %v13661_v50  ;;  %v14203_v28 = vld [vmem:[%s26306_s9 + $0x1300] sm:$0xf]  ;;  %v16827_v33 = vld [vmem:[%s26306_s9 + $0xe04] sm:$0xf]  ;;  %v10916_v36 = vor.u32 %v16168_v27, %v10915_v25 }
 0x1ae   :  { %8634 = vmatpush.bf16.msrb.mxu1 %v12736_v56  ;;  %8451 = vmatpush.bf16.msra.mxu2 %v13276_v31  ;;  %v2190_v52 = vpop.f32.mrf.mxu1  ;;  %v13212_v56 = vor.u32 %v16743_v46, %v13211_v45  ;;  %v10780_v31 = vor.u32 %v16135_v18, %v10779_v16  ;;  %v16703_v45 = vld [vmem:[%s26306_s9 + $0xa1c] sm:$0xf0]  ;;  %v13629_v0 = vld [vmem:[%s26306_s9 + $0xea0] sm:$0xf0] }
 0x1af   :  { %8589 = vmatmul.bf16.vlgmr.msra.gmra.mxu1 %v19463_v55  ;;  %v14299_v46 = vld [vmem:[%s26306_s9 + $0x13c0] sm:$0xf]  ;;  %v19576_v52 = vpop.f32.mrf.mxu2  ;;  %v13632_v8 = vor.u32 %v16843_v63, %v13629_v0  ;;  %v17131_v49 = vld [vmem:[%s26306_s9 + $0x1784] sm:$0xf]  ;;  %v11243_v63 = vld [vmem:[%s26299_s7 + $0x3b0] sm:$0xf] }
 0x1b0   :  { %1988 = vmatpush.bf16.msrb.mxu3 %v10972_v54  ;;  %v2197_v54 = vmax.f32 %v18904_v30, 0.0  ;;  %v14300_v58 = vor.u32 %v17015_v47, %v14299_v46  ;;  %v17007_v30 = vld [vmem:[%s26306_s9 + $0x139c] sm:$0xf0]  ;;  %v14781_v50 = vld [vmem:[%s26306_s9 + $0x17a0] sm:$0xf0] }
 0x1b1   :  { %v17469_v16 = vld [vmem:[%s26307_s6] ss:$0 sm:$0xff]  ;;  %v14717_v27 = vld [vmem:[%s26306_s9 + $0x1720] sm:$0xf0] }
 0x1b2   :  { %8635 = vmatpush.bf16.msrb.mxu1 %v12704_v2  ;;  %8452 = vmatpush.bf16.msra.mxu2 %v13244_v40  ;;  %v13789_v2 = vld [vmem:[%s26306_s9 + $0xfe0] sm:$0xf0]  ;;  %v13084_v40 = vor.u32 %v16711_v35, %v13083_v34  ;;  %v12443_v38 = vld [vmem:[%s26306_s9 + $0x540] sm:$0xf] }
 0x1b3   :  { %v13792_v48 = vor.u32 %v16883_v1, %v13789_v2  ;;  %v19597_v1 = vpack.c.bf16 %v2197_v54, %v2197_v54  ;;  %v11044_v2 = vor.u32 %v16200_v61, %v11043_v60  ;;  %v17139_v34 = vld [vmem:[%s26306_s9 + $0x17c4] sm:$0xf]  ;;  %v14171_v46 = vld [vmem:[%s26306_s9 + $0x12c0] sm:$0xf] }
 0x1b4   :  { %1989 = vmatpush.bf16.msrb.mxu3 %v10908_v3  ;;  %v12507_v3 = vld [vmem:[%s26306_s9 + $0x5c0] sm:$0xf]  ;;  %v14813_v35 = vld [vmem:[%s26306_s9 + $0x17e0] sm:$0xf0] }
 0x1b5   :  { %v16983_v47 = vld [vmem:[%s26306_s9 + $0x12dc] sm:$0xf0] }
 0x1b6   :  { %8636 = vmatpush.bf16.msrb.mxu1 %v12672_v13  ;;  %8453 = vmatpush.bf16.msra.mxu2 %v13212_v56  ;;  %v13757_v13 = vld [vmem:[%s26306_s9 + $0xfa0] sm:$0xf0]  ;;  %v16543_v60 = vld [vmem:[%s26306_s9 + $0x51c] sm:$0xf0]  ;;  %v14172_v61 = vor.u32 %v16983_v47, %v14171_v46 }
 0x1b7   :  { %v13760_v20 = vor.u32 %v16875_v12, %v13757_v13  ;;  %v16999_v12 = vld [vmem:[%s26306_s9 + $0x135c] sm:$0xf0]  ;;  %v16835_v13 = vld [vmem:[%s26306_s9 + $0xe44] sm:$0xf] }
 0x1b8   :  { %1990 = vmatpush.bf16.msrb.mxu3 %v10844_v14  ;;  %v13597_v14 = vld [vmem:[%s26306_s9 + $0xe60] sm:$0xf0]  ;;  %v16967_v25 = vld [vmem:[%s26306_s9 + $0x125c] sm:$0xf0] }
 0x1b9   :  { %v13600_v24 = vor.u32 %v16835_v13, %v13597_v14  ;;  %v19688_v54 = vld [vmem:[%s26305_s8] sm:$0xff] }
 0x1ba   :  { %8637 = vmatpush.bf16.msrb.mxu1 %v12640_v32  ;;  %8454 = vmatpush.bf16.msra.mxu2 %v13180_v4  ;;  %v11236_v32 = vor.u32 %v16248_v23, %v11235_v19  ;;  %v16567_v4 = vld [vmem:[%s26306_s9 + $0x5dc] sm:$0xf0]  ;;  %v14236_v23 = vor.u32 %v16999_v12, %v14235_v10 }
 0x1bb   :  { %v12508_v11 = vor.u32 %v16567_v4, %v12507_v3  ;;  %v12475_v19 = vld [vmem:[%s26306_s9 + $0x580] sm:$0xf]  ;;  %v16249_v3 = vld [vmem:[%s26299_s7 + $0x3ec] sm:$0xf0] }
 0x1bc   :  { %1991 = vmatpush.bf16.msrb.mxu3 %v10780_v31  ;;  %v14139_v4 = vld [vmem:[%s26306_s9 + $0x1280] sm:$0xf]  ;;  %v11244_v14 = vor.u32 %v16249_v3, %v11243_v63 }
 0x1bd   :  { %8412 = vmatpush.bf16.msrb.mxu0 %v12508_v11  ;;  %v12379_v12 = vld [vmem:[%s26306_s9 + $0x4c0] sm:$0xf] }
 0x1be   :  { %8638 = vmatpush.bf16.msrb.mxu1 %v12608_v41  ;;  %8455 = vmatpush.bf16.msra.mxu2 %v13148_v15  ;;  %v11107_v41 = vld [vmem:[%s26299_s7 + $0x2a8] sm:$0xf]  ;;  %v1800_v15 = vpop.f32.mrf.mxu2  ;;  %v16535_v13 = vld [vmem:[%s26306_s9 + $0x4dc] sm:$0xf0] }
 0x1bf   :  { %1992 = vmatmul.bf16.vlgmr.msrb.gmra.mxu3 %v17798_v29  ;;  %v11108_v56 = vor.u32 %v16216_v42, %v11107_v41  ;;  %v10851_v42 = vld [vmem:[%s26299_s7 + $0xa8] sm:$0xf]  ;;  %v16511_v3 = vld [vmem:[%s26306_s9 + $0x41c] sm:$0xf0] }
 0x1c0   :  { %2036 = vmatpush.bf16.msra.mxu3 %v11236_v32  ;;  %v197_v32 = vpop.f32.mrf.mxu3 }
 0x1c1   :  { %v198_v51 = vadd.f32 %v17469_v16, %v197_v32  ;;  %v11179_v16 = vld [vmem:[%s26299_s7 + $0x330] sm:$0xf] }
 0x1c2   :  { %8639 = vmatpush.bf16.msrb.mxu1 %v12576_v57  ;;  %8456 = vmatpush.bf16.msra.mxu2 %v13116_v26  ;;  %v13052_v57 = vor.u32 %v16703_v45, %v13051_v44  ;;  %v16991_v26 = vld [vmem:[%s26306_s9 + $0x131c] sm:$0xf0]  ;;  %v14816_v45 = vor.u32 %v17139_v34, %v14813_v35 }
 0x1c3   :  { %201 = vst.msk [vmem:[%s26308_s15] sm:$0xff] %vm200_vm2, %v198_v51  ;;  %v16527_v51 = vld [vmem:[%s26306_s9 + $0x49c] sm:$0xf0] }
 0x1c4   :  { %2037 = vmatpush.bf16.msra.mxu3 %v11172_v39  ;;  %v16551_v39 = vld [vmem:[%s26306_s9 + $0x55c] sm:$0xf0] }
 0x1c5   :  { %v12444_v44 = vor.u32 %v16551_v39, %v12443_v38  ;;  %v14075_v35 = vld [vmem:[%s26306_s9 + $0x1200] sm:$0xf] }
 0x1c6   :  { %8640 = vmatpush.bf16.msrb.mxu1 %v12544_v7  ;;  %8457 = vmatpush.bf16.msra.mxu2 %v13084_v40  ;;  %v14268_v7 = vor.u32 %v17007_v30, %v14267_v62  ;;  %v14204_v40 = vor.u32 %v16991_v26, %v14203_v28  ;;  %v10787_v62 = vld [vmem:[%s26299_s7 + $0x28] sm:$0xf]  ;;  %v15323_v38 = vld [vmem:[%s26306_s9 + $0x1bc0] sm:$0xf] }
 0x1c7   :  { %v16136_v30 = vld [vmem:[%s26299_s7 + $0x64] sm:$0xf0] }
 0x1c8   :  { %2038 = vmatpush.bf16.msra.mxu3 %v11108_v56  ;;  %v464_v56 = vperm.slane %v19688_v54, 0  ;;  %v10788_v11 = vor.u32 %v16136_v30, %v10787_v62  ;;  %v17099_v62 = vld [vmem:[%s26306_s9 + $0x1684] sm:$0xf] }
 0x1c9   :  { %8641 = vmatmul.bf16.vlgmr.msrb.gmra.mxu1 %v18896_v22  ;;  %v14653_v30 = vld [vmem:[%s26306_s9 + $0x16a0] sm:$0xf0] }
 0x1ca   :  { %8685 = vmatpush.bf16.msra.mxu1 %v13792_v48  ;;  %8458 = vmatpush.bf16.msra.mxu2 %v13052_v57  ;;  %v16184_v48 = vld [vmem:[%s26299_s7 + $0x1e4] sm:$0xf0]  ;;  %v19691_v57 = vpop.f32.mrf.mxu2 }
 0x1cb   :  { %v10980_v18 = vor.u32 %v16184_v48, %v10979_v9  ;;  %v17123_v9 = vld [vmem:[%s26306_s9 + $0x1744] sm:$0xf] }
 0x1cc   :  { %2039 = vmatpush.bf16.msra.mxu3 %v11044_v2  ;;  %v14784_v2 = vor.u32 %v17131_v49, %v14781_v50  ;;  %v14749_v48 = vld [vmem:[%s26306_s9 + $0x1760] sm:$0xf0]  ;;  %v16519_v49 = vld [vmem:[%s26306_s9 + $0x45c] sm:$0xf0] }
 0x1cd   :  { %8459 = vmatmul.bf16.vlgmr.msra.gmra.mxu2 %v19597_v1 }
 0x1ce   :  { %8686 = vmatpush.bf16.msra.mxu1 %v13760_v20  ;;  %8503 = vmatpush.bf16.msrb.mxu2 %v14300_v58  ;;  %v16559_v20 = vld [vmem:[%s26306_s9 + $0x59c] sm:$0xf0] }
 0x1cf   :  { %v12476_v31 = vor.u32 %v16559_v20, %v12475_v19  ;;  %v12380_v19 = vor.u32 %v16535_v13, %v12379_v12  ;;  %v14752_v20 = vor.u32 %v17123_v9, %v14749_v48  ;;  %v14656_v9 = vor.u32 %v17099_v62, %v14653_v30  ;;  %v10987_v48 = vld [vmem:[%s26299_s7 + $0x1b0] sm:$0xf]  ;;  %v17255_v12 = vld [vmem:[%s26306_s9 + $0x1b5c] sm:$0xf0]  ;;  %v17091_v13 = vld [vmem:[%s26306_s9 + $0x1644] sm:$0xf] }
 0x1d0   :  { %2040 = vmatpush.bf16.msra.mxu3 %v10980_v18 }
 0x1d1   :  { %8413 = vmatpush.bf16.msrb.mxu0 %v12476_v31  ;;  %v12347_v31 = vld [vmem:[%s26306_s9 + $0x480] sm:$0xf] }
 0x1d2   :  { %8687 = vmatpush.bf16.msra.mxu1 %v13728_v5  ;;  %8504 = vmatpush.bf16.msrb.mxu2 %v14268_v7  ;;  %v13565_v5 = vld [vmem:[%s26306_s9 + $0xe20] sm:$0xf0]  ;;  %v16975_v7 = vld [vmem:[%s26306_s9 + $0x129c] sm:$0xf0]  ;;  %v1852_v28 = vpop.f32.mrf.mxu2 }
 0x1d3   :  { %v13568_v41 = vor.u32 %v16827_v33, %v13565_v5  ;;  %v14140_v15 = vor.u32 %v16975_v7, %v14139_v4  ;;  %v11115_v33 = vld [vmem:[%s26299_s7 + $0x2b0] sm:$0xf]  ;;  %v466_v28 = vperm.slane %v19688_v54, 2 }
 0x1d4   :  { %2041 = vmatpush.bf16.msra.mxu3 %v10916_v36  ;;  %v16217_v5 = vld [vmem:[%s26299_s7 + $0x2ec] sm:$0xf0]  ;;  %v16959_v36 = vld [vmem:[%s26306_s9 + $0x121c] sm:$0xf0] }
 0x1d5   :  { %8414 = vmatpush.bf16.msrb.mxu0 %v12444_v44  ;;  %v2201_v44 = vmax.f32 %v19078_v6, 0.0  ;;  %v11116_v46 = vor.u32 %v16217_v5, %v11115_v33  ;;  %v14076_v47 = vor.u32 %v16959_v36, %v14075_v35  ;;  %v11051_v6 = vld [vmem:[%s26299_s7 + $0x230] sm:$0xf] }
 0x1d6   :  { %8688 = vmatpush.bf16.msra.mxu1 %v13696_v43  ;;  %8505 = vmatpush.bf16.msrb.mxu2 %v14236_v23  ;;  %v16152_v43 = vld [vmem:[%s26299_s7 + $0xe4] sm:$0xf0]  ;;  %v16233_v23 = vld [vmem:[%s26299_s7 + $0x36c] sm:$0xf0] }
 0x1d7   :  { %v10852_v58 = vor.u32 %v16152_v43, %v10851_v42  ;;  %v11180_v32 = vor.u32 %v16233_v23, %v11179_v16  ;;  %v17107_v42 = vld [vmem:[%s26306_s9 + $0x16c4] sm:$0xf]  ;;  %v10923_v16 = vld [vmem:[%s26299_s7 + $0x130] sm:$0xf] }
 0x1d8   :  { %v14685_v43 = vld [vmem:[%s26306_s9 + $0x16e0] sm:$0xf0]  ;;  %v16169_v23 = vld [vmem:[%s26299_s7 + $0x16c] sm:$0xf0] }
 0x1d9   :  { %2042 = vmatpush.bf16.msra.mxu3 %v10852_v58  ;;  %v16201_v58 = vld [vmem:[%s26299_s7 + $0x26c] sm:$0xf0]  ;;  %v10924_v33 = vor.u32 %v16169_v23, %v10923_v16  ;;  %v11123_v16 = vld [vmem:[%s26299_s7 + $0x2b8] sm:$0xf]  ;;  %v15099_v23 = vld [vmem:[%s26306_s9 + $0x1a00] sm:$0xf] }
 0x1da   :  { %8689 = vmatpush.bf16.msra.mxu1 %v13664_v59  ;;  %v12411_v59 = vld [vmem:[%s26306_s9 + $0x500] sm:$0xf]  ;;  %8506 = vmatpush.bf16.msrb.mxu2 %v14204_v40  ;;  %v12348_v40 = vor.u32 %v16527_v51, %v12347_v31  ;;  %v19807_v63 = vpop.f32.mrf.mxu2  ;;  %v11052_v4 = vor.u32 %v16201_v58, %v11051_v6  ;;  %v16153_v35 = vld [vmem:[%s26299_s7 + $0xec] sm:$0xf0] }
 0x1db   :  { %v12412_v0 = vor.u32 %v16543_v60, %v12411_v59  ;;  %v15291_v59 = vld [vmem:[%s26306_s9 + $0x1b80] sm:$0xf] }
 0x1dc   :  { %v17231_v58 = vld [vmem:[%s26306_s9 + $0x1a9c] sm:$0xf0] }
 0x1dd   :  { %8415 = vmatpush.bf16.msrb.mxu0 %v12412_v0  ;;  %2043 = vmatpush.bf16.msra.mxu3 %v10788_v11  ;;  %v19809_v0 = vpack.c.bf16 %v2201_v44, %v2201_v44  ;;  %v15259_v11 = vld [vmem:[%s26306_s9 + $0x1b40] sm:$0xf] }
 0x1de   :  { %8690 = vmatpush.bf16.msra.mxu1 %v13632_v8  ;;  %v1785_v8 = vpop.f32.mrf.mxu3  ;;  %8507 = vmatpush.bf16.msrb.mxu2 %v14172_v61  ;;  %v17263_v61 = vld [vmem:[%s26306_s9 + $0x1b9c] sm:$0xf0] }
 0x1df   :  { %v1786_v10 = vadd.f32 %v1785_v8, %v464_v56  ;;  %v14688_v56 = vor.u32 %v17107_v42, %v14685_v43  ;;  %v15292_v8 = vor.u32 %v17263_v61, %v15291_v59  ;;  %v17387_v42 = vld [vmem:[%s26306_s9 + $0x1f84] sm:$0xf] }
 0x1e0   :  { %2044 = vmatmul.bf16.vlgmr.msra.gmra.mxu3 %v17798_v29  ;;  %v15805_v43 = vld [vmem:[%s26306_s9 + $0x1fa0] sm:$0xf0] }
 0x1e1   :  { %v19734_v18 = vadd.f32 %v19576_v52, %v1786_v10  ;;  %v17115_v52 = vld [vmem:[%s26306_s9 + $0x1704] sm:$0xf]  ;;  %8416 = vmatpush.bf16.msrb.mxu0 %v12380_v19  ;;  %2088 = vmatpush.bf16.msrb.mxu3 %v11244_v14  ;;  %v16185_v10 = vld [vmem:[%s26299_s7 + $0x1ec] sm:$0xf0]  ;;  %v15260_v19 = vor.u32 %v17255_v12, %v15259_v11  ;;  %v15808_v6 = vor.u32 %v17387_v42, %v15805_v43  ;;  %v17223_v11 = vld [vmem:[%s26306_s9 + $0x1a5c] sm:$0xf0] }
 0x1e2   :  { %8691 = vmatpush.bf16.msra.mxu1 %v13600_v24  ;;  %v14107_v24 = vld [vmem:[%s26306_s9 + $0x1240] sm:$0xf]  ;;  %8508 = vmatpush.bf16.msrb.mxu2 %v14140_v15  ;;  %v14720_v34 = vor.u32 %v17115_v52, %v14717_v27  ;;  %v14621_v14 = vld [vmem:[%s26306_s9 + $0x1660] sm:$0xf0]  ;;  %v10988_v15 = vor.u32 %v16185_v10, %v10987_v48  ;;  %v1904_v31 = vpop.f32.mrf.mxu2  ;;  %v16234_v48 = vld [vmem:[%s26299_s7 + $0x374] sm:$0xf0] }
 0x1e3   :  { %v14108_v26 = vor.u32 %v16967_v25, %v14107_v24  ;;  %v15227_v24 = vld [vmem:[%s26306_s9 + $0x1b00] sm:$0xf]  ;;  %v17083_v52 = vld [vmem:[%s26306_s9 + $0x1604] sm:$0xf] }
 0x1e4   :  { %v17247_v25 = vld [vmem:[%s26306_s9 + $0x1b1c] sm:$0xf0]  ;;  %v14589_v27 = vld [vmem:[%s26306_s9 + $0x1620] sm:$0xf0] }
 0x1e5   :  { %8417 = vmatpush.bf16.msrb.mxu0 %v12348_v40  ;;  %2089 = vmatpush.bf16.msrb.mxu3 %v11180_v32  ;;  %v17395_v32 = vld [vmem:[%s26306_s9 + $0x1fc4] sm:$0xf]  ;;  %v15228_v5 = vor.u32 %v17247_v25, %v15227_v24  ;;  %v14592_v51 = vor.u32 %v17083_v52, %v14589_v27  ;;  %v17239_v40 = vld [vmem:[%s26306_s9 + $0x1adc] sm:$0xf0] }
 0x1e6   :  { %8692 = vmatpush.bf16.msra.mxu1 %v13568_v41  ;;  %v1787_v39 = vpop.f32.mrf.mxu3  ;;  %v17271_v41 = vld [vmem:[%s26306_s9 + $0x1bdc] sm:$0xf0]  ;;  %8509 = vmatpush.bf16.msrb.mxu2 %v14108_v26  ;;  %v15837_v26 = vld [vmem:[%s26306_s9 + $0x1fe0] sm:$0xf0] }
 0x1e7   :  { %v15324_v50 = vor.u32 %v17271_v41, %v15323_v38  ;;  %v15840_v38 = vor.u32 %v17395_v32, %v15837_v26  ;;  %v15195_v39 = vld [vmem:[%s26306_s9 + $0x1ac0] sm:$0xf]  ;;  %v15773_v61 = vld [vmem:[%s26306_s9 + $0x1f60] sm:$0xf0]  ;;  %v2205_v32 = vmax.f32 %v19301_v17, 0.0 }
 0x1e8   :  { %v15131_v10 = vld [vmem:[%s26306_s9 + $0x1a40] sm:$0xf]  ;;  %v17371_v12 = vld [vmem:[%s26306_s9 + $0x1f04] sm:$0xf] }
 0x1e9   :  { %8693 = vmatmul.bf16.vlgmr.msra.gmra.mxu1 %v19050_v53  ;;  %2090 = vmatpush.bf16.msrb.mxu3 %v11116_v46  ;;  %v17215_v24 = vld [vmem:[%s26306_s9 + $0x1a1c] sm:$0xf0]  ;;  %v16499_v25 = vld [vmem:[%s26306_s9 + $0x3c4] sm:$0xf] }
 0x1ea   :  { %8737 = vmatpush.bf16.msrb.mxu1 %v14816_v45  ;;  %v12315_v45 = vld [vmem:[%s26306_s9 + $0x440] sm:$0xf]  ;;  %8510 = vmatpush.bf16.msrb.mxu2 %v14076_v47  ;;  %v15196_v47 = vor.u32 %v17239_v40, %v15195_v39  ;;  %v19904_v62 = vpop.f32.mrf.mxu2  ;;  %v12253_v52 = vld [vmem:[%s26306_s9 + $0x3e0] sm:$0xf0]  ;;  %v19972_v40 = vpack.c.bf16 %v2205_v32, %v2205_v32 }
 0x1eb   :  { %v12316_v60 = vor.u32 %v16519_v49, %v12315_v45  ;;  %v10795_v45 = vld [vmem:[%s26299_s7 + $0x30] sm:$0xf]  ;;  %v17363_v27 = vld [vmem:[%s26306_s9 + $0x1ec4] sm:$0xf]  ;;  %v13531_v42 = vld [vmem:[%s26306_s9 + $0xdc0] sm:$0xf] }
 0x1ec   :  { %v16137_v49 = vld [vmem:[%s26299_s7 + $0x6c] sm:$0xf0]  ;;  %v12221_v17 = vld [vmem:[%s26306_s9 + $0x3a0] sm:$0xf0]  ;;  %v16823_v43 = vld [vmem:[%s26306_s9 + $0xddc] sm:$0xf0] }
 0x1ed   :  { %8418 = vmatpush.bf16.msrb.mxu0 %v12316_v60  ;;  %8511 = vmatmul.bf16.vlgmr.msrb.gmra.mxu2 %v19809_v0  ;;  %v17379_v60 = vld [vmem:[%s26306_s9 + $0x1f44] sm:$0xf]  ;;  %v10796_v30 = vor.u32 %v16137_v49, %v10795_v45 }
 0x1ee   :  { %8738 = vmatpush.bf16.msrb.mxu1 %v14784_v2  ;;  %v12283_v2 = vld [vmem:[%s26306_s9 + $0x400] sm:$0xf]  ;;  %8555 = vmatpush.bf16.msra.mxu2 %v15324_v50  ;;  %v1837_v36 = vpop.f32.mrf.mxu3  ;;  %v11251_v50 = vld [vmem:[%s26299_s7 + $0x3b8] sm:$0xf]  ;;  %v15677_v39 = vld [vmem:[%s26306_s9 + $0x1ea0] sm:$0xf0] }
 0x1ef   :  { %v12284_v7 = vor.u32 %v16511_v3, %v12283_v2  ;;  %2091 = vmatpush.bf16.msrb.mxu3 %v11052_v4  ;;  %v1838_v41 = vadd.f32 %v1837_v36, %v466_v28  ;;  %v15709_v28 = vld [vmem:[%s26306_s9 + $0x1ee0] sm:$0xf0] }
 0x1f0   :  { %v16491_v36 = vld [vmem:[%s26306_s9 + $0x384] sm:$0xf] }
 0x1f1   :  { %8419 = vmatpush.bf16.msrb.mxu0 %v12284_v7  ;;  %v1851_v46 = vadd.f32 %v19691_v57, %v1838_v41  ;;  %v15163_v57 = vld [vmem:[%s26306_s9 + $0x1a80] sm:$0xf]  ;;  %v11187_v7 = vld [vmem:[%s26299_s7 + $0x338] sm:$0xf]  ;;  %v16483_v49 = vld [vmem:[%s26306_s9 + $0x344] sm:$0xf] }
 0x1f2   :  { %8739 = vmatpush.bf16.msrb.mxu1 %v14752_v20  ;;  %8556 = vmatpush.bf16.msra.mxu2 %v15292_v8  ;;  %v14624_v20 = vor.u32 %v17091_v13, %v14621_v14  ;;  %v15164_v4 = vor.u32 %v17231_v58, %v15163_v57  ;;  %v15741_v13 = vld [vmem:[%s26306_s9 + $0x1f20] sm:$0xf0]  ;;  %v11188_v14 = vor.u32 %v16234_v48, %v11187_v7  ;;  %v1956_v31 = vpop.f32.mrf.mxu2  ;;  %v16170_v7 = vld [vmem:[%s26299_s7 + $0x174] sm:$0xf0] }
 0x1f3   :  { %2092 = vmatpush.bf16.msrb.mxu3 %v10988_v15  ;;  %v2194_v59 = vmax.f32 %v1851_v46, 0.0  ;;  %v15132_v15 = vor.u32 %v17223_v11, %v15131_v10  ;;  %v10995_v46 = vld [vmem:[%s26299_s7 + $0x1b8] sm:$0xf]  ;;  %v15645_v57 = vld [vmem:[%s26306_s9 + $0x1e60] sm:$0xf0] }
 0x1f4   :  { %v12157_v48 = vld [vmem:[%s26306_s9 + $0x320] sm:$0xf0] }
 0x1f5   :  { %v19906_v2 = vpack.c.bf16 %v2194_v59, %v2194_v59  ;;  %v17339_v10 = vld [vmem:[%s26306_s9 + $0x1e04] sm:$0xf] }
 0x1f6   :  { %8740 = vmatpush.bf16.msrb.mxu1 %v14720_v34  ;;  %8557 = vmatpush.bf16.msra.mxu2 %v15260_v19  ;;  %v10859_v34 = vld [vmem:[%s26299_s7 + $0xb0] sm:$0xf]  ;;  %v1839_v8 = vpop.f32.mrf.mxu3  ;;  %v16218_v19 = vld [vmem:[%s26299_s7 + $0x2f4] sm:$0xf0]  ;;  %v15613_v11 = vld [vmem:[%s26306_s9 + $0x1e20] sm:$0xf0] }
 0x1f7   :  { %2093 = vmatpush.bf16.msrb.mxu3 %v10924_v33  ;;  %v10860_v44 = vor.u32 %v16153_v35, %v10859_v34  ;;  %8420 = vmatmul.bf16.vlgmr.msrb.gmra.mxu0 %v19906_v2  ;;  %v11124_v26 = vor.u32 %v16218_v19, %v11123_v16  ;;  %v15100_v33 = vor.u32 %v17215_v24, %v15099_v23  ;;  %v11059_v34 = vld [vmem:[%s26299_s7 + $0x238] sm:$0xf]  ;;  %v16475_v8 = vld [vmem:[%s26306_s9 + $0x304] sm:$0xf]  ;;  %v16807_v16 = vld [vmem:[%s26306_s9 + $0xd5c] sm:$0xf0] }
 0x1f8   :  { %v16202_v35 = vld [vmem:[%s26299_s7 + $0x274] sm:$0xf0]  ;;  %v12160_v19 = vor.u32 %v16475_v8, %v12157_v48  ;;  %v16467_v31 = vld [vmem:[%s26306_s9 + $0x2c4] sm:$0xf]  ;;  %v12675_v48 = vld [vmem:[%s26306_s9 + $0x708] sm:$0xf] }
 0x1f9   :  { %v11060_v41 = vor.u32 %v16202_v35, %v11059_v34  ;;  %v10867_v23 = vld [vmem:[%s26299_s7 + $0xb8] sm:$0xf]  ;;  %v12125_v32 = vld [vmem:[%s26306_s9 + $0x2e0] sm:$0xf0]  ;;  %v13435_v34 = vld [vmem:[%s26306_s9 + $0xd00] sm:$0xf] }
 0x1fa   :  { %8741 = vmatpush.bf16.msrb.mxu1 %v14688_v56  ;;  %8558 = vmatpush.bf16.msra.mxu2 %v15228_v5  ;;  %v16250_v56 = vld [vmem:[%s26299_s7 + $0x3f4] sm:$0xf0]  ;;  %v12256_v5 = vor.u32 %v16499_v25, %v12253_v52  ;;  %v19998_v58 = vpop.f32.mrf.mxu2  ;;  %v20045_v52 = vpop.f32.mrf.mxu1  ;;  %v16799_v35 = vld [vmem:[%s26306_s9 + $0xd1c] sm:$0xf0]  ;;  %v12061_v8 = vld [vmem:[%s26306_s9 + $0x260] sm:$0xf0] }
 0x1fb   :  { %2094 = vmatpush.bf16.msrb.mxu3 %v10860_v44  ;;  %v11252_v3 = vor.u32 %v16250_v56, %v11251_v50  ;;  %v12224_v44 = vor.u32 %v16491_v36, %v12221_v17  ;;  %v13532_v50 = vor.u32 %v16823_v43, %v13531_v42  ;;  %v12189_v56 = vld [vmem:[%s26306_s9 + $0x360] sm:$0xf0]  ;;  %v16154_v24 = vld [vmem:[%s26299_s7 + $0xf4] sm:$0xf0]  ;;  %v12128_v36 = vor.u32 %v16467_v31, %v12125_v32  ;;  %v16439_v43 = vld [vmem:[%s26306_s9 + $0x1dc] sm:$0xf0] }
 0x1fc   :  { %v10803_v17 = vld [vmem:[%s26299_s7 + $0x38] sm:$0xf]  ;;  %v12643_v31 = vld [vmem:[%s26306_s9 + $0x6c8] sm:$0xf] }
 0x1fd   :  { %8464 = vmatpush.bf16.msra.mxu0 %v13532_v50  ;;  %v13403_v50 = vld [vmem:[%s26306_s9 + $0xcc0] sm:$0xf]  ;;  %v16600_v32 = vld [vmem:[%s26306_s9 + $0x6e4] sm:$0xf0] }
 0x1fe   :  { %8742 = vmatpush.bf16.msrb.mxu1 %v14656_v9  ;;  %8559 = vmatpush.bf16.msra.mxu2 %v15196_v47  ;;  %v15776_v9 = vor.u32 %v17379_v60, %v15773_v61  ;;  %v16186_v47 = vld [vmem:[%s26299_s7 + $0x1f4] sm:$0xf0]  ;;  %v13499_v60 = vld [vmem:[%s26306_s9 + $0xd80] sm:$0xf] }
 0x1ff   :  { %2095 = vmatpush.bf16.msrb.mxu3 %v10796_v30  ;;  %v10996_v59 = vor.u32 %v16186_v47, %v10995_v46  ;;  %v16815_v61 = vld [vmem:[%s26306_s9 + $0xd9c] sm:$0xf0]  ;;  %v12192_v30 = vor.u32 %v16483_v49, %v12189_v56  ;;  %v12707_v46 = vld [vmem:[%s26306_s9 + $0x748] sm:$0xf] }
 0x200   :  { %v16616_v47 = vld [vmem:[%s26306_s9 + $0x764] sm:$0xf0]  ;;  %v16791_v56 = vld [vmem:[%s26306_s9 + $0xcdc] sm:$0xf0] }
 0x202   :  { %8743 = vmatpush.bf16.msrb.mxu1 %v14624_v20  ;;  %8560 = vmatpush.bf16.msra.mxu2 %v15164_v4  ;;  %v15744_v20 = vor.u32 %v17371_v12, %v15741_v13  ;;  %v10931_v4 = vld [vmem:[%s26299_s7 + $0x138] sm:$0xf]  ;;  %v12771_v12 = vld [vmem:[%s26306_s9 + $0x7c8] sm:$0xf]  ;;  %v20043_v25 = vpop.f32.mrf.mxu3 }
 0x203   :  { %2140 = vmatpush.bf16.msra.mxu3 %v11252_v3  ;;  %v16632_v13 = vld [vmem:[%s26306_s9 + $0x7e4] sm:$0xf0] }
 0x204   :  { %2096 = vmatmul.bf16.vlgmr.msrb.gmra.mxu3 %v17798_v29 }
 0x206   :  { %8744 = vmatpush.bf16.msrb.mxu1 %v14592_v51  ;;  %8561 = vmatpush.bf16.msra.mxu2 %v15132_v15  ;;  %v15712_v51 = vor.u32 %v17363_v27, %v15709_v28  ;;  %v13467_v15 = vld [vmem:[%s26306_s9 + $0xd40] sm:$0xf]  ;;  %v12772_v28 = vor.u32 %v16632_v13, %v12771_v12 }
 0x207   :  { %2141 = vmatpush.bf16.msra.mxu3 %v11188_v14  ;;  %v10932_v14 = vor.u32 %v16170_v7, %v10931_v4  ;;  %v13468_v27 = vor.u32 %v16807_v16, %v13467_v15  ;;  %v16431_v4 = vld [vmem:[%s26306_s9 + $0x19c] sm:$0xf0]  ;;  %v16451_v7 = vld [vmem:[%s26306_s9 + $0x244] sm:$0xf] }
 0x208   :  { %v16783_v12 = vld [vmem:[%s26306_s9 + $0xc9c] sm:$0xf0] }
 0x209   :  { %8745 = vmatmul.bf16.vlgmr.msrb.gmra.mxu1 %v19203_v21  ;;  %v11931_v15 = vld [vmem:[%s26306_s9 + $0x140] sm:$0xf] }
 0x20a   :  { %8789 = vmatpush.bf16.msra.mxu1 %v15840_v38  ;;  %v17355_v38 = vld [vmem:[%s26306_s9 + $0x1e84] sm:$0xf]  ;;  %8562 = vmatpush.bf16.msra.mxu2 %v15100_v33  ;;  %v12739_v33 = vld [vmem:[%s26306_s9 + $0x788] sm:$0xf]  ;;  %v16423_v16 = vld [vmem:[%s26306_s9 + $0x15c] sm:$0xf0] }
 0x20b   :  { %2142 = vmatpush.bf16.msra.mxu3 %v11124_v26  ;;  %v15680_v45 = vor.u32 %v17355_v38, %v15677_v39  ;;  %v2008_v26 = vpop.f32.mrf.mxu2  ;;  %v16138_v38 = vld [vmem:[%s26299_s7 + $0x74] sm:$0xf0]  ;;  %v11995_v39 = vld [vmem:[%s26306_s9 + $0x1c0] sm:$0xf] }
 0x20c   :  { %v10804_v49 = vor.u32 %v16138_v38, %v10803_v17  ;;  %v13339_v26 = vld [vmem:[%s26306_s9 + $0xc40] sm:$0xf]  ;;  %v16747_v17 = vld [vmem:[%s26306_s9 + $0xb84] sm:$0xf] }
 0x20d   :  { %8563 = vmatmul.bf16.vlgmr.msra.gmra.mxu2 %v19972_v40 }
 0x20e   :  { %8790 = vmatpush.bf16.msra.mxu1 %v15808_v6  ;;  %8607 = vmatpush.bf16.msrb.mxu2 %v12256_v5  ;;  %v17347_v6 = vld [vmem:[%s26306_s9 + $0x1e44] sm:$0xf]  ;;  %v16624_v5 = vld [vmem:[%s26306_s9 + $0x7a4] sm:$0xf0] }
 0x20f   :  { %2143 = vmatpush.bf16.msra.mxu3 %v11060_v41  ;;  %v15648_v3 = vor.u32 %v17347_v6, %v15645_v57  ;;  %v13436_v41 = vor.u32 %v16799_v35, %v13435_v34  ;;  %v12740_v42 = vor.u32 %v16624_v5, %v12739_v33  ;;  %v11996_v6 = vor.u32 %v16439_v43, %v11995_v39  ;;  %v16775_v5 = vld [vmem:[%s26306_s9 + $0xc5c] sm:$0xf0]  ;;  %v12611_v43 = vld [vmem:[%s26306_s9 + $0x688] sm:$0xf] }
 0x210   :  { %v12644_v34 = vor.u32 %v16600_v32, %v12643_v31  ;;  %v11899_v35 = vld [vmem:[%s26306_s9 + $0x100] sm:$0xf] }
 0x211   :  { %v16391_v31 = vld [vmem:[%s26306_s9 + $0x5c] sm:$0xf0] }
 0x212   :  { %8791 = vmatpush.bf16.msra.mxu1 %v15776_v9  ;;  %8608 = vmatpush.bf16.msrb.mxu2 %v12224_v44  ;;  %v13500_v9 = vor.u32 %v16815_v61, %v13499_v60  ;;  %v16459_v44 = vld [vmem:[%s26306_s9 + $0x284] sm:$0xf]  ;;  %v1891_v60 = vpop.f32.mrf.mxu3  ;;  %v8436_v61 = vpop.f32.mrf.mxu1 }
 0x213   :  { %2144 = vmatpush.bf16.msra.mxu3 %v10996_v59  ;;  %v11963_v59 = vld [vmem:[%s26306_s9 + $0x180] sm:$0xf]  ;;  %v13213_v60 = vld [vmem:[%s26306_s9 + $0xb60] sm:$0xf0]  ;;  %v12579_v61 = vld [vmem:[%s26306_s9 + $0x648] sm:$0xf] }
 0x214   :  { %8465 = vmatpush.bf16.msra.mxu0 %v13500_v9  ;;  %v20108_v9 = vpop.f32.mrf.mxu2  ;;  %v11964_v13 = vor.u32 %v16431_v4, %v11963_v59  ;;  %v16739_v59 = vld [vmem:[%s26306_s9 + $0xb44] sm:$0xf]  ;;  %v11835_v4 = vld [vmem:[%s26306_s9 + $0x80] sm:$0xf] }
 0x216   :  { %8792 = vmatpush.bf16.msra.mxu1 %v15744_v20  ;;  %8609 = vmatpush.bf16.msrb.mxu2 %v12192_v30  ;;  %v15616_v20 = vor.u32 %v17339_v10, %v15613_v11  ;;  %v13404_v30 = vor.u32 %v16791_v56, %v13403_v50  ;;  %v16608_v10 = vld [vmem:[%s26306_s9 + $0x724] sm:$0xf0]  ;;  %v13371_v11 = vld [vmem:[%s26306_s9 + $0xc80] sm:$0xf] }
 0x217   :  { %2145 = vmatpush.bf16.msra.mxu3 %v10932_v14  ;;  %v12064_v14 = vor.u32 %v16451_v7, %v12061_v8  ;;  %v13216_v7 = vor.u32 %v16739_v59, %v13213_v60  ;;  %v16872_v59 = vld [vmem:[%s26306_s9 + $0xf64] sm:$0xf0]  ;;  %v2192_v60 = vmax.f32 %v19734_v18, 0.0  ;;  %v12987_v18 = vld [vmem:[%s26306_s9 + $0x980] sm:$0xf] }
 0x218   :  { %8466 = vmatpush.bf16.msra.mxu0 %v13468_v27  ;;  %v16755_v27 = vld [vmem:[%s26306_s9 + $0xbc4] sm:$0xf] }
 0x21a   :  { %8793 = vmatpush.bf16.msra.mxu1 %v15712_v51  ;;  %v10868_v51 = vor.u32 %v16154_v24, %v10867_v23  ;;  %8610 = vmatpush.bf16.msrb.mxu2 %v12160_v19  ;;  %v13372_v19 = vor.u32 %v16783_v12, %v13371_v11  ;;  %v16443_v23 = vld [vmem:[%s26306_s9 + $0x204] sm:$0xf]  ;;  %v20162_v38 = vpop.f32.mrf.mxu1 }
 0x21b   :  { %v12029_v24 = vld [vmem:[%s26306_s9 + $0x220] sm:$0xf0] }
 0x21c   :  { %8467 = vmatpush.bf16.msra.mxu0 %v13436_v41  ;;  %2146 = vmatpush.bf16.msra.mxu3 %v10868_v51  ;;  %v12032_v33 = vor.u32 %v16443_v23, %v12029_v24  ;;  %v2060_v39 = vpop.f32.mrf.mxu2  ;;  %v13340_v41 = vor.u32 %v16775_v5, %v13339_v26  ;;  %v13181_v11 = vld [vmem:[%s26306_s9 + $0xb20] sm:$0xf0] }
 0x21d   :  { %v14555_v39 = vld [vmem:[%s26306_s9 + $0x15c0] sm:$0xf] }
 0x21e   :  { %8794 = vmatpush.bf16.msra.mxu1 %v15680_v45  ;;  %v12093_v45 = vld [vmem:[%s26306_s9 + $0x2a0] sm:$0xf0]  ;;  %8611 = vmatpush.bf16.msrb.mxu2 %v12128_v36  ;;  %v16415_v36 = vld [vmem:[%s26306_s9 + $0x11c] sm:$0xf0] }
 0x21f   :  { %v12096_v57 = vor.u32 %v16459_v44, %v12093_v45  ;;  %v16592_v44 = vld [vmem:[%s26306_s9 + $0x6a4] sm:$0xf0]  ;;  %v13307_v45 = vld [vmem:[%s26306_s9 + $0xc00] sm:$0xf] }
 0x220   :  { %8468 = vmatpush.bf16.msra.mxu0 %v13404_v30  ;;  %2147 = vmatpush.bf16.msra.mxu3 %v10804_v49  ;;  %v12612_v56 = vor.u32 %v16592_v44, %v12611_v43  ;;  %v16584_v30 = vld [vmem:[%s26306_s9 + $0x664] sm:$0xf0]  ;;  %v16383_v43 = vld [vmem:[%s26306_s9 + $0x1c] sm:$0xf0] }
 0x221   :  { %v12580_v8 = vor.u32 %v16584_v30, %v12579_v61  ;;  %v13019_v44 = vld [vmem:[%s26306_s9 + $0x9c0] sm:$0xf] }
 0x222   :  { %8795 = vmatpush.bf16.msra.mxu1 %v15648_v3  ;;  %v12708_v3 = vor.u32 %v16616_v47, %v12707_v46  ;;  %8612 = vmatpush.bf16.msrb.mxu2 %v12096_v57  ;;  %v16767_v46 = vld [vmem:[%s26306_s9 + $0xc1c] sm:$0xf0]  ;;  %v11900_v47 = vor.u32 %v16415_v36, %v11899_v35  ;;  %v8488_v12 = vpop.f32.mrf.mxu1  ;;  %v1941_v32 = vpop.f32.mrf.mxu3 }
 0x223   :  { %2148 = vmatmul.bf16.vlgmr.msra.gmra.mxu3 %v17798_v29  ;;  %v11932_v29 = vor.u32 %v16423_v16, %v11931_v15  ;;  %v13308_v49 = vor.u32 %v16767_v46, %v13307_v45  ;;  %v16407_v57 = vld [vmem:[%s26306_s9 + $0xdc] sm:$0xf0]  ;;  %v16576_v15 = vld [vmem:[%s26306_s9 + $0x624] sm:$0xf0]  ;;  %v470_v16 = vperm.slane %v19688_v54, 6 }
 0x224   :  { %8386 = vmatpush.bf16.msrb.mxu3 %v11996_v6  ;;  %8469 = vmatpush.bf16.msra.mxu0 %v13372_v19  ;;  %v11867_v6 = vld [vmem:[%s26306_s9 + $0xc0] sm:$0xf]  ;;  %v13795_v19 = vld [vmem:[%s26306_s9 + $0xfc8] sm:$0xf] }
 0x225   :  { %v1942_v5 = vadd.f32 %v1941_v32, %v470_v16  ;;  %v11771_v36 = vld [vmem:[%s26306_s9] sm:$0xf]  ;;  %v13699_v16 = vld [vmem:[%s26306_s9 + $0xf08] sm:$0xf] }
 0x226   :  { %8796 = vmatpush.bf16.msra.mxu1 %v15616_v20  ;;  %v12676_v20 = vor.u32 %v16608_v10, %v12675_v48  ;;  %8613 = vmatpush.bf16.msrb.mxu2 %v12064_v14  ;;  %v16399_v48 = vld [vmem:[%s26306_s9 + $0x9c] sm:$0xf0]  ;;  %v16731_v10 = vld [vmem:[%s26306_s9 + $0xb04] sm:$0xf]  ;;  %v12547_v14 = vld [vmem:[%s26306_s9 + $0x608] sm:$0xf]  ;;  %v11772_v61 = vor.u32 %v16383_v43, %v11771_v36 }
 0x227   :  { %v11836_v23 = vor.u32 %v16399_v48, %v11835_v4  ;;  %v13184_v24 = vor.u32 %v16731_v10, %v13181_v11  ;;  %v17071_v4 = vld [vmem:[%s26306_s9 + $0x159c] sm:$0xf0]  ;;  %v14301_v36 = vld [vmem:[%s26306_s9 + $0x13e0] sm:$0xf0] }
 0x228   :  { %8387 = vmatpush.bf16.msrb.mxu3 %v11964_v13  ;;  %8470 = vmatpush.bf16.msra.mxu0 %v13340_v41  ;;  %v20210_v13 = vpop.f32.mrf.mxu2  ;;  %v17079_v41 = vld [vmem:[%s26306_s9 + $0x15dc] sm:$0xf0] }
 0x229   :  { %8797 = vmatmul.bf16.vlgmr.msra.gmra.mxu1 %v19463_v55  ;;  %v16687_v12 = vld [vmem:[%s26306_s9 + $0x99c] sm:$0xf0] }
 0x22a   :  { %8841 = vmatpush.bf16.msrb.mxu1 %v12772_v28  ;;  %v13277_v28 = vld [vmem:[%s26306_s9 + $0xbe0] sm:$0xf0]  ;;  %8614 = vmatpush.bf16.msrb.mxu2 %v12032_v33  ;;  %v20262_v45 = vpop.f32.mrf.mxu1  ;;  %v1943_v48 = vpop.f32.mrf.mxu3  ;;  %v16679_v32 = vld [vmem:[%s26306_s9 + $0x95c] sm:$0xf0] }
 0x22b   :  { %v13280_v51 = vor.u32 %v16755_v27, %v13277_v28  ;;  %v12548_v27 = vor.u32 %v16576_v15, %v12547_v14  ;;  %v11803_v28 = vld [vmem:[%s26306_s9 + $0x40] sm:$0xf]  ;;  %v13149_v33 = vld [vmem:[%s26306_s9 + $0xae0] sm:$0xf0] }
 0x22c   :  { %8388 = vmatpush.bf16.msrb.mxu3 %v11932_v29  ;;  %8471 = vmatpush.bf16.msra.mxu0 %v13308_v49  ;;  %v16723_v29 = vld [vmem:[%s26306_s9 + $0xac4] sm:$0xf]  ;;  %v11804_v35 = vor.u32 %v16391_v31, %v11803_v28  ;;  %v12955_v31 = vld [vmem:[%s26306_s9 + $0x940] sm:$0xf] }
 0x22d   :  { %8615 = vmatmul.bf16.vlgmr.msrb.gmra.mxu2 %v19442_v37  ;;  %v16707_v14 = vld [vmem:[%s26306_s9 + $0xa44] sm:$0xf] }
 0x22e   :  { %8842 = vmatpush.bf16.msrb.mxu1 %v12740_v42  ;;  %v13245_v42 = vld [vmem:[%s26306_s9 + $0xba0] sm:$0xf0]  ;;  %8659 = vmatpush.bf16.msra.mxu2 %v13280_v51  ;;  %v13763_v51 = vld [vmem:[%s26306_s9 + $0xf88] sm:$0xf] }
 0x22f   :  { %v13248_v50 = vor.u32 %v16747_v17, %v13245_v42  ;;  %v1955_v17 = vadd.f32 %v19904_v62, %v1942_v5  ;;  %v13152_v42 = vor.u32 %v16723_v29, %v13149_v33  ;;  %v16695_v62 = vld [vmem:[%s26306_s9 + $0x9dc] sm:$0xf0]  ;;  %v13085_v15 = vld [vmem:[%s26306_s9 + $0xa60] sm:$0xf0] }
 0x230   :  { %8389 = vmatpush.bf16.msrb.mxu3 %v11900_v47  ;;  %v2112_v46 = vpop.f32.mrf.mxu2  ;;  %v14556_v47 = vor.u32 %v17079_v41, %v14555_v39  ;;  %v13088_v28 = vor.u32 %v16707_v14, %v13085_v15  ;;  %v16856_v39 = vld [vmem:[%s26306_s9 + $0xee4] sm:$0xf0]  ;;  %v14459_v41 = vld [vmem:[%s26306_s9 + $0x1500] sm:$0xf]  ;;  %v14237_v14 = vld [vmem:[%s26306_s9 + $0x1360] sm:$0xf0] }
 0x231   :  { %v13603_v15 = vld [vmem:[%s26306_s9 + $0xe48] sm:$0xf] }
 0x232   :  { %8843 = vmatpush.bf16.msrb.mxu1 %v12708_v3  ;;  %v11868_v3 = vor.u32 %v16407_v57, %v11867_v6  ;;  %8660 = vmatpush.bf16.msra.mxu2 %v13248_v50  ;;  %v16715_v50 = vld [vmem:[%s26306_s9 + $0xa84] sm:$0xf]  ;;  %v2198_v6 = vmax.f32 %v1955_v17, 0.0  ;;  %v13731_v57 = vld [vmem:[%s26306_s9 + $0xf48] sm:$0xf] }
 0x233   :  { %8516 = vmatpush.bf16.msrb.mxu0 %v14556_v47  ;;  %v13732_v11 = vor.u32 %v16872_v59, %v13731_v57  ;;  %v13667_v17 = vld [vmem:[%s26306_s9 + $0xec8] sm:$0xf]  ;;  %v12923_v47 = vld [vmem:[%s26306_s9 + $0x900] sm:$0xf] }
 0x234   :  { %8390 = vmatpush.bf16.msrb.mxu3 %v11868_v3  ;;  %v20278_v30 = vpack.c.bf16 %v2198_v6, %v2198_v6  ;;  %v14523_v3 = vld [vmem:[%s26306_s9 + $0x1580] sm:$0xf]  ;;  %v13668_v46 = vor.u32 %v16856_v39, %v13667_v17  ;;  %v14269_v6 = vld [vmem:[%s26306_s9 + $0x13a0] sm:$0xf0]  ;;  %v13635_v57 = vld [vmem:[%s26306_s9 + $0xe88] sm:$0xf] }
 0x235   :  { %v14524_v10 = vor.u32 %v17071_v4, %v14523_v3  ;;  %v16848_v59 = vld [vmem:[%s26306_s9 + $0xea4] sm:$0xf0]  ;;  %v14363_v17 = vld [vmem:[%s26306_s9 + $0x1440] sm:$0xf] }
 0x236   :  { %8844 = vmatpush.bf16.msrb.mxu1 %v12676_v20  ;;  %v16888_v20 = vld [vmem:[%s26306_s9 + $0xfe4] sm:$0xf0]  ;;  %8661 = vmatpush.bf16.msra.mxu2 %v13216_v7  ;;  %v13020_v7 = vor.u32 %v16695_v62, %v13019_v44  ;;  %v17055_v44 = vld [vmem:[%s26306_s9 + $0x151c] sm:$0xf0]  ;;  %v13636_v48 = vor.u32 %v16848_v59, %v13635_v57  ;;  %v16979_v57 = vld [vmem:[%s26306_s9 + $0x12c4] sm:$0xf] }
 0x237   :  { %v13796_v26 = vor.u32 %v16888_v20, %v13795_v19  ;;  %8472 = vmatmul.bf16.vlgmr.msra.gmra.mxu0 %v20278_v30  ;;  %v16864_v19 = vld [vmem:[%s26306_s9 + $0xf24] sm:$0xf0]  ;;  %v20305_v20 = vpack.c.bf16 %v2192_v60, %v2192_v60  ;;  %v14427_v60 = vld [vmem:[%s26306_s9 + $0x14c0] sm:$0xf] }
 0x238   :  { %8391 = vmatpush.bf16.msrb.mxu3 %v11836_v23  ;;  %8517 = vmatpush.bf16.msrb.mxu0 %v14524_v10  ;;  %v14491_v23 = vld [vmem:[%s26306_s9 + $0x1540] sm:$0xf]  ;;  %v20319_v29 = vpop.f32.mrf.mxu2  ;;  %v13700_v5 = vor.u32 %v16864_v19, %v13699_v16  ;;  %v16840_v16 = vld [vmem:[%s26306_s9 + $0xe64] sm:$0xf0] }
 0x239   :  { %v12891_v10 = vld [vmem:[%s26306_s9 + $0x8c0] sm:$0xf]  ;;  %v14787_v59 = vld [vmem:[%s26306_s9 + $0x1788] sm:$0xf] }
 0x23a   :  { %8845 = vmatpush.bf16.msrb.mxu1 %v12644_v34  ;;  %v16880_v34 = vld [vmem:[%s26306_s9 + $0xfa4] sm:$0xf0]  ;;  %8662 = vmatpush.bf16.msra.mxu2 %v13184_v24  ;;  %v17063_v24 = vld [vmem:[%s26306_s9 + $0x155c] sm:$0xf0] }
 0x23b   :  { %v13764_v49 = vor.u32 %v16880_v34, %v13763_v51  ;;  %v14492_v33 = vor.u32 %v17063_v24, %v14491_v23  ;;  %v16699_v51 = vld [vmem:[%s26306_s9 + $0xa04] sm:$0xf]  ;;  %v14395_v19 = vld [vmem:[%s26306_s9 + $0x1480] sm:$0xf]  ;;  %v468_v24 = vperm.slane %v19688_v54, 4 }
 0x23c   :  { %8392 = vmatpush.bf16.msrb.mxu3 %v11804_v35  ;;  %v13053_v34 = vld [vmem:[%s26306_s9 + $0xa20] sm:$0xf0]  ;;  %v17039_v23 = vld [vmem:[%s26306_s9 + $0x149c] sm:$0xf0] }
 0x23d   :  { %v17011_v35 = vld [vmem:[%s26306_s9 + $0x13c4] sm:$0xf]  ;;  %8518 = vmatpush.bf16.msrb.mxu0 %v14492_v33  ;;  %v13056_v43 = vor.u32 %v16699_v51, %v13053_v34  ;;  %v16655_v33 = vld [vmem:[%s26306_s9 + $0x89c] sm:$0xf0]  ;;  %v13571_v51 = vld [vmem:[%s26306_s9 + $0xe08] sm:$0xf] }
 0x23e   :  { %8846 = vmatpush.bf16.msrb.mxu1 %v12612_v56  ;;  %v13117_v56 = vld [vmem:[%s26306_s9 + $0xaa0] sm:$0xf0]  ;;  %8663 = vmatpush.bf16.msra.mxu2 %v13152_v42  ;;  %v12956_v42 = vor.u32 %v16679_v32, %v12955_v31  ;;  %v14304_v62 = vor.u32 %v17011_v35, %v14301_v36  ;;  %v14396_v31 = vor.u32 %v17039_v23, %v14395_v19  ;;  %v16832_v34 = vld [vmem:[%s26306_s9 + $0xe24] sm:$0xf0]  ;;  %v17031_v39 = vld [vmem:[%s26306_s9 + $0x145c] sm:$0xf0] }
 0x23f   :  { %v14205_v54 = vld [vmem:[%s26306_s9 + $0x1320] sm:$0xf0]  ;;  %v14819_v35 = vld [vmem:[%s26306_s9 + $0x17c8] sm:$0xf] }
 0x240   :  { %8393 = vmatpush.bf16.msrb.mxu3 %v11772_v61  ;;  %v17047_v61 = vld [vmem:[%s26306_s9 + $0x14dc] sm:$0xf0]  ;;  %v17144_v36 = vld [vmem:[%s26306_s9 + $0x17e4] sm:$0xf0]  ;;  %v16971_v23 = vld [vmem:[%s26306_s9 + $0x1284] sm:$0xf] }
 0x242   :  { %8847 = vmatpush.bf16.msrb.mxu1 %v12580_v8  ;;  %v13120_v8 = vor.u32 %v16715_v50, %v13117_v56  ;;  %v17003_v50 = vld [vmem:[%s26306_s9 + $0x1384] sm:$0xf]  ;;  %v14460_v56 = vor.u32 %v17055_v44, %v14459_v41  ;;  %v14364_v44 = vor.u32 %v17031_v39, %v14363_v17  ;;  %v16943_v39 = vld [vmem:[%s26306_s9 + $0x119c] sm:$0xf0] }
 0x243   :  { %8394 = vmatmul.bf16.vlgmr.msrb.gmra.mxu3 %v20305_v20 }
 0x244   :  { %8438 = vmatpush.bf16.msra.mxu3 %v13020_v7  ;;  %8664 = vmatpush.bf16.msra.mxu2 %v13120_v8  ;;  %v2164_v7 = vpop.f32.mrf.mxu2  ;;  %v14428_v8 = vor.u32 %v17047_v61, %v14427_v60  ;;  %v17136_v60 = vld [vmem:[%s26306_s9 + $0x17a4] sm:$0xf0]  ;;  %v14331_v61 = vld [vmem:[%s26306_s9 + $0x1400] sm:$0xf] }
 0x245   :  { %8519 = vmatpush.bf16.msrb.mxu0 %v14460_v56  ;;  %v20437_v56 = vpop.f32.mrf.mxu3  ;;  %v14788_v19 = vor.u32 %v17136_v60, %v14787_v59  ;;  %v17319_v59 = vld [vmem:[%s26306_s9 + $0x1d5c] sm:$0xf0] }
 0x246   :  { %8848 = vmatpush.bf16.msrb.mxu1 %v12548_v27  ;;  %v12988_v27 = vor.u32 %v16687_v12, %v12987_v18  ;;  %v14272_v18 = vor.u32 %v17003_v50, %v14269_v6  ;;  %v16995_v12 = vld [vmem:[%s26306_s9 + $0x1344] sm:$0xf]  ;;  %v16647_v50 = vld [vmem:[%s26306_s9 + $0x85c] sm:$0xf0]  ;;  %v14820_v6 = vor.u32 %v17144_v36, %v14819_v35 }
 0x247   :  { %v14240_v32 = vor.u32 %v16995_v12, %v14237_v14  ;;  %v12795_v12 = vld [vmem:[%s26306_s9 + $0x800] sm:$0xf] }
 0x248   :  { %8439 = vmatpush.bf16.msra.mxu3 %v12988_v27  ;;  %8665 = vmatpush.bf16.msra.mxu2 %v13088_v28  ;;  %v12859_v28 = vld [vmem:[%s26306_s9 + $0x880] sm:$0xf] }
 0x249   :  { %8849 = vmatmul.bf16.vlgmr.msrb.gmra.mxu1 %v18896_v22  ;;  %8520 = vmatpush.bf16.msrb.mxu0 %v14428_v8  ;;  %v12860_v41 = vor.u32 %v16655_v33, %v12859_v28  ;;  %v16639_v14 = vld [vmem:[%s26306_s9 + $0x81c] sm:$0xf0]  ;;  %v17128_v28 = vld [vmem:[%s26306_s9 + $0x1764] sm:$0xf0] }
 0x24a   :  { %8893 = vmatpush.bf16.msra.mxu1 %v13796_v26  ;;  %v8540_v26 = vpop.f32.mrf.mxu1  ;;  %v15547_v33 = vld [vmem:[%s26306_s9 + $0x1d80] sm:$0xf] }
 0x24b   :  { %v13604_v26 = vor.u32 %v16840_v16, %v13603_v15  ;;  %v14043_v15 = vld [vmem:[%s26306_s9 + $0x11c0] sm:$0xf] }
 0x24c   :  { %8440 = vmatpush.bf16.msra.mxu3 %v12956_v42  ;;  %8666 = vmatpush.bf16.msra.mxu2 %v13056_v43  ;;  %v20428_v43 = vpop.f32.mrf.mxu2  ;;  %v14011_v35 = vld [vmem:[%s26306_s9 + $0x1180] sm:$0xf] }
 0x24d   :  { %8521 = vmatpush.bf16.msrb.mxu0 %v14396_v31  ;;  %v12796_v31 = vor.u32 %v16639_v14, %v12795_v12  ;;  %v1995_v36 = vpop.f32.mrf.mxu3  ;;  %v15483_v14 = vld [vmem:[%s26306_s9 + $0x1d00] sm:$0xf] }
 0x24e   :  { %8894 = vmatpush.bf16.msra.mxu1 %v13764_v49  ;;  %v16671_v49 = vld [vmem:[%s26306_s9 + $0x91c] sm:$0xf0] }
 0x24f   :  { %v12924_v3 = vor.u32 %v16671_v49, %v12923_v47  ;;  %8667 = vmatmul.bf16.vlgmr.msra.gmra.mxu2 %v19597_v1  ;;  %v13572_v47 = vor.u32 %v16832_v34, %v13571_v51  ;;  %v12827_v49 = vld [vmem:[%s26306_s9 + $0x840] sm:$0xf] }
 0x250   :  { %8711 = vmatpush.bf16.msrb.mxu2 %v14304_v62  ;;  %v1890_v62 = vadd.f32 %v20043_v25, %v468_v24  ;;  %v14173_v25 = vld [vmem:[%s26306_s9 + $0x12e0] sm:$0xf0]  ;;  %v12828_v7 = vor.u32 %v16647_v50, %v12827_v49  ;;  %v14012_v50 = vor.u32 %v16943_v39, %v14011_v35  ;;  %v16919_v39 = vld [vmem:[%s26306_s9 + $0x10dc] sm:$0xf0] }
 0x251   :  { %8441 = vmatpush.bf16.msra.mxu3 %v12924_v3  ;;  %8522 = vmatpush.bf16.msrb.mxu0 %v14364_v44  ;;  %v17023_v3 = vld [vmem:[%s26306_s9 + $0x141c] sm:$0xf0]  ;;  %v14141_v24 = vld [vmem:[%s26306_s9 + $0x12a0] sm:$0xf0] }
 0x252   :  { %8895 = vmatpush.bf16.msra.mxu1 %v13732_v11  ;;  %v20370_v4 = vpop.f32.mrf.mxu1  ;;  %v16663_v11 = vld [vmem:[%s26306_s9 + $0x8dc] sm:$0xf0]  ;;  %v14332_v8 = vor.u32 %v17023_v3, %v14331_v61  ;;  %v14144_v34 = vor.u32 %v16971_v23, %v14141_v24  ;;  %v16955_v61 = vld [vmem:[%s26306_s9 + $0x1204] sm:$0xf] }
 0x253   :  { %v12892_v27 = vor.u32 %v16663_v11, %v12891_v10  ;;  %v1903_v10 = vadd.f32 %v19807_v63, %v1890_v62  ;;  %v14176_v11 = vor.u32 %v16979_v57, %v14173_v25  ;;  %v16951_v63 = vld [vmem:[%s26306_s9 + $0x11dc] sm:$0xf0]  ;;  %v14723_v62 = vld [vmem:[%s26306_s9 + $0x1708] sm:$0xf]  ;;  %v14077_v3 = vld [vmem:[%s26306_s9 + $0x1220] sm:$0xf0] }
 0x254   :  { %8712 = vmatpush.bf16.msrb.mxu2 %v14272_v18  ;;  %v15579_v18 = vld [vmem:[%s26306_s9 + $0x1dc0] sm:$0xf]  ;;  %v14044_v51 = vor.u32 %v16951_v63, %v14043_v15 }
 0x255   :  { %8442 = vmatpush.bf16.msra.mxu3 %v12892_v27  ;;  %v14755_v27 = vld [vmem:[%s26306_s9 + $0x1748] sm:$0xf]  ;;  %8523 = vmatpush.bf16.msrb.mxu0 %v14332_v8  ;;  %v13979_v57 = vld [vmem:[%s26306_s9 + $0x1140] sm:$0xf] }
 0x256   :  { %8896 = vmatpush.bf16.msra.mxu1 %v13700_v5  ;;  %v16987_v5 = vld [vmem:[%s26306_s9 + $0x1304] sm:$0xf]  ;;  %v14756_v17 = vor.u32 %v17128_v28, %v14755_v27  ;;  %v16935_v25 = vld [vmem:[%s26306_s9 + $0x115c] sm:$0xf0] }
 0x257   :  { %v17311_v15 = vld [vmem:[%s26306_s9 + $0x1d1c] sm:$0xf0]  ;;  %v17259_v28 = vld [vmem:[%s26306_s9 + $0x1b84] sm:$0xf] }
 0x258   :  { %8713 = vmatpush.bf16.msrb.mxu2 %v14240_v32  ;;  %v13947_v24 = vld [vmem:[%s26306_s9 + $0x1100] sm:$0xf] }
 0x259   :  { %8443 = vmatpush.bf16.msra.mxu3 %v12860_v41  ;;  %v16963_v41 = vld [vmem:[%s26306_s9 + $0x1244] sm:$0xf]  ;;  %v16927_v27 = vld [vmem:[%s26306_s9 + $0x111c] sm:$0xf0] }
 0x25a   :  { %8897 = vmatpush.bf16.msra.mxu1 %v13668_v46  ;;  %v8592_v42 = vpop.f32.mrf.mxu1  ;;  %v14208_v46 = vor.u32 %v16987_v5, %v14205_v54  ;;  %v17327_v5 = vld [vmem:[%s26306_s9 + $0x1d9c] sm:$0xf0]  ;;  %v2196_v54 = vmax.f32 %v1903_v10, 0.0  ;;  %v17112_v10 = vld [vmem:[%s26306_s9 + $0x16e4] sm:$0xf0] }
 0x25b   :  { %v14109_v42 = vld [vmem:[%s26306_s9 + $0x1260] sm:$0xf0]  ;;  %v15548_v44 = vor.u32 %v17327_v5, %v15547_v33  ;;  %v17104_v33 = vld [vmem:[%s26306_s9 + $0x16a4] sm:$0xf0]  ;;  %v15484_v5 = vor.u32 %v17311_v15, %v15483_v14 }
 0x25c   :  { %8714 = vmatpush.bf16.msrb.mxu2 %v14208_v46  ;;  %v17120_v46 = vld [vmem:[%s26306_s9 + $0x1724] sm:$0xf0]  ;;  %v20518_v49 = vpack.c.bf16 %v2196_v54, %v2196_v54  ;;  %v15451_v54 = vld [vmem:[%s26306_s9 + $0x1cc0] sm:$0xf] }
 0x25d   :  { %8444 = vmatpush.bf16.msra.mxu3 %v12828_v7  ;;  %v14724_v60 = vor.u32 %v17120_v46, %v14723_v62  ;;  %v17267_v7 = vld [vmem:[%s26306_s9 + $0x1bc4] sm:$0xf]  ;;  %v17096_v62 = vld [vmem:[%s26306_s9 + $0x1664] sm:$0xf0] }
 0x25e   :  { %8898 = vmatpush.bf16.msra.mxu1 %v13636_v48  ;;  %v17335_v48 = vld [vmem:[%s26306_s9 + $0x1ddc] sm:$0xf0]  ;;  %v15843_v14 = vld [vmem:[%s26306_s9 + $0x1fc8] sm:$0xf] }
 0x25f   :  { %v15580_v16 = vor.u32 %v17335_v48, %v15579_v18  ;;  %v15325_v18 = vld [vmem:[%s26306_s9 + $0x1be0] sm:$0xf0]  ;;  %v14691_v48 = vld [vmem:[%s26306_s9 + $0x16c8] sm:$0xf] }
 0x260   :  { %8715 = vmatpush.bf16.msrb.mxu2 %v14176_v11  ;;  %v15328_v63 = vor.u32 %v17267_v7, %v15325_v18  ;;  %v14692_v23 = vor.u32 %v17112_v10, %v14691_v48  ;;  %v17243_v18 = vld [vmem:[%s26306_s9 + $0x1b04] sm:$0xf]  ;;  %v14595_v10 = vld [vmem:[%s26306_s9 + $0x1608] sm:$0xf] }
 0x261   :  { %8568 = vmatpush.bf16.msra.mxu0 %v15580_v16  ;;  %8445 = vmatpush.bf16.msra.mxu3 %v12796_v31  ;;  %v13980_v16 = vor.u32 %v16935_v25, %v13979_v57  ;;  %v15293_v31 = vld [vmem:[%s26306_s9 + $0x1ba0] sm:$0xf0]  ;;  %v17295_v57 = vld [vmem:[%s26306_s9 + $0x1c9c] sm:$0xf0]  ;;  %v20610_v25 = vld [vmem:[%s26305_s8 + $0x8] sm:$0xff] }
 0x262   :  { %8899 = vmatpush.bf16.msra.mxu1 %v13604_v26  ;;  %v20489_v32 = vpop.f32.mrf.mxu1  ;;  %v8410_v26 = vpop.f32.mrf.mxu2  ;;  %v15296_v35 = vor.u32 %v17259_v28, %v15293_v31  ;;  %v15229_v48 = vld [vmem:[%s26306_s9 + $0x1b20] sm:$0xf0]  ;;  %v474_v15 = vperm.slane %v20610_v25, 2 }
 0x263   :  { %v14659_v26 = vld [vmem:[%s26306_s9 + $0x1688] sm:$0xf]  ;;  %v15232_v28 = vor.u32 %v17243_v18, %v15229_v48 }
 0x264   :  { %8716 = vmatpush.bf16.msrb.mxu2 %v14144_v34  ;;  %8446 = vmatmul.bf16.vlgmr.msra.gmra.mxu3 %v20518_v49  ;;  %v13948_v34 = vor.u32 %v16927_v27, %v13947_v24  ;;  %v14660_v36 = vor.u32 %v17104_v33, %v14659_v26  ;;  %v13851_v26 = vld [vmem:[%s26306_s9 + $0x1040] sm:$0xf]  ;;  %v15779_v18 = vld [vmem:[%s26306_s9 + $0x1f48] sm:$0xf] }
 0x265   :  { %8490 = vmatpush.bf16.msrb.mxu3 %v14044_v51  ;;  %8569 = vmatpush.bf16.msra.mxu0 %v15548_v44  ;;  %v17303_v51 = vld [vmem:[%s26306_s9 + $0x1cdc] sm:$0xf0]  ;;  %v14627_v44 = vld [vmem:[%s26306_s9 + $0x1648] sm:$0xf] }
 0x266   :  { %8900 = vmatpush.bf16.msra.mxu1 %v13572_v47  ;;  %v15515_v47 = vld [vmem:[%s26306_s9 + $0x1d40] sm:$0xf]  ;;  %v15452_v46 = vor.u32 %v17303_v51, %v15451_v54  ;;  %v15197_v51 = vld [vmem:[%s26306_s9 + $0x1ae0] sm:$0xf0]  ;;  %v17384_v48 = vld [vmem:[%s26306_s9 + $0x1f64] sm:$0xf0] }
 0x267   :  { %v15516_v8 = vor.u32 %v17319_v59, %v15515_v47  ;;  %v472_v59 = vperm.slane %v20610_v25, 0  ;;  %v16903_v33 = vld [vmem:[%s26306_s9 + $0x105c] sm:$0xf0] }
 0x269   :  { %8901 = vmatmul.bf16.vlgmr.msra.gmra.mxu1 %v19050_v53  ;;  %8491 = vmatpush.bf16.msrb.mxu3 %v14012_v50  ;;  %v1994_v24 = vadd.f32 %v20437_v56, %v472_v59  ;;  %v17235_v56 = vld [vmem:[%s26306_s9 + $0x1ac4] sm:$0xf] }
 0x26a   :  { %8945 = vmatpush.bf16.msrb.mxu1 %v14820_v6  ;;  %v14112_v6 = vor.u32 %v16963_v41, %v14109_v42  ;;  %v8644_v11 = vpop.f32.mrf.mxu1  ;;  %v20548_v12 = vpop.f32.mrf.mxu2  ;;  %8570 = vmatpush.bf16.msra.mxu0 %v15516_v8  ;;  %v17251_v41 = vld [vmem:[%s26306_s9 + $0x1b44] sm:$0xf]  ;;  %v14628_v8 = vor.u32 %v17096_v62, %v14627_v44  ;;  %v13852_v62 = vor.u32 %v16903_v33, %v13851_v26  ;;  %v17199_v26 = vld [vmem:[%s26306_s9 + $0x199c] sm:$0xf0] }
 0x26b   :  { %v15261_v42 = vld [vmem:[%s26306_s9 + $0x1b60] sm:$0xf0]  ;;  %v17088_v11 = vld [vmem:[%s26306_s9 + $0x1624] sm:$0xf0]  ;;  %v2007_v44 = vadd.f32 %v19998_v58, %v1994_v24  ;;  %v15200_v59 = vor.u32 %v17235_v56, %v15197_v51  ;;  %v17207_v58 = vld [vmem:[%s26306_s9 + $0x19dc] sm:$0xf0] }
 0x26c   :  { %8717 = vmatpush.bf16.msrb.mxu2 %v14112_v6  ;;  %v15419_v6 = vld [vmem:[%s26306_s9 + $0x1c80] sm:$0xf]  ;;  %v15264_v7 = vor.u32 %v17251_v41, %v15261_v42  ;;  %v14596_v31 = vor.u32 %v17088_v11, %v14595_v10  ;;  %v17219_v33 = vld [vmem:[%s26306_s9 + $0x1a44] sm:$0xf]  ;;  %v15747_v56 = vld [vmem:[%s26306_s9 + $0x1f08] sm:$0xf] }
 0x26d   :  { %8492 = vmatpush.bf16.msrb.mxu3 %v13980_v16  ;;  %v15420_v16 = vor.u32 %v17295_v57, %v15419_v6  ;;  %v16895_v41 = vld [vmem:[%s26306_s9 + $0x101c] sm:$0xf0]  ;;  %v2200_v11 = vmax.f32 %v2007_v44, 0.0  ;;  %v17376_v51 = vld [vmem:[%s26306_s9 + $0x1f24] sm:$0xf0] }
 0x26e   :  { %8946 = vmatpush.bf16.msrb.mxu1 %v14788_v19  ;;  %v14080_v19 = vor.u32 %v16955_v61, %v14077_v3  ;;  %8571 = vmatpush.bf16.msra.mxu0 %v15484_v5  ;;  %v13883_v61 = vld [vmem:[%s26306_s9 + $0x1080] sm:$0xf]  ;;  %v2045_v5 = vpop.f32.mrf.mxu3  ;;  %v12445_v44 = vld [vmem:[%s26306_s9 + $0x560] sm:$0xf0] }
 0x26f   :  { %v16911_v3 = vld [vmem:[%s26306_s9 + $0x109c] sm:$0xf0] }
 0x270   :  { %8718 = vmatpush.bf16.msrb.mxu2 %v14080_v19  ;;  %v17400_v19 = vld [vmem:[%s26306_s9 + $0x1fe4] sm:$0xf0]  ;;  %v13884_v27 = vor.u32 %v16911_v3, %v13883_v61  ;;  %v15355_v6 = vld [vmem:[%s26306_s9 + $0x1c00] sm:$0xf]  ;;  %v17227_v3 = vld [vmem:[%s26306_s9 + $0x1a84] sm:$0xf] }
 0x271   :  { %8493 = vmatpush.bf16.msrb.mxu3 %v13948_v34  ;;  %v15844_v54 = vor.u32 %v17400_v19, %v15843_v14  ;;  %v15811_v34 = vld [vmem:[%s26306_s9 + $0x1f88] sm:$0xf]  ;;  %v17279_v57 = vld [vmem:[%s26306_s9 + $0x1c1c] sm:$0xf0] }
 0x272   :  { %8947 = vmatpush.bf16.msrb.mxu1 %v14756_v17  ;;  %v13915_v17 = vld [vmem:[%s26306_s9 + $0x10c0] sm:$0xf]  ;;  %v20599_v47 = vpop.f32.mrf.mxu1  ;;  %v8462_v50 = vpop.f32.mrf.mxu2  ;;  %8572 = vmatpush.bf16.msra.mxu0 %v15452_v46  ;;  %v15356_v10 = vor.u32 %v17279_v57, %v15355_v6  ;;  %v12259_v6 = vld [vmem:[%s26306_s9 + $0x3c8] sm:$0xf] }
 0x273   :  { %8719 = vmatmul.bf16.vlgmr.msrb.gmra.mxu2 %v19809_v0  ;;  %v15067_v46 = vld [vmem:[%s26306_s9 + $0x19c0] sm:$0xf]  ;;  %v16504_v57 = vld [vmem:[%s26306_s9 + $0x3e4] sm:$0xf0] }
 0x274   :  { %8763 = vmatpush.bf16.msra.mxu2 %v15328_v63  ;;  %v15387_v63 = vld [vmem:[%s26306_s9 + $0x1c40] sm:$0xf]  ;;  %v15068_v19 = vor.u32 %v17207_v58, %v15067_v46  ;;  %v17211_v46 = vld [vmem:[%s26306_s9 + $0x1a04] sm:$0xf]  ;;  %v17368_v58 = vld [vmem:[%s26306_s9 + $0x1ee4] sm:$0xf0] }
 0x276   :  { %8948 = vmatpush.bf16.msrb.mxu1 %v14724_v60  ;;  %v13916_v60 = vor.u32 %v16919_v39, %v13915_v17  ;;  %8573 = vmatpush.bf16.msra.mxu0 %v15420_v16  ;;  %v17392_v17 = vld [vmem:[%s26306_s9 + $0x1fa4] sm:$0xf0]  ;;  %v13819_v39 = vld [vmem:[%s26306_s9 + $0x1000] sm:$0xf]  ;;  %v2047_v24 = vpop.f32.mrf.mxu3 }
 0x277   :  { %v15812_v61 = vor.u32 %v17392_v17, %v15811_v34  ;;  %v13820_v14 = vor.u32 %v16895_v41, %v13819_v39  ;;  %v15003_v34 = vld [vmem:[%s26306_s9 + $0x1940] sm:$0xf]  ;;  %v20790_v24 = vpop.f32.mrf.mxu0 }
 0x278   :  { %8764 = vmatpush.bf16.msra.mxu2 %v15296_v35  ;;  %8494 = vmatpush.bf16.msrb.mxu3 %v13916_v60  ;;  %v2046_v35 = vadd.f32 %v2045_v5, %v474_v15  ;;  %v16563_v60 = vld [vmem:[%s26306_s9 + $0x5c4] sm:$0xf]  ;;  %v17191_v41 = vld [vmem:[%s26306_s9 + $0x195c] sm:$0xf0] }
 0x279   :  { %v15133_v5 = vld [vmem:[%s26306_s9 + $0x1a60] sm:$0xf0] }
 0x27a   :  { %8949 = vmatpush.bf16.msrb.mxu1 %v14692_v23  ;;  %v17287_v23 = vld [vmem:[%s26306_s9 + $0x1c5c] sm:$0xf0]  ;;  %v8696_v42 = vpop.f32.mrf.mxu1  ;;  %v2059_v50 = vadd.f32 %v20108_v9, %v2046_v35  ;;  %v12509_v9 = vld [vmem:[%s26306_s9 + $0x5e0] sm:$0xf0]  ;;  %v15136_v39 = vor.u32 %v17219_v33, %v15133_v5 }
 0x27b   :  { %v12512_v16 = vor.u32 %v16563_v60, %v12509_v9  ;;  %v16547_v42 = vld [vmem:[%s26306_s9 + $0x544] sm:$0xf]  ;;  %v15004_v9 = vor.u32 %v17191_v41, %v15003_v34  ;;  %v12195_v34 = vld [vmem:[%s26306_s9 + $0x348] sm:$0xf] }
 0x27c   :  { %8765 = vmatpush.bf16.msra.mxu2 %v15264_v7  ;;  %8495 = vmatpush.bf16.msrb.mxu3 %v13884_v27  ;;  %v15165_v7 = vld [vmem:[%s26306_s9 + $0x1aa0] sm:$0xf0]  ;;  %v12448_v60 = vor.u32 %v16547_v42, %v12445_v44  ;;  %v14907_v44 = vld [vmem:[%s26306_s9 + $0x1880] sm:$0xf] }
 0x27d   :  { %v16555_v27 = vld [vmem:[%s26306_s9 + $0x584] sm:$0xf] }
 0x27e   :  { %8950 = vmatpush.bf16.msrb.mxu1 %v14660_v36  ;;  %v15388_v36 = vor.u32 %v17287_v23, %v15387_v63  ;;  %v15168_v63 = vor.u32 %v17227_v3, %v15165_v7  ;;  %v15035_v23 = vld [vmem:[%s26306_s9 + $0x1980] sm:$0xf]  ;;  %v16539_v7 = vld [vmem:[%s26306_s9 + $0x504] sm:$0xf] }
 0x27f   :  { %v15036_v17 = vor.u32 %v17199_v26, %v15035_v23  ;;  %v17360_v23 = vld [vmem:[%s26306_s9 + $0x1ea4] sm:$0xf0]  ;;  %v12381_v26 = vld [vmem:[%s26306_s9 + $0x4e0] sm:$0xf0] }
 0x280   :  { %8766 = vmatpush.bf16.msra.mxu2 %v15232_v28  ;;  %8574 = vmatpush.bf16.msra.mxu0 %v15388_v36  ;;  %v12477_v28 = vld [vmem:[%s26306_s9 + $0x5a0] sm:$0xf0]  ;;  %v20734_v36 = vpack.c.bf16 %v2200_v11, %v2200_v11  ;;  %v17183_v11 = vld [vmem:[%s26306_s9 + $0x191c] sm:$0xf0] }
 0x281   :  { %8496 = vmatpush.bf16.msrb.mxu3 %v13852_v62  ;;  %v12480_v35 = vor.u32 %v16555_v27, %v12477_v28  ;;  %v15748_v62 = vor.u32 %v17376_v51, %v15747_v56  ;;  %v14939_v56 = vld [vmem:[%s26306_s9 + $0x18c0] sm:$0xf] }
 0x282   :  { %8951 = vmatpush.bf16.msrb.mxu1 %v14628_v8  ;;  %v2202_v8 = vmax.f32 %v2059_v50, 0.0  ;;  %v15101_v50 = vld [vmem:[%s26306_s9 + $0x1a20] sm:$0xf0]  ;;  %v17175_v51 = vld [vmem:[%s26306_s9 + $0x18dc] sm:$0xf0] }
 0x283   :  { %v14940_v42 = vor.u32 %v17175_v51, %v14939_v56  ;;  %v16620_v56 = vld [vmem:[%s26306_s9 + $0x78c] sm:$0xf] }
 0x284   :  { %v20701_v15 = vpack.c.bf16 %v2202_v8, %v2202_v8  ;;  %8767 = vmatpush.bf16.msra.mxu2 %v15200_v59  ;;  %8575 = vmatpush.bf16.msra.mxu0 %v15356_v10  ;;  %v15715_v59 = vld [vmem:[%s26306_s9 + $0x1ec8] sm:$0xf]  ;;  %v12413_v8 = vld [vmem:[%s26306_s9 + $0x520] sm:$0xf0]  ;;  %v14971_v10 = vld [vmem:[%s26306_s9 + $0x1900] sm:$0xf] }
 0x285   :  { %8497 = vmatpush.bf16.msrb.mxu3 %v13820_v14  ;;  %v12227_v14 = vld [vmem:[%s26306_s9 + $0x388] sm:$0xf]  ;;  %v12416_v27 = vor.u32 %v16539_v7, %v12413_v8  ;;  %v14972_v28 = vor.u32 %v17183_v11, %v14971_v10  ;;  %v476_v7 = vperm.slane %v20610_v25, 4  ;;  %v8423_v8 = vpop.f32.mrf.mxu0  ;;  %v12741_v51 = vld [vmem:[%s26306_s9 + $0x7a8] sm:$0xf0] }
 0x286   :  { %8952 = vmatpush.bf16.msrb.mxu1 %v14596_v31  ;;  %v15780_v31 = vor.u32 %v17384_v48, %v15779_v18  ;;  %8524 = vmatmul.bf16.vlgmr.msrb.gmra.mxu0 %v20701_v15  ;;  %v20764_v3 = vpop.f32.mrf.mxu1  ;;  %v12260_v18 = vor.u32 %v16504_v57, %v12259_v6  ;;  %v15716_v48 = vor.u32 %v17368_v58, %v15715_v59  ;;  %v17167_v59 = vld [vmem:[%s26306_s9 + $0x189c] sm:$0xf0]  ;;  %v12163_v58 = vld [vmem:[%s26306_s9 + $0x308] sm:$0xf] }
 0x287   :  { %v14908_v11 = vor.u32 %v17167_v59, %v14907_v44  ;;  %v14843_v44 = vld [vmem:[%s26306_s9 + $0x1800] sm:$0xf] }
 0x288   :  { %8620 = vmatpush.bf16.msrb.mxu0 %v12512_v16  ;;  %8768 = vmatpush.bf16.msra.mxu2 %v15168_v63  ;;  %v15683_v63 = vld [vmem:[%s26306_s9 + $0x1e88] sm:$0xf] }
 0x289   :  { %8953 = vmatmul.bf16.vlgmr.msrb.gmra.mxu1 %v19203_v21  ;;  %8542 = vmatpush.bf16.msra.mxu3 %v15068_v19  ;;  %v16496_v19 = vld [vmem:[%s26306_s9 + $0x3a4] sm:$0xf0]  ;;  %v15684_v5 = vor.u32 %v17360_v23, %v15683_v63  ;;  %v2097_v23 = vpop.f32.mrf.mxu3 }
 0x28a   :  { %8997 = vmatpush.bf16.msra.mxu1 %v15844_v54  ;;  %v20723_v54 = vpop.f32.mrf.mxu2  ;;  %8498 = vmatmul.bf16.vlgmr.msrb.gmra.mxu3 %v20734_v36  ;;  %v12228_v33 = vor.u32 %v16496_v19, %v12227_v14  ;;  %v16515_v14 = vld [vmem:[%s26306_s9 + $0x444] sm:$0xf] }
 0x28c   :  { %8621 = vmatpush.bf16.msrb.mxu0 %v12480_v35  ;;  %8769 = vmatpush.bf16.msra.mxu2 %v15136_v39  ;;  %v16488_v35 = vld [vmem:[%s26306_s9 + $0x364] sm:$0xf0] }
 0x28d   :  { %8543 = vmatpush.bf16.msra.mxu3 %v15036_v17  ;;  %v15651_v17 = vld [vmem:[%s26306_s9 + $0x1e48] sm:$0xf]  ;;  %v12196_v6 = vor.u32 %v16488_v35, %v12195_v34 }
 0x28e   :  { %8998 = vmatpush.bf16.msra.mxu1 %v15812_v61  ;;  %v15104_v61 = vor.u32 %v17211_v46, %v15101_v50  ;;  %v17352_v39 = vld [vmem:[%s26306_s9 + $0x1e64] sm:$0xf0]  ;;  %v16523_v46 = vld [vmem:[%s26306_s9 + $0x484] sm:$0xf] }
 0x28f   :  { %v12349_v50 = vld [vmem:[%s26306_s9 + $0x4a0] sm:$0xf0]  ;;  %v15652_v57 = vor.u32 %v17352_v39, %v15651_v17 }
 0x290   :  { %8622 = vmatpush.bf16.msrb.mxu0 %v12448_v60  ;;  %8770 = vmatpush.bf16.msra.mxu2 %v15104_v61  ;;  %v16480_v60 = vld [vmem:[%s26306_s9 + $0x324] sm:$0xf0]  ;;  %v12352_v10 = vor.u32 %v16523_v46, %v12349_v50  ;;  %v16507_v39 = vld [vmem:[%s26306_s9 + $0x404] sm:$0xf]  ;;  %v12744_v46 = vor.u32 %v16620_v56, %v12741_v51 }
 0x291   :  { %8544 = vmatpush.bf16.msra.mxu3 %v15004_v9  ;;  %v15619_v9 = vld [vmem:[%s26306_s9 + $0x1e08] sm:$0xf]  ;;  %v12164_v19 = vor.u32 %v16480_v60, %v12163_v58  ;;  %v11997_v50 = vld [vmem:[%s26306_s9 + $0x1e0] sm:$0xf0]  ;;  %v16612_v58 = vld [vmem:[%s26306_s9 + $0x74c] sm:$0xf] }
 0x292   :  { %8999 = vmatpush.bf16.msra.mxu1 %v15780_v31  ;;  %v8514_v16 = vpop.f32.mrf.mxu2  ;;  %v16531_v31 = vld [vmem:[%s26306_s9 + $0x4c4] sm:$0xf]  ;;  %v17344_v61 = vld [vmem:[%s26306_s9 + $0x1e24] sm:$0xf0]  ;;  %v12709_v60 = vld [vmem:[%s26306_s9 + $0x768] sm:$0xf0] }
 0x293   :  { %8771 = vmatmul.bf16.vlgmr.msra.gmra.mxu2 %v19972_v40  ;;  %v12384_v41 = vor.u32 %v16531_v31, %v12381_v26  ;;  %v12317_v16 = vld [vmem:[%s26306_s9 + $0x460] sm:$0xf0]  ;;  %v15620_v63 = vor.u32 %v17344_v61, %v15619_v9  ;;  %v2098_v31 = vadd.f32 %v2097_v23, %v476_v7  ;;  %v16604_v23 = vld [vmem:[%s26306_s9 + $0x70c] sm:$0xf]  ;;  %v12035_v56 = vld [vmem:[%s26306_s9 + $0x208] sm:$0xf] }
 0x294   :  { %8815 = vmatpush.bf16.msrb.mxu2 %v12260_v18  ;;  %8623 = vmatpush.bf16.msrb.mxu0 %v12416_v27  ;;  %v16628_v18 = vld [vmem:[%s26306_s9 + $0x7cc] sm:$0xf]  ;;  %v14875_v27 = vld [vmem:[%s26306_s9 + $0x1840] sm:$0xf]  ;;  %v12320_v34 = vor.u32 %v16515_v14, %v12317_v16  ;;  %v12067_v14 = vld [vmem:[%s26306_s9 + $0x248] sm:$0xf] }
 0x295   :  { %8545 = vmatpush.bf16.msra.mxu3 %v14972_v28  ;;  %v17159_v28 = vld [vmem:[%s26306_s9 + $0x185c] sm:$0xf0]  ;;  %v2111_v35 = vadd.f32 %v20210_v13, %v2098_v31  ;;  %v16456_v16 = vld [vmem:[%s26306_s9 + $0x264] sm:$0xf0] }
 0x296   :  { %9000 = vmatpush.bf16.msra.mxu1 %v15748_v62  ;;  %v8748_v62 = vpop.f32.mrf.mxu1  ;;  %v14876_v17 = vor.u32 %v17159_v28, %v14875_v27  ;;  %v17151_v13 = vld [vmem:[%s26306_s9 + $0x181c] sm:$0xf0]  ;;  %v12677_v27 = vld [vmem:[%s26306_s9 + $0x728] sm:$0xf0]  ;;  %v12068_v31 = vor.u32 %v16456_v16, %v12067_v14  ;;  %v16448_v51 = vld [vmem:[%s26306_s9 + $0x224] sm:$0xf0] }
 0x297   :  { %v16435_v62 = vld [vmem:[%s26306_s9 + $0x1c4] sm:$0xf]  ;;  %v2204_v59 = vmax.f32 %v2111_v35, 0.0  ;;  %v14844_v61 = vor.u32 %v17151_v13, %v14843_v44  ;;  %v16760_v35 = vld [vmem:[%s26306_s9 + $0xbe4] sm:$0xf0] }
 0x298   :  { %8816 = vmatpush.bf16.msrb.mxu2 %v12228_v33  ;;  %8624 = vmatpush.bf16.msrb.mxu0 %v12384_v41  ;;  %v12131_v33 = vld [vmem:[%s26306_s9 + $0x2c8] sm:$0xf]  ;;  %v12285_v41 = vld [vmem:[%s26306_s9 + $0x420] sm:$0xf0]  ;;  %v12000_v7 = vor.u32 %v16435_v62, %v11997_v50  ;;  %v12581_v14 = vld [vmem:[%s26306_s9 + $0x668] sm:$0xf0] }
 0x299   :  { %8546 = vmatpush.bf16.msra.mxu3 %v14940_v42  ;;  %v12288_v9 = vor.u32 %v16507_v39, %v12285_v41  ;;  %v12645_v39 = vld [vmem:[%s26306_s9 + $0x6e8] sm:$0xf0]  ;;  %v11901_v50 = vld [vmem:[%s26306_s9 + $0x120] sm:$0xf0] }
 0x29a   :  { %9001 = vmatpush.bf16.msra.mxu1 %v15716_v48  ;;  %v12773_v48 = vld [vmem:[%s26306_s9 + $0x7e8] sm:$0xf0] }
 0x29b   :  { %v12776_v26 = vor.u32 %v16628_v18, %v12773_v48  ;;  %v16427_v18 = vld [vmem:[%s26306_s9 + $0x184] sm:$0xf]  ;;  %v2099_v48 = vpop.f32.mrf.mxu3 }
 0x29c   :  { %8817 = vmatpush.bf16.msrb.mxu2 %v12196_v6  ;;  %8625 = vmatpush.bf16.msrb.mxu0 %v12352_v10  ;;  %v12099_v6 = vld [vmem:[%s26306_s9 + $0x288] sm:$0xf]  ;;  %v12712_v10 = vor.u32 %v16612_v58, %v12709_v60  ;;  %v16588_v58 = vld [vmem:[%s26306_s9 + $0x68c] sm:$0xf] }
 0x29d   :  { %8547 = vmatpush.bf16.msra.mxu3 %v14908_v11  ;;  %v11965_v11 = vld [vmem:[%s26306_s9 + $0x1a0] sm:$0xf0]  ;;  %v12613_v60 = vld [vmem:[%s26306_s9 + $0x6a8] sm:$0xf0]  ;;  %v13219_v48 = vld [vmem:[%s26306_s9 + $0xb48] sm:$0xf] }
 0x29e   :  { %9002 = vmatpush.bf16.msra.mxu1 %v15684_v5  ;;  %v16472_v5 = vld [vmem:[%s26306_s9 + $0x2e4] sm:$0xf0]  ;;  %v11968_v28 = vor.u32 %v16427_v18, %v11965_v11  ;;  %v11869_v18 = vld [vmem:[%s26306_s9 + $0xe0] sm:$0xf0]  ;;  %v16580_v11 = vld [vmem:[%s26306_s9 + $0x64c] sm:$0xf] }
 0x29f   :  { %v12132_v42 = vor.u32 %v16472_v5, %v12131_v33  ;;  %v11933_v33 = vld [vmem:[%s26306_s9 + $0x160] sm:$0xf0]  ;;  %v12680_v5 = vor.u32 %v16604_v23, %v12677_v27  ;;  %v478_v23 = vperm.slane %v20610_v25, 6  ;;  %v16736_v25 = vld [vmem:[%s26306_s9 + $0xb24] sm:$0xf0] }
 0x2a0   :  { %8818 = vmatpush.bf16.msrb.mxu2 %v12164_v19  ;;  %8626 = vmatpush.bf16.msrb.mxu0 %v12320_v34  ;;  %v20916_v19 = vpop.f32.mrf.mxu2  ;;  %v13283_v34 = vld [vmem:[%s26306_s9 + $0xbc8] sm:$0xf] }
 0x2a1   :  { %8548 = vmatpush.bf16.msra.mxu3 %v14876_v17  ;;  %v16596_v17 = vld [vmem:[%s26306_s9 + $0x6cc] sm:$0xf]  ;;  %v13284_v13 = vor.u32 %v16760_v35, %v13283_v34 }
 0x2a2   :  { %9003 = vmatpush.bf16.msra.mxu1 %v15652_v57  ;;  %v16464_v57 = vld [vmem:[%s26306_s9 + $0x2a4] sm:$0xf0]  ;;  %v12648_v62 = vor.u32 %v16596_v17, %v12645_v39  ;;  %v16884_v34 = vld [vmem:[%s26306_s9 + $0xfcc] sm:$0xf] }
 0x2a3   :  { %v12100_v8 = vor.u32 %v16464_v57, %v12099_v6  ;;  %v13251_v6 = vld [vmem:[%s26306_s9 + $0xb88] sm:$0xf]  ;;  %v13797_v35 = vld [vmem:[%s26306_s9 + $0xfe8] sm:$0xf0] }
 0x2a4   :  { %8819 = vmatpush.bf16.msrb.mxu2 %v12132_v42  ;;  %8627 = vmatpush.bf16.msrb.mxu0 %v12288_v9  ;;  %v12036_v42 = vor.u32 %v16448_v51, %v12035_v56  ;;  %v16572_v56 = vld [vmem:[%s26306_s9 + $0x60c] sm:$0xf] }
 0x2a5   :  { %8549 = vmatpush.bf16.msra.mxu3 %v14844_v61  ;;  %v12549_v51 = vld [vmem:[%s26306_s9 + $0x628] sm:$0xf0] }
 0x2a6   :  { %9004 = vmatpush.bf16.msra.mxu1 %v15620_v63  ;;  %v20918_v63 = vpack.c.bf16 %v2204_v59, %v2204_v59  ;;  %v20951_v44 = vpop.f32.mrf.mxu1  ;;  %v16752_v59 = vld [vmem:[%s26306_s9 + $0xba4] sm:$0xf0]  ;;  %v2149_v39 = vpop.f32.mrf.mxu3 }
 0x2a7   :  { %v13252_v61 = vor.u32 %v16752_v59, %v13251_v6  ;;  %v13155_v6 = vld [vmem:[%s26306_s9 + $0xac8] sm:$0xf]  ;;  %v16876_v59 = vld [vmem:[%s26306_s9 + $0xf8c] sm:$0xf] }
 0x2a8   :  { %8820 = vmatpush.bf16.msrb.mxu2 %v12100_v8  ;;  %8550 = vmatmul.bf16.vlgmr.msra.gmra.mxu3 %v20918_v63  ;;  %v8566_v57 = vpop.f32.mrf.mxu2  ;;  %v16403_v8 = vld [vmem:[%s26306_s9 + $0xc4] sm:$0xf] }
 0x2a9   :  { %9005 = vmatmul.bf16.vlgmr.msra.gmra.mxu1 %v19463_v55  ;;  %8594 = vmatpush.bf16.msrb.mxu3 %v12000_v7  ;;  %v12616_v7 = vor.u32 %v16588_v58, %v12613_v60  ;;  %v11872_v16 = vor.u32 %v16403_v8, %v11869_v18  ;;  %v16728_v57 = vld [vmem:[%s26306_s9 + $0xae4] sm:$0xf0]  ;;  %v13765_v58 = vld [vmem:[%s26306_s9 + $0xfa8] sm:$0xf0]  ;;  %v16379_v8 = vld [vmem:[%s26306_s9 + $0x4] sm:$0xf] }
 0x2aa   :  { %9049 = vmatpush.bf16.msrb.mxu1 %v12776_v26  ;;  %v16419_v26 = vld [vmem:[%s26306_s9 + $0x144] sm:$0xf]  ;;  %v13156_v18 = vor.u32 %v16728_v57, %v13155_v6 }
 0x2ab   :  { %v11936_v41 = vor.u32 %v16419_v26, %v11933_v33  ;;  %v16395_v26 = vld [vmem:[%s26306_s9 + $0x84] sm:$0xf] }
 0x2ac   :  { %8821 = vmatpush.bf16.msrb.mxu2 %v12068_v31  ;;  %v12584_v31 = vor.u32 %v16580_v11, %v12581_v14  ;;  %v11837_v33 = vld [vmem:[%s26306_s9 + $0xa0] sm:$0xf0]  ;;  %v13768_v14 = vor.u32 %v16876_v59, %v13765_v58 }
 0x2ad   :  { %8595 = vmatpush.bf16.msrb.mxu3 %v11968_v28  ;;  %v11840_v17 = vor.u32 %v16395_v26, %v11837_v33  ;;  %v16803_v6 = vld [vmem:[%s26306_s9 + $0xd44] sm:$0xf] }
 0x2ae   :  { %9050 = vmatpush.bf16.msrb.mxu1 %v12744_v46  ;;  %v16411_v46 = vld [vmem:[%s26306_s9 + $0x104] sm:$0xf]  ;;  %v8800_v27 = vpop.f32.mrf.mxu1 }
 0x2af   :  { %v11904_v9 = vor.u32 %v16411_v46, %v11901_v50  ;;  %v2150_v46 = vadd.f32 %v2149_v39, %v478_v23  ;;  %v13800_v50 = vor.u32 %v16884_v34, %v13797_v35  ;;  %v16720_v23 = vld [vmem:[%s26306_s9 + $0xaa4] sm:$0xf0]  ;;  %v2151_v34 = vpop.f32.mrf.mxu3  ;;  %v16683_v35 = vld [vmem:[%s26306_s9 + $0x984] sm:$0xf] }
 0x2b0   :  { %8822 = vmatpush.bf16.msrb.mxu2 %v12036_v42  ;;  %v12552_v42 = vor.u32 %v16572_v56, %v12549_v51  ;;  %v13469_v57 = vld [vmem:[%s26306_s9 + $0xd60] sm:$0xf0] }
 0x2b1   :  { %8596 = vmatpush.bf16.msrb.mxu3 %v11936_v41  ;;  %v2163_v60 = vadd.f32 %v20319_v29, %v2150_v46  ;;  %v11773_v29 = vld [vmem:[%s26306_s9 + $0x20] sm:$0xf0]  ;;  %v16860_v46 = vld [vmem:[%s26306_s9 + $0xf0c] sm:$0xf] }
 0x2b2   :  { %9051 = vmatpush.bf16.msrb.mxu1 %v12712_v10  ;;  %v16744_v10 = vld [vmem:[%s26306_s9 + $0xb64] sm:$0xf0]  ;;  %v11776_v33 = vor.u32 %v16379_v8, %v11773_v29  ;;  %v13472_v29 = vor.u32 %v16803_v6, %v13469_v57  ;;  %v16787_v34 = vld [vmem:[%s26306_s9 + $0xcc4] sm:$0xf] }
 0x2b3   :  { %8823 = vmatmul.bf16.vlgmr.msrb.gmra.mxu2 %v19442_v37  ;;  %v13220_v28 = vor.u32 %v16744_v10, %v13219_v48  ;;  %v16691_v48 = vld [vmem:[%s26306_s9 + $0x9c4] sm:$0xf]  ;;  %v2206_v11 = vmax.f32 %v2163_v60, 0.0  ;;  %v16704_v8 = vld [vmem:[%s26306_s9 + $0xa24] sm:$0xf0] }
 0x2b4   :  { %8867 = vmatpush.bf16.msra.mxu2 %v13284_v13  ;;  %v16387_v13 = vld [vmem:[%s26306_s9 + $0x44] sm:$0xf] }
 0x2b5   :  { %8597 = vmatpush.bf16.msrb.mxu3 %v11904_v9  ;;  %v13021_v10 = vld [vmem:[%s26306_s9 + $0x9e0] sm:$0xf0]  ;;  %v21064_v26 = vpack.c.bf16 %v2206_v11, %v2206_v11  ;;  %v13669_v11 = vld [vmem:[%s26306_s9 + $0xee8] sm:$0xf0] }
 0x2b6   :  { %9052 = vmatpush.bf16.msrb.mxu1 %v12680_v5  ;;  %v13187_v5 = vld [vmem:[%s26306_s9 + $0xb08] sm:$0xf]  ;;  %v13024_v56 = vor.u32 %v16691_v48, %v13021_v10  ;;  %v16675_v60 = vld [vmem:[%s26306_s9 + $0x944] sm:$0xf]  ;;  %v16852_v10 = vld [vmem:[%s26306_s9 + $0xecc] sm:$0xf] }
 0x2b7   :  { %v13188_v41 = vor.u32 %v16736_v25, %v13187_v5  ;;  %v16811_v5 = vld [vmem:[%s26306_s9 + $0xd84] sm:$0xf]  ;;  %8576 = vmatmul.bf16.vlgmr.msra.gmra.mxu0 %v21064_v26  ;;  %v17016_v48 = vld [vmem:[%s26306_s9 + $0x13e4] sm:$0xf0] }
 0x2b8   :  { %8868 = vmatpush.bf16.msra.mxu2 %v13252_v61  ;;  %v16819_v61 = vld [vmem:[%s26306_s9 + $0xdc4] sm:$0xf] }
 0x2b9   :  { %8598 = vmatpush.bf16.msrb.mxu3 %v11872_v16  ;;  %v13123_v16 = vld [vmem:[%s26306_s9 + $0xa88] sm:$0xf]  ;;  %v13501_v25 = vld [vmem:[%s26306_s9 + $0xda0] sm:$0xf0] }
 0x2ba   :  { %9053 = vmatpush.bf16.msrb.mxu1 %v12648_v62  ;;  %v11805_v62 = vld [vmem:[%s26306_s9 + $0x60] sm:$0xf0]  ;;  %v13124_v51 = vor.u32 %v16720_v23, %v13123_v16 }
 0x2bb   :  { %v11808_v9 = vor.u32 %v16387_v13, %v11805_v62  ;;  %v16712_v13 = vld [vmem:[%s26306_s9 + $0xa64] sm:$0xf0]  ;;  %v13504_v62 = vor.u32 %v16811_v5, %v13501_v25  ;;  %v13437_v16 = vld [vmem:[%s26306_s9 + $0xd20] sm:$0xf0]  ;;  %v13672_v5 = vor.u32 %v16852_v10, %v13669_v11 }
 0x2bc   :  { %8869 = vmatpush.bf16.msra.mxu2 %v13220_v28  ;;  %v16868_v28 = vld [vmem:[%s26306_s9 + $0xf4c] sm:$0xf]  ;;  %v16667_v25 = vld [vmem:[%s26306_s9 + $0x904] sm:$0xf] }
 0x2bd   :  { %8599 = vmatpush.bf16.msrb.mxu3 %v11840_v17  ;;  %v21077_v17 = vpop.f32.mrf.mxu2  ;;  %v16659_v6 = vld [vmem:[%s26306_s9 + $0x8c4] sm:$0xf] }
 0x2be   :  { %9054 = vmatpush.bf16.msrb.mxu1 %v12616_v7  ;;  %v13533_v7 = vld [vmem:[%s26306_s9 + $0xde0] sm:$0xf0] }
 0x2bf   :  { %v13536_v27 = vor.u32 %v16819_v61, %v13533_v7  ;;  %v13059_v7 = vld [vmem:[%s26306_s9 + $0xa08] sm:$0xf]  ;;  %v12893_v57 = vld [vmem:[%s26306_s9 + $0x8e0] sm:$0xf0] }
 0x2c0   :  { %8870 = vmatpush.bf16.msra.mxu2 %v13188_v41  ;;  %v12989_v41 = vld [vmem:[%s26306_s9 + $0x9a0] sm:$0xf0] }
 0x2c1   :  { %8600 = vmatpush.bf16.msrb.mxu3 %v11808_v9  ;;  %8672 = vmatpush.bf16.msra.mxu0 %v13536_v27  ;;  %v12992_v59 = vor.u32 %v16683_v35, %v12989_v41  ;;  %v12957_v9 = vld [vmem:[%s26306_s9 + $0x960] sm:$0xf0]  ;;  %v14275_v35 = vld [vmem:[%s26306_s9 + $0x1388] sm:$0xf]  ;;  %v21148_v41 = vpop.f32.mrf.mxu0 }
 0x2c2   :  { %9055 = vmatpush.bf16.msrb.mxu1 %v12584_v31  ;;  %v13733_v31 = vld [vmem:[%s26306_s9 + $0xf68] sm:$0xf0]  ;;  %v12960_v27 = vor.u32 %v16675_v60, %v12957_v9  ;;  %v16779_v60 = vld [vmem:[%s26306_s9 + $0xc84] sm:$0xf]  ;;  %v14243_v9 = vld [vmem:[%s26306_s9 + $0x1348] sm:$0xf] }
 0x2c3   :  { %v13736_v39 = vor.u32 %v16868_v28, %v13733_v31  ;;  %v13060_v28 = vor.u32 %v16704_v8, %v13059_v7  ;;  %v13373_v7 = vld [vmem:[%s26306_s9 + $0xca0] sm:$0xf0]  ;;  %v16836_v8 = vld [vmem:[%s26306_s9 + $0xe4c] sm:$0xf] }
 0x2c4   :  { %8871 = vmatpush.bf16.msra.mxu2 %v13156_v18  ;;  %v14307_v18 = vld [vmem:[%s26306_s9 + $0x13c8] sm:$0xf]  ;;  %v16651_v11 = vld [vmem:[%s26306_s9 + $0x884] sm:$0xf] }
 0x2c5   :  { %8601 = vmatpush.bf16.msrb.mxu3 %v11776_v33  ;;  %8673 = vmatpush.bf16.msra.mxu0 %v13504_v62  ;;  %v8618_v31 = vpop.f32.mrf.mxu2  ;;  %v14308_v33 = vor.u32 %v17016_v48, %v14307_v18  ;;  %v13637_v62 = vld [vmem:[%s26306_s9 + $0xea8] sm:$0xf0]  ;;  %v12896_v48 = vor.u32 %v16659_v6, %v12893_v57  ;;  %v14179_v57 = vld [vmem:[%s26306_s9 + $0x12c8] sm:$0xf] }
 0x2c6   :  { %9056 = vmatpush.bf16.msrb.mxu1 %v12552_v42  ;;  %v13091_v42 = vld [vmem:[%s26306_s9 + $0xa48] sm:$0xf]  ;;  %v21131_v23 = vpop.f32.mrf.mxu1  ;;  %v13605_v18 = vld [vmem:[%s26306_s9 + $0xe68] sm:$0xf0] }
 0x2c7   :  { %v13092_v58 = vor.u32 %v16712_v13, %v13091_v42  ;;  %v13405_v42 = vld [vmem:[%s26306_s9 + $0xce0] sm:$0xf0]  ;;  %v16844_v13 = vld [vmem:[%s26306_s9 + $0xe8c] sm:$0xf]  ;;  %8628 = vmatmul.bf16.vlgmr.msrb.gmra.mxu0 %v19906_v2  ;;  %v14211_v31 = vld [vmem:[%s26306_s9 + $0x1308] sm:$0xf] }
 0x2c8   :  { %8872 = vmatpush.bf16.msra.mxu2 %v13124_v51  ;;  %8602 = vmatmul.bf16.vlgmr.msrb.gmra.mxu3 %v20305_v20 }
 0x2c9   :  { %9057 = vmatmul.bf16.vlgmr.msrb.gmra.mxu1 %v18896_v22  ;;  %8646 = vmatpush.bf16.msra.mxu3 %v13024_v56  ;;  %v12925_v56 = vld [vmem:[%s26306_s9 + $0x920] sm:$0xf0] }
 0x2ca   :  { %9101 = vmatpush.bf16.msra.mxu1 %v13800_v50  ;;  %v13701_v50 = vld [vmem:[%s26306_s9 + $0xf28] sm:$0xf0]  ;;  %8674 = vmatpush.bf16.msra.mxu0 %v13472_v29 }
 0x2cb   :  { %v13704_v61 = vor.u32 %v16860_v46, %v13701_v50  ;;  %v12928_v46 = vor.u32 %v16667_v25, %v12925_v56  ;;  %v13341_v25 = vld [vmem:[%s26306_s9 + $0xc60] sm:$0xf0]  ;;  %v16828_v56 = vld [vmem:[%s26306_s9 + $0xe0c] sm:$0xf] }
 0x2cc   :  { %8873 = vmatpush.bf16.msra.mxu2 %v13092_v58  ;;  %v13640_v58 = vor.u32 %v16844_v13, %v13637_v62  ;;  %v16643_v62 = vld [vmem:[%s26306_s9 + $0x844] sm:$0xf] }
 0x2cd   :  { %8647 = vmatpush.bf16.msra.mxu3 %v12992_v59  ;;  %v13408_v59 = vor.u32 %v16787_v34, %v13405_v42  ;;  %v21215_v42 = vpop.f32.mrf.mxu3 }
 0x2ce   :  { %9102 = vmatpush.bf16.msra.mxu1 %v13768_v14  ;;  %v16795_v14 = vld [vmem:[%s26306_s9 + $0xd04] sm:$0xf]  ;;  %v8852_v29 = vpop.f32.mrf.mxu1 }
 0x2cf   :  { %v13440_v51 = vor.u32 %v16795_v14, %v13437_v16  ;;  %v12861_v14 = vld [vmem:[%s26306_s9 + $0x8a0] sm:$0xf0]  ;;  %v13376_v16 = vor.u32 %v16779_v60, %v13373_v7  ;;  %v14789_v29 = vld [vmem:[%s26306_s9 + $0x17a8] sm:$0xf0] }
 0x2d0   :  { %8874 = vmatpush.bf16.msra.mxu2 %v13060_v28  ;;  %v16771_v28 = vld [vmem:[%s26306_s9 + $0xc44] sm:$0xf]  ;;  %v12864_v34 = vor.u32 %v16651_v11, %v12861_v14 }
 0x2d1   :  { %8648 = vmatpush.bf16.msra.mxu3 %v12960_v27  ;;  %8675 = vmatpush.bf16.msra.mxu0 %v13440_v51  ;;  %v13608_v27 = vor.u32 %v16836_v8, %v13605_v18  ;;  %v13573_v51 = vld [vmem:[%s26306_s9 + $0xe28] sm:$0xf0]  ;;  %v16763_v60 = vld [vmem:[%s26306_s9 + $0xc04] sm:$0xf] }
 0x2d2   :  { %9103 = vmatpush.bf16.msra.mxu1 %v13736_v39  ;;  %v17008_v39 = vld [vmem:[%s26306_s9 + $0x13a4] sm:$0xf0]  ;;  %v13576_v6 = vor.u32 %v16828_v56, %v13573_v51  ;;  %v14557_v8 = vld [vmem:[%s26306_s9 + $0x15e0] sm:$0xf0]  ;;  %v17132_v18 = vld [vmem:[%s26306_s9 + $0x178c] sm:$0xf] }
 0x2d3   :  { %v14276_v50 = vor.u32 %v17008_v39, %v14275_v35  ;;  %8875 = vmatmul.bf16.vlgmr.msra.gmra.mxu2 %v19597_v1  ;;  %v17140_v35 = vld [vmem:[%s26306_s9 + $0x17cc] sm:$0xf]  ;;  %v12797_v11 = vld [vmem:[%s26306_s9 + $0x820] sm:$0xf0] }
 0x2d4   :  { %8919 = vmatpush.bf16.msrb.mxu2 %v14308_v33  ;;  %v16992_v33 = vld [vmem:[%s26306_s9 + $0x1324] sm:$0xf0]  ;;  %v14821_v39 = vld [vmem:[%s26306_s9 + $0x17e8] sm:$0xf0]  ;;  %v14525_v51 = vld [vmem:[%s26306_s9 + $0x15a0] sm:$0xf0] }
 0x2d5   :  { %8649 = vmatpush.bf16.msra.mxu3 %v12928_v46  ;;  %8676 = vmatpush.bf16.msra.mxu0 %v13408_v59  ;;  %v14212_v13 = vor.u32 %v16992_v33, %v14211_v31  ;;  %v12829_v46 = vld [vmem:[%s26306_s9 + $0x860] sm:$0xf0]  ;;  %v16984_v59 = vld [vmem:[%s26306_s9 + $0x12e4] sm:$0xf0]  ;;  %v14792_v31 = vor.u32 %v17132_v18, %v14789_v29  ;;  %v14725_v18 = vld [vmem:[%s26306_s9 + $0x1728] sm:$0xf0] }
 0x2d6   :  { %9104 = vmatpush.bf16.msra.mxu1 %v13704_v61  ;;  %v17000_v61 = vld [vmem:[%s26306_s9 + $0x1364] sm:$0xf0]  ;;  %v12832_v7 = vor.u32 %v16643_v62, %v12829_v46  ;;  %v3248_v62 = vld [vmem:[%s26309_s10] sm:$0xff]  ;;  %v21281_v46 = vpop.f32.mrf.mxu2 }
 0x2d7   :  { %v14244_v10 = vor.u32 %v17000_v61, %v14243_v9  ;;  %v13309_v9 = vld [vmem:[%s26306_s9 + $0xc20] sm:$0xf0]  ;;  %v14147_v33 = vld [vmem:[%s26306_s9 + $0x1288] sm:$0xf]  ;;  %v3250_v29 = vperm.slane %v3248_v62, 0 }
 0x2d8   :  { %8920 = vmatpush.bf16.msrb.mxu2 %v14276_v50  ;;  %v13344_v50 = vor.u32 %v16771_v28, %v13341_v25  ;;  %v17075_v61 = vld [vmem:[%s26306_s9 + $0x15c4] sm:$0xf]  ;;  %v13312_v14 = vor.u32 %v16763_v60, %v13309_v9  ;;  %v14115_v60 = vld [vmem:[%s26306_s9 + $0x1248] sm:$0xf] }
 0x2d9   :  { %8650 = vmatpush.bf16.msra.mxu3 %v12896_v48  ;;  %8677 = vmatpush.bf16.msra.mxu0 %v13376_v16  ;;  %v14180_v48 = vor.u32 %v16984_v59, %v14179_v57  ;;  %v16947_v16 = vld [vmem:[%s26306_s9 + $0x11c4] sm:$0xf]  ;;  %v14560_v28 = vor.u32 %v17075_v61, %v14557_v8  ;;  %v16968_v9 = vld [vmem:[%s26306_s9 + $0x1264] sm:$0xf0]  ;;  %v17116_v8 = vld [vmem:[%s26306_s9 + $0x170c] sm:$0xf] }
 0x2da   :  { %9105 = vmatpush.bf16.msra.mxu1 %v13672_v5  ;;  %v8475_v5 = vpop.f32.mrf.mxu0  ;;  %v17067_v25 = vld [vmem:[%s26306_s9 + $0x1584] sm:$0xf] }
 0x2db   :  { %v16976_v5 = vld [vmem:[%s26306_s9 + $0x12a4] sm:$0xf0]  ;;  %v14013_v57 = vld [vmem:[%s26306_s9 + $0x11a0] sm:$0xf0]  ;;  %v14528_v59 = vor.u32 %v17067_v25, %v14525_v51  ;;  %v8396_v51 = vadd.f32 %v21215_v42, %v3250_v29  ;;  %v17100_v29 = vld [vmem:[%s26306_s9 + $0x168c] sm:$0xf] }
 0x2dc   :  { %8921 = vmatpush.bf16.msrb.mxu2 %v14244_v10  ;;  %v16635_v10 = vld [vmem:[%s26306_s9 + $0x804] sm:$0xf]  ;;  %v15331_v25 = vld [vmem:[%s26306_s9 + $0x1bc8] sm:$0xf] }
 0x2dd   :  { %8651 = vmatpush.bf16.msra.mxu3 %v12864_v34  ;;  %8678 = vmatpush.bf16.msra.mxu0 %v13344_v50  ;;  %v12800_v56 = vor.u32 %v16635_v10, %v12797_v11  ;;  %v17124_v34 = vld [vmem:[%s26306_s9 + $0x174c] sm:$0xf]  ;;  %v14148_v50 = vor.u32 %v16976_v5, %v14147_v33  ;;  %v17059_v61 = vld [vmem:[%s26306_s9 + $0x1544] sm:$0xf]  ;;  %v14116_v10 = vor.u32 %v16968_v9, %v14115_v60 }
 0x2de   :  { %9106 = vmatpush.bf16.msra.mxu1 %v13640_v58  ;;  %v14824_v58 = vor.u32 %v17140_v35, %v14821_v39  ;;  %v14757_v35 = vld [vmem:[%s26306_s9 + $0x1768] sm:$0xf0]  ;;  %v8397_v39 = vpop.f32.mrf.mxu3  ;;  %v16931_v11 = vld [vmem:[%s26306_s9 + $0x1144] sm:$0xf]  ;;  %v8670_v62 = vpop.f32.mrf.mxu2 }
 0x2df   :  { %v17051_v33 = vld [vmem:[%s26306_s9 + $0x1504] sm:$0xf]  ;;  %v17108_v39 = vld [vmem:[%s26306_s9 + $0x16cc] sm:$0xf] }
 0x2e0   :  { %8922 = vmatpush.bf16.msrb.mxu2 %v14212_v13  ;;  %v14461_v5 = vld [vmem:[%s26306_s9 + $0x1520] sm:$0xf0] }
 0x2e1   :  { %8652 = vmatpush.bf16.msra.mxu3 %v12832_v7  ;;  %8679 = vmatpush.bf16.msra.mxu0 %v13312_v14  ;;  %v14493_v7 = vld [vmem:[%s26306_s9 + $0x1560] sm:$0xf0] }
 0x2e2   :  { %9107 = vmatpush.bf16.msra.mxu1 %v13608_v27  ;;  %v14045_v27 = vld [vmem:[%s26306_s9 + $0x11e0] sm:$0xf0] }
 0x2e3   :  { %v14048_v13 = vor.u32 %v16947_v16, %v14045_v27  ;;  %v13981_v14 = vld [vmem:[%s26306_s9 + $0x1160] sm:$0xf0]  ;;  %v14496_v16 = vor.u32 %v17059_v61, %v14493_v7  ;;  %v14728_v27 = vor.u32 %v17116_v8, %v14725_v18  ;;  %v15299_v61 = vld [vmem:[%s26306_s9 + $0x1b88] sm:$0xf]  ;;  %v8409_v8 = vadd.f32 %v20428_v43, %v8396_v51  ;;  %v17092_v51 = vld [vmem:[%s26306_s9 + $0x164c] sm:$0xf] }
 0x2e4   :  { %8923 = vmatpush.bf16.msrb.mxu2 %v14180_v48  ;;  %8680 = vmatmul.bf16.vlgmr.msra.gmra.mxu0 %v20278_v30  ;;  %v13949_v42 = vld [vmem:[%s26306_s9 + $0x1120] sm:$0xf0]  ;;  %v17264_v7 = vld [vmem:[%s26306_s9 + $0x1ba4] sm:$0xf0] }
 0x2e5   :  { %8724 = vmatpush.bf16.msrb.mxu0 %v14560_v28  ;;  %8653 = vmatpush.bf16.msra.mxu3 %v12800_v56  ;;  %v14083_v28 = vld [vmem:[%s26306_s9 + $0x1208] sm:$0xf]  ;;  %v14429_v9 = vld [vmem:[%s26306_s9 + $0x14e0] sm:$0xf0] }
 0x2e6   :  { %9108 = vmatpush.bf16.msra.mxu1 %v13576_v6  ;;  %v16939_v6 = vld [vmem:[%s26306_s9 + $0x1184] sm:$0xf]  ;;  %v17272_v56 = vld [vmem:[%s26306_s9 + $0x1be4] sm:$0xf0] }
 0x2e7   :  { %v14016_v48 = vor.u32 %v16939_v6, %v14013_v57  ;;  %v16923_v6 = vld [vmem:[%s26306_s9 + $0x1104] sm:$0xf]  ;;  %v14464_v57 = vor.u32 %v17051_v33, %v14461_v5  ;;  %v17256_v33 = vld [vmem:[%s26306_s9 + $0x1b64] sm:$0xf0] }
 0x2e8   :  { %8924 = vmatpush.bf16.msrb.mxu2 %v14148_v50  ;;  %8654 = vmatmul.bf16.vlgmr.msra.gmra.mxu3 %v20518_v49  ;;  %v13952_v18 = vor.u32 %v16923_v6, %v13949_v42  ;;  %v14365_v42 = vld [vmem:[%s26306_s9 + $0x1460] sm:$0xf0] }
 0x2e9   :  { %9109 = vmatmul.bf16.vlgmr.msra.gmra.mxu1 %v19050_v53  ;;  %8698 = vmatpush.bf16.msrb.mxu3 %v14048_v13  ;;  %v14693_v13 = vld [vmem:[%s26306_s9 + $0x16e8] sm:$0xf0] }
 0x2ea   :  { %9153 = vmatpush.bf16.msrb.mxu1 %v14824_v58  ;;  %v14760_v58 = vor.u32 %v17124_v34, %v14757_v35  ;;  %8725 = vmatpush.bf16.msrb.mxu0 %v14528_v59  ;;  %v21334_v34 = vpop.f32.mrf.mxu1  ;;  %v13984_v35 = vor.u32 %v16931_v11, %v13981_v14  ;;  %v15332_v59 = vor.u32 %v17272_v56, %v15331_v25  ;;  %v13917_v11 = vld [vmem:[%s26306_s9 + $0x10e0] sm:$0xf0] }
 0x2eb   :  { %v14696_v60 = vor.u32 %v17108_v39, %v14693_v13  ;;  %v15300_v14 = vor.u32 %v17264_v7, %v15299_v61  ;;  %v8422_v56 = vadd.f32 %v20790_v24, %v8409_v8  ;;  %v16907_v39 = vld [vmem:[%s26306_s9 + $0x1084] sm:$0xf]  ;;  %v14597_v61 = vld [vmem:[%s26306_s9 + $0x1628] sm:$0xf0]  ;;  %v8447_v8 = vpop.f32.mrf.mxu3 }
 0x2ec   :  { %8925 = vmatpush.bf16.msrb.mxu2 %v14116_v10  ;;  %v16915_v10 = vld [vmem:[%s26306_s9 + $0x10c4] sm:$0xf]  ;;  %v17396_v7 = vld [vmem:[%s26306_s9 + $0x1fcc] sm:$0xf] }
 0x2ed   :  { %8699 = vmatpush.bf16.msrb.mxu3 %v14016_v48  ;;  %v14661_v48 = vld [vmem:[%s26306_s9 + $0x16a8] sm:$0xf0]  ;;  %v13920_v25 = vor.u32 %v16915_v10, %v13917_v11  ;;  %v13885_v13 = vld [vmem:[%s26306_s9 + $0x10a0] sm:$0xf0] }
 0x2ee   :  { %9154 = vmatpush.bf16.msrb.mxu1 %v14792_v31  ;;  %v16960_v31 = vld [vmem:[%s26306_s9 + $0x1224] sm:$0xf0]  ;;  %8726 = vmatpush.bf16.msrb.mxu0 %v14496_v16  ;;  %v17035_v16 = vld [vmem:[%s26306_s9 + $0x1484] sm:$0xf] }
 0x2ef   :  { %v14084_v50 = vor.u32 %v16960_v31, %v14083_v28  ;;  %v14397_v28 = vld [vmem:[%s26306_s9 + $0x14a0] sm:$0xf0]  ;;  %v15267_v31 = vld [vmem:[%s26306_s9 + $0x1b48] sm:$0xf] }
 0x2f0   :  { %v14400_v62 = vor.u32 %v17035_v16, %v14397_v28  ;;  %v15268_v24 = vor.u32 %v17256_v33, %v15267_v31  ;;  %v14333_v16 = vld [vmem:[%s26306_s9 + $0x1420] sm:$0xf0]  ;;  %v17240_v28 = vld [vmem:[%s26306_s9 + $0x1ae4] sm:$0xf0] }
 0x2f1   :  { %8700 = vmatpush.bf16.msrb.mxu3 %v13984_v35  ;;  %8926 = vmatpush.bf16.msrb.mxu2 %v14084_v50  ;;  %v14629_v35 = vld [vmem:[%s26306_s9 + $0x1668] sm:$0xf0]  ;;  %v17027_v50 = vld [vmem:[%s26306_s9 + $0x1444] sm:$0xf] }
 0x2f2   :  { %9155 = vmatpush.bf16.msrb.mxu1 %v14760_v58  ;;  %v17043_v58 = vld [vmem:[%s26306_s9 + $0x14c4] sm:$0xf]  ;;  %8727 = vmatpush.bf16.msrb.mxu0 %v14464_v57  ;;  %v8904_v5 = vpop.f32.mrf.mxu1  ;;  %v14632_v6 = vor.u32 %v17092_v51, %v14629_v35  ;;  %v15235_v57 = vld [vmem:[%s26306_s9 + $0x1b08] sm:$0xf]  ;;  %v14368_v10 = vor.u32 %v17027_v50, %v14365_v42  ;;  %v17388_v51 = vld [vmem:[%s26306_s9 + $0x1f8c] sm:$0xf] }
 0x2f3   :  { %v14432_v43 = vor.u32 %v17043_v58, %v14429_v9  ;;  %v8435_v58 = vadd.f32 %v20045_v52, %v8422_v56  ;;  %v17084_v9 = vld [vmem:[%s26306_s9 + $0x160c] sm:$0xf]  ;;  %v16899_v52 = vld [vmem:[%s26306_s9 + $0x1044] sm:$0xf] }
 0x2f4   :  { %8927 = vmatmul.bf16.vlgmr.msrb.gmra.mxu2 %v19809_v0  ;;  %v15581_v56 = vld [vmem:[%s26306_s9 + $0x1de0] sm:$0xf0]  ;;  %v15813_v35 = vld [vmem:[%s26306_s9 + $0x1fa8] sm:$0xf0] }
 0x2f5   :  { %8971 = vmatpush.bf16.msra.mxu2 %v15332_v59  ;;  %8701 = vmatpush.bf16.msrb.mxu3 %v13952_v18  ;;  %v17248_v59 = vld [vmem:[%s26306_s9 + $0x1b24] sm:$0xf0]  ;;  %v15845_v18 = vld [vmem:[%s26306_s9 + $0x1fe8] sm:$0xf0] }
 0x2f6   :  { %9156 = vmatpush.bf16.msrb.mxu1 %v14728_v27  ;;  %v14664_v27 = vor.u32 %v17100_v29, %v14661_v48  ;;  %8728 = vmatpush.bf16.msrb.mxu0 %v14432_v43  ;;  %v13853_v29 = vld [vmem:[%s26306_s9 + $0x1060] sm:$0xf0]  ;;  %v8448_v48 = vadd.f32 %v8447_v8, %v8435_v58  ;;  %v15236_v11 = vor.u32 %v17248_v59, %v15235_v57  ;;  %v15171_v57 = vld [vmem:[%s26306_s9 + $0x1a88] sm:$0xf]  ;;  %v17380_v8 = vld [vmem:[%s26306_s9 + $0x1f4c] sm:$0xf] }
 0x2f7   :  { %v17019_v43 = vld [vmem:[%s26306_s9 + $0x1404] sm:$0xf]  ;;  %v15848_v33 = vor.u32 %v17396_v7, %v15845_v18  ;;  %v13856_v5 = vor.u32 %v16899_v52, %v13853_v29  ;;  %v15816_v59 = vor.u32 %v17388_v51, %v15813_v35  ;;  %v15781_v18 = vld [vmem:[%s26306_s9 + $0x1f68] sm:$0xf0] }
 0x2f8   :  { %v8461_v31 = vadd.f32 %v20548_v12, %v8448_v48  ;;  %v16891_v12 = vld [vmem:[%s26306_s9 + $0x1004] sm:$0xf]  ;;  %v21495_v48 = vpop.f32.mrf.mxu2 }
 0x2f9   :  { %8972 = vmatpush.bf16.msra.mxu2 %v15300_v14  ;;  %8702 = vmatpush.bf16.msrb.mxu3 %v13920_v25  ;;  %v14600_v14 = vor.u32 %v17084_v9, %v14597_v61  ;;  %v17331_v25 = vld [vmem:[%s26306_s9 + $0x1dc4] sm:$0xf]  ;;  %v8449_v61 = vpop.f32.mrf.mxu3 }
 0x2fa   :  { %9157 = vmatpush.bf16.msrb.mxu1 %v14696_v60  ;;  %v13888_v60 = vor.u32 %v16907_v39, %v13885_v13  ;;  %8729 = vmatpush.bf16.msrb.mxu0 %v14400_v62  ;;  %v13821_v39 = vld [vmem:[%s26306_s9 + $0x1020] sm:$0xf0]  ;;  %v14336_v13 = vor.u32 %v17019_v43, %v14333_v16  ;;  %v21468_v50 = vadd.f32 %v21148_v41, %v8461_v31  ;;  %v15139_v43 = vld [vmem:[%s26306_s9 + $0x1a48] sm:$0xf] }
 0x2fb   :  { %v17203_v62 = vld [vmem:[%s26306_s9 + $0x19c4] sm:$0xf]  ;;  %v15584_v42 = vor.u32 %v17331_v25, %v15581_v56  ;;  %v13824_v58 = vor.u32 %v16891_v12, %v13821_v39  ;;  %v17224_v16 = vld [vmem:[%s26306_s9 + $0x1a64] sm:$0xf0] }
 0x2fc   :  { %v17323_v41 = vld [vmem:[%s26306_s9 + $0x1d84] sm:$0xf]  ;;  %v15140_v51 = vor.u32 %v17224_v16, %v15139_v43  ;;  %v15107_v12 = vld [vmem:[%s26306_s9 + $0x1a08] sm:$0xf]  ;;  %v16492_v43 = vld [vmem:[%s26306_s9 + $0x38c] sm:$0xf] }
 0x2fd   :  { %8973 = vmatpush.bf16.msra.mxu2 %v15268_v24  ;;  %8703 = vmatpush.bf16.msrb.mxu3 %v13888_v60  ;;  %v15069_v24 = vld [vmem:[%s26306_s9 + $0x19e0] sm:$0xf0]  ;;  %v17232_v60 = vld [vmem:[%s26306_s9 + $0x1aa4] sm:$0xf0]  ;;  %v12229_v16 = vld [vmem:[%s26306_s9 + $0x3a8] sm:$0xf0] }
 0x2fe   :  { %9158 = vmatpush.bf16.msrb.mxu1 %v14664_v27  ;;  %v15203_v27 = vld [vmem:[%s26306_s9 + $0x1ac8] sm:$0xf]  ;;  %8730 = vmatpush.bf16.msrb.mxu0 %v14368_v10  ;;  %v15549_v9 = vld [vmem:[%s26306_s9 + $0x1da0] sm:$0xf0]  ;;  %v15072_v7 = vor.u32 %v17203_v62, %v15069_v24  ;;  %v15172_v10 = vor.u32 %v17232_v60, %v15171_v57  ;;  %v12261_v57 = vld [vmem:[%s26306_s9 + $0x3e8] sm:$0xf0] }
 0x2ff   :  { %v17195_v52 = vld [vmem:[%s26306_s9 + $0x1984] sm:$0xf]  ;;  %v17216_v39 = vld [vmem:[%s26306_s9 + $0x1a24] sm:$0xf0] }
 0x300   :  { %v15037_v29 = vld [vmem:[%s26306_s9 + $0x19a0] sm:$0xf0]  ;;  %v8722_v61 = vpop.f32.mrf.mxu2 }
 0x301   :  { %8974 = vmatpush.bf16.msra.mxu2 %v15236_v11  ;;  %8704 = vmatpush.bf16.msrb.mxu3 %v13856_v5  ;;  %v15552_v11 = vor.u32 %v17323_v41, %v15549_v9  ;;  %v15040_v31 = vor.u32 %v17195_v52, %v15037_v29  ;;  %v15749_v5 = vld [vmem:[%s26306_s9 + $0x1f28] sm:$0xf0]  ;;  %v17187_v25 = vld [vmem:[%s26306_s9 + $0x1944] sm:$0xf] }
 0x302   :  { %9159 = vmatpush.bf16.msrb.mxu1 %v14632_v6  ;;  %v15204_v6 = vor.u32 %v17240_v28, %v15203_v27  ;;  %8731 = vmatpush.bf16.msrb.mxu0 %v14336_v13  ;;  %v17315_v27 = vld [vmem:[%s26306_s9 + $0x1d44] sm:$0xf] }
 0x303   :  { %v15517_v28 = vld [vmem:[%s26306_s9 + $0x1d60] sm:$0xf0] }
 0x304   :  { %v15005_v56 = vld [vmem:[%s26306_s9 + $0x1960] sm:$0xf0]  ;;  %v15520_v35 = vor.u32 %v17315_v27, %v15517_v28  ;;  %v17356_v27 = vld [vmem:[%s26306_s9 + $0x1e8c] sm:$0xf] }
 0x305   :  { %8975 = vmatpush.bf16.msra.mxu2 %v15204_v6  ;;  %8705 = vmatpush.bf16.msrb.mxu3 %v13824_v58  ;;  %v17307_v62 = vld [vmem:[%s26306_s9 + $0x1d04] sm:$0xf]  ;;  %v16500_v6 = vld [vmem:[%s26306_s9 + $0x3cc] sm:$0xf] }
 0x306   :  { %9160 = vmatpush.bf16.msrb.mxu1 %v14600_v14  ;;  %8776 = vmatpush.bf16.msra.mxu0 %v15584_v42  ;;  %v15784_v14 = vor.u32 %v17380_v8, %v15781_v18  ;;  %v15485_v24 = vld [vmem:[%s26306_s9 + $0x1d20] sm:$0xf0]  ;;  %v15008_v42 = vor.u32 %v17187_v25, %v15005_v56  ;;  %v15717_v58 = vld [vmem:[%s26306_s9 + $0x1ee8] sm:$0xf0]  ;;  %v21547_v60 = vpop.f32.mrf.mxu1  ;;  %v21555_v18 = vpop.f32.mrf.mxu0  ;;  %v12264_v52 = vor.u32 %v16500_v6, %v12261_v57 }
 0x307   :  { %8732 = vmatmul.bf16.vlgmr.msrb.gmra.mxu0 %v20701_v15  ;;  %v17179_v41 = vld [vmem:[%s26306_s9 + $0x1904] sm:$0xf]  ;;  %v15488_v8 = vor.u32 %v17307_v62, %v15485_v24  ;;  %v15685_v28 = vld [vmem:[%s26306_s9 + $0x1ea8] sm:$0xf0]  ;;  %v12232_v25 = vor.u32 %v16492_v43, %v12229_v16 }
 0x308   :  { %8706 = vmatmul.bf16.vlgmr.msrb.gmra.mxu3 %v20734_v36  ;;  %v14973_v9 = vld [vmem:[%s26306_s9 + $0x1920] sm:$0xf0]  ;;  %v15688_v56 = vor.u32 %v17356_v27, %v15685_v28  ;;  %v17348_v62 = vld [vmem:[%s26306_s9 + $0x1e4c] sm:$0xf]  ;;  %v16633_v27 = vld [vmem:[%s26306_s9 + $0x7ec] sm:$0xf0] }
 0x309   :  { %9161 = vmatmul.bf16.vlgmr.msrb.gmra.mxu1 %v19203_v21  ;;  %8750 = vmatpush.bf16.msra.mxu3 %v15072_v7  ;;  %v15108_v7 = vor.u32 %v17216_v39, %v15107_v12  ;;  %v16484_v12 = vld [vmem:[%s26306_s9 + $0x34c] sm:$0xf]  ;;  %v14909_v57 = vld [vmem:[%s26306_s9 + $0x18a0] sm:$0xf0] }
 0x30a   :  { %9205 = vmatpush.bf16.msra.mxu1 %v15848_v33  ;;  %v17372_v33 = vld [vmem:[%s26306_s9 + $0x1f0c] sm:$0xf]  ;;  %8976 = vmatpush.bf16.msra.mxu2 %v15172_v10  ;;  %v17299_v10 = vld [vmem:[%s26306_s9 + $0x1cc4] sm:$0xf] }
 0x30b   :  { %8777 = vmatpush.bf16.msra.mxu0 %v15552_v11  ;;  %v15752_v13 = vor.u32 %v17372_v33, %v15749_v5  ;;  %v15453_v11 = vld [vmem:[%s26306_s9 + $0x1ce0] sm:$0xf0]  ;;  %v15653_v24 = vld [vmem:[%s26306_s9 + $0x1e68] sm:$0xf0] }
 0x30c   :  { %v14941_v33 = vld [vmem:[%s26306_s9 + $0x18e0] sm:$0xf0]  ;;  %v15456_v5 = vor.u32 %v17299_v10, %v15453_v11  ;;  %v15656_v61 = vor.u32 %v17348_v62, %v15653_v24  ;;  %v17340_v11 = vld [vmem:[%s26306_s9 + $0x1e0c] sm:$0xf]  ;;  %v12515_v62 = vld [vmem:[%s26306_s9 + $0x5c8] sm:$0xf] }
 0x30d   :  { %8751 = vmatpush.bf16.msra.mxu3 %v15040_v31  ;;  %v17171_v31 = vld [vmem:[%s26306_s9 + $0x18c4] sm:$0xf]  ;;  %v15621_v43 = vld [vmem:[%s26306_s9 + $0x1e28] sm:$0xf0]  ;;  %v8499_v16 = vpop.f32.mrf.mxu3  ;;  %v16568_v24 = vld [vmem:[%s26306_s9 + $0x5e4] sm:$0xf0] }
 0x30e   :  { %9206 = vmatpush.bf16.msra.mxu1 %v15816_v59  ;;  %v17364_v59 = vld [vmem:[%s26306_s9 + $0x1ecc] sm:$0xf]  ;;  %8977 = vmatpush.bf16.msra.mxu2 %v15140_v51  ;;  %v17291_v51 = vld [vmem:[%s26306_s9 + $0x1c84] sm:$0xf]  ;;  %v14944_v39 = vor.u32 %v17171_v31, %v14941_v33  ;;  %v8956_v6 = vpop.f32.mrf.mxu1 }
 0x30f   :  { %8778 = vmatpush.bf16.msra.mxu0 %v15520_v35  ;;  %v15720_v29 = vor.u32 %v17364_v59, %v15717_v58  ;;  %v15421_v35 = vld [vmem:[%s26306_s9 + $0x1ca0] sm:$0xf0]  ;;  %v12747_v6 = vld [vmem:[%s26306_s9 + $0x790] sm:$0xf] }
 0x310   :  { %v15424_v59 = vor.u32 %v17291_v51, %v15421_v35  ;;  %v17283_v58 = vld [vmem:[%s26306_s9 + $0x1c44] sm:$0xf]  ;;  %v16468_v51 = vld [vmem:[%s26306_s9 + $0x2cc] sm:$0xf] }
 0x311   :  { %8752 = vmatpush.bf16.msra.mxu3 %v15008_v42  ;;  %v17163_v42 = vld [vmem:[%s26306_s9 + $0x1884] sm:$0xf]  ;;  %v12133_v35 = vld [vmem:[%s26306_s9 + $0x2e8] sm:$0xf0] }
 0x312   :  { %9207 = vmatpush.bf16.msra.mxu1 %v15784_v14  ;;  %v14976_v14 = vor.u32 %v17179_v41, %v14973_v9  ;;  %8978 = vmatpush.bf16.msra.mxu2 %v15108_v7  ;;  %v8527_v41 = vpop.f32.mrf.mxu0  ;;  %v15389_v7 = vld [vmem:[%s26306_s9 + $0x1c60] sm:$0xf0]  ;;  %v14912_v10 = vor.u32 %v17163_v42, %v14909_v57  ;;  %v16625_v42 = vld [vmem:[%s26306_s9 + $0x7ac] sm:$0xf0] }
 0x313   :  { %8779 = vmatpush.bf16.msra.mxu0 %v15488_v8  ;;  %v16476_v8 = vld [vmem:[%s26306_s9 + $0x30c] sm:$0xf]  ;;  %v15392_v31 = vor.u32 %v17283_v58, %v15389_v7  ;;  %v17275_v33 = vld [vmem:[%s26306_s9 + $0x1c04] sm:$0xf]  ;;  %v12003_v41 = vld [vmem:[%s26306_s9 + $0x1c8] sm:$0xf]  ;;  %v12516_v7 = vor.u32 %v16568_v24, %v12515_v62 }
 0x314   :  { %v14845_v57 = vld [vmem:[%s26306_s9 + $0x1820] sm:$0xf0]  ;;  %v11939_v62 = vld [vmem:[%s26306_s9 + $0x148] sm:$0xf] }
 0x315   :  { %8753 = vmatpush.bf16.msra.mxu3 %v14976_v14  ;;  %8979 = vmatmul.bf16.vlgmr.msra.gmra.mxu2 %v19972_v40  ;;  %v12779_v14 = vld [vmem:[%s26306_s9 + $0x7d0] sm:$0xf]  ;;  %v16424_v24 = vld [vmem:[%s26306_s9 + $0x164] sm:$0xf0] }
 0x316   :  { %9208 = vmatpush.bf16.msra.mxu1 %v15752_v13  ;;  %9023 = vmatpush.bf16.msrb.mxu2 %v12264_v52  ;;  %v12197_v13 = vld [vmem:[%s26306_s9 + $0x368] sm:$0xf0] }
 0x317   :  { %8780 = vmatpush.bf16.msra.mxu0 %v15456_v5  ;;  %v12200_v9 = vor.u32 %v16484_v12, %v12197_v13  ;;  %v12165_v52 = vld [vmem:[%s26306_s9 + $0x328] sm:$0xf0] }
 0x318   :  { %v12168_v5 = vor.u32 %v16476_v8, %v12165_v52  ;;  %v16460_v8 = vld [vmem:[%s26306_s9 + $0x28c] sm:$0xf] }
 0x319   :  { %8754 = vmatpush.bf16.msra.mxu3 %v14944_v39  ;;  %v12780_v39 = vor.u32 %v16633_v27, %v12779_v14  ;;  %v16617_v27 = vld [vmem:[%s26306_s9 + $0x76c] sm:$0xf0] }
 0x31a   :  { %9209 = vmatpush.bf16.msra.mxu1 %v15720_v29  ;;  %9024 = vmatpush.bf16.msrb.mxu2 %v12232_v25  ;;  %v8487_v29 = vadd.f32 %v20162_v38, %v21468_v50  ;;  %v17155_v38 = vld [vmem:[%s26306_s9 + $0x1844] sm:$0xf]  ;;  %v15624_v25 = vor.u32 %v17340_v11, %v15621_v43  ;;  %v16560_v11 = vld [vmem:[%s26306_s9 + $0x5a4] sm:$0xf0]  ;;  %v8501_v43 = vpop.f32.mrf.mxu3 }
 0x31b   :  { %v14877_v50 = vld [vmem:[%s26306_s9 + $0x1860] sm:$0xf0]  ;;  %8781 = vmatpush.bf16.msra.mxu0 %v15424_v59 }
 0x31c   :  { %v8500_v28 = vadd.f32 %v8499_v16, %v8487_v29  ;;  %v14880_v13 = vor.u32 %v17155_v38, %v14877_v50  ;;  %v12101_v29 = vld [vmem:[%s26306_s9 + $0x2a8] sm:$0xf0]  ;;  %v12715_v16 = vld [vmem:[%s26306_s9 + $0x750] sm:$0xf]  ;;  %v11971_v38 = vld [vmem:[%s26306_s9 + $0x188] sm:$0xf] }
 0x31d   :  { %8755 = vmatpush.bf16.msra.mxu3 %v14912_v10  ;;  %v12483_v10 = vld [vmem:[%s26306_s9 + $0x588] sm:$0xf] }
 0x31e   :  { %9210 = vmatpush.bf16.msra.mxu1 %v15688_v56  ;;  %9025 = vmatpush.bf16.msrb.mxu2 %v12200_v9  ;;  %v15357_v56 = vld [vmem:[%s26306_s9 + $0x1c20] sm:$0xf0]  ;;  %v8513_v12 = vadd.f32 %v20723_v54, %v8500_v28  ;;  %v16440_v9 = vld [vmem:[%s26306_s9 + $0x1e4] sm:$0xf0]  ;;  %v21703_v28 = vpop.f32.mrf.mxu2 }
 0x31f   :  { %v17147_v54 = vld [vmem:[%s26306_s9 + $0x1804] sm:$0xf]  ;;  %8782 = vmatpush.bf16.msra.mxu0 %v15392_v31  ;;  %v15360_v58 = vor.u32 %v17275_v33, %v15357_v56  ;;  %v12004_v14 = vor.u32 %v16440_v9, %v12003_v41  ;;  %v16432_v50 = vld [vmem:[%s26306_s9 + $0x1a4] sm:$0xf0]  ;;  %v12104_v31 = vor.u32 %v16460_v8, %v12101_v29  ;;  %v12484_v33 = vor.u32 %v16560_v11, %v12483_v10  ;;  %v12069_v56 = vld [vmem:[%s26306_s9 + $0x268] sm:$0xf0] }
 0x320   :  { %v21670_v59 = vadd.f32 %v21555_v18, %v8513_v12  ;;  %v12748_v18 = vor.u32 %v16625_v42, %v12747_v6  ;;  %v14848_v52 = vor.u32 %v17147_v54, %v14845_v57  ;;  %v11972_v12 = vor.u32 %v16432_v50, %v11971_v38  ;;  %v16444_v54 = vld [vmem:[%s26306_s9 + $0x20c] sm:$0xf]  ;;  %v12419_v41 = vld [vmem:[%s26306_s9 + $0x508] sm:$0xf] }
 0x321   :  { %8756 = vmatpush.bf16.msra.mxu3 %v14880_v13  ;;  %v16609_v13 = vld [vmem:[%s26306_s9 + $0x72c] sm:$0xf0]  ;;  %v12037_v57 = vld [vmem:[%s26306_s9 + $0x228] sm:$0xf0]  ;;  %v16544_v9 = vld [vmem:[%s26306_s9 + $0x524] sm:$0xf0] }
 0x322   :  { %9211 = vmatpush.bf16.msra.mxu1 %v15656_v61  ;;  %9026 = vmatpush.bf16.msrb.mxu2 %v12168_v5  ;;  %v12136_v61 = vor.u32 %v16468_v51, %v12133_v35  ;;  %v16452_v5 = vld [vmem:[%s26306_s9 + $0x24c] sm:$0xf]  ;;  %v12451_v51 = vld [vmem:[%s26306_s9 + $0x548] sm:$0xf] }
 0x323   :  { %8783 = vmatpush.bf16.msra.mxu0 %v15360_v58  ;;  %v16552_v35 = vld [vmem:[%s26306_s9 + $0x564] sm:$0xf0]  ;;  %v12072_v6 = vor.u32 %v16452_v5, %v12069_v56  ;;  %v13285_v8 = vld [vmem:[%s26306_s9 + $0xbe8] sm:$0xf0]  ;;  %v12619_v56 = vld [vmem:[%s26306_s9 + $0x690] sm:$0xf] }
 0x324   :  { %v12452_v42 = vor.u32 %v16552_v35, %v12451_v51  ;;  %v11907_v10 = vld [vmem:[%s26306_s9 + $0x108] sm:$0xf]  ;;  %v16593_v51 = vld [vmem:[%s26306_s9 + $0x6ac] sm:$0xf0] }
 0x325   :  { %8757 = vmatpush.bf16.msra.mxu3 %v14848_v52  ;;  %v16601_v52 = vld [vmem:[%s26306_s9 + $0x6ec] sm:$0xf0]  ;;  %v16416_v11 = vld [vmem:[%s26306_s9 + $0x124] sm:$0xf0] }
 0x326   :  { %9212 = vmatpush.bf16.msra.mxu1 %v15624_v25  ;;  %9027 = vmatpush.bf16.msrb.mxu2 %v12136_v61  ;;  %v12716_v25 = vor.u32 %v16617_v27, %v12715_v16  ;;  %v16756_v61 = vld [vmem:[%s26306_s9 + $0xbcc] sm:$0xf]  ;;  %v21755_v29 = vpop.f32.mrf.mxu1  ;;  %v8774_v43 = vpop.f32.mrf.mxu2  ;;  %v12420_v16 = vor.u32 %v16544_v9, %v12419_v41  ;;  %v12387_v50 = vld [vmem:[%s26306_s9 + $0x4c8] sm:$0xf]  ;;  %v11908_v5 = vor.u32 %v16416_v11, %v11907_v10  ;;  %v16585_v41 = vld [vmem:[%s26306_s9 + $0x66c] sm:$0xf0] }
 0x327   :  { %8828 = vmatpush.bf16.msrb.mxu0 %v12516_v7  ;;  %v11940_v7 = vor.u32 %v16424_v24, %v11939_v62  ;;  %v13288_v27 = vor.u32 %v16756_v61, %v13285_v8  ;;  %v11875_v35 = vld [vmem:[%s26306_s9 + $0xc8] sm:$0xf]  ;;  %v12620_v62 = vor.u32 %v16593_v51, %v12619_v56  ;;  %v16732_v43 = vld [vmem:[%s26306_s9 + $0xb0c] sm:$0xf] }
 0x328   :  { %8784 = vmatmul.bf16.vlgmr.msra.gmra.mxu0 %v21064_v26  ;;  %8758 = vmatmul.bf16.vlgmr.msra.gmra.mxu3 %v20918_v63  ;;  %v12355_v24 = vld [vmem:[%s26306_s9 + $0x488] sm:$0xf] }
 0x329   :  { %9213 = vmatmul.bf16.vlgmr.msra.gmra.mxu1 %v19463_v55  ;;  %8802 = vmatpush.bf16.msrb.mxu3 %v12004_v14  ;;  %v12040_v14 = vor.u32 %v16444_v54, %v12037_v57  ;;  %v13221_v57 = vld [vmem:[%s26306_s9 + $0xb68] sm:$0xf0]  ;;  %v11843_v61 = vld [vmem:[%s26306_s9 + $0x88] sm:$0xf] }
 0x32a   :  { %9257 = vmatpush.bf16.msrb.mxu1 %v12780_v39  ;;  %v12683_v39 = vld [vmem:[%s26306_s9 + $0x710] sm:$0xf]  ;;  %9028 = vmatpush.bf16.msrb.mxu2 %v12104_v31  ;;  %v16536_v31 = vld [vmem:[%s26306_s9 + $0x4e4] sm:$0xf0] }
 0x32b   :  { %8829 = vmatpush.bf16.msrb.mxu0 %v12484_v33  ;;  %v12684_v58 = vor.u32 %v16609_v13, %v12683_v39  ;;  %v16748_v33 = vld [vmem:[%s26306_s9 + $0xb8c] sm:$0xf]  ;;  %v12388_v39 = vor.u32 %v16536_v31, %v12387_v50  ;;  %v16520_v11 = vld [vmem:[%s26306_s9 + $0x464] sm:$0xf0]  ;;  %v16577_v50 = vld [vmem:[%s26306_s9 + $0x62c] sm:$0xf0] }
 0x32c   :  { %v13803_v31 = vld [vmem:[%s26306_s9 + $0xfd0] sm:$0xf]  ;;  %v12291_v51 = vld [vmem:[%s26306_s9 + $0x408] sm:$0xf] }
 0x32d   :  { %8803 = vmatpush.bf16.msrb.mxu3 %v11972_v12  ;;  %v16408_v12 = vld [vmem:[%s26306_s9 + $0xe4] sm:$0xf0] }
 0x32e   :  { %9258 = vmatpush.bf16.msrb.mxu1 %v12748_v18  ;;  %v12651_v18 = vld [vmem:[%s26306_s9 + $0x6d0] sm:$0xf]  ;;  %9029 = vmatpush.bf16.msrb.mxu2 %v12072_v6  ;;  %v16528_v6 = vld [vmem:[%s26306_s9 + $0x4a4] sm:$0xf0]  ;;  %v11876_v54 = vor.u32 %v16408_v12, %v11875_v35  ;;  %v9008_v9 = vpop.f32.mrf.mxu1 }
 0x32f   :  { %8830 = vmatpush.bf16.msrb.mxu0 %v12452_v42  ;;  %v12652_v38 = vor.u32 %v16601_v52, %v12651_v18  ;;  %v16740_v42 = vld [vmem:[%s26306_s9 + $0xb4c] sm:$0xf]  ;;  %v12356_v8 = vor.u32 %v16528_v6, %v12355_v24  ;;  %v12323_v18 = vld [vmem:[%s26306_s9 + $0x448] sm:$0xf] }
 0x330   :  { %v13224_v52 = vor.u32 %v16740_v42, %v13221_v57  ;;  %v12324_v56 = vor.u32 %v16520_v11, %v12323_v18  ;;  %v13539_v42 = vld [vmem:[%s26306_s9 + $0xdc8] sm:$0xf]  ;;  %v13771_v57 = vld [vmem:[%s26306_s9 + $0xf90] sm:$0xf] }
 0x331   :  { %8804 = vmatpush.bf16.msrb.mxu3 %v11940_v7  ;;  %v16400_v7 = vld [vmem:[%s26306_s9 + $0xa4] sm:$0xf0] }
 0x332   :  { %9259 = vmatpush.bf16.msrb.mxu1 %v12716_v25  ;;  %v13253_v25 = vld [vmem:[%s26306_s9 + $0xba8] sm:$0xf0]  ;;  %9030 = vmatpush.bf16.msrb.mxu2 %v12040_v14  ;;  %v16384_v9 = vld [vmem:[%s26306_s9 + $0x24] sm:$0xf0] }
 0x333   :  { %8831 = vmatpush.bf16.msrb.mxu0 %v12420_v16  ;;  %v13256_v13 = vor.u32 %v16748_v33, %v13253_v25  ;;  %v13189_v14 = vld [vmem:[%s26306_s9 + $0xb28] sm:$0xf0]  ;;  %v8539_v16 = vadd.f32 %v20262_v45, %v21670_v59  ;;  %v8551_v33 = vpop.f32.mrf.mxu3  ;;  %v11811_v45 = vld [vmem:[%s26306_s9 + $0x48] sm:$0xf] }
 0x334   :  { %v16392_v59 = vld [vmem:[%s26306_s9 + $0x64] sm:$0xf0]  ;;  %v13192_v35 = vor.u32 %v16732_v43, %v13189_v14  ;;  %v13125_v14 = vld [vmem:[%s26306_s9 + $0xaa8] sm:$0xf0] }
 0x335   :  { %8805 = vmatpush.bf16.msrb.mxu3 %v11908_v5  ;;  %9031 = vmatmul.bf16.vlgmr.msrb.gmra.mxu2 %v19442_v37  ;;  %v16889_v5 = vld [vmem:[%s26306_s9 + $0xfec] sm:$0xf0]  ;;  %v21844_v25 = vadd.f32 %v8551_v33, %v8539_v16  ;;  %v11812_v6 = vor.u32 %v16392_v59, %v11811_v45  ;;  %v13507_v16 = vld [vmem:[%s26306_s9 + $0xd88] sm:$0xf] }
 0x336   :  { %9260 = vmatpush.bf16.msrb.mxu1 %v12684_v58  ;;  %9075 = vmatpush.bf16.msra.mxu2 %v13288_v27  ;;  %v12587_v58 = vld [vmem:[%s26306_s9 + $0x650] sm:$0xf]  ;;  %v11844_v27 = vor.u32 %v16400_v7, %v11843_v61  ;;  %v13804_v24 = vor.u32 %v16889_v5, %v13803_v31  ;;  %v13027_v7 = vld [vmem:[%s26306_s9 + $0x9c8] sm:$0xf]  ;;  %v21901_v5 = vpop.f32.mrf.mxu2 }
 0x337   :  { %8832 = vmatpush.bf16.msrb.mxu0 %v12388_v39  ;;  %v12588_v10 = vor.u32 %v16585_v41, %v12587_v58  ;;  %v16512_v39 = vld [vmem:[%s26306_s9 + $0x424] sm:$0xf0]  ;;  %v16881_v58 = vld [vmem:[%s26306_s9 + $0xfac] sm:$0xf0] }
 0x338   :  { %v11779_v41 = vld [vmem:[%s26306_s9 + $0x8] sm:$0xf]  ;;  %v12292_v61 = vor.u32 %v16512_v39, %v12291_v51  ;;  %v13772_v11 = vor.u32 %v16881_v58, %v13771_v57  ;;  %v16873_v31 = vld [vmem:[%s26306_s9 + $0xf6c] sm:$0xf0]  ;;  %v13093_v39 = vld [vmem:[%s26306_s9 + $0xa68] sm:$0xf0] }
 0x339   :  { %8806 = vmatpush.bf16.msrb.mxu3 %v11876_v54  ;;  %v16824_v54 = vld [vmem:[%s26306_s9 + $0xde4] sm:$0xf0]  ;;  %v11780_v43 = vor.u32 %v16384_v9, %v11779_v41  ;;  %v16700_v9 = vld [vmem:[%s26306_s9 + $0xa0c] sm:$0xf] }
 0x33a   :  { %9261 = vmatpush.bf16.msrb.mxu1 %v12652_v38  ;;  %9076 = vmatpush.bf16.msra.mxu2 %v13256_v13  ;;  %v12555_v38 = vld [vmem:[%s26306_s9 + $0x610] sm:$0xf]  ;;  %v16724_v13 = vld [vmem:[%s26306_s9 + $0xacc] sm:$0xf]  ;;  %v12995_v45 = vld [vmem:[%s26306_s9 + $0x988] sm:$0xf] }
 0x33b   :  { %8833 = vmatpush.bf16.msrb.mxu0 %v12356_v8  ;;  %v12556_v12 = vor.u32 %v16577_v50, %v12555_v38  ;;  %v16696_v8 = vld [vmem:[%s26306_s9 + $0x9e4] sm:$0xf0]  ;;  %v13739_v50 = vld [vmem:[%s26306_s9 + $0xf50] sm:$0xf]  ;;  %v8553_v33 = vpop.f32.mrf.mxu3 }
 0x33c   :  { %v13028_v38 = vor.u32 %v16696_v8, %v13027_v7  ;;  %v16688_v59 = vld [vmem:[%s26306_s9 + $0x9a4] sm:$0xf0]  ;;  %v8577_v33 = vpop.f32.mrf.mxu0 }
 0x33d   :  { %8807 = vmatpush.bf16.msrb.mxu3 %v11844_v27  ;;  %v16816_v27 = vld [vmem:[%s26306_s9 + $0xda4] sm:$0xf0] }
 0x33e   :  { %9262 = vmatpush.bf16.msrb.mxu1 %v12620_v62  ;;  %9077 = vmatpush.bf16.msra.mxu2 %v13224_v52  ;;  %v13157_v62 = vld [vmem:[%s26306_s9 + $0xae8] sm:$0xf0]  ;;  %v13540_v52 = vor.u32 %v16824_v54, %v13539_v42  ;;  %v13508_v51 = vor.u32 %v16816_v27, %v13507_v16  ;;  %v16865_v42 = vld [vmem:[%s26306_s9 + $0xf2c] sm:$0xf0]  ;;  %v12963_v54 = vld [vmem:[%s26306_s9 + $0x948] sm:$0xf]  ;;  %v8826_v27 = vpop.f32.mrf.mxu2 }
 0x33f   :  { %8834 = vmatpush.bf16.msrb.mxu0 %v12324_v56  ;;  %v13160_v18 = vor.u32 %v16724_v13, %v13157_v62  ;;  %v13475_v13 = vld [vmem:[%s26306_s9 + $0xd48] sm:$0xf]  ;;  %v16857_v16 = vld [vmem:[%s26306_s9 + $0xeec] sm:$0xf0]  ;;  %v17473_v27 = vld [vmem:[%s26309_s10] sm:$0xff] }
 0x340   :  { %v16808_v62 = vld [vmem:[%s26306_s9 + $0xd64] sm:$0xf0] }
 0x341   :  { %8808 = vmatpush.bf16.msrb.mxu3 %v11812_v6  ;;  %v13707_v6 = vld [vmem:[%s26306_s9 + $0xf10] sm:$0xf]  ;;  %v16680_v57 = vld [vmem:[%s26306_s9 + $0x964] sm:$0xf0]  ;;  %v13476_v41 = vor.u32 %v16808_v62, %v13475_v13  ;;  %v14277_v13 = vld [vmem:[%s26306_s9 + $0x13a8] sm:$0xf0] }
 0x342   :  { %9263 = vmatpush.bf16.msrb.mxu1 %v12588_v10  ;;  %9078 = vmatpush.bf16.msra.mxu2 %v13192_v35  ;;  %v16716_v10 = vld [vmem:[%s26306_s9 + $0xa8c] sm:$0xf]  ;;  %v13708_v7 = vor.u32 %v16865_v42, %v13707_v6  ;;  %v13443_v8 = vld [vmem:[%s26306_s9 + $0xd08] sm:$0xf]  ;;  %v13643_v62 = vld [vmem:[%s26306_s9 + $0xe90] sm:$0xf] }
 0x343   :  { %8835 = vmatpush.bf16.msrb.mxu0 %v12292_v61  ;;  %v13128_v56 = vor.u32 %v16716_v10, %v13125_v14  ;;  %v16708_v35 = vld [vmem:[%s26306_s9 + $0xa4c] sm:$0xf]  ;;  %v13675_v14 = vld [vmem:[%s26306_s9 + $0xed0] sm:$0xf]  ;;  %v12899_v6 = vld [vmem:[%s26306_s9 + $0x8c8] sm:$0xf] }
 0x344   :  { %v13096_v58 = vor.u32 %v16708_v35, %v13093_v39  ;;  %v13061_v61 = vld [vmem:[%s26306_s9 + $0xa28] sm:$0xf0]  ;;  %v13676_v35 = vor.u32 %v16857_v16, %v13675_v14  ;;  %v16664_v42 = vld [vmem:[%s26306_s9 + $0x8e4] sm:$0xf0]  ;;  %v8579_v16 = vpop.f32.mrf.mxu0 }
 0x345   :  { %8809 = vmatpush.bf16.msrb.mxu3 %v11780_v43  ;;  %v14309_v43 = vld [vmem:[%s26306_s9 + $0x13e8] sm:$0xf0]  ;;  %v16656_v14 = vld [vmem:[%s26306_s9 + $0x8a4] sm:$0xf0]  ;;  %v17137_v16 = vld [vmem:[%s26306_s9 + $0x17ac] sm:$0xf0] }
 0x346   :  { %9264 = vmatpush.bf16.msrb.mxu1 %v12556_v12  ;;  %9079 = vmatpush.bf16.msra.mxu2 %v13160_v18  ;;  %v13740_v12 = vor.u32 %v16873_v31, %v13739_v50  ;;  %v16800_v18 = vld [vmem:[%s26306_s9 + $0xd24] sm:$0xf0]  ;;  %v21950_v10 = vpop.f32.mrf.mxu1 }
 0x347   :  { %8880 = vmatpush.bf16.msra.mxu0 %v13540_v52  ;;  %v17012_v52 = vld [vmem:[%s26306_s9 + $0x13cc] sm:$0xf]  ;;  %v12931_v50 = vld [vmem:[%s26306_s9 + $0x908] sm:$0xf] }
 0x348   :  { %8836 = vmatmul.bf16.vlgmr.msrb.gmra.mxu0 %v19906_v2  ;;  %8810 = vmatmul.bf16.vlgmr.msrb.gmra.mxu3 %v20305_v20  ;;  %v16672_v31 = vld [vmem:[%s26306_s9 + $0x924] sm:$0xf0] }
 0x349   :  { %9265 = vmatmul.bf16.vlgmr.msrb.gmra.mxu1 %v18896_v22  ;;  %8854 = vmatpush.bf16.msra.mxu3 %v13028_v38  ;;  %v8565_v38 = vadd.f32 %v20916_v19, %v21844_v25  ;;  %v13411_v19 = vld [vmem:[%s26306_s9 + $0xcc8] sm:$0xf]  ;;  %v12932_v39 = vor.u32 %v16672_v31, %v12931_v50 }
 0x34a   :  { %9309 = vmatpush.bf16.msra.mxu1 %v13804_v24  ;;  %v12996_v24 = vor.u32 %v16688_v59, %v12995_v45  ;;  %9080 = vmatpush.bf16.msra.mxu2 %v13128_v56  ;;  %v13064_v45 = vor.u32 %v16700_v9, %v13061_v61  ;;  %v13444_v59 = vor.u32 %v16800_v18, %v13443_v8  ;;  %v16792_v25 = vld [vmem:[%s26306_s9 + $0xce4] sm:$0xf0]  ;;  %v16996_v61 = vld [vmem:[%s26306_s9 + $0x134c] sm:$0xf] }
 0x34b   :  { %8881 = vmatpush.bf16.msra.mxu0 %v13508_v51  ;;  %v21969_v56 = vadd.f32 %v8577_v33, %v8565_v38  ;;  %v14312_v51 = vor.u32 %v17012_v52, %v14309_v43  ;;  %v16784_v9 = vld [vmem:[%s26306_s9 + $0xca4] sm:$0xf0]  ;;  %v12900_v8 = vor.u32 %v16664_v42, %v12899_v6  ;;  %v14245_v18 = vld [vmem:[%s26306_s9 + $0x1368] sm:$0xf0]  ;;  %v13611_v52 = vld [vmem:[%s26306_s9 + $0xe50] sm:$0xf] }
 0x34c   :  { %v12867_v43 = vld [vmem:[%s26306_s9 + $0x888] sm:$0xf]  ;;  %v3251_v38 = vperm.slane %v17473_v27, 1  ;;  %v14248_v33 = vor.u32 %v16996_v61, %v14245_v18  ;;  %v16980_v61 = vld [vmem:[%s26306_s9 + $0x12cc] sm:$0xf] }
 0x34d   :  { %8855 = vmatpush.bf16.msra.mxu3 %v12996_v24  ;;  %v16849_v24 = vld [vmem:[%s26306_s9 + $0xeac] sm:$0xf0]  ;;  %v13347_v31 = vld [vmem:[%s26306_s9 + $0xc48] sm:$0xf] }
 0x34e   :  { %9310 = vmatpush.bf16.msra.mxu1 %v13772_v11  ;;  %v12964_v11 = vor.u32 %v16680_v57, %v12963_v54  ;;  %9081 = vmatpush.bf16.msra.mxu2 %v13096_v58  ;;  %v13412_v54 = vor.u32 %v16792_v25, %v13411_v19  ;;  %v13644_v58 = vor.u32 %v16849_v24, %v13643_v62  ;;  %v13579_v25 = vld [vmem:[%s26306_s9 + $0xe10] sm:$0xf]  ;;  %v12835_v24 = vld [vmem:[%s26306_s9 + $0x848] sm:$0xf] }
 0x34f   :  { %8882 = vmatpush.bf16.msra.mxu0 %v13476_v41  ;;  %v13379_v41 = vld [vmem:[%s26306_s9 + $0xc88] sm:$0xf]  ;;  %v12868_v19 = vor.u32 %v16656_v14, %v12867_v43  ;;  %v17145_v62 = vld [vmem:[%s26306_s9 + $0x17ec] sm:$0xf0] }
 0x350   :  { %v13380_v50 = vor.u32 %v16784_v9, %v13379_v41  ;;  %v16648_v6 = vld [vmem:[%s26306_s9 + $0x864] sm:$0xf0]  ;;  %v14795_v14 = vld [vmem:[%s26306_s9 + $0x1790] sm:$0xf] }
 0x351   :  { %8856 = vmatpush.bf16.msra.mxu3 %v12964_v11  ;;  %v16841_v11 = vld [vmem:[%s26306_s9 + $0xe6c] sm:$0xf0]  ;;  %v16768_v9 = vld [vmem:[%s26306_s9 + $0xc24] sm:$0xf0] }
 0x352   :  { %9311 = vmatpush.bf16.msra.mxu1 %v13740_v12  ;;  %v17004_v12 = vld [vmem:[%s26306_s9 + $0x138c] sm:$0xf]  ;;  %9082 = vmatpush.bf16.msra.mxu2 %v13064_v45  ;;  %v13612_v45 = vor.u32 %v16841_v11, %v13611_v52  ;;  %v12836_v52 = vor.u32 %v16648_v6, %v12835_v24  ;;  %v14563_v11 = vld [vmem:[%s26306_s9 + $0x15c8] sm:$0xf]  ;;  %v14763_v6 = vld [vmem:[%s26306_s9 + $0x1750] sm:$0xf] }
 0x353   :  { %8883 = vmatpush.bf16.msra.mxu0 %v13444_v59  ;;  %v14280_v57 = vor.u32 %v17004_v12, %v14277_v13  ;;  %v16776_v59 = vld [vmem:[%s26306_s9 + $0xc64] sm:$0xf0]  ;;  %v16833_v12 = vld [vmem:[%s26306_s9 + $0xe2c] sm:$0xf0]  ;;  %v8603_v13 = vpop.f32.mrf.mxu3 }
 0x354   :  { %v8604_v42 = vadd.f32 %v8603_v13, %v3251_v38  ;;  %v13580_v41 = vor.u32 %v16833_v12, %v13579_v25  ;;  %v17080_v43 = vld [vmem:[%s26306_s9 + $0x15e4] sm:$0xf0]  ;;  %v8629_v38 = vpop.f32.mrf.mxu0  ;;  %v14149_v12 = vld [vmem:[%s26306_s9 + $0x12a8] sm:$0xf0] }
 0x355   :  { %8857 = vmatpush.bf16.msra.mxu3 %v12932_v39  ;;  %9083 = vmatmul.bf16.vlgmr.msra.gmra.mxu2 %v19597_v1  ;;  %v14827_v39 = vld [vmem:[%s26306_s9 + $0x17d0] sm:$0xf]  ;;  %v16640_v27 = vld [vmem:[%s26306_s9 + $0x824] sm:$0xf0] }
 0x356   :  { %9312 = vmatpush.bf16.msra.mxu1 %v13708_v7  ;;  %9127 = vmatpush.bf16.msrb.mxu2 %v14312_v51  ;;  %v9060_v7 = vpop.f32.mrf.mxu1  ;;  %v16988_v51 = vld [vmem:[%s26306_s9 + $0x130c] sm:$0xf]  ;;  %v14828_v18 = vor.u32 %v17145_v62, %v14827_v39  ;;  %v14531_v39 = vld [vmem:[%s26306_s9 + $0x1588] sm:$0xf] }
 0x357   :  { %8884 = vmatpush.bf16.msra.mxu0 %v13412_v54  ;;  %v13348_v54 = vor.u32 %v16776_v59, %v13347_v31  ;;  %v14181_v7 = vld [vmem:[%s26306_s9 + $0x12e8] sm:$0xf0]  ;;  %v14051_v31 = vld [vmem:[%s26306_s9 + $0x11c8] sm:$0xf] }
 0x358   :  { %v14184_v59 = vor.u32 %v16980_v61, %v14181_v7  ;;  %v17072_v13 = vld [vmem:[%s26306_s9 + $0x15a4] sm:$0xf0]  ;;  %v16964_v61 = vld [vmem:[%s26306_s9 + $0x124c] sm:$0xf] }
 0x359   :  { %8858 = vmatpush.bf16.msra.mxu3 %v12900_v8  ;;  %v8617_v8 = vadd.f32 %v21077_v17, %v8604_v42  ;;  %v12803_v17 = vld [vmem:[%s26306_s9 + $0x808] sm:$0xf]  ;;  %v17129_v42 = vld [vmem:[%s26306_s9 + $0x176c] sm:$0xf0] }
 0x35a   :  { %9313 = vmatpush.bf16.msra.mxu1 %v13676_v35  ;;  %9128 = vmatpush.bf16.msrb.mxu2 %v14280_v57  ;;  %v14213_v35 = vld [vmem:[%s26306_s9 + $0x1328] sm:$0xf0]  ;;  %v13315_v57 = vld [vmem:[%s26306_s9 + $0xc08] sm:$0xf]  ;;  %v12804_v25 = vor.u32 %v16640_v27, %v12803_v17  ;;  %v14764_v7 = vor.u32 %v17129_v42, %v14763_v6 }
 0x35b   :  { %8885 = vmatpush.bf16.msra.mxu0 %v13380_v50  ;;  %v13316_v50 = vor.u32 %v16768_v9, %v13315_v57  ;;  %v8605_v62 = vpop.f32.mrf.mxu3  ;;  %v14019_v57 = vld [vmem:[%s26306_s9 + $0x1188] sm:$0xf]  ;;  %v14532_v9 = vor.u32 %v17072_v13, %v14531_v39  ;;  %v14699_v39 = vld [vmem:[%s26306_s9 + $0x16d0] sm:$0xf] }
 0x35c   :  { %v13987_v17 = vld [vmem:[%s26306_s9 + $0x1148] sm:$0xf]  ;;  %v17113_v13 = vld [vmem:[%s26306_s9 + $0x16ec] sm:$0xf0] }
 0x35d   :  { %8859 = vmatpush.bf16.msra.mxu3 %v12868_v19  ;;  %v14796_v19 = vor.u32 %v17137_v16, %v14795_v14  ;;  %v17121_v14 = vld [vmem:[%s26306_s9 + $0x172c] sm:$0xf0]  ;;  %v8631_v16 = vpop.f32.mrf.mxu0  ;;  %v16936_v27 = vld [vmem:[%s26306_s9 + $0x1164] sm:$0xf0] }
 0x35e   :  { %9314 = vmatpush.bf16.msra.mxu1 %v13644_v58  ;;  %9129 = vmatpush.bf16.msrb.mxu2 %v14248_v33  ;;  %v14216_v58 = vor.u32 %v16988_v51, %v14213_v35  ;;  %v16952_v33 = vld [vmem:[%s26306_s9 + $0x11e4] sm:$0xf0]  ;;  %v14564_v51 = vor.u32 %v17080_v43, %v14563_v11  ;;  %v16972_v35 = vld [vmem:[%s26306_s9 + $0x128c] sm:$0xf]  ;;  %v14731_v43 = vld [vmem:[%s26306_s9 + $0x1710] sm:$0xf] }
 0x35f   :  { %8886 = vmatpush.bf16.msra.mxu0 %v13348_v54  ;;  %v14052_v24 = vor.u32 %v16952_v33, %v14051_v31  ;;  %v22111_v54 = vpop.f32.mrf.mxu2  ;;  %v16956_v31 = vld [vmem:[%s26306_s9 + $0x120c] sm:$0xf]  ;;  %v13955_v6 = vld [vmem:[%s26306_s9 + $0x1108] sm:$0xf] }
 0x360   :  { %v14085_v33 = vld [vmem:[%s26306_s9 + $0x1228] sm:$0xf0]  ;;  %v16928_v42 = vld [vmem:[%s26306_s9 + $0x1124] sm:$0xf0] }
 0x361   :  { %8860 = vmatpush.bf16.msra.mxu3 %v12836_v52  ;;  %v17064_v52 = vld [vmem:[%s26306_s9 + $0x1564] sm:$0xf0] }
 0x362   :  { %9315 = vmatpush.bf16.msra.mxu1 %v13612_v45  ;;  %9130 = vmatpush.bf16.msrb.mxu2 %v14216_v58  ;;  %v22090_v45 = vadd.f32 %v8629_v38, %v8617_v8  ;;  %v16944_v58 = vld [vmem:[%s26306_s9 + $0x11a4] sm:$0xf0]  ;;  %v14117_v8 = vld [vmem:[%s26306_s9 + $0x1268] sm:$0xf0] }
 0x363   :  { %8887 = vmatpush.bf16.msra.mxu0 %v13316_v50  ;;  %v14020_v11 = vor.u32 %v16944_v58, %v14019_v57  ;;  %v14120_v38 = vor.u32 %v16964_v61, %v14117_v8  ;;  %v14088_v57 = vor.u32 %v16956_v31, %v14085_v33  ;;  %v14435_v61 = vld [vmem:[%s26306_s9 + $0x14c8] sm:$0xf]  ;;  %v17260_v8 = vld [vmem:[%s26306_s9 + $0x1b8c] sm:$0xf] }
 0x364   :  { %v13923_v16 = vld [vmem:[%s26306_s9 + $0x10c8] sm:$0xf] }
 0x365   :  { %8861 = vmatpush.bf16.msra.mxu3 %v12804_v25  ;;  %v13988_v25 = vor.u32 %v16936_v27, %v13987_v17  ;;  %v16920_v17 = vld [vmem:[%s26306_s9 + $0x10e4] sm:$0xf0] }
 0x366   :  { %9316 = vmatpush.bf16.msra.mxu1 %v13580_v41  ;;  %9131 = vmatpush.bf16.msrb.mxu2 %v14184_v59  ;;  %v14152_v41 = vor.u32 %v16972_v35, %v14149_v12  ;;  %v14732_v59 = vor.u32 %v17121_v14, %v14731_v43  ;;  %v17056_v35 = vld [vmem:[%s26306_s9 + $0x1524] sm:$0xf0]  ;;  %v15333_v12 = vld [vmem:[%s26306_s9 + $0x1be8] sm:$0xf0]  ;;  %v22169_v62 = vpop.f32.mrf.mxu1  ;;  %v17105_v43 = vld [vmem:[%s26306_s9 + $0x16ac] sm:$0xf0]  ;;  %v22195_v14 = vpop.f32.mrf.mxu0 }
 0x367   :  { %8932 = vmatpush.bf16.msrb.mxu0 %v14564_v51  ;;  %v14467_v51 = vld [vmem:[%s26306_s9 + $0x1508] sm:$0xf] }
 0x368   :  { %8888 = vmatmul.bf16.vlgmr.msra.gmra.mxu0 %v20278_v30  ;;  %8862 = vmatmul.bf16.vlgmr.msra.gmra.mxu3 %v20518_v49  ;;  %v14468_v58 = vor.u32 %v17056_v35, %v14467_v51  ;;  %v14403_v31 = vld [vmem:[%s26306_s9 + $0x1488] sm:$0xf]  ;;  %v13924_v51 = vor.u32 %v16920_v17, %v13923_v16  ;;  %v15269_v35 = vld [vmem:[%s26306_s9 + $0x1b68] sm:$0xf0] }
 0x369   :  { %9317 = vmatmul.bf16.vlgmr.msra.gmra.mxu1 %v19050_v53  ;;  %8906 = vmatpush.bf16.msrb.mxu3 %v14052_v24  ;;  %v8878_v24 = vpop.f32.mrf.mxu2  ;;  %v17040_v33 = vld [vmem:[%s26306_s9 + $0x14a4] sm:$0xf0] }
 0x36a   :  { %9361 = vmatpush.bf16.msrb.mxu1 %v14828_v18  ;;  %v14499_v18 = vld [vmem:[%s26306_s9 + $0x1548] sm:$0xf]  ;;  %9132 = vmatpush.bf16.msrb.mxu2 %v14152_v41  ;;  %v14404_v24 = vor.u32 %v17040_v33, %v14403_v31 }
 0x36b   :  { %8933 = vmatpush.bf16.msrb.mxu0 %v14532_v9  ;;  %v14500_v50 = vor.u32 %v17064_v52, %v14499_v18  ;;  %v14700_v9 = vor.u32 %v17113_v13, %v14699_v39  ;;  %v13956_v18 = vor.u32 %v16928_v42, %v13955_v6  ;;  %v15301_v52 = vld [vmem:[%s26306_s9 + $0x1ba8] sm:$0xf0]  ;;  %v13891_v39 = vld [vmem:[%s26306_s9 + $0x1088] sm:$0xf] }
 0x36c   :  { %v16912_v13 = vld [vmem:[%s26306_s9 + $0x10a4] sm:$0xf0] }
 0x36d   :  { %8907 = vmatpush.bf16.msrb.mxu3 %v14020_v11  ;;  %v14667_v11 = vld [vmem:[%s26306_s9 + $0x1690] sm:$0xf]  ;;  %v14371_v6 = vld [vmem:[%s26306_s9 + $0x1448] sm:$0xf] }
 0x36e   :  { %9362 = vmatpush.bf16.msrb.mxu1 %v14796_v19  ;;  %v17268_v19 = vld [vmem:[%s26306_s9 + $0x1bcc] sm:$0xf]  ;;  %9133 = vmatpush.bf16.msrb.mxu2 %v14120_v38  ;;  %v15304_v38 = vor.u32 %v17260_v8, %v15301_v52  ;;  %v17089_v8 = vld [vmem:[%s26306_s9 + $0x162c] sm:$0xf0]  ;;  %v8643_v52 = vadd.f32 %v20489_v32, %v22090_v45  ;;  %v13859_v16 = vld [vmem:[%s26306_s9 + $0x1048] sm:$0xf] }
 0x36f   :  { %8934 = vmatpush.bf16.msrb.mxu0 %v14500_v50  ;;  %v15336_v41 = vor.u32 %v17268_v19, %v15333_v12  ;;  %v14668_v50 = vor.u32 %v17105_v43, %v14667_v11  ;;  %v14635_v19 = vld [vmem:[%s26306_s9 + $0x1650] sm:$0xf]  ;;  %v9112_v12 = vpop.f32.mrf.mxu1  ;;  %v8683_v11 = vpop.f32.mrf.mxu0  ;;  %v16904_v17 = vld [vmem:[%s26306_s9 + $0x1064] sm:$0xf0] }
 0x370   :  { %v17401_v43 = vld [vmem:[%s26306_s9 + $0x1fec] sm:$0xf0]  ;;  %v14339_v32 = vld [vmem:[%s26306_s9 + $0x1408] sm:$0xf] }
 0x371   :  { %8908 = vmatpush.bf16.msrb.mxu3 %v13988_v25  ;;  %v17097_v25 = vld [vmem:[%s26306_s9 + $0x166c] sm:$0xf0]  ;;  %v17024_v33 = vld [vmem:[%s26306_s9 + $0x1424] sm:$0xf0] }
 0x372   :  { %9363 = vmatpush.bf16.msrb.mxu1 %v14764_v7  ;;  %v17048_v7 = vld [vmem:[%s26306_s9 + $0x14e4] sm:$0xf0]  ;;  %9134 = vmatpush.bf16.msrb.mxu2 %v14088_v57  ;;  %v14636_v57 = vor.u32 %v17097_v25, %v14635_v19  ;;  %v13860_v19 = vor.u32 %v16904_v17, %v13859_v16  ;;  %v17385_v17 = vld [vmem:[%s26306_s9 + $0x1f6c] sm:$0xf0] }
 0x373   :  { %8935 = vmatpush.bf16.msrb.mxu0 %v14468_v58  ;;  %v14436_v27 = vor.u32 %v17048_v7, %v14435_v61  ;;  %v17032_v58 = vld [vmem:[%s26306_s9 + $0x1464] sm:$0xf0]  ;;  %v13892_v61 = vor.u32 %v16912_v13, %v13891_v39  ;;  %v14603_v7 = vld [vmem:[%s26306_s9 + $0x1610] sm:$0xf] }
 0x374   :  { %v14604_v31 = vor.u32 %v17089_v8, %v14603_v7  ;;  %v15587_v25 = vld [vmem:[%s26306_s9 + $0x1dc8] sm:$0xf]  ;;  %v15819_v39 = vld [vmem:[%s26306_s9 + $0x1f90] sm:$0xf] }
 0x375   :  { %8909 = vmatpush.bf16.msrb.mxu3 %v13956_v18  ;;  %9135 = vmatmul.bf16.vlgmr.msrb.gmra.mxu2 %v19809_v0  ;;  %v15851_v18 = vld [vmem:[%s26306_s9 + $0x1fd0] sm:$0xf]  ;;  %v17336_v12 = vld [vmem:[%s26306_s9 + $0x1de4] sm:$0xf0] }
 0x376   :  { %9364 = vmatpush.bf16.msrb.mxu1 %v14732_v59  ;;  %9179 = vmatpush.bf16.msra.mxu2 %v15336_v41  ;;  %v17252_v59 = vld [vmem:[%s26306_s9 + $0x1b4c] sm:$0xf]  ;;  %v15555_v11 = vld [vmem:[%s26306_s9 + $0x1d88] sm:$0xf] }
 0x377   :  { %8936 = vmatpush.bf16.msrb.mxu0 %v14436_v27  ;;  %v15272_v42 = vor.u32 %v17252_v59, %v15269_v35  ;;  %v17244_v41 = vld [vmem:[%s26306_s9 + $0x1b0c] sm:$0xf]  ;;  %v8655_v27 = vpop.f32.mrf.mxu3  ;;  %v15852_v35 = vor.u32 %v17401_v43, %v15851_v18  ;;  %v17328_v43 = vld [vmem:[%s26306_s9 + $0x1da4] sm:$0xf0] }
 0x378   :  { %v8656_v45 = vadd.f32 %v8655_v27, %v8643_v52  ;;  %v17236_v59 = vld [vmem:[%s26306_s9 + $0x1acc] sm:$0xf] }
 0x379   :  { %8910 = vmatpush.bf16.msrb.mxu3 %v13924_v51  ;;  %v15205_v51 = vld [vmem:[%s26306_s9 + $0x1ae8] sm:$0xf0] }
 0x37a   :  { %9365 = vmatpush.bf16.msrb.mxu1 %v14700_v9  ;;  %9180 = vmatpush.bf16.msra.mxu2 %v15304_v38  ;;  %v15237_v9 = vld [vmem:[%s26306_s9 + $0x1b28] sm:$0xf0]  ;;  %v14372_v38 = vor.u32 %v17032_v58, %v14371_v6  ;;  %v8669_v13 = vadd.f32 %v21281_v46, %v8656_v45  ;;  %v13827_v6 = vld [vmem:[%s26306_s9 + $0x1008] sm:$0xf]  ;;  %v22325_v45 = vpop.f32.mrf.mxu2 }
 0x37b   :  { %8937 = vmatpush.bf16.msrb.mxu0 %v14404_v24  ;;  %v17393_v24 = vld [vmem:[%s26306_s9 + $0x1fac] sm:$0xf0]  ;;  %v15075_v58 = vld [vmem:[%s26306_s9 + $0x19c8] sm:$0xf]  ;;  %v15173_v52 = vld [vmem:[%s26306_s9 + $0x1aa8] sm:$0xf0] }
 0x37c   :  { %v17208_v46 = vld [vmem:[%s26306_s9 + $0x19e4] sm:$0xf0]  ;;  %v22301_v7 = vadd.f32 %v22195_v14, %v8669_v13  ;;  %v15820_v8 = vor.u32 %v17393_v24, %v15819_v39  ;;  %v15787_v14 = vld [vmem:[%s26306_s9 + $0x1f50] sm:$0xf] }
 0x37d   :  { %8911 = vmatpush.bf16.msrb.mxu3 %v13892_v61  ;;  %v17228_v61 = vld [vmem:[%s26306_s9 + $0x1a8c] sm:$0xf]  ;;  %v15076_v16 = vor.u32 %v17208_v46, %v15075_v58  ;;  %v17377_v39 = vld [vmem:[%s26306_s9 + $0x1f2c] sm:$0xf0]  ;;  %v15011_v13 = vld [vmem:[%s26306_s9 + $0x1948] sm:$0xf] }
 0x37e   :  { %9366 = vmatpush.bf16.msrb.mxu1 %v14668_v50  ;;  %9181 = vmatpush.bf16.msra.mxu2 %v15272_v42  ;;  %v15240_v50 = vor.u32 %v17244_v41, %v15237_v9  ;;  %v16896_v42 = vld [vmem:[%s26306_s9 + $0x1024] sm:$0xf0]  ;;  %v15208_v41 = vor.u32 %v17236_v59, %v15205_v51  ;;  %v15588_v9 = vor.u32 %v17336_v12, %v15587_v25  ;;  %v15141_v51 = vld [vmem:[%s26306_s9 + $0x1a68] sm:$0xf0]  ;;  %v15755_v12 = vld [vmem:[%s26306_s9 + $0x1f10] sm:$0xf] }
 0x37f   :  { %8938 = vmatpush.bf16.msrb.mxu0 %v14372_v38  ;;  %v13828_v18 = vor.u32 %v16896_v42, %v13827_v6  ;;  %v8657_v27 = vpop.f32.mrf.mxu3  ;;  %v15043_v38 = vld [vmem:[%s26306_s9 + $0x1988] sm:$0xf]  ;;  %v15788_v59 = vor.u32 %v17385_v17, %v15787_v14  ;;  %v15109_v58 = vld [vmem:[%s26306_s9 + $0x1a28] sm:$0xf0]  ;;  %v15756_v46 = vor.u32 %v17377_v39, %v15755_v12 }
 0x380   :  { %v17192_v24 = vld [vmem:[%s26306_s9 + $0x1964] sm:$0xf0] }
 0x381   :  { %8912 = vmatpush.bf16.msrb.mxu3 %v13860_v19  ;;  %v17320_v19 = vld [vmem:[%s26306_s9 + $0x1d64] sm:$0xf0] }
 0x382   :  { %9367 = vmatpush.bf16.msrb.mxu1 %v14636_v57  ;;  %v14340_v57 = vor.u32 %v17024_v33, %v14339_v32  ;;  %9182 = vmatpush.bf16.msra.mxu2 %v15240_v50  ;;  %v17200_v32 = vld [vmem:[%s26306_s9 + $0x19a4] sm:$0xf0]  ;;  %v15176_v50 = vor.u32 %v17228_v61, %v15173_v52  ;;  %v17220_v33 = vld [vmem:[%s26306_s9 + $0x1a4c] sm:$0xf]  ;;  %v12267_v61 = vld [vmem:[%s26306_s9 + $0x3d0] sm:$0xf]  ;;  %v8930_v17 = vpop.f32.mrf.mxu2 }
 0x383   :  { %v15044_v25 = vor.u32 %v17200_v32, %v15043_v38  ;;  %v15144_v6 = vor.u32 %v17220_v33, %v15141_v51  ;;  %v15723_v52 = vld [vmem:[%s26306_s9 + $0x1ed0] sm:$0xf]  ;;  %v17304_v33 = vld [vmem:[%s26306_s9 + $0x1ce4] sm:$0xf0] }
 0x384   :  { %8939 = vmatpush.bf16.msrb.mxu0 %v14340_v57  ;;  %v17212_v57 = vld [vmem:[%s26306_s9 + $0x1a0c] sm:$0xf]  ;;  %v22403_v12 = vpop.f32.mrf.mxu0  ;;  %v14947_v39 = vld [vmem:[%s26306_s9 + $0x18c8] sm:$0xf] }
 0x385   :  { %8913 = vmatpush.bf16.msrb.mxu3 %v13828_v18  ;;  %v16505_v18 = vld [vmem:[%s26306_s9 + $0x3ec] sm:$0xf0]  ;;  %v15112_v27 = vor.u32 %v17212_v57, %v15109_v58  ;;  %v15427_v57 = vld [vmem:[%s26306_s9 + $0x1c88] sm:$0xf] }
 0x386   :  { %9368 = vmatpush.bf16.msrb.mxu1 %v14604_v31  ;;  %9183 = vmatpush.bf16.msra.mxu2 %v15208_v41  ;;  %v15556_v31 = vor.u32 %v17328_v43, %v15555_v11  ;;  %v15491_v41 = vld [vmem:[%s26306_s9 + $0x1d08] sm:$0xf]  ;;  %v17369_v11 = vld [vmem:[%s26306_s9 + $0x1eec] sm:$0xf0]  ;;  %v22383_v14 = vpop.f32.mrf.mxu1  ;;  %v12268_v32 = vor.u32 %v16505_v18, %v12267_v61 }
 0x387   :  { %8940 = vmatmul.bf16.vlgmr.msrb.gmra.mxu0 %v20701_v15  ;;  %v14979_v43 = vld [vmem:[%s26306_s9 + $0x1908] sm:$0xf]  ;;  %v15659_v61 = vld [vmem:[%s26306_s9 + $0x1e50] sm:$0xf] }
 0x388   :  { %8984 = vmatpush.bf16.msra.mxu0 %v15588_v9  ;;  %8914 = vmatmul.bf16.vlgmr.msrb.gmra.mxu3 %v20734_v36  ;;  %v17312_v9 = vld [vmem:[%s26306_s9 + $0x1d24] sm:$0xf0] }
 0x389   :  { %9369 = vmatmul.bf16.vlgmr.msrb.gmra.mxu1 %v19203_v21  ;;  %8958 = vmatpush.bf16.msra.mxu3 %v15076_v16  ;;  %v17184_v16 = vld [vmem:[%s26306_s9 + $0x1924] sm:$0xf0]  ;;  %v15492_v38 = vor.u32 %v17312_v9, %v15491_v41  ;;  %v16489_v9 = vld [vmem:[%s26306_s9 + $0x36c] sm:$0xf0] }
 0x38a   :  { %9413 = vmatpush.bf16.msra.mxu1 %v15852_v35  ;;  %v15523_v35 = vld [vmem:[%s26306_s9 + $0x1d48] sm:$0xf]  ;;  %9184 = vmatpush.bf16.msra.mxu2 %v15176_v50  ;;  %v15724_v50 = vor.u32 %v17369_v11, %v15723_v52  ;;  %v14980_v51 = vor.u32 %v17184_v16, %v14979_v43 }
 0x38b   :  { %v15524_v42 = vor.u32 %v17320_v19, %v15523_v35  ;;  %v16497_v35 = vld [vmem:[%s26306_s9 + $0x3ac] sm:$0xf0]  ;;  %v17296_v58 = vld [vmem:[%s26306_s9 + $0x1ca4] sm:$0xf0] }
 0x38c   :  { %8985 = vmatpush.bf16.msra.mxu0 %v15556_v31  ;;  %v15459_v31 = vld [vmem:[%s26306_s9 + $0x1cc8] sm:$0xf]  ;;  %v15691_v19 = vld [vmem:[%s26306_s9 + $0x1e90] sm:$0xf]  ;;  %v15428_v43 = vor.u32 %v17296_v58, %v15427_v57 }
 0x38d   :  { %8959 = vmatpush.bf16.msra.mxu3 %v15044_v25  ;;  %v17361_v25 = vld [vmem:[%s26306_s9 + $0x1eac] sm:$0xf0]  ;;  %v14915_v18 = vld [vmem:[%s26306_s9 + $0x1888] sm:$0xf] }
 0x38e   :  { %9414 = vmatpush.bf16.msra.mxu1 %v15820_v8  ;;  %v15012_v8 = vor.u32 %v17192_v24, %v15011_v13  ;;  %9185 = vmatpush.bf16.msra.mxu2 %v15144_v6  ;;  %v17176_v13 = vld [vmem:[%s26306_s9 + $0x18e4] sm:$0xf0]  ;;  %v15460_v24 = vor.u32 %v17304_v33, %v15459_v31  ;;  %v9164_v11 = vpop.f32.mrf.mxu1  ;;  %v15627_v33 = vld [vmem:[%s26306_s9 + $0x1e10] sm:$0xf] }
 0x38f   :  { %v14948_v41 = vor.u32 %v17176_v13, %v14947_v39  ;;  %v17168_v52 = vld [vmem:[%s26306_s9 + $0x18a4] sm:$0xf0] }
 0x390   :  { %8986 = vmatpush.bf16.msra.mxu0 %v15524_v42  ;;  %v15692_v42 = vor.u32 %v17361_v25, %v15691_v19  ;;  %v15395_v16 = vld [vmem:[%s26306_s9 + $0x1c48] sm:$0xf]  ;;  %v14916_v31 = vor.u32 %v17168_v52, %v14915_v18  ;;  %v8695_v19 = vadd.f32 %v20599_v47, %v22301_v7  ;;  %v12781_v25 = vld [vmem:[%s26306_s9 + $0x7f0] sm:$0xf0]  ;;  %v12517_v18 = vld [vmem:[%s26306_s9 + $0x5e8] sm:$0xf0] }
 0x391   :  { %8960 = vmatpush.bf16.msra.mxu3 %v15012_v8  ;;  %v17353_v8 = vld [vmem:[%s26306_s9 + $0x1e6c] sm:$0xf0]  ;;  %v14883_v39 = vld [vmem:[%s26306_s9 + $0x1848] sm:$0xf]  ;;  %v16621_v52 = vld [vmem:[%s26306_s9 + $0x794] sm:$0xf] }
 0x392   :  { %9415 = vmatpush.bf16.msra.mxu1 %v15788_v59  ;;  %v12235_v59 = vld [vmem:[%s26306_s9 + $0x390] sm:$0xf]  ;;  %9186 = vmatpush.bf16.msra.mxu2 %v15112_v27  ;;  %v15660_v27 = vor.u32 %v17353_v8, %v15659_v61  ;;  %v17160_v13 = vld [vmem:[%s26306_s9 + $0x1864] sm:$0xf0]  ;;  %v16564_v8 = vld [vmem:[%s26306_s9 + $0x5cc] sm:$0xf] }
 0x393   :  { %v12236_v6 = vor.u32 %v16497_v35, %v12235_v59  ;;  %v17345_v59 = vld [vmem:[%s26306_s9 + $0x1e2c] sm:$0xf0]  ;;  %v8735_v35 = vpop.f32.mrf.mxu0  ;;  %v17280_v58 = vld [vmem:[%s26306_s9 + $0x1c24] sm:$0xf0]  ;;  %v14884_v61 = vor.u32 %v17160_v13, %v14883_v39  ;;  %v12717_v13 = vld [vmem:[%s26306_s9 + $0x770] sm:$0xf0] }
 0x394   :  { %8987 = vmatpush.bf16.msra.mxu0 %v15492_v38  ;;  %v17288_v38 = vld [vmem:[%s26306_s9 + $0x1c64] sm:$0xf0]  ;;  %v15628_v57 = vor.u32 %v17345_v59, %v15627_v33  ;;  %v16465_v35 = vld [vmem:[%s26306_s9 + $0x2ac] sm:$0xf0] }
 0x395   :  { %8961 = vmatpush.bf16.msra.mxu3 %v14980_v51  ;;  %9187 = vmatmul.bf16.vlgmr.msra.gmra.mxu2 %v19972_v40  ;;  %v16629_v51 = vld [vmem:[%s26306_s9 + $0x7d4] sm:$0xf] }
 0x396   :  { %9416 = vmatpush.bf16.msra.mxu1 %v15756_v46  ;;  %9231 = vmatpush.bf16.msrb.mxu2 %v12268_v32  ;;  %v12203_v46 = vld [vmem:[%s26306_s9 + $0x350] sm:$0xf] }
 0x397   :  { %v12204_v17 = vor.u32 %v16489_v9, %v12203_v46  ;;  %v12171_v32 = vld [vmem:[%s26306_s9 + $0x310] sm:$0xf]  ;;  %v12784_v9 = vor.u32 %v16629_v51, %v12781_v25  ;;  %v12485_v25 = vld [vmem:[%s26306_s9 + $0x5a8] sm:$0xf0] }
 0x398   :  { %8988 = vmatpush.bf16.msra.mxu0 %v15460_v24  ;;  %v8707_v24 = vpop.f32.mrf.mxu3  ;;  %v12139_v46 = vld [vmem:[%s26306_s9 + $0x2d0] sm:$0xf] }
 0x399   :  { %8962 = vmatpush.bf16.msra.mxu3 %v14948_v41  ;;  %v8708_v47 = vadd.f32 %v8707_v24, %v8695_v19  ;;  %v16473_v41 = vld [vmem:[%s26306_s9 + $0x2ec] sm:$0xf0]  ;;  %v16556_v19 = vld [vmem:[%s26306_s9 + $0x58c] sm:$0xf] }
 0x39a   :  { %9417 = vmatpush.bf16.msra.mxu1 %v15724_v50  ;;  %9232 = vmatpush.bf16.msrb.mxu2 %v12236_v6  ;;  %v16481_v50 = vld [vmem:[%s26306_s9 + $0x32c] sm:$0xf0]  ;;  %v15396_v6 = vor.u32 %v17288_v38, %v15395_v16  ;;  %v14851_v16 = vld [vmem:[%s26306_s9 + $0x1808] sm:$0xf]  ;;  %v16436_v38 = vld [vmem:[%s26306_s9 + $0x1cc] sm:$0xf] }
 0x39b   :  { %v12172_v7 = vor.u32 %v16481_v50, %v12171_v32  ;;  %v8721_v11 = vadd.f32 %v21495_v48, %v8708_v47  ;;  %v12005_v48 = vld [vmem:[%s26306_s9 + $0x1e8] sm:$0xf0]  ;;  %v12140_v32 = vor.u32 %v16473_v41, %v12139_v46  ;;  %v12520_v50 = vor.u32 %v16564_v8, %v12517_v18  ;;  %v16457_v41 = vld [vmem:[%s26306_s9 + $0x26c] sm:$0xf0]  ;;  %v16605_v18 = vld [vmem:[%s26306_s9 + $0x714] sm:$0xf] }
 0x39c   :  { %8989 = vmatpush.bf16.msra.mxu0 %v15428_v43  ;;  %v12749_v43 = vld [vmem:[%s26306_s9 + $0x7b0] sm:$0xf0]  ;;  %v12008_v39 = vor.u32 %v16436_v38, %v12005_v48  ;;  %v16449_v38 = vld [vmem:[%s26306_s9 + $0x22c] sm:$0xf0] }
 0x39d   :  { %8963 = vmatpush.bf16.msra.mxu3 %v14916_v31  ;;  %v12107_v31 = vld [vmem:[%s26306_s9 + $0x290] sm:$0xf]  ;;  %v22509_v33 = vadd.f32 %v22403_v12, %v8721_v11  ;;  %v12752_v59 = vor.u32 %v16621_v52, %v12749_v43  ;;  %v16613_v12 = vld [vmem:[%s26306_s9 + $0x754] sm:$0xf]  ;;  %v16420_v11 = vld [vmem:[%s26306_s9 + $0x14c] sm:$0xf] }
 0x39e   :  { %9418 = vmatpush.bf16.msra.mxu1 %v15692_v42  ;;  %v15363_v42 = vld [vmem:[%s26306_s9 + $0x1c08] sm:$0xf]  ;;  %9233 = vmatpush.bf16.msrb.mxu2 %v12204_v17  ;;  %v12108_v47 = vor.u32 %v16465_v35, %v12107_v31  ;;  %v12720_v46 = vor.u32 %v16613_v12, %v12717_v13  ;;  %v12685_v52 = vld [vmem:[%s26306_s9 + $0x730] sm:$0xf0]  ;;  %v11941_v43 = vld [vmem:[%s26306_s9 + $0x168] sm:$0xf0] }
 0x39f   :  { %v17152_v17 = vld [vmem:[%s26306_s9 + $0x1824] sm:$0xf0]  ;;  %v12688_v48 = vor.u32 %v16605_v18, %v12685_v52  ;;  %v13291_v31 = vld [vmem:[%s26306_s9 + $0xbd0] sm:$0xf]  ;;  %v16597_v35 = vld [vmem:[%s26306_s9 + $0x6d4] sm:$0xf] }
 0x3a0   :  { %8990 = vmatpush.bf16.msra.mxu0 %v15396_v6  ;;  %v14852_v51 = vor.u32 %v17152_v17, %v14851_v16  ;;  %v8709_v24 = vpop.f32.mrf.mxu3  ;;  %v16428_v6 = vld [vmem:[%s26306_s9 + $0x18c] sm:$0xf] }
 0x3a1   :  { %8964 = vmatpush.bf16.msra.mxu3 %v14884_v61  ;;  %v12453_v61 = vld [vmem:[%s26306_s9 + $0x568] sm:$0xf0] }
 0x3a2   :  { %9419 = vmatpush.bf16.msra.mxu1 %v15660_v27  ;;  %v15364_v27 = vor.u32 %v17280_v58, %v15363_v42  ;;  %9234 = vmatpush.bf16.msrb.mxu2 %v12172_v7  ;;  %v11973_v42 = vld [vmem:[%s26306_s9 + $0x1a8] sm:$0xf0]  ;;  %v12488_v7 = vor.u32 %v16556_v19, %v12485_v25  ;;  %v22536_v58 = vpop.f32.mrf.mxu2  ;;  %v12653_v19 = vld [vmem:[%s26306_s9 + $0x6f0] sm:$0xf0] }
 0x3a3   :  { %v11976_v8 = vor.u32 %v16428_v6, %v11973_v42  ;;  %v16412_v25 = vld [vmem:[%s26306_s9 + $0x10c] sm:$0xf] }
 0x3a4   :  { %8991 = vmatpush.bf16.msra.mxu0 %v15364_v27  ;;  %v12043_v27 = vld [vmem:[%s26306_s9 + $0x210] sm:$0xf]  ;;  %v16404_v52 = vld [vmem:[%s26306_s9 + $0xcc] sm:$0xf] }
 0x3a5   :  { %8965 = vmatpush.bf16.msra.mxu3 %v14852_v51  ;;  %v16761_v51 = vld [vmem:[%s26306_s9 + $0xbec] sm:$0xf0]  ;;  %v12044_v13 = vor.u32 %v16449_v38, %v12043_v27  ;;  %v22611_v18 = vpop.f32.mrf.mxu0  ;;  %v16524_v27 = vld [vmem:[%s26306_s9 + $0x48c] sm:$0xf] }
 0x3a6   :  { %9420 = vmatpush.bf16.msra.mxu1 %v15628_v57  ;;  %9235 = vmatpush.bf16.msrb.mxu2 %v12140_v32  ;;  %v12075_v57 = vld [vmem:[%s26306_s9 + $0x250] sm:$0xf]  ;;  %v16540_v32 = vld [vmem:[%s26306_s9 + $0x50c] sm:$0xf]  ;;  %v22591_v12 = vpop.f32.mrf.mxu1  ;;  %v13292_v42 = vor.u32 %v16761_v51, %v13291_v31  ;;  %v16581_v31 = vld [vmem:[%s26306_s9 + $0x654] sm:$0xf] }
 0x3a7   :  { %8992 = vmatmul.bf16.vlgmr.msra.gmra.mxu0 %v21064_v26  ;;  %v12076_v16 = vor.u32 %v16457_v41, %v12075_v57  ;;  %v12389_v57 = vld [vmem:[%s26306_s9 + $0x4e8] sm:$0xf0] }
 0x3a8   :  { %9036 = vmatpush.bf16.msrb.mxu0 %v12520_v50  ;;  %8966 = vmatmul.bf16.vlgmr.msra.gmra.mxu3 %v20918_v63  ;;  %v12421_v50 = vld [vmem:[%s26306_s9 + $0x528] sm:$0xf0] }
 0x3a9   :  { %9421 = vmatmul.bf16.vlgmr.msra.gmra.mxu1 %v19463_v55  ;;  %9010 = vmatpush.bf16.msrb.mxu3 %v12008_v39  ;;  %v11909_v39 = vld [vmem:[%s26306_s9 + $0x128] sm:$0xf0]  ;;  %v12424_v24 = vor.u32 %v16540_v32, %v12421_v50  ;;  %v16745_v50 = vld [vmem:[%s26306_s9 + $0xb6c] sm:$0xf0] }
 0x3aa   :  { %9465 = vmatpush.bf16.msrb.mxu1 %v12784_v9  ;;  %v16548_v9 = vld [vmem:[%s26306_s9 + $0x54c] sm:$0xf]  ;;  %9236 = vmatpush.bf16.msrb.mxu2 %v12108_v47  ;;  %v8982_v6 = vpop.f32.mrf.mxu2  ;;  %v12656_v47 = vor.u32 %v16597_v35, %v12653_v19  ;;  %v11912_v41 = vor.u32 %v16412_v25, %v11909_v39 }
 0x3ab   :  { %v12456_v17 = vor.u32 %v16548_v9, %v12453_v61  ;;  %v16753_v9 = vld [vmem:[%s26306_s9 + $0xbac] sm:$0xf0]  ;;  %v16589_v61 = vld [vmem:[%s26306_s9 + $0x694] sm:$0xf]  ;;  %v12357_v38 = vld [vmem:[%s26306_s9 + $0x4a8] sm:$0xf0] }
 0x3ac   :  { %9037 = vmatpush.bf16.msrb.mxu0 %v12488_v7  ;;  %v16532_v7 = vld [vmem:[%s26306_s9 + $0x4cc] sm:$0xf]  ;;  %v12360_v25 = vor.u32 %v16524_v27, %v12357_v38 }
 0x3ad   :  { %9011 = vmatpush.bf16.msrb.mxu3 %v11976_v8  ;;  %v12621_v8 = vld [vmem:[%s26306_s9 + $0x6b0] sm:$0xf0]  ;;  %v16396_v51 = vld [vmem:[%s26306_s9 + $0x8c] sm:$0xf] }
 0x3ae   :  { %9466 = vmatpush.bf16.msrb.mxu1 %v12752_v59  ;;  %v11944_v59 = vor.u32 %v16420_v11, %v11941_v43  ;;  %9237 = vmatpush.bf16.msrb.mxu2 %v12076_v16  ;;  %v11877_v11 = vld [vmem:[%s26306_s9 + $0xe8] sm:$0xf0]  ;;  %v12392_v43 = vor.u32 %v16532_v7, %v12389_v57  ;;  %v9216_v19 = vpop.f32.mrf.mxu1  ;;  %v16573_v57 = vld [vmem:[%s26306_s9 + $0x614] sm:$0xf] }
 0x3af   :  { %v11880_v32 = vor.u32 %v16404_v52, %v11877_v11  ;;  %v11845_v35 = vld [vmem:[%s26306_s9 + $0xa8] sm:$0xf0] }
 0x3b0   :  { %9038 = vmatpush.bf16.msrb.mxu0 %v12456_v17  ;;  %v12624_v17 = vor.u32 %v16589_v61, %v12621_v8  ;;  %v16516_v39 = vld [vmem:[%s26306_s9 + $0x44c] sm:$0xf]  ;;  %v11848_v7 = vor.u32 %v16396_v51, %v11845_v35  ;;  %v8747_v61 = vadd.f32 %v20764_v3, %v22509_v33  ;;  %v13805_v8 = vld [vmem:[%s26306_s9 + $0xff0] sm:$0xf0] }
 0x3b1   :  { %9012 = vmatpush.bf16.msrb.mxu3 %v11944_v59  ;;  %v12589_v59 = vld [vmem:[%s26306_s9 + $0x670] sm:$0xf0]  ;;  %v12325_v6 = vld [vmem:[%s26306_s9 + $0x468] sm:$0xf0] }
 0x3b2   :  { %9467 = vmatpush.bf16.msrb.mxu1 %v12720_v46  ;;  %v13259_v46 = vld [vmem:[%s26306_s9 + $0xb90] sm:$0xf]  ;;  %9238 = vmatpush.bf16.msrb.mxu2 %v12044_v13  ;;  %v16388_v52 = vld [vmem:[%s26306_s9 + $0x4c] sm:$0xf]  ;;  %v16877_v35 = vld [vmem:[%s26306_s9 + $0xf94] sm:$0xf] }
 0x3b3   :  { %v13260_v16 = vor.u32 %v16753_v9, %v13259_v46  ;;  %v12557_v46 = vld [vmem:[%s26306_s9 + $0x630] sm:$0xf0]  ;;  %v8787_v9 = vpop.f32.mrf.mxu0  ;;  %v11813_v11 = vld [vmem:[%s26306_s9 + $0x68] sm:$0xf0] }
 0x3b4   :  { %9039 = vmatpush.bf16.msrb.mxu0 %v12424_v24  ;;  %v12592_v24 = vor.u32 %v16581_v31, %v12589_v59  ;;  %v12560_v27 = vor.u32 %v16573_v57, %v12557_v46  ;;  %v12293_v38 = vld [vmem:[%s26306_s9 + $0x428] sm:$0xf0]  ;;  %v11816_v31 = vor.u32 %v16388_v52, %v11813_v11  ;;  %v13131_v57 = vld [vmem:[%s26306_s9 + $0xa90] sm:$0xf]  ;;  %v16869_v52 = vld [vmem:[%s26306_s9 + $0xf54] sm:$0xf] }
 0x3b5   :  { %9013 = vmatpush.bf16.msrb.mxu3 %v11912_v41  ;;  %9239 = vmatmul.bf16.vlgmr.msrb.gmra.mxu2 %v19442_v37  ;;  %v16885_v41 = vld [vmem:[%s26306_s9 + $0xfd4] sm:$0xf]  ;;  %v16820_v59 = vld [vmem:[%s26306_s9 + $0xdcc] sm:$0xf]  ;;  %v16721_v9 = vld [vmem:[%s26306_s9 + $0xaac] sm:$0xf0] }
 0x3b6   :  { %9468 = vmatpush.bf16.msrb.mxu1 %v12688_v48  ;;  %9283 = vmatpush.bf16.msra.mxu2 %v13292_v42  ;;  %v13227_v48 = vld [vmem:[%s26306_s9 + $0xb50] sm:$0xf]  ;;  %v13541_v51 = vld [vmem:[%s26306_s9 + $0xde8] sm:$0xf0]  ;;  %v13741_v11 = vld [vmem:[%s26306_s9 + $0xf70] sm:$0xf0] }
 0x3b7   :  { %v13228_v13 = vor.u32 %v16745_v50, %v13227_v48  ;;  %v13195_v42 = vld [vmem:[%s26306_s9 + $0xb10] sm:$0xf]  ;;  %v13808_v50 = vor.u32 %v16885_v41, %v13805_v8 }
 0x3b8   :  { %9040 = vmatpush.bf16.msrb.mxu0 %v12392_v43  ;;  %v8759_v43 = vpop.f32.mrf.mxu3  ;;  %v13163_v48 = vld [vmem:[%s26306_s9 + $0xad0] sm:$0xf] }
 0x3b9   :  { %9014 = vmatpush.bf16.msrb.mxu3 %v11880_v32  ;;  %v8760_v3 = vadd.f32 %v8759_v43, %v8747_v61  ;;  %v16729_v32 = vld [vmem:[%s26306_s9 + $0xaec] sm:$0xf0]  ;;  %v13509_v61 = vld [vmem:[%s26306_s9 + $0xda8] sm:$0xf0] }
 0x3ba   :  { %9469 = vmatpush.bf16.msrb.mxu1 %v12656_v47  ;;  %9284 = vmatpush.bf16.msra.mxu2 %v13260_v16  ;;  %v16737_v47 = vld [vmem:[%s26306_s9 + $0xb2c] sm:$0xf0]  ;;  %v12328_v16 = vor.u32 %v16516_v39, %v12325_v6  ;;  %v16380_v39 = vld [vmem:[%s26306_s9 + $0xc] sm:$0xf] }
 0x3bb   :  { %v13196_v33 = vor.u32 %v16737_v47, %v13195_v42  ;;  %v8773_v19 = vadd.f32 %v21703_v28, %v8760_v3  ;;  %v16692_v6 = vld [vmem:[%s26306_s9 + $0x9cc] sm:$0xf]  ;;  %v13164_v47 = vor.u32 %v16729_v32, %v13163_v48  ;;  %v13132_v3 = vor.u32 %v16721_v9, %v13131_v57  ;;  %v16713_v32 = vld [vmem:[%s26306_s9 + $0xa6c] sm:$0xf0]  ;;  %v16853_v9 = vld [vmem:[%s26306_s9 + $0xed4] sm:$0xf] }
 0x3bc   :  { %9041 = vmatpush.bf16.msrb.mxu0 %v12360_v25  ;;  %v13773_v25 = vld [vmem:[%s26306_s9 + $0xfb0] sm:$0xf0]  ;;  %v13029_v28 = vld [vmem:[%s26306_s9 + $0x9e8] sm:$0xf0]  ;;  %v13744_v48 = vor.u32 %v16869_v52, %v13741_v11  ;;  %v14315_v57 = vld [vmem:[%s26306_s9 + $0x13d0] sm:$0xf] }
 0x3bd   :  { %9015 = vmatpush.bf16.msrb.mxu3 %v11848_v7  ;;  %v22714_v42 = vadd.f32 %v22611_v18, %v8773_v19  ;;  %v13544_v7 = vor.u32 %v16820_v59, %v13541_v51  ;;  %v13776_v46 = vor.u32 %v16877_v35, %v13773_v25  ;;  %v16812_v18 = vld [vmem:[%s26306_s9 + $0xd8c] sm:$0xf]  ;;  %v13032_v8 = vor.u32 %v16692_v6, %v13029_v28  ;;  %v16861_v51 = vld [vmem:[%s26306_s9 + $0xf14] sm:$0xf]  ;;  %v16705_v6 = vld [vmem:[%s26306_s9 + $0xa2c] sm:$0xf0] }
 0x3be   :  { %9470 = vmatpush.bf16.msrb.mxu1 %v12624_v17  ;;  %v16508_v17 = vld [vmem:[%s26306_s9 + $0x40c] sm:$0xf]  ;;  %9285 = vmatpush.bf16.msra.mxu2 %v13228_v13  ;;  %v13709_v35 = vld [vmem:[%s26306_s9 + $0xf30] sm:$0xf0] }
 0x3bf   :  { %v11781_v13 = vld [vmem:[%s26306_s9 + $0x28] sm:$0xf0]  ;;  %v13712_v28 = vor.u32 %v16861_v51, %v13709_v35 }
 0x3c0   :  { %9042 = vmatpush.bf16.msrb.mxu0 %v12328_v16  ;;  %v11784_v41 = vor.u32 %v16380_v39, %v11781_v13  ;;  %v8761_v43 = vpop.f32.mrf.mxu3  ;;  %v16684_v16 = vld [vmem:[%s26306_s9 + $0x98c] sm:$0xf] }
 0x3c1   :  { %9016 = vmatpush.bf16.msrb.mxu3 %v11816_v31  ;;  %v13477_v31 = vld [vmem:[%s26306_s9 + $0xd68] sm:$0xf0] }
 0x3c2   :  { %9471 = vmatpush.bf16.msrb.mxu1 %v12592_v24  ;;  %v12296_v24 = vor.u32 %v16508_v17, %v12293_v38  ;;  %9286 = vmatpush.bf16.msra.mxu2 %v13196_v33  ;;  %v12997_v17 = vld [vmem:[%s26306_s9 + $0x9a8] sm:$0xf0]  ;;  %v13512_v33 = vor.u32 %v16812_v18, %v13509_v61  ;;  %v22744_v38 = vpop.f32.mrf.mxu2  ;;  %v13677_v18 = vld [vmem:[%s26306_s9 + $0xef0] sm:$0xf0] }
 0x3c3   :  { %v13000_v59 = vor.u32 %v16684_v16, %v12997_v17  ;;  %v16676_v19 = vld [vmem:[%s26306_s9 + $0x94c] sm:$0xf] }
 0x3c4   :  { %9043 = vmatpush.bf16.msrb.mxu0 %v12296_v24  ;;  %v12965_v25 = vld [vmem:[%s26306_s9 + $0x968] sm:$0xf0]  ;;  %v13067_v24 = vld [vmem:[%s26306_s9 + $0xa10] sm:$0xf] }
 0x3c5   :  { %9017 = vmatpush.bf16.msrb.mxu3 %v11784_v41  ;;  %v17017_v41 = vld [vmem:[%s26306_s9 + $0x13ec] sm:$0xf0]  ;;  %v16668_v61 = vld [vmem:[%s26306_s9 + $0x90c] sm:$0xf]  ;;  %v13068_v11 = vor.u32 %v16705_v6, %v13067_v24  ;;  %v22819_v51 = vpop.f32.mrf.mxu0 }
 0x3c6   :  { %9472 = vmatpush.bf16.msrb.mxu1 %v12560_v27  ;;  %9287 = vmatpush.bf16.msra.mxu2 %v13164_v47  ;;  %v13099_v27 = vld [vmem:[%s26306_s9 + $0xa50] sm:$0xf]  ;;  %v16796_v47 = vld [vmem:[%s26306_s9 + $0xd0c] sm:$0xf]  ;;  %v22799_v52 = vpop.f32.mrf.mxu1  ;;  %v14316_v17 = vor.u32 %v17017_v41, %v14315_v57  ;;  %v16837_v57 = vld [vmem:[%s26306_s9 + $0xe54] sm:$0xf] }
 0x3c7   :  { %9044 = vmatmul.bf16.vlgmr.msrb.gmra.mxu0 %v19906_v2  ;;  %v13100_v39 = vor.u32 %v16713_v32, %v13099_v27  ;;  %v13413_v27 = vld [vmem:[%s26306_s9 + $0xce8] sm:$0xf0] }
 0x3c8   :  { %9088 = vmatpush.bf16.msra.mxu0 %v13544_v7  ;;  %9018 = vmatmul.bf16.vlgmr.msrb.gmra.mxu3 %v20305_v20  ;;  %v13445_v7 = vld [vmem:[%s26306_s9 + $0xd28] sm:$0xf0] }
 0x3c9   :  { %9473 = vmatmul.bf16.vlgmr.msrb.gmra.mxu1 %v18896_v22  ;;  %9062 = vmatpush.bf16.msra.mxu3 %v13032_v8  ;;  %v12933_v8 = vld [vmem:[%s26306_s9 + $0x928] sm:$0xf0]  ;;  %v13448_v43 = vor.u32 %v16796_v47, %v13445_v7  ;;  %v17001_v7 = vld [vmem:[%s26306_s9 + $0x136c] sm:$0xf0] }
 0x3ca   :  { %9517 = vmatpush.bf16.msra.mxu1 %v13808_v50  ;;  %v16804_v50 = vld [vmem:[%s26306_s9 + $0xd4c] sm:$0xf]  ;;  %9288 = vmatpush.bf16.msra.mxu2 %v13132_v3  ;;  %v9034_v16 = vpop.f32.mrf.mxu2  ;;  %v13680_v3 = vor.u32 %v16853_v9, %v13677_v18  ;;  %v12936_v32 = vor.u32 %v16668_v61, %v12933_v8  ;;  %v17474_v61 = vld [vmem:[%s26309_s10] sm:$0xff] }
 0x3cb   :  { %v13480_v13 = vor.u32 %v16804_v50, %v13477_v31  ;;  %v17009_v50 = vld [vmem:[%s26306_s9 + $0x13ac] sm:$0xf0]  ;;  %v16845_v31 = vld [vmem:[%s26306_s9 + $0xe94] sm:$0xf]  ;;  %v16660_v35 = vld [vmem:[%s26306_s9 + $0x8cc] sm:$0xf] }
 0x3cc   :  { %9089 = vmatpush.bf16.msra.mxu0 %v13512_v33  ;;  %v16788_v33 = vld [vmem:[%s26306_s9 + $0xccc] sm:$0xf]  ;;  %v3252_v8 = vperm.slane %v17474_v61, 2 }
 0x3cd   :  { %9063 = vmatpush.bf16.msra.mxu3 %v13000_v59  ;;  %v13645_v59 = vld [vmem:[%s26306_s9 + $0xeb0] sm:$0xf0]  ;;  %v16780_v24 = vld [vmem:[%s26306_s9 + $0xc8c] sm:$0xf] }
 0x3ce   :  { %9518 = vmatpush.bf16.msra.mxu1 %v13776_v46  ;;  %v12968_v46 = vor.u32 %v16676_v19, %v12965_v25  ;;  %9289 = vmatpush.bf16.msra.mxu2 %v13100_v39  ;;  %v12901_v19 = vld [vmem:[%s26306_s9 + $0x8e8] sm:$0xf0]  ;;  %v13416_v25 = vor.u32 %v16788_v33, %v13413_v27  ;;  %v9268_v18 = vpop.f32.mrf.mxu1  ;;  %v14219_v33 = vld [vmem:[%s26306_s9 + $0x1310] sm:$0xf] }
 0x3cf   :  { %v13381_v6 = vld [vmem:[%s26306_s9 + $0xca8] sm:$0xf0]  ;;  %v12904_v47 = vor.u32 %v16660_v35, %v12901_v19  ;;  %v16993_v27 = vld [vmem:[%s26306_s9 + $0x132c] sm:$0xf0]  ;;  %v14829_v35 = vld [vmem:[%s26306_s9 + $0x17f0] sm:$0xf0] }
 0x3d0   :  { %9090 = vmatpush.bf16.msra.mxu0 %v13480_v13  ;;  %v13648_v13 = vor.u32 %v16845_v31, %v13645_v59  ;;  %v16652_v41 = vld [vmem:[%s26306_s9 + $0x88c] sm:$0xf]  ;;  %v17141_v31 = vld [vmem:[%s26306_s9 + $0x17d4] sm:$0xf]  ;;  %v8839_v59 = vpop.f32.mrf.mxu0 }
 0x3d1   :  { %9064 = vmatpush.bf16.msra.mxu3 %v12968_v46  ;;  %v13613_v46 = vld [vmem:[%s26306_s9 + $0xe70] sm:$0xf0]  ;;  %v12869_v9 = vld [vmem:[%s26306_s9 + $0x8a8] sm:$0xf0] }
 0x3d2   :  { %9519 = vmatpush.bf16.msra.mxu1 %v13744_v48  ;;  %v14283_v48 = vld [vmem:[%s26306_s9 + $0x1390] sm:$0xf]  ;;  %9290 = vmatpush.bf16.msra.mxu2 %v13068_v11  ;;  %v13384_v11 = vor.u32 %v16780_v24, %v13381_v6  ;;  %v16644_v19 = vld [vmem:[%s26306_s9 + $0x84c] sm:$0xf] }
 0x3d3   :  { %v14284_v39 = vor.u32 %v17009_v50, %v14283_v48  ;;  %v12872_v48 = vor.u32 %v16652_v41, %v12869_v9  ;;  %v13581_v50 = vld [vmem:[%s26306_s9 + $0xe30] sm:$0xf0]  ;;  %v16764_v24 = vld [vmem:[%s26306_s9 + $0xc0c] sm:$0xf]  ;;  %v14832_v41 = vor.u32 %v17141_v31, %v14829_v35  ;;  %v16977_v35 = vld [vmem:[%s26306_s9 + $0x12ac] sm:$0xf0] }
 0x3d4   :  { %9091 = vmatpush.bf16.msra.mxu0 %v13448_v43  ;;  %v16772_v43 = vld [vmem:[%s26306_s9 + $0xc4c] sm:$0xf] }
 0x3d5   :  { %9065 = vmatpush.bf16.msra.mxu3 %v12936_v32  ;;  %9291 = vmatmul.bf16.vlgmr.msra.gmra.mxu2 %v19597_v1  ;;  %v16829_v32 = vld [vmem:[%s26306_s9 + $0xe14] sm:$0xf]  ;;  %v17076_v18 = vld [vmem:[%s26306_s9 + $0x15cc] sm:$0xf] }
 0x3d6   :  { %9520 = vmatpush.bf16.msra.mxu1 %v13712_v28  ;;  %9335 = vmatpush.bf16.msrb.mxu2 %v14316_v17  ;;  %v14251_v28 = vld [vmem:[%s26306_s9 + $0x1350] sm:$0xf]  ;;  %v13616_v17 = vor.u32 %v16837_v57, %v13613_v46  ;;  %v14565_v61 = vld [vmem:[%s26306_s9 + $0x15e8] sm:$0xf0] }
 0x3d7   :  { %v14252_v16 = vor.u32 %v17001_v7, %v14251_v28  ;;  %v14220_v28 = vor.u32 %v16993_v27, %v14219_v33  ;;  %v13317_v7 = vld [vmem:[%s26306_s9 + $0xc28] sm:$0xf0]  ;;  %v14187_v57 = vld [vmem:[%s26306_s9 + $0x12d0] sm:$0xf] }
 0x3d8   :  { %9092 = vmatpush.bf16.msra.mxu0 %v13416_v25  ;;  %v12837_v25 = vld [vmem:[%s26306_s9 + $0x868] sm:$0xf0]  ;;  %v16985_v46 = vld [vmem:[%s26306_s9 + $0x12ec] sm:$0xf0] }
 0x3d9   :  { %9066 = vmatpush.bf16.msra.mxu3 %v12904_v47  ;;  %v13584_v47 = vor.u32 %v16829_v32, %v13581_v50  ;;  %v12840_v9 = vor.u32 %v16644_v19, %v12837_v25  ;;  %v16948_v33 = vld [vmem:[%s26306_s9 + $0x11cc] sm:$0xf]  ;;  %v14188_v27 = vor.u32 %v16985_v46, %v14187_v57  ;;  %v14155_v32 = vld [vmem:[%s26306_s9 + $0x1290] sm:$0xf]  ;;  %v22953_v46 = vpop.f32.mrf.mxu2 }
 0x3da   :  { %9521 = vmatpush.bf16.msra.mxu1 %v13680_v3  ;;  %9336 = vmatpush.bf16.msrb.mxu2 %v14284_v39  ;;  %v13349_v3 = vld [vmem:[%s26306_s9 + $0xc68] sm:$0xf0]  ;;  %v8811_v39 = vpop.f32.mrf.mxu3  ;;  %v14123_v57 = vld [vmem:[%s26306_s9 + $0x1250] sm:$0xf] }
 0x3db   :  { %v8812_v6 = vadd.f32 %v8811_v39, %v3252_v8  ;;  %v17133_v8 = vld [vmem:[%s26306_s9 + $0x1794] sm:$0xf]  ;;  %v17068_v19 = vld [vmem:[%s26306_s9 + $0x158c] sm:$0xf] }
 0x3dc   :  { %9093 = vmatpush.bf16.msra.mxu0 %v13384_v11  ;;  %v14533_v25 = vld [vmem:[%s26306_s9 + $0x15a8] sm:$0xf0] }
 0x3dd   :  { %9067 = vmatpush.bf16.msra.mxu3 %v12872_v48  ;;  %v8825_v11 = vadd.f32 %v21901_v5, %v8812_v6  ;;  %v14053_v5 = vld [vmem:[%s26306_s9 + $0x11e8] sm:$0xf0]  ;;  %v14568_v48 = vor.u32 %v17076_v18, %v14565_v61 }
 0x3de   :  { %9522 = vmatpush.bf16.msra.mxu1 %v13648_v13  ;;  %v13352_v13 = vor.u32 %v16772_v43, %v13349_v3  ;;  %9337 = vmatpush.bf16.msrb.mxu2 %v14252_v16  ;;  %v14797_v43 = vld [vmem:[%s26306_s9 + $0x17b0] sm:$0xf0]  ;;  %v16636_v16 = vld [vmem:[%s26306_s9 + $0x80c] sm:$0xf]  ;;  %v13320_v3 = vor.u32 %v16764_v24, %v13317_v7  ;;  %v14056_v39 = vor.u32 %v16948_v33, %v14053_v5  ;;  %v14091_v5 = vld [vmem:[%s26306_s9 + $0x1210] sm:$0xf] }
 0x3df   :  { %v22926_v50 = vadd.f32 %v22819_v51, %v8825_v11  ;;  %v14800_v31 = vor.u32 %v17133_v8, %v14797_v43  ;;  %v17125_v51 = vld [vmem:[%s26306_s9 + $0x1754] sm:$0xf]  ;;  %v16940_v6 = vld [vmem:[%s26306_s9 + $0x118c] sm:$0xf]  ;;  %v14536_v7 = vor.u32 %v17068_v19, %v14533_v25  ;;  %v17273_v19 = vld [vmem:[%s26306_s9 + $0x1bec] sm:$0xf0] }
 0x3e0   :  { %9094 = vmatpush.bf16.msra.mxu0 %v13352_v13  ;;  %v14765_v13 = vld [vmem:[%s26306_s9 + $0x1770] sm:$0xf0]  ;;  %v17060_v18 = vld [vmem:[%s26306_s9 + $0x154c] sm:$0xf] }
 0x3e1   :  { %9068 = vmatpush.bf16.msra.mxu3 %v12840_v9  ;;  %v16969_v9 = vld [vmem:[%s26306_s9 + $0x126c] sm:$0xf0]  ;;  %v14501_v61 = vld [vmem:[%s26306_s9 + $0x1568] sm:$0xf0]  ;;  %v17117_v11 = vld [vmem:[%s26306_s9 + $0x1714] sm:$0xf] }
 0x3e2   :  { %9523 = vmatpush.bf16.msra.mxu1 %v13616_v17  ;;  %v12805_v17 = vld [vmem:[%s26306_s9 + $0x828] sm:$0xf0]  ;;  %9338 = vmatpush.bf16.msrb.mxu2 %v14220_v28  ;;  %v8813_v24 = vpop.f32.mrf.mxu3  ;;  %v14733_v43 = vld [vmem:[%s26306_s9 + $0x1730] sm:$0xf0]  ;;  %v14504_v33 = vor.u32 %v17060_v18, %v14501_v61  ;;  %v15307_v18 = vld [vmem:[%s26306_s9 + $0x1b90] sm:$0xf] }
 0x3e3   :  { %v12808_v59 = vor.u32 %v16636_v16, %v12805_v17  ;;  %v14021_v28 = vld [vmem:[%s26306_s9 + $0x11a8] sm:$0xf0]  ;;  %v17109_v25 = vld [vmem:[%s26306_s9 + $0x16d4] sm:$0xf] }
 0x3e4   :  { %9095 = vmatpush.bf16.msra.mxu0 %v13320_v3  ;;  %v14024_v8 = vor.u32 %v16940_v6, %v14021_v28  ;;  %v16932_v16 = vld [vmem:[%s26306_s9 + $0x114c] sm:$0xf]  ;;  %v14124_v3 = vor.u32 %v16969_v9, %v14123_v57 }
 0x3e5   :  { %9069 = vmatpush.bf16.msra.mxu3 %v12808_v59  ;;  %v13989_v17 = vld [vmem:[%s26306_s9 + $0x1168] sm:$0xf0]  ;;  %v15339_v59 = vld [vmem:[%s26306_s9 + $0x1bd0] sm:$0xf] }
 0x3e6   :  { %9524 = vmatpush.bf16.msra.mxu1 %v13584_v47  ;;  %9339 = vmatpush.bf16.msrb.mxu2 %v14188_v27  ;;  %v14156_v47 = vor.u32 %v16977_v35, %v14155_v32  ;;  %v16961_v27 = vld [vmem:[%s26306_s9 + $0x122c] sm:$0xf0]  ;;  %v17052_v32 = vld [vmem:[%s26306_s9 + $0x150c] sm:$0xf]  ;;  %v13992_v35 = vor.u32 %v16932_v16, %v13989_v17  ;;  %v23008_v24 = vpop.f32.mrf.mxu1  ;;  %v23028_v16 = vpop.f32.mrf.mxu0 }
 0x3e7   :  { %9096 = vmatmul.bf16.vlgmr.msra.gmra.mxu0 %v20278_v30  ;;  %v14092_v6 = vor.u32 %v16961_v27, %v14091_v5  ;;  %v14437_v9 = vld [vmem:[%s26306_s9 + $0x14e8] sm:$0xf0] }
 0x3e8   :  { %9140 = vmatpush.bf16.msrb.mxu0 %v14568_v48  ;;  %9070 = vmatmul.bf16.vlgmr.msra.gmra.mxu3 %v20518_v49  ;;  %v14736_v48 = vor.u32 %v17117_v11, %v14733_v43  ;;  %v17101_v11 = vld [vmem:[%s26306_s9 + $0x1694] sm:$0xf]  ;;  %v16916_v17 = vld [vmem:[%s26306_s9 + $0x10cc] sm:$0xf] }
 0x3e9   :  { %9525 = vmatmul.bf16.vlgmr.msra.gmra.mxu1 %v19050_v53  ;;  %9114 = vmatpush.bf16.msrb.mxu3 %v14056_v39  ;;  %v14701_v39 = vld [vmem:[%s26306_s9 + $0x16f0] sm:$0xf0] }
 0x3ea   :  { %9569 = vmatpush.bf16.msrb.mxu1 %v14832_v41  ;;  %v14768_v41 = vor.u32 %v17125_v51, %v14765_v13  ;;  %9340 = vmatpush.bf16.msrb.mxu2 %v14156_v47  ;;  %v16924_v51 = vld [vmem:[%s26306_s9 + $0x110c] sm:$0xf]  ;;  %v9086_v47 = vpop.f32.mrf.mxu2  ;;  %v14704_v57 = vor.u32 %v17109_v25, %v14701_v39  ;;  %v14669_v43 = vld [vmem:[%s26306_s9 + $0x16b0] sm:$0xf0] }
 0x3eb   :  { %v13957_v13 = vld [vmem:[%s26306_s9 + $0x1128] sm:$0xf0]  ;;  %v14672_v27 = vor.u32 %v17101_v11, %v14669_v43  ;;  %v14637_v25 = vld [vmem:[%s26306_s9 + $0x1670] sm:$0xf0] }
 0x3ec   :  { %9141 = vmatpush.bf16.msrb.mxu0 %v14536_v7  ;;  %v15340_v7 = vor.u32 %v17273_v19, %v15339_v59  ;;  %v13960_v61 = vor.u32 %v16924_v51, %v13957_v13  ;;  %v17093_v19 = vld [vmem:[%s26306_s9 + $0x1654] sm:$0xf]  ;;  %v16908_v39 = vld [vmem:[%s26306_s9 + $0x108c] sm:$0xf] }
 0x3ed   :  { %9115 = vmatpush.bf16.msrb.mxu3 %v14024_v8  ;;  %v17265_v8 = vld [vmem:[%s26306_s9 + $0x1bac] sm:$0xf0]  ;;  %v13893_v51 = vld [vmem:[%s26306_s9 + $0x10a8] sm:$0xf0]  ;;  %v17397_v11 = vld [vmem:[%s26306_s9 + $0x1fd4] sm:$0xf] }
 0x3ee   :  { %9570 = vmatpush.bf16.msrb.mxu1 %v14800_v31  ;;  %v14469_v31 = vld [vmem:[%s26306_s9 + $0x1528] sm:$0xf0]  ;;  %9341 = vmatpush.bf16.msrb.mxu2 %v14124_v3  ;;  %v15308_v5 = vor.u32 %v17265_v8, %v15307_v18  ;;  %v9320_v13 = vpop.f32.mrf.mxu1  ;;  %v13896_v18 = vor.u32 %v16908_v39, %v13893_v51  ;;  %v14605_v8 = vld [vmem:[%s26306_s9 + $0x1630] sm:$0xf0]  ;;  %v8891_v43 = vpop.f32.mrf.mxu0 }
 0x3ef   :  { %v14472_v28 = vor.u32 %v17052_v32, %v14469_v31  ;;  %v13925_v3 = vld [vmem:[%s26306_s9 + $0x10e8] sm:$0xf0]  ;;  %v15275_v31 = vld [vmem:[%s26306_s9 + $0x1b50] sm:$0xf] }
 0x3f0   :  { %9142 = vmatpush.bf16.msrb.mxu0 %v14504_v33  ;;  %v14405_v32 = vld [vmem:[%s26306_s9 + $0x14a8] sm:$0xf0]  ;;  %v13928_v59 = vor.u32 %v16916_v17, %v13925_v3  ;;  %v8851_v17 = vadd.f32 %v21131_v23, %v22926_v50  ;;  %v15853_v3 = vld [vmem:[%s26306_s9 + $0x1ff0] sm:$0xf0] }
 0x3f1   :  { %9116 = vmatpush.bf16.msrb.mxu3 %v13992_v35  ;;  %v17257_v35 = vld [vmem:[%s26306_s9 + $0x1b6c] sm:$0xf0]  ;;  %v17332_v51 = vld [vmem:[%s26306_s9 + $0x1dcc] sm:$0xf] }
 0x3f2   :  { %9571 = vmatpush.bf16.msrb.mxu1 %v14768_v41  ;;  %v17044_v41 = vld [vmem:[%s26306_s9 + $0x14cc] sm:$0xf]  ;;  %9342 = vmatpush.bf16.msrb.mxu2 %v14092_v6  ;;  %v15276_v47 = vor.u32 %v17257_v35, %v15275_v31  ;;  %v15211_v35 = vld [vmem:[%s26306_s9 + $0x1ad0] sm:$0xf] }
 0x3f3   :  { %v14440_v33 = vor.u32 %v17044_v41, %v14437_v9  ;;  %v15243_v41 = vld [vmem:[%s26306_s9 + $0x1b10] sm:$0xf]  ;;  %v15589_v13 = vld [vmem:[%s26306_s9 + $0x1de8] sm:$0xf0] }
 0x3f4   :  { %9143 = vmatpush.bf16.msrb.mxu0 %v14472_v28  ;;  %v17028_v28 = vld [vmem:[%s26306_s9 + $0x144c] sm:$0xf]  ;;  %v17249_v9 = vld [vmem:[%s26306_s9 + $0x1b2c] sm:$0xf0] }
 0x3f5   :  { %9117 = vmatpush.bf16.msrb.mxu3 %v13960_v61  ;;  %9343 = vmatmul.bf16.vlgmr.msrb.gmra.mxu2 %v19809_v0  ;;  %v17085_v61 = vld [vmem:[%s26306_s9 + $0x1614] sm:$0xf]  ;;  %v15244_v50 = vor.u32 %v17249_v9, %v15243_v41  ;;  %v17204_v9 = vld [vmem:[%s26306_s9 + $0x19cc] sm:$0xf] }
 0x3f6   :  { %9572 = vmatpush.bf16.msrb.mxu1 %v14736_v48  ;;  %9387 = vmatpush.bf16.msra.mxu2 %v15340_v7  ;;  %v17036_v48 = vld [vmem:[%s26306_s9 + $0x148c] sm:$0xf]  ;;  %v14640_v7 = vor.u32 %v17093_v19, %v14637_v25  ;;  %v14608_v31 = vor.u32 %v17085_v61, %v14605_v8  ;;  %v17241_v19 = vld [vmem:[%s26306_s9 + $0x1aec] sm:$0xf0]  ;;  %v15856_v25 = vor.u32 %v17397_v11, %v15853_v3 }
 0x3f7   :  { %v14408_v6 = vor.u32 %v17036_v48, %v14405_v32  ;;  %v17020_v32 = vld [vmem:[%s26306_s9 + $0x140c] sm:$0xf]  ;;  %v15592_v61 = vor.u32 %v17332_v51, %v15589_v13  ;;  %v15179_v8 = vld [vmem:[%s26306_s9 + $0x1a90] sm:$0xf] }
 0x3f8   :  { %9144 = vmatpush.bf16.msrb.mxu0 %v14440_v33  ;;  %v16900_v33 = vld [vmem:[%s26306_s9 + $0x104c] sm:$0xf]  ;;  %v17233_v3 = vld [vmem:[%s26306_s9 + $0x1aac] sm:$0xf0] }
 0x3f9   :  { %9118 = vmatpush.bf16.msrb.mxu3 %v13928_v59  ;;  %v14341_v59 = vld [vmem:[%s26306_s9 + $0x1428] sm:$0xf0] }
 0x3fa   :  { %9573 = vmatpush.bf16.msrb.mxu1 %v14704_v57  ;;  %9388 = vmatpush.bf16.msra.mxu2 %v15308_v5  ;;  %v14373_v57 = vld [vmem:[%s26306_s9 + $0x1468] sm:$0xf0]  ;;  %v14344_v41 = vor.u32 %v17020_v32, %v14341_v59 }
 0x3fb   :  { %v13861_v5 = vld [vmem:[%s26306_s9 + $0x1068] sm:$0xf0]  ;;  %v14376_v48 = vor.u32 %v17028_v28, %v14373_v57 }
 0x3fc   :  { %9145 = vmatpush.bf16.msrb.mxu0 %v14408_v6  ;;  %v13864_v39 = vor.u32 %v16900_v33, %v13861_v5  ;;  %v17389_v6 = vld [vmem:[%s26306_s9 + $0x1f94] sm:$0xf]  ;;  %v13829_v57 = vld [vmem:[%s26306_s9 + $0x1028] sm:$0xf0] }
 0x3fd   :  { %9119 = vmatpush.bf16.msrb.mxu3 %v13896_v18  ;;  %v15212_v18 = vor.u32 %v17241_v19, %v15211_v35  ;;  %v17324_v33 = vld [vmem:[%s26306_s9 + $0x1d8c] sm:$0xf]  ;;  %v15147_v35 = vld [vmem:[%s26306_s9 + $0x1a50] sm:$0xf]  ;;  %v23161_v19 = vpop.f32.mrf.mxu2 }
 0x3fe   :  { %9574 = vmatpush.bf16.msrb.mxu1 %v14672_v27  ;;  %v8863_v27 = vpop.f32.mrf.mxu3  ;;  %9389 = vmatpush.bf16.msra.mxu2 %v15276_v47  ;;  %v15821_v47 = vld [vmem:[%s26306_s9 + $0x1fb0] sm:$0xf0]  ;;  %v15557_v5 = vld [vmem:[%s26306_s9 + $0x1da8] sm:$0xf0] }
 0x3ff   :  { %v8864_v23 = vadd.f32 %v8863_v27, %v8851_v17  ;;  %v15824_v43 = vor.u32 %v17389_v6, %v15821_v47  ;;  %v15560_v59 = vor.u32 %v17324_v33, %v15557_v5  ;;  %v17316_v51 = vld [vmem:[%s26306_s9 + $0x1d4c] sm:$0xf]  ;;  %v15757_v47 = vld [vmem:[%s26306_s9 + $0x1f30] sm:$0xf0] }
 0x400   :  { %9146 = vmatpush.bf16.msrb.mxu0 %v14376_v48  ;;  %v15789_v48 = vld [vmem:[%s26306_s9 + $0x1f70] sm:$0xf0]  ;;  %v15525_v13 = vld [vmem:[%s26306_s9 + $0x1d68] sm:$0xf0] }
 0x401   :  { %v8877_v28 = vadd.f32 %v22111_v54, %v8864_v23  ;;  %v15077_v54 = vld [vmem:[%s26306_s9 + $0x19e8] sm:$0xf0]  ;;  %9120 = vmatpush.bf16.msrb.mxu3 %v13864_v39  ;;  %v17225_v39 = vld [vmem:[%s26306_s9 + $0x1a6c] sm:$0xf0]  ;;  %v12269_v33 = vld [vmem:[%s26306_s9 + $0x3f0] sm:$0xf0] }
 0x402   :  { %9575 = vmatpush.bf16.msrb.mxu1 %v14640_v7  ;;  %v16892_v7 = vld [vmem:[%s26306_s9 + $0x100c] sm:$0xf]  ;;  %9390 = vmatpush.bf16.msra.mxu2 %v15244_v50  ;;  %v15080_v27 = vor.u32 %v17204_v9, %v15077_v54  ;;  %v15528_v9 = vor.u32 %v17316_v51, %v15525_v13  ;;  %v15115_v54 = vld [vmem:[%s26306_s9 + $0x1a10] sm:$0xf]  ;;  %v17365_v5 = vld [vmem:[%s26306_s9 + $0x1ed4] sm:$0xf] }
 0x403   :  { %v23134_v11 = vadd.f32 %v23028_v16, %v8877_v28  ;;  %v13832_v17 = vor.u32 %v16892_v7, %v13829_v57  ;;  %v17381_v16 = vld [vmem:[%s26306_s9 + $0x1f54] sm:$0xf]  ;;  %v17196_v23 = vld [vmem:[%s26306_s9 + $0x198c] sm:$0xf] }
 0x404   :  { %9147 = vmatpush.bf16.msrb.mxu0 %v14344_v41  ;;  %v15045_v50 = vld [vmem:[%s26306_s9 + $0x19a8] sm:$0xf0]  ;;  %v17373_v28 = vld [vmem:[%s26306_s9 + $0x1f14] sm:$0xf]  ;;  %v15148_v41 = vor.u32 %v17225_v39, %v15147_v35 }
 0x405   :  { %9121 = vmatpush.bf16.msrb.mxu3 %v13832_v17  ;;  %v15048_v6 = vor.u32 %v17196_v23, %v15045_v50  ;;  %v17188_v7 = vld [vmem:[%s26306_s9 + $0x194c] sm:$0xf]  ;;  %v16501_v17 = vld [vmem:[%s26306_s9 + $0x3d4] sm:$0xf] }
 0x406   :  { %9576 = vmatpush.bf16.msrb.mxu1 %v14608_v31  ;;  %v8865_v32 = vpop.f32.mrf.mxu3  ;;  %9391 = vmatpush.bf16.msra.mxu2 %v15212_v18  ;;  %v15180_v31 = vor.u32 %v17233_v3, %v15179_v8  ;;  %v15013_v57 = vld [vmem:[%s26306_s9 + $0x1968] sm:$0xf0]  ;;  %v17217_v18 = vld [vmem:[%s26306_s9 + $0x1a2c] sm:$0xf0]  ;;  %v16493_v51 = vld [vmem:[%s26306_s9 + $0x394] sm:$0xf] }
 0x407   :  { %9148 = vmatmul.bf16.vlgmr.msrb.gmra.mxu0 %v20701_v15  ;;  %v17308_v8 = vld [vmem:[%s26306_s9 + $0x1d0c] sm:$0xf]  ;;  %v15016_v3 = vor.u32 %v17188_v7, %v15013_v57  ;;  %v23216_v32 = vpop.f32.mrf.mxu1  ;;  %v15116_v23 = vor.u32 %v17217_v18, %v15115_v54  ;;  %v23236_v7 = vpop.f32.mrf.mxu0 }
 0x408   :  { %9192 = vmatpush.bf16.msra.mxu0 %v15592_v61  ;;  %9122 = vmatmul.bf16.vlgmr.msrb.gmra.mxu3 %v20734_v36  ;;  %v15760_v61 = vor.u32 %v17373_v28, %v15757_v47  ;;  %v15461_v39 = vld [vmem:[%s26306_s9 + $0x1ce8] sm:$0xf0]  ;;  %v17357_v28 = vld [vmem:[%s26306_s9 + $0x1e94] sm:$0xf] }
 0x409   :  { %9577 = vmatmul.bf16.vlgmr.msrb.gmra.mxu1 %v19203_v21  ;;  %9166 = vmatpush.bf16.msra.mxu3 %v15080_v27  ;;  %v15725_v27 = vld [vmem:[%s26306_s9 + $0x1ef0] sm:$0xf0]  ;;  %v17172_v57 = vld [vmem:[%s26306_s9 + $0x18cc] sm:$0xf] }
 0x40a   :  { %9621 = vmatpush.bf16.msra.mxu1 %v15856_v25  ;;  %v15792_v25 = vor.u32 %v17381_v16, %v15789_v48  ;;  %9392 = vmatpush.bf16.msra.mxu2 %v15180_v31  ;;  %v17180_v16 = vld [vmem:[%s26306_s9 + $0x190c] sm:$0xf]  ;;  %v9138_v31 = vpop.f32.mrf.mxu2  ;;  %v15728_v35 = vor.u32 %v17365_v5, %v15725_v27  ;;  %v15693_v47 = vld [vmem:[%s26306_s9 + $0x1eb0] sm:$0xf0] }
 0x40b   :  { %v14981_v48 = vld [vmem:[%s26306_s9 + $0x1928] sm:$0xf0]  ;;  %v15696_v18 = vor.u32 %v17357_v28, %v15693_v47  ;;  %v15661_v5 = vld [vmem:[%s26306_s9 + $0x1e70] sm:$0xf0]  ;;  %v12787_v28 = vld [vmem:[%s26306_s9 + $0x7d8] sm:$0xf] }
 0x40c   :  { %9193 = vmatpush.bf16.msra.mxu0 %v15560_v59  ;;  %v12272_v59 = vor.u32 %v16501_v17, %v12269_v33  ;;  %v14984_v13 = vor.u32 %v17180_v16, %v14981_v48  ;;  %v17349_v33 = vld [vmem:[%s26306_s9 + $0x1e54] sm:$0xf]  ;;  %v17164_v27 = vld [vmem:[%s26306_s9 + $0x188c] sm:$0xf] }
 0x40d   :  { %9167 = vmatpush.bf16.msra.mxu3 %v15048_v6  ;;  %v12237_v6 = vld [vmem:[%s26306_s9 + $0x3b0] sm:$0xf0]  ;;  %v14917_v16 = vld [vmem:[%s26306_s9 + $0x18a8] sm:$0xf0] }
 0x40e   :  { %9622 = vmatpush.bf16.msra.mxu1 %v15824_v43  ;;  %v15493_v43 = vld [vmem:[%s26306_s9 + $0x1d28] sm:$0xf0]  ;;  %9393 = vmatpush.bf16.msra.mxu2 %v15148_v41  ;;  %v12240_v54 = vor.u32 %v16493_v51, %v12237_v6  ;;  %v14920_v51 = vor.u32 %v17164_v27, %v14917_v16  ;;  %v15629_v6 = vld [vmem:[%s26306_s9 + $0x1e30] sm:$0xf0]  ;;  %v12523_v16 = vld [vmem:[%s26306_s9 + $0x5d0] sm:$0xf] }
 0x40f   :  { %v15496_v50 = vor.u32 %v17308_v8, %v15493_v43  ;;  %v14949_v41 = vld [vmem:[%s26306_s9 + $0x18e8] sm:$0xf0]  ;;  %v16485_v43 = vld [vmem:[%s26306_s9 + $0x354] sm:$0xf]  ;;  %v9372_v48 = vpop.f32.mrf.mxu1  ;;  %v8943_v47 = vpop.f32.mrf.mxu0 }
 0x410   :  { %9194 = vmatpush.bf16.msra.mxu0 %v15528_v9  ;;  %v15429_v8 = vld [vmem:[%s26306_s9 + $0x1ca8] sm:$0xf0]  ;;  %v14952_v17 = vor.u32 %v17172_v57, %v14949_v41  ;;  %v8903_v57 = vadd.f32 %v21334_v34, %v23134_v11  ;;  %v16634_v41 = vld [vmem:[%s26306_s9 + $0x7f4] sm:$0xf0]  ;;  %v16569_v48 = vld [vmem:[%s26306_s9 + $0x5ec] sm:$0xf0] }
 0x411   :  { %9168 = vmatpush.bf16.msra.mxu3 %v15016_v3  ;;  %v12205_v3 = vld [vmem:[%s26306_s9 + $0x370] sm:$0xf0] }
 0x412   :  { %9623 = vmatpush.bf16.msra.mxu1 %v15792_v25  ;;  %v17300_v25 = vld [vmem:[%s26306_s9 + $0x1ccc] sm:$0xf]  ;;  %9394 = vmatpush.bf16.msra.mxu2 %v15116_v23  ;;  %v12208_v31 = vor.u32 %v16485_v43, %v12205_v3  ;;  %v16469_v3 = vld [vmem:[%s26306_s9 + $0x2d4] sm:$0xf] }
 0x413   :  { %v15464_v9 = vor.u32 %v17300_v25, %v15461_v39  ;;  %v16477_v25 = vld [vmem:[%s26306_s9 + $0x314] sm:$0xf] }
 0x414   :  { %9195 = vmatpush.bf16.msra.mxu0 %v15496_v50  ;;  %v17284_v50 = vld [vmem:[%s26306_s9 + $0x1c4c] sm:$0xf]  ;;  %v12173_v39 = vld [vmem:[%s26306_s9 + $0x330] sm:$0xf0] }
 0x415   :  { %9169 = vmatpush.bf16.msra.mxu3 %v14984_v13  ;;  %9395 = vmatmul.bf16.vlgmr.msra.gmra.mxu2 %v19972_v40  ;;  %v17341_v13 = vld [vmem:[%s26306_s9 + $0x1e14] sm:$0xf]  ;;  %v12176_v11 = vor.u32 %v16477_v25, %v12173_v39  ;;  %v12011_v39 = vld [vmem:[%s26306_s9 + $0x1d0] sm:$0xf] }
 0x416   :  { %9624 = vmatpush.bf16.msra.mxu1 %v15760_v61  ;;  %9439 = vmatpush.bf16.msrb.mxu2 %v12272_v59  ;;  %v17292_v61 = vld [vmem:[%s26306_s9 + $0x1c8c] sm:$0xf]  ;;  %v15664_v59 = vor.u32 %v17349_v33, %v15661_v5  ;;  %v15632_v43 = vor.u32 %v17341_v13, %v15629_v6  ;;  %v12141_v33 = vld [vmem:[%s26306_s9 + $0x2f0] sm:$0xf0]  ;;  %v12788_v5 = vor.u32 %v16634_v41, %v12787_v28 }
 0x417   :  { %v15432_v23 = vor.u32 %v17292_v61, %v15429_v8  ;;  %v17276_v8 = vld [vmem:[%s26306_s9 + $0x1c0c] sm:$0xf]  ;;  %v12524_v13 = vor.u32 %v16569_v48, %v12523_v16  ;;  %v16461_v6 = vld [vmem:[%s26306_s9 + $0x294] sm:$0xf]  ;;  %v12459_v16 = vld [vmem:[%s26306_s9 + $0x550] sm:$0xf] }
 0x418   :  { %9196 = vmatpush.bf16.msra.mxu0 %v15464_v9  ;;  %v17156_v9 = vld [vmem:[%s26306_s9 + $0x184c] sm:$0xf]  ;;  %v12109_v41 = vld [vmem:[%s26306_s9 + $0x2b0] sm:$0xf0]  ;;  %v16553_v48 = vld [vmem:[%s26306_s9 + $0x56c] sm:$0xf0] }
 0x419   :  { %9170 = vmatpush.bf16.msra.mxu3 %v14952_v17  ;;  %v15365_v17 = vld [vmem:[%s26306_s9 + $0x1c28] sm:$0xf0] }
 0x41a   :  { %9625 = vmatpush.bf16.msra.mxu1 %v15728_v35  ;;  %9440 = vmatpush.bf16.msrb.mxu2 %v12240_v54  ;;  %v15397_v35 = vld [vmem:[%s26306_s9 + $0x1c68] sm:$0xf0]  ;;  %v15368_v25 = vor.u32 %v17276_v8, %v15365_v17 }
 0x41b   :  { %v14885_v54 = vld [vmem:[%s26306_s9 + $0x1868] sm:$0xf0]  ;;  %v15400_v61 = vor.u32 %v17284_v50, %v15397_v35 }
 0x41c   :  { %9197 = vmatpush.bf16.msra.mxu0 %v15432_v23  ;;  %v14888_v27 = vor.u32 %v17156_v9, %v14885_v54  ;;  %v12755_v23 = vld [vmem:[%s26306_s9 + $0x798] sm:$0xf]  ;;  %v14853_v35 = vld [vmem:[%s26306_s9 + $0x1828] sm:$0xf0]  ;;  %v12491_v9 = vld [vmem:[%s26306_s9 + $0x590] sm:$0xf] }
 0x41d   :  { %9171 = vmatpush.bf16.msra.mxu3 %v14920_v51  ;;  %v12144_v51 = vor.u32 %v16469_v3, %v12141_v33  ;;  %v16561_v54 = vld [vmem:[%s26306_s9 + $0x5ac] sm:$0xf0]  ;;  %v16453_v3 = vld [vmem:[%s26306_s9 + $0x254] sm:$0xf]  ;;  %v23369_v33 = vpop.f32.mrf.mxu2 }
 0x41e   :  { %9626 = vmatpush.bf16.msra.mxu1 %v15696_v18  ;;  %v8915_v18 = vpop.f32.mrf.mxu3  ;;  %9441 = vmatpush.bf16.msrb.mxu2 %v12208_v31  ;;  %v16626_v31 = vld [vmem:[%s26306_s9 + $0x7b4] sm:$0xf0]  ;;  %v12492_v17 = vor.u32 %v16561_v54, %v12491_v9  ;;  %v13293_v9 = vld [vmem:[%s26306_s9 + $0xbf0] sm:$0xf0] }
 0x41f   :  { %v8916_v34 = vadd.f32 %v8915_v18, %v8903_v57  ;;  %v12756_v47 = vor.u32 %v16626_v31, %v12755_v23  ;;  %v16610_v31 = vld [vmem:[%s26306_s9 + $0x734] sm:$0xf0] }
 0x420   :  { %9198 = vmatpush.bf16.msra.mxu0 %v15400_v61  ;;  %v16618_v61 = vld [vmem:[%s26306_s9 + $0x774] sm:$0xf0] }
 0x421   :  { %v8929_v50 = vadd.f32 %v22325_v45, %v8916_v34  ;;  %v16441_v45 = vld [vmem:[%s26306_s9 + $0x1ec] sm:$0xf0]  ;;  %9172 = vmatpush.bf16.msra.mxu3 %v14888_v27  ;;  %v12077_v27 = vld [vmem:[%s26306_s9 + $0x270] sm:$0xf0]  ;;  %v12659_v54 = vld [vmem:[%s26306_s9 + $0x6d8] sm:$0xf] }
 0x422   :  { %9627 = vmatpush.bf16.msra.mxu1 %v15664_v59  ;;  %v17148_v59 = vld [vmem:[%s26306_s9 + $0x180c] sm:$0xf]  ;;  %9442 = vmatpush.bf16.msrb.mxu2 %v12176_v11  ;;  %v12012_v18 = vor.u32 %v16441_v45, %v12011_v39  ;;  %v11979_v34 = vld [vmem:[%s26306_s9 + $0x190] sm:$0xf]  ;;  %v12460_v39 = vor.u32 %v16553_v48, %v12459_v16  ;;  %v16445_v45 = vld [vmem:[%s26306_s9 + $0x214] sm:$0xf] }
 0x423   :  { %v23342_v28 = vadd.f32 %v23236_v7, %v8929_v50  ;;  %v14856_v57 = vor.u32 %v17148_v59, %v14853_v35  ;;  %v12723_v7 = vld [vmem:[%s26306_s9 + $0x758] sm:$0xf]  ;;  %v16433_v11 = vld [vmem:[%s26306_s9 + $0x1ac] sm:$0xf0]  ;;  %v16749_v16 = vld [vmem:[%s26306_s9 + $0xb94] sm:$0xf] }
 0x424   :  { %9199 = vmatpush.bf16.msra.mxu0 %v15368_v25  ;;  %v11980_v23 = vor.u32 %v16433_v11, %v11979_v34  ;;  %v12691_v50 = vld [vmem:[%s26306_s9 + $0x718] sm:$0xf]  ;;  %v11947_v59 = vld [vmem:[%s26306_s9 + $0x150] sm:$0xf]  ;;  %v12080_v25 = vor.u32 %v16453_v3, %v12077_v27 }
 0x425   :  { %9173 = vmatpush.bf16.msra.mxu3 %v14856_v57  ;;  %v16425_v35 = vld [vmem:[%s26306_s9 + $0x16c] sm:$0xf0]  ;;  %v16757_v57 = vld [vmem:[%s26306_s9 + $0xbd4] sm:$0xf] }
 0x426   :  { %9628 = vmatpush.bf16.msra.mxu1 %v15632_v43  ;;  %v8917_v8 = vpop.f32.mrf.mxu3  ;;  %9443 = vmatpush.bf16.msrb.mxu2 %v12144_v51  ;;  %v12112_v43 = vor.u32 %v16461_v6, %v12109_v41  ;;  %v12045_v51 = vld [vmem:[%s26306_s9 + $0x230] sm:$0xf0]  ;;  %v12427_v6 = vld [vmem:[%s26306_s9 + $0x510] sm:$0xf]  ;;  %v11948_v41 = vor.u32 %v16425_v35, %v11947_v59  ;;  %v23444_v59 = vpop.f32.mrf.mxu0 }
 0x427   :  { %9200 = vmatmul.bf16.vlgmr.msra.gmra.mxu0 %v21064_v26  ;;  %v23424_v8 = vpop.f32.mrf.mxu1  ;;  %v12048_v34 = vor.u32 %v16445_v45, %v12045_v51  ;;  %v16537_v27 = vld [vmem:[%s26306_s9 + $0x4ec] sm:$0xf0] }
 0x428   :  { %9244 = vmatpush.bf16.msrb.mxu0 %v12524_v13  ;;  %9174 = vmatmul.bf16.vlgmr.msra.gmra.mxu3 %v20918_v63  ;;  %v12692_v13 = vor.u32 %v16610_v31, %v12691_v50  ;;  %v12627_v50 = vld [vmem:[%s26306_s9 + $0x698] sm:$0xf]  ;;  %v11883_v35 = vld [vmem:[%s26306_s9 + $0xd0] sm:$0xf] }
 0x429   :  { %9629 = vmatmul.bf16.vlgmr.msra.gmra.mxu1 %v19463_v55  ;;  %9218 = vmatpush.bf16.msrb.mxu3 %v12012_v18  ;;  %v16602_v18 = vld [vmem:[%s26306_s9 + $0x6f4] sm:$0xf0] }
 0x42a   :  { %9673 = vmatpush.bf16.msrb.mxu1 %v12788_v5  ;;  %v12724_v5 = vor.u32 %v16618_v61, %v12723_v7  ;;  %9444 = vmatpush.bf16.msrb.mxu2 %v12112_v43  ;;  %v11915_v7 = vld [vmem:[%s26306_s9 + $0x110] sm:$0xf]  ;;  %v9190_v43 = vpop.f32.mrf.mxu2  ;;  %v12660_v3 = vor.u32 %v16602_v18, %v12659_v54  ;;  %v16594_v31 = vld [vmem:[%s26306_s9 + $0x6b4] sm:$0xf0] }
 0x42b   :  { %v16417_v61 = vld [vmem:[%s26306_s9 + $0x12c] sm:$0xf0]  ;;  %v12628_v51 = vor.u32 %v16594_v31, %v12627_v50  ;;  %v16586_v54 = vld [vmem:[%s26306_s9 + $0x674] sm:$0xf0] }
 0x42c   :  { %9245 = vmatpush.bf16.msrb.mxu0 %v12492_v17  ;;  %v13296_v17 = vor.u32 %v16757_v57, %v13293_v9  ;;  %v11916_v48 = vor.u32 %v16417_v61, %v11915_v7  ;;  %v12595_v9 = vld [vmem:[%s26306_s9 + $0x658] sm:$0xf]  ;;  %v11851_v18 = vld [vmem:[%s26306_s9 + $0x90] sm:$0xf] }
 0x42d   :  { %9219 = vmatpush.bf16.msrb.mxu3 %v11980_v23  ;;  %v13261_v23 = vld [vmem:[%s26306_s9 + $0xbb0] sm:$0xf0]  ;;  %v16401_v7 = vld [vmem:[%s26306_s9 + $0xac] sm:$0xf0]  ;;  %v13811_v50 = vld [vmem:[%s26306_s9 + $0xfd8] sm:$0xf] }
 0x42e   :  { %9674 = vmatpush.bf16.msrb.mxu1 %v12756_v47  ;;  %v16545_v47 = vld [vmem:[%s26306_s9 + $0x52c] sm:$0xf0]  ;;  %9445 = vmatpush.bf16.msrb.mxu2 %v12080_v25  ;;  %v13264_v45 = vor.u32 %v16749_v16, %v13261_v23  ;;  %v11852_v16 = vor.u32 %v16401_v7, %v11851_v18  ;;  %v16578_v23 = vld [vmem:[%s26306_s9 + $0x634] sm:$0xf0]  ;;  %v8995_v31 = vpop.f32.mrf.mxu0 }
 0x42f   :  { %v12428_v11 = vor.u32 %v16545_v47, %v12427_v6  ;;  %v16409_v25 = vld [vmem:[%s26306_s9 + $0xec] sm:$0xf0]  ;;  %v16741_v47 = vld [vmem:[%s26306_s9 + $0xb54] sm:$0xf]  ;;  %v9424_v61 = vpop.f32.mrf.mxu1 }
 0x430   :  { %9246 = vmatpush.bf16.msrb.mxu0 %v12460_v39  ;;  %v16529_v6 = vld [vmem:[%s26306_s9 + $0x4ac] sm:$0xf0]  ;;  %v11884_v57 = vor.u32 %v16409_v25, %v11883_v35  ;;  %v8955_v35 = vadd.f32 %v21547_v60, %v23342_v28  ;;  %v16890_v25 = vld [vmem:[%s26306_s9 + $0xff4] sm:$0xf0] }
 0x431   :  { %9220 = vmatpush.bf16.msrb.mxu3 %v11948_v41  ;;  %v13229_v41 = vld [vmem:[%s26306_s9 + $0xb70] sm:$0xf0]  ;;  %v13547_v7 = vld [vmem:[%s26306_s9 + $0xdd0] sm:$0xf] }
 0x432   :  { %9675 = vmatpush.bf16.msrb.mxu1 %v12724_v5  ;;  %v12395_v5 = vld [vmem:[%s26306_s9 + $0x4d0] sm:$0xf]  ;;  %9446 = vmatpush.bf16.msrb.mxu2 %v12048_v34  ;;  %v13232_v43 = vor.u32 %v16741_v47, %v13229_v41  ;;  %v16725_v41 = vld [vmem:[%s26306_s9 + $0xad4] sm:$0xf] }
 0x433   :  { %v12396_v39 = vor.u32 %v16537_v27, %v12395_v5  ;;  %v16733_v5 = vld [vmem:[%s26306_s9 + $0xb14] sm:$0xf]  ;;  %v16825_v61 = vld [vmem:[%s26306_s9 + $0xdec] sm:$0xf0] }
 0x434   :  { %9247 = vmatpush.bf16.msrb.mxu0 %v12428_v11  ;;  %v12331_v11 = vld [vmem:[%s26306_s9 + $0x450] sm:$0xf]  ;;  %v13197_v27 = vld [vmem:[%s26306_s9 + $0xb30] sm:$0xf0] }
 0x435   :  { %9221 = vmatpush.bf16.msrb.mxu3 %v11916_v48  ;;  %9447 = vmatmul.bf16.vlgmr.msrb.gmra.mxu2 %v19442_v37  ;;  %v12563_v48 = vld [vmem:[%s26306_s9 + $0x618] sm:$0xf]  ;;  %v13200_v28 = vor.u32 %v16733_v5, %v13197_v27  ;;  %v13035_v27 = vld [vmem:[%s26306_s9 + $0x9d0] sm:$0xf] }
 0x436   :  { %9676 = vmatpush.bf16.msrb.mxu1 %v12692_v13  ;;  %9491 = vmatpush.bf16.msra.mxu2 %v13296_v17  ;;  %v12363_v13 = vld [vmem:[%s26306_s9 + $0x490] sm:$0xf]  ;;  %v12596_v17 = vor.u32 %v16586_v54, %v12595_v9  ;;  %v12564_v47 = vor.u32 %v16578_v23, %v12563_v48  ;;  %v13165_v9 = vld [vmem:[%s26306_s9 + $0xaf0] sm:$0xf0]  ;;  %v13812_v54 = vor.u32 %v16890_v25, %v13811_v50 }
 0x437   :  { %v12364_v34 = vor.u32 %v16529_v6, %v12363_v13  ;;  %v12299_v6 = vld [vmem:[%s26306_s9 + $0x410] sm:$0xf]  ;;  %v13168_v48 = vor.u32 %v16725_v41, %v13165_v9  ;;  %v13548_v23 = vor.u32 %v16825_v61, %v13547_v7  ;;  %v16717_v50 = vld [vmem:[%s26306_s9 + $0xa94] sm:$0xf] }
 0x438   :  { %9248 = vmatpush.bf16.msrb.mxu0 %v12396_v39  ;;  %v11819_v39 = vld [vmem:[%s26306_s9 + $0x50] sm:$0xf]  ;;  %v13133_v25 = vld [vmem:[%s26306_s9 + $0xab0] sm:$0xf0]  ;;  %v23577_v9 = vpop.f32.mrf.mxu2 }
 0x439   :  { %9222 = vmatpush.bf16.msrb.mxu3 %v11884_v57  ;;  %v16513_v57 = vld [vmem:[%s26306_s9 + $0x42c] sm:$0xf0]  ;;  %v16709_v41 = vld [vmem:[%s26306_s9 + $0xa54] sm:$0xf] }
 0x43a   :  { %9677 = vmatpush.bf16.msrb.mxu1 %v12660_v3  ;;  %9492 = vmatpush.bf16.msra.mxu2 %v13264_v45  ;;  %v16521_v3 = vld [vmem:[%s26306_s9 + $0x46c] sm:$0xf0]  ;;  %v12300_v5 = vor.u32 %v16513_v57, %v12299_v6 }
 0x43b   :  { %v16393_v45 = vld [vmem:[%s26306_s9 + $0x6c] sm:$0xf0]  ;;  %v12332_v13 = vor.u32 %v16521_v3, %v12331_v11 }
 0x43c   :  { %9249 = vmatpush.bf16.msrb.mxu0 %v12364_v34  ;;  %v11820_v18 = vor.u32 %v16393_v45, %v11819_v39  ;;  %v13779_v34 = vld [vmem:[%s26306_s9 + $0xf98] sm:$0xf]  ;;  %v16385_v3 = vld [vmem:[%s26306_s9 + $0x2c] sm:$0xf0] }
 0x43d   :  { %9223 = vmatpush.bf16.msrb.mxu3 %v11852_v16  ;;  %v16817_v39 = vld [vmem:[%s26306_s9 + $0xdac] sm:$0xf0] }
 0x43e   :  { %9678 = vmatpush.bf16.msrb.mxu1 %v12628_v51  ;;  %v8967_v51 = vpop.f32.mrf.mxu3  ;;  %9493 = vmatpush.bf16.msra.mxu2 %v13232_v43  ;;  %v16882_v43 = vld [vmem:[%s26306_s9 + $0xfb4] sm:$0xf0]  ;;  %v13483_v7 = vld [vmem:[%s26306_s9 + $0xd50] sm:$0xf] }
 0x43f   :  { %v8968_v60 = vadd.f32 %v8967_v51, %v8955_v35  ;;  %v13780_v31 = vor.u32 %v16882_v43, %v13779_v34  ;;  %v13747_v51 = vld [vmem:[%s26306_s9 + $0xf58] sm:$0xf]  ;;  %v16809_v61 = vld [vmem:[%s26306_s9 + $0xd6c] sm:$0xf0] }
 0x440   :  { %9250 = vmatpush.bf16.msrb.mxu0 %v12332_v13  ;;  %v16874_v13 = vld [vmem:[%s26306_s9 + $0xf74] sm:$0xf0] }
 0x441   :  { %v8981_v11 = vadd.f32 %v22536_v58, %v8968_v60  ;;  %v16697_v58 = vld [vmem:[%s26306_s9 + $0x9ec] sm:$0xf0]  ;;  %9224 = vmatpush.bf16.msrb.mxu3 %v11820_v18  ;;  %v13101_v18 = vld [vmem:[%s26306_s9 + $0xa70] sm:$0xf0]  ;;  %v16866_v43 = vld [vmem:[%s26306_s9 + $0xf34] sm:$0xf0] }
 0x442   :  { %9679 = vmatpush.bf16.msrb.mxu1 %v12596_v17  ;;  %v11787_v17 = vld [vmem:[%s26306_s9 + $0x10] sm:$0xf]  ;;  %9494 = vmatpush.bf16.msra.mxu2 %v13200_v28  ;;  %v13036_v45 = vor.u32 %v16697_v58, %v13035_v27  ;;  %v13484_v27 = vor.u32 %v16809_v61, %v13483_v7  ;;  %v16701_v58 = vld [vmem:[%s26306_s9 + $0xa14] sm:$0xf] }
 0x443   :  { %v23547_v16 = vadd.f32 %v23444_v59, %v8981_v11  ;;  %v11788_v35 = vor.u32 %v16385_v3, %v11787_v17  ;;  %v13515_v59 = vld [vmem:[%s26306_s9 + $0xd90] sm:$0xf]  ;;  %v13715_v11 = vld [vmem:[%s26306_s9 + $0xf18] sm:$0xf]  ;;  %v17005_v7 = vld [vmem:[%s26306_s9 + $0x1394] sm:$0xf] }
 0x444   :  { %9251 = vmatpush.bf16.msrb.mxu0 %v12300_v5  ;;  %v13003_v60 = vld [vmem:[%s26306_s9 + $0x990] sm:$0xf]  ;;  %v13516_v57 = vor.u32 %v16817_v39, %v13515_v59  ;;  %v13104_v5 = vor.u32 %v16709_v41, %v13101_v18  ;;  %v14317_v59 = vld [vmem:[%s26306_s9 + $0x13f0] sm:$0xf0]  ;;  %v13683_v39 = vld [vmem:[%s26306_s9 + $0xed8] sm:$0xf] }
 0x445   :  { %v16689_v28 = vld [vmem:[%s26306_s9 + $0x9ac] sm:$0xf0]  ;;  %9225 = vmatpush.bf16.msrb.mxu3 %v11788_v35  ;;  %v17013_v35 = vld [vmem:[%s26306_s9 + $0x13d4] sm:$0xf] }
 0x446   :  { %9680 = vmatpush.bf16.msrb.mxu1 %v12564_v47  ;;  %v8969_v6 = vpop.f32.mrf.mxu3  ;;  %9495 = vmatpush.bf16.msra.mxu2 %v13168_v48  ;;  %v13136_v47 = vor.u32 %v16717_v50, %v13133_v25  ;;  %v13004_v34 = vor.u32 %v16689_v28, %v13003_v60  ;;  %v12971_v17 = vld [vmem:[%s26306_s9 + $0x950] sm:$0xf]  ;;  %v13069_v48 = vld [vmem:[%s26306_s9 + $0xa30] sm:$0xf0] }
 0x447   :  { %9252 = vmatmul.bf16.vlgmr.msrb.gmra.mxu0 %v19906_v2  ;;  %v16681_v3 = vld [vmem:[%s26306_s9 + $0x96c] sm:$0xf0]  ;;  %v23632_v6 = vpop.f32.mrf.mxu1  ;;  %v13072_v60 = vor.u32 %v16701_v58, %v13069_v48 }
 0x448   :  { %9296 = vmatpush.bf16.msra.mxu0 %v13548_v23  ;;  %9226 = vmatmul.bf16.vlgmr.msrb.gmra.mxu3 %v20305_v20  ;;  %v13716_v23 = vor.u32 %v16866_v43, %v13715_v11  ;;  %v13451_v50 = vld [vmem:[%s26306_s9 + $0xd10] sm:$0xf]  ;;  %v12972_v25 = vor.u32 %v16681_v3, %v12971_v17  ;;  %v13651_v11 = vld [vmem:[%s26306_s9 + $0xe98] sm:$0xf]  ;;  %v23652_v17 = vpop.f32.mrf.mxu0 }
 0x449   :  { %9681 = vmatmul.bf16.vlgmr.msrb.gmra.mxu1 %v18896_v22  ;;  %9270 = vmatpush.bf16.msra.mxu3 %v13036_v45  ;;  %v16858_v45 = vld [vmem:[%s26306_s9 + $0xef4] sm:$0xf0]  ;;  %v16793_v18 = vld [vmem:[%s26306_s9 + $0xcec] sm:$0xf0] }
 0x44a   :  { %9725 = vmatpush.bf16.msra.mxu1 %v13812_v54  ;;  %v13748_v54 = vor.u32 %v16874_v13, %v13747_v51  ;;  %9496 = vmatpush.bf16.msra.mxu2 %v13136_v47  ;;  %v12939_v51 = vld [vmem:[%s26306_s9 + $0x910] sm:$0xf]  ;;  %v9242_v47 = vpop.f32.mrf.mxu2  ;;  %v13684_v41 = vor.u32 %v16858_v45, %v13683_v39  ;;  %v16850_v43 = vld [vmem:[%s26306_s9 + $0xeb4] sm:$0xf0] }
 0x44b   :  { %v16673_v13 = vld [vmem:[%s26306_s9 + $0x92c] sm:$0xf0]  ;;  %v13652_v48 = vor.u32 %v16850_v43, %v13651_v11  ;;  %v16842_v39 = vld [vmem:[%s26306_s9 + $0xe74] sm:$0xf0] }
 0x44c   :  { %9297 = vmatpush.bf16.msra.mxu0 %v13516_v57  ;;  %v14320_v57 = vor.u32 %v17013_v35, %v14317_v59  ;;  %v12940_v61 = vor.u32 %v16673_v13, %v12939_v51  ;;  %v12907_v3 = vld [vmem:[%s26306_s9 + $0x8d0] sm:$0xf]  ;;  %v13619_v59 = vld [vmem:[%s26306_s9 + $0xe58] sm:$0xf] }
 0x44d   :  { %9271 = vmatpush.bf16.msra.mxu3 %v13004_v34  ;;  %v14285_v34 = vld [vmem:[%s26306_s9 + $0x13b0] sm:$0xf0]  ;;  %v12875_v45 = vld [vmem:[%s26306_s9 + $0x890] sm:$0xf]  ;;  %v13587_v11 = vld [vmem:[%s26306_s9 + $0xe18] sm:$0xf] }
 0x44e   :  { %9726 = vmatpush.bf16.msra.mxu1 %v13780_v31  ;;  %v16801_v31 = vld [vmem:[%s26306_s9 + $0xd2c] sm:$0xf0]  ;;  %9497 = vmatpush.bf16.msra.mxu2 %v13104_v5  ;;  %v14288_v58 = vor.u32 %v17005_v7, %v14285_v34  ;;  %v16989_v7 = vld [vmem:[%s26306_s9 + $0x1314] sm:$0xf]  ;;  %v16834_v43 = vld [vmem:[%s26306_s9 + $0xe34] sm:$0xf0] }
 0x44f   :  { %v13452_v28 = vor.u32 %v16801_v31, %v13451_v50  ;;  %v16665_v5 = vld [vmem:[%s26306_s9 + $0x8ec] sm:$0xf0]  ;;  %v16997_v31 = vld [vmem:[%s26306_s9 + $0x1354] sm:$0xf]  ;;  %v9476_v13 = vpop.f32.mrf.mxu1 }
 0x450   :  { %9298 = vmatpush.bf16.msra.mxu0 %v13484_v27  ;;  %v16785_v50 = vld [vmem:[%s26306_s9 + $0xcac] sm:$0xf0]  ;;  %v12908_v35 = vor.u32 %v16665_v5, %v12907_v3  ;;  %v14835_v3 = vld [vmem:[%s26306_s9 + $0x17d8] sm:$0xf]  ;;  %v9047_v5 = vpop.f32.mrf.mxu0 }
 0x451   :  { %9272 = vmatpush.bf16.msra.mxu3 %v12972_v25  ;;  %v14253_v25 = vld [vmem:[%s26306_s9 + $0x1370] sm:$0xf0]  ;;  %v16657_v51 = vld [vmem:[%s26306_s9 + $0x8ac] sm:$0xf0] }
 0x452   :  { %9727 = vmatpush.bf16.msra.mxu1 %v13748_v54  ;;  %v13419_v54 = vld [vmem:[%s26306_s9 + $0xcd0] sm:$0xf]  ;;  %9498 = vmatpush.bf16.msra.mxu2 %v13072_v60  ;;  %v17475_v60 = vld [vmem:[%s26309_s10] sm:$0xff]  ;;  %v12876_v34 = vor.u32 %v16657_v51, %v12875_v45  ;;  %v16981_v45 = vld [vmem:[%s26306_s9 + $0x12d4] sm:$0xf] }
 0x453   :  { %v13420_v27 = vor.u32 %v16793_v18, %v13419_v54  ;;  %v13620_v54 = vor.u32 %v16842_v39, %v13619_v59  ;;  %v16777_v18 = vld [vmem:[%s26306_s9 + $0xc6c] sm:$0xf0]  ;;  %v13588_v59 = vor.u32 %v16834_v43, %v13587_v11  ;;  %v14189_v51 = vld [vmem:[%s26306_s9 + $0x12f0] sm:$0xf0] }
 0x454   :  { %9299 = vmatpush.bf16.msra.mxu0 %v13452_v28  ;;  %v3253_v28 = vperm.slane %v17475_v60, 3  ;;  %v16769_v39 = vld [vmem:[%s26306_s9 + $0xc2c] sm:$0xf0]  ;;  %v14192_v11 = vor.u32 %v16981_v45, %v14189_v51 }
 0x455   :  { %9273 = vmatpush.bf16.msra.mxu3 %v12940_v61  ;;  %9499 = vmatmul.bf16.vlgmr.msra.gmra.mxu2 %v19597_v1  ;;  %v14221_v61 = vld [vmem:[%s26306_s9 + $0x1330] sm:$0xf0] }
 0x456   :  { %9728 = vmatpush.bf16.msra.mxu1 %v13716_v23  ;;  %9543 = vmatpush.bf16.msrb.mxu2 %v14320_v57  ;;  %v13387_v23 = vld [vmem:[%s26306_s9 + $0xc90] sm:$0xf] }
 0x457   :  { %v13388_v47 = vor.u32 %v16785_v50, %v13387_v23  ;;  %v13355_v57 = vld [vmem:[%s26306_s9 + $0xc50] sm:$0xf]  ;;  %v9019_v23 = vpop.f32.mrf.mxu3 }
 0x458   :  { %9300 = vmatpush.bf16.msra.mxu0 %v13420_v27  ;;  %v17146_v27 = vld [vmem:[%s26306_s9 + $0x17f4] sm:$0xf0]  ;;  %v13356_v50 = vor.u32 %v16777_v18, %v13355_v57  ;;  %v12811_v18 = vld [vmem:[%s26306_s9 + $0x810] sm:$0xf] }
 0x459   :  { %9274 = vmatpush.bf16.msra.mxu3 %v12908_v35  ;;  %v9020_v35 = vadd.f32 %v9019_v23, %v3253_v28  ;;  %v14836_v13 = vor.u32 %v17146_v27, %v14835_v3  ;;  %v14571_v28 = vld [vmem:[%s26306_s9 + $0x15d0] sm:$0xf]  ;;  %v14803_v57 = vld [vmem:[%s26306_s9 + $0x1798] sm:$0xf]  ;;  %v16973_v3 = vld [vmem:[%s26306_s9 + $0x1294] sm:$0xf] }
 0x45a   :  { %9729 = vmatpush.bf16.msra.mxu1 %v13684_v41  ;;  %9544 = vmatpush.bf16.msrb.mxu2 %v14288_v58  ;;  %v14256_v41 = vor.u32 %v16997_v31, %v14253_v25  ;;  %v12843_v58 = vld [vmem:[%s26306_s9 + $0x850] sm:$0xf]  ;;  %v14224_v25 = vor.u32 %v16989_v7, %v14221_v61 }
 0x45b   :  { %v13323_v31 = vld [vmem:[%s26306_s9 + $0xc10] sm:$0xf] }
 0x45c   :  { %9301 = vmatpush.bf16.msra.mxu0 %v13388_v47  ;;  %v17081_v47 = vld [vmem:[%s26306_s9 + $0x15ec] sm:$0xf0]  ;;  %v13324_v61 = vor.u32 %v16769_v39, %v13323_v31 }
 0x45d   :  { %9275 = vmatpush.bf16.msra.mxu3 %v12876_v34  ;;  %v16641_v7 = vld [vmem:[%s26306_s9 + $0x82c] sm:$0xf0]  ;;  %v14572_v43 = vor.u32 %v17081_v47, %v14571_v28  ;;  %v14125_v47 = vld [vmem:[%s26306_s9 + $0x1270] sm:$0xf0] }
 0x45e   :  { %9730 = vmatpush.bf16.msra.mxu1 %v13652_v48  ;;  %v16649_v48 = vld [vmem:[%s26306_s9 + $0x86c] sm:$0xf0]  ;;  %9545 = vmatpush.bf16.msrb.mxu2 %v14256_v41  ;;  %v9033_v41 = vadd.f32 %v22744_v38, %v9020_v35  ;;  %v17130_v35 = vld [vmem:[%s26306_s9 + $0x1774] sm:$0xf0] }
 0x45f   :  { %v12844_v60 = vor.u32 %v16649_v48, %v12843_v58  ;;  %v14059_v34 = vld [vmem:[%s26306_s9 + $0x11d0] sm:$0xf]  ;;  %v12812_v58 = vor.u32 %v16641_v7, %v12811_v18  ;;  %v14157_v48 = vld [vmem:[%s26306_s9 + $0x12b0] sm:$0xf0]  ;;  %v14739_v18 = vld [vmem:[%s26306_s9 + $0x1718] sm:$0xf] }
 0x460   :  { %9302 = vmatpush.bf16.msra.mxu0 %v13356_v50  ;;  %v16953_v38 = vld [vmem:[%s26306_s9 + $0x11ec] sm:$0xf0]  ;;  %v23759_v5 = vadd.f32 %v23652_v17, %v9033_v41  ;;  %v14771_v17 = vld [vmem:[%s26306_s9 + $0x1758] sm:$0xf]  ;;  %v14160_v45 = vor.u32 %v16973_v3, %v14157_v48  ;;  %v14093_v3 = vld [vmem:[%s26306_s9 + $0x1230] sm:$0xf0] }
 0x461   :  { %9276 = vmatpush.bf16.msra.mxu3 %v12844_v60  ;;  %v14539_v23 = vld [vmem:[%s26306_s9 + $0x1590] sm:$0xf]  ;;  %v14060_v31 = vor.u32 %v16953_v38, %v14059_v34  ;;  %v23786_v60 = vpop.f32.mrf.mxu2  ;;  %v14772_v28 = vor.u32 %v17130_v35, %v14771_v17  ;;  %v17122_v7 = vld [vmem:[%s26306_s9 + $0x1734] sm:$0xf0] }
 0x462   :  { %9731 = vmatpush.bf16.msra.mxu1 %v13620_v54  ;;  %v17138_v54 = vld [vmem:[%s26306_s9 + $0x17b4] sm:$0xf0]  ;;  %9546 = vmatpush.bf16.msrb.mxu2 %v14224_v25  ;;  %v17073_v50 = vld [vmem:[%s26306_s9 + $0x15ac] sm:$0xf0]  ;;  %v9021_v25 = vpop.f32.mrf.mxu3 }
 0x463   :  { %v14804_v27 = vor.u32 %v17138_v54, %v14803_v57  ;;  %v16945_v39 = vld [vmem:[%s26306_s9 + $0x11ac] sm:$0xf0]  ;;  %v14540_v51 = vor.u32 %v17073_v50, %v14539_v23  ;;  %v17269_v23 = vld [vmem:[%s26306_s9 + $0x1bd4] sm:$0xf]  ;;  %v14707_v17 = vld [vmem:[%s26306_s9 + $0x16d8] sm:$0xf] }
 0x464   :  { %9303 = vmatpush.bf16.msra.mxu0 %v13324_v61  ;;  %v14507_v57 = vld [vmem:[%s26306_s9 + $0x1550] sm:$0xf]  ;;  %v17114_v35 = vld [vmem:[%s26306_s9 + $0x16f4] sm:$0xf0] }
 0x465   :  { %9277 = vmatpush.bf16.msra.mxu3 %v12812_v58  ;;  %v17065_v41 = vld [vmem:[%s26306_s9 + $0x156c] sm:$0xf0] }
 0x466   :  { %9732 = vmatpush.bf16.msra.mxu1 %v13588_v59  ;;  %v14027_v59 = vld [vmem:[%s26306_s9 + $0x1190] sm:$0xf]  ;;  %9547 = vmatpush.bf16.msrb.mxu2 %v14192_v11  ;;  %v14508_v11 = vor.u32 %v17065_v41, %v14507_v57 }
 0x467   :  { %9304 = vmatmul.bf16.vlgmr.msra.gmra.mxu0 %v20278_v30  ;;  %v14028_v54 = vor.u32 %v16945_v39, %v14027_v59  ;;  %v13995_v61 = vld [vmem:[%s26306_s9 + $0x1150] sm:$0xf]  ;;  %v23841_v39 = vpop.f32.mrf.mxu1 }
 0x468   :  { %9348 = vmatpush.bf16.msrb.mxu0 %v14572_v43  ;;  %v16937_v34 = vld [vmem:[%s26306_s9 + $0x116c] sm:$0xf0]  ;;  %v16957_v43 = vld [vmem:[%s26306_s9 + $0x1214] sm:$0xf]  ;;  %9278 = vmatmul.bf16.vlgmr.msra.gmra.mxu3 %v20518_v49 }
 0x469   :  { %9733 = vmatmul.bf16.vlgmr.msra.gmra.mxu1 %v19050_v53  ;;  %9322 = vmatpush.bf16.msrb.mxu3 %v14060_v31  ;;  %v14475_v58 = vld [vmem:[%s26306_s9 + $0x1510] sm:$0xf]  ;;  %v13996_v50 = vor.u32 %v16937_v34, %v13995_v61  ;;  %v15341_v31 = vld [vmem:[%s26306_s9 + $0x1bf0] sm:$0xf0]  ;;  %v14675_v61 = vld [vmem:[%s26306_s9 + $0x1698] sm:$0xf] }
 0x46a   :  { %9777 = vmatpush.bf16.msrb.mxu1 %v14836_v13  ;;  %v16965_v13 = vld [vmem:[%s26306_s9 + $0x1254] sm:$0xf]  ;;  %9548 = vmatpush.bf16.msrb.mxu2 %v14160_v45  ;;  %v17057_v48 = vld [vmem:[%s26306_s9 + $0x152c] sm:$0xf0]  ;;  %v14096_v45 = vor.u32 %v16957_v43, %v14093_v3  ;;  %v17106_v34 = vld [vmem:[%s26306_s9 + $0x16b4] sm:$0xf0] }
 0x46b   :  { %v14128_v38 = vor.u32 %v16965_v13, %v14125_v47  ;;  %v13963_v25 = vld [vmem:[%s26306_s9 + $0x1110] sm:$0xf]  ;;  %v9294_v13 = vpop.f32.mrf.mxu2  ;;  %v14708_v47 = vor.u32 %v17114_v35, %v14707_v17  ;;  %v15277_v17 = vld [vmem:[%s26306_s9 + $0x1b70] sm:$0xf0]  ;;  %v14643_v35 = vld [vmem:[%s26306_s9 + $0x1658] sm:$0xf] }
 0x46c   :  { %9349 = vmatpush.bf16.msrb.mxu0 %v14540_v51  ;;  %v16929_v59 = vld [vmem:[%s26306_s9 + $0x112c] sm:$0xf0]  ;;  %v14476_v51 = vor.u32 %v17057_v48, %v14475_v58  ;;  %v14676_v58 = vor.u32 %v17106_v34, %v14675_v61  ;;  %v14611_v61 = vld [vmem:[%s26306_s9 + $0x1618] sm:$0xf] }
 0x46d   :  { %9323 = vmatpush.bf16.msrb.mxu3 %v14028_v54  ;;  %v14443_v57 = vld [vmem:[%s26306_s9 + $0x14d0] sm:$0xf]  ;;  %v17261_v54 = vld [vmem:[%s26306_s9 + $0x1b94] sm:$0xf]  ;;  %v17090_v34 = vld [vmem:[%s26306_s9 + $0x1634] sm:$0xf0] }
 0x46e   :  { %9778 = vmatpush.bf16.msrb.mxu1 %v14804_v27  ;;  %v14740_v27 = vor.u32 %v17122_v7, %v14739_v18  ;;  %9549 = vmatpush.bf16.msrb.mxu2 %v14128_v38  ;;  %v17049_v41 = vld [vmem:[%s26306_s9 + $0x14ec] sm:$0xf0]  ;;  %v13964_v18 = vor.u32 %v16929_v59, %v13963_v25  ;;  %v15309_v7 = vld [vmem:[%s26306_s9 + $0x1bb0] sm:$0xf0]  ;;  %v23861_v38 = vpop.f32.mrf.mxu0  ;;  %v17098_v25 = vld [vmem:[%s26306_s9 + $0x1674] sm:$0xf0] }
 0x46f   :  { %v16921_v43 = vld [vmem:[%s26306_s9 + $0x10ec] sm:$0xf0]  ;;  %v14444_v3 = vor.u32 %v17049_v41, %v14443_v57  ;;  %v14644_v57 = vor.u32 %v17098_v25, %v14643_v35  ;;  %v17237_v25 = vld [vmem:[%s26306_s9 + $0x1ad4] sm:$0xf] }
 0x470   :  { %9350 = vmatpush.bf16.msrb.mxu0 %v14508_v11  ;;  %v13931_v11 = vld [vmem:[%s26306_s9 + $0x10d0] sm:$0xf] }
 0x471   :  { %9324 = vmatpush.bf16.msrb.mxu3 %v13996_v50  ;;  %v14411_v48 = vld [vmem:[%s26306_s9 + $0x1490] sm:$0xf]  ;;  %v17253_v50 = vld [vmem:[%s26306_s9 + $0x1b54] sm:$0xf] }
 0x472   :  { %9779 = vmatpush.bf16.msrb.mxu1 %v14772_v28  ;;  %v15344_v28 = vor.u32 %v17269_v23, %v15341_v31  ;;  %9550 = vmatpush.bf16.msrb.mxu2 %v14096_v45  ;;  %v17041_v23 = vld [vmem:[%s26306_s9 + $0x14ac] sm:$0xf0]  ;;  %v13932_v31 = vor.u32 %v16921_v43, %v13931_v11  ;;  %v15859_v11 = vld [vmem:[%s26306_s9 + $0x1fd8] sm:$0xf] }
 0x473   :  { %v13899_v59 = vld [vmem:[%s26306_s9 + $0x1090] sm:$0xf]  ;;  %v14412_v13 = vor.u32 %v17041_v23, %v14411_v48  ;;  %v9071_v23 = vpop.f32.mrf.mxu3 }
 0x474   :  { %9351 = vmatpush.bf16.msrb.mxu0 %v14476_v51  ;;  %v16913_v45 = vld [vmem:[%s26306_s9 + $0x10ac] sm:$0xf0]  ;;  %v9528_v51 = vpop.f32.mrf.mxu1 }
 0x475   :  { %9325 = vmatpush.bf16.msrb.mxu3 %v13964_v18  ;;  %9551 = vmatmul.bf16.vlgmr.msrb.gmra.mxu2 %v19809_v0  ;;  %v17033_v41 = vld [vmem:[%s26306_s9 + $0x146c] sm:$0xf0]  ;;  %v15245_v18 = vld [vmem:[%s26306_s9 + $0x1b30] sm:$0xf0] }
 0x476   :  { %9780 = vmatpush.bf16.msrb.mxu1 %v14740_v27  ;;  %9595 = vmatpush.bf16.msra.mxu2 %v15344_v28  ;;  %v15312_v27 = vor.u32 %v17261_v54, %v15309_v7  ;;  %v14379_v28 = vld [vmem:[%s26306_s9 + $0x1450] sm:$0xf]  ;;  %v17245_v54 = vld [vmem:[%s26306_s9 + $0x1b14] sm:$0xf]  ;;  %v13900_v7 = vor.u32 %v16913_v45, %v13899_v59  ;;  %v9099_v43 = vpop.f32.mrf.mxu0 }
 0x477   :  { %v16905_v48 = vld [vmem:[%s26306_s9 + $0x106c] sm:$0xf0]  ;;  %v15213_v59 = vld [vmem:[%s26306_s9 + $0x1af0] sm:$0xf0] }
 0x478   :  { %9352 = vmatpush.bf16.msrb.mxu0 %v14444_v3  ;;  %v9059_v3 = vadd.f32 %v21950_v10, %v23759_v5  ;;  %v15248_v5 = vor.u32 %v17245_v54, %v15245_v18  ;;  %v17025_v35 = vld [vmem:[%s26306_s9 + $0x142c] sm:$0xf0]  ;;  %v17229_v43 = vld [vmem:[%s26306_s9 + $0x1a94] sm:$0xf] }
 0x479   :  { %9326 = vmatpush.bf16.msrb.mxu3 %v13932_v31  ;;  %v14347_v31 = vld [vmem:[%s26306_s9 + $0x1410] sm:$0xf] }
 0x47a   :  { %9781 = vmatpush.bf16.msrb.mxu1 %v14708_v47  ;;  %9596 = vmatpush.bf16.msra.mxu2 %v15312_v27  ;;  %v15280_v47 = vor.u32 %v17253_v50, %v15277_v17  ;;  %v17402_v27 = vld [vmem:[%s26306_s9 + $0x1ff4] sm:$0xf0]  ;;  %v14380_v50 = vor.u32 %v17033_v41, %v14379_v28  ;;  %v9072_v10 = vadd.f32 %v9071_v23, %v9059_v3  ;;  %v17337_v28 = vld [vmem:[%s26306_s9 + $0x1dec] sm:$0xf0] }
 0x47b   :  { %v14612_v17 = vor.u32 %v17090_v34, %v14611_v61  ;;  %v15860_v45 = vor.u32 %v17402_v27, %v15859_v11  ;;  %v17394_v41 = vld [vmem:[%s26306_s9 + $0x1fb4] sm:$0xf0]  ;;  %v13835_v54 = vld [vmem:[%s26306_s9 + $0x1010] sm:$0xf]  ;;  %v15216_v34 = vor.u32 %v17237_v25, %v15213_v59 }
 0x47c   :  { %9353 = vmatpush.bf16.msrb.mxu0 %v14412_v13  ;;  %v15595_v13 = vld [vmem:[%s26306_s9 + $0x1dd0] sm:$0xf] }
 0x47d   :  { %9327 = vmatpush.bf16.msrb.mxu3 %v13900_v7  ;;  %v16897_v18 = vld [vmem:[%s26306_s9 + $0x102c] sm:$0xf0]  ;;  %v14348_v7 = vor.u32 %v17025_v35, %v14347_v31  ;;  %v15596_v11 = vor.u32 %v17337_v28, %v15595_v13  ;;  %v15149_v28 = vld [vmem:[%s26306_s9 + $0x1a70] sm:$0xf0] }
 0x47e   :  { %9782 = vmatpush.bf16.msrb.mxu1 %v14676_v58  ;;  %v13867_v58 = vld [vmem:[%s26306_s9 + $0x1050] sm:$0xf]  ;;  %9597 = vmatpush.bf16.msra.mxu2 %v15280_v47  ;;  %v15827_v47 = vld [vmem:[%s26306_s9 + $0x1f98] sm:$0xf] }
 0x47f   :  { %v13868_v51 = vor.u32 %v16905_v48, %v13867_v58  ;;  %v15083_v61 = vld [vmem:[%s26306_s9 + $0x19d0] sm:$0xf]  ;;  %v15828_v27 = vor.u32 %v17394_v41, %v15827_v47  ;;  %v13836_v58 = vor.u32 %v16897_v18, %v13835_v54  ;;  %v15181_v48 = vld [vmem:[%s26306_s9 + $0x1ab0] sm:$0xf0]  ;;  %v15763_v54 = vld [vmem:[%s26306_s9 + $0x1f18] sm:$0xf] }
 0x480   :  { %9354 = vmatpush.bf16.msrb.mxu0 %v14380_v50  ;;  %v15563_v23 = vld [vmem:[%s26306_s9 + $0x1d90] sm:$0xf]  ;;  %v15184_v25 = vor.u32 %v17229_v43, %v15181_v48  ;;  %v17378_v18 = vld [vmem:[%s26306_s9 + $0x1f34] sm:$0xf0]  ;;  %v15117_v43 = vld [vmem:[%s26306_s9 + $0x1a30] sm:$0xf0] }
 0x481   :  { %9328 = vmatpush.bf16.msrb.mxu3 %v13868_v51  ;;  %v17329_v50 = vld [vmem:[%s26306_s9 + $0x1dac] sm:$0xf0]  ;;  %v23994_v51 = vpop.f32.mrf.mxu2 }
 0x482   :  { %9783 = vmatpush.bf16.msrb.mxu1 %v14644_v57  ;;  %v9085_v57 = vadd.f32 %v22953_v46, %v9072_v10  ;;  %v17209_v46 = vld [vmem:[%s26306_s9 + $0x19ec] sm:$0xf0]  ;;  %9598 = vmatpush.bf16.msra.mxu2 %v15248_v5  ;;  %v17386_v10 = vld [vmem:[%s26306_s9 + $0x1f74] sm:$0xf0]  ;;  %v9073_v5 = vpop.f32.mrf.mxu3  ;;  %v15564_v59 = vor.u32 %v17329_v50, %v15563_v23 }
 0x483   :  { %v15084_v31 = vor.u32 %v17209_v46, %v15083_v61  ;;  %v17201_v35 = vld [vmem:[%s26306_s9 + $0x19ac] sm:$0xf0]  ;;  %v12275_v23 = vld [vmem:[%s26306_s9 + $0x3d8] sm:$0xf] }
 0x484   :  { %v23967_v3 = vadd.f32 %v23861_v38, %v9085_v57  ;;  %v15795_v38 = vld [vmem:[%s26306_s9 + $0x1f58] sm:$0xf]  ;;  %9355 = vmatpush.bf16.msrb.mxu0 %v14348_v7  ;;  %v15531_v47 = vld [vmem:[%s26306_s9 + $0x1d50] sm:$0xf] }
 0x485   :  { %9329 = vmatpush.bf16.msrb.mxu3 %v13836_v58  ;;  %v15796_v13 = vor.u32 %v17386_v10, %v15795_v38  ;;  %v17321_v57 = vld [vmem:[%s26306_s9 + $0x1d6c] sm:$0xf0]  ;;  %v15731_v38 = vld [vmem:[%s26306_s9 + $0x1ed8] sm:$0xf] }
 0x486   :  { %9784 = vmatpush.bf16.msrb.mxu1 %v14612_v17  ;;  %v15051_v17 = vld [vmem:[%s26306_s9 + $0x1990] sm:$0xf]  ;;  %9599 = vmatpush.bf16.msra.mxu2 %v15216_v34  ;;  %v15532_v34 = vor.u32 %v17321_v57, %v15531_v47  ;;  %v17370_v10 = vld [vmem:[%s26306_s9 + $0x1ef4] sm:$0xf0] }
 0x487   :  { %9356 = vmatmul.bf16.vlgmr.msrb.gmra.mxu0 %v20701_v15  ;;  %v15052_v41 = vor.u32 %v17201_v35, %v15051_v17  ;;  %v15019_v7 = vld [vmem:[%s26306_s9 + $0x1950] sm:$0xf]  ;;  %v24049_v35 = vpop.f32.mrf.mxu1 }
 0x488   :  { %9400 = vmatpush.bf16.msra.mxu0 %v15596_v11  ;;  %v17193_v61 = vld [vmem:[%s26306_s9 + $0x196c] sm:$0xf0]  ;;  %v17213_v11 = vld [vmem:[%s26306_s9 + $0x1a14] sm:$0xf]  ;;  %9330 = vmatmul.bf16.vlgmr.msrb.gmra.mxu3 %v20734_v36 }
 0x489   :  { %9785 = vmatmul.bf16.vlgmr.msrb.gmra.mxu1 %v19203_v21  ;;  %9374 = vmatpush.bf16.msra.mxu3 %v15084_v31  ;;  %v15499_v58 = vld [vmem:[%s26306_s9 + $0x1d10] sm:$0xf]  ;;  %v15020_v50 = vor.u32 %v17193_v61, %v15019_v7  ;;  %v16506_v31 = vld [vmem:[%s26306_s9 + $0x3f4] sm:$0xf0] }
 0x48a   :  { %9829 = vmatpush.bf16.msra.mxu1 %v15860_v45  ;;  %v17221_v45 = vld [vmem:[%s26306_s9 + $0x1a54] sm:$0xf]  ;;  %9600 = vmatpush.bf16.msra.mxu2 %v15184_v25  ;;  %v17313_v48 = vld [vmem:[%s26306_s9 + $0x1d2c] sm:$0xf0]  ;;  %v15120_v25 = vor.u32 %v17213_v11, %v15117_v43  ;;  %v15699_v7 = vld [vmem:[%s26306_s9 + $0x1e98] sm:$0xf] }
 0x48b   :  { %v15152_v46 = vor.u32 %v17221_v45, %v15149_v28  ;;  %v14987_v5 = vld [vmem:[%s26306_s9 + $0x1910] sm:$0xf]  ;;  %v9346_v45 = vpop.f32.mrf.mxu2  ;;  %v15732_v28 = vor.u32 %v17370_v10, %v15731_v38  ;;  %v17362_v61 = vld [vmem:[%s26306_s9 + $0x1eb4] sm:$0xf0] }
 0x48c   :  { %9401 = vmatpush.bf16.msra.mxu0 %v15564_v59  ;;  %v17185_v17 = vld [vmem:[%s26306_s9 + $0x192c] sm:$0xf0]  ;;  %v15500_v59 = vor.u32 %v17313_v48, %v15499_v58  ;;  %v15700_v58 = vor.u32 %v17362_v61, %v15699_v7  ;;  %v16490_v38 = vld [vmem:[%s26306_s9 + $0x374] sm:$0xf0] }
 0x48d   :  { %9375 = vmatpush.bf16.msra.mxu3 %v15052_v41  ;;  %v15467_v47 = vld [vmem:[%s26306_s9 + $0x1cd0] sm:$0xf]  ;;  %v12243_v41 = vld [vmem:[%s26306_s9 + $0x398] sm:$0xf] }
 0x48e   :  { %9830 = vmatpush.bf16.msra.mxu1 %v15828_v27  ;;  %v15764_v27 = vor.u32 %v17378_v18, %v15763_v54  ;;  %9601 = vmatpush.bf16.msra.mxu2 %v15152_v46  ;;  %v17305_v57 = vld [vmem:[%s26306_s9 + $0x1cec] sm:$0xf0]  ;;  %v14988_v54 = vor.u32 %v17185_v17, %v14987_v5  ;;  %v16498_v18 = vld [vmem:[%s26306_s9 + $0x3b4] sm:$0xf0]  ;;  %v24069_v46 = vpop.f32.mrf.mxu0 }
 0x48f   :  { %v17177_v11 = vld [vmem:[%s26306_s9 + $0x18ec] sm:$0xf0]  ;;  %v15468_v43 = vor.u32 %v17305_v57, %v15467_v47  ;;  %v15667_v10 = vld [vmem:[%s26306_s9 + $0x1e58] sm:$0xf] }
 0x490   :  { %9402 = vmatpush.bf16.msra.mxu0 %v15532_v34  ;;  %v14955_v34 = vld [vmem:[%s26306_s9 + $0x18d0] sm:$0xf]  ;;  %v17354_v5 = vld [vmem:[%s26306_s9 + $0x1e74] sm:$0xf0] }
 0x491   :  { %9376 = vmatpush.bf16.msra.mxu3 %v15020_v50  ;;  %v15435_v48 = vld [vmem:[%s26306_s9 + $0x1c90] sm:$0xf]  ;;  %v12211_v50 = vld [vmem:[%s26306_s9 + $0x358] sm:$0xf]  ;;  %v15668_v47 = vor.u32 %v17354_v5, %v15667_v10 }
 0x492   :  { %9831 = vmatpush.bf16.msra.mxu1 %v15796_v13  ;;  %v12276_v13 = vor.u32 %v16506_v31, %v12275_v23  ;;  %9602 = vmatpush.bf16.msra.mxu2 %v15120_v25  ;;  %v17297_v23 = vld [vmem:[%s26306_s9 + $0x1cac] sm:$0xf0]  ;;  %v14956_v31 = vor.u32 %v17177_v11, %v14955_v34  ;;  %v15635_v7 = vld [vmem:[%s26306_s9 + $0x1e18] sm:$0xf]  ;;  %v16630_v34 = vld [vmem:[%s26306_s9 + $0x7dc] sm:$0xf] }
 0x493   :  { %v14923_v17 = vld [vmem:[%s26306_s9 + $0x1890] sm:$0xf]  ;;  %v15436_v45 = vor.u32 %v17297_v23, %v15435_v48  ;;  %v17346_v61 = vld [vmem:[%s26306_s9 + $0x1e34] sm:$0xf0]  ;;  %v9123_v23 = vpop.f32.mrf.mxu3 }
 0x494   :  { %9403 = vmatpush.bf16.msra.mxu0 %v15500_v59  ;;  %v17169_v25 = vld [vmem:[%s26306_s9 + $0x18ac] sm:$0xf0]  ;;  %v9580_v59 = vpop.f32.mrf.mxu1  ;;  %v12147_v5 = vld [vmem:[%s26306_s9 + $0x2d8] sm:$0xf] }
 0x495   :  { %9377 = vmatpush.bf16.msra.mxu3 %v14988_v54  ;;  %9603 = vmatmul.bf16.vlgmr.msra.gmra.mxu2 %v19972_v40  ;;  %v17289_v57 = vld [vmem:[%s26306_s9 + $0x1c6c] sm:$0xf0]  ;;  %v16482_v54 = vld [vmem:[%s26306_s9 + $0x334] sm:$0xf0] }
 0x496   :  { %9832 = vmatpush.bf16.msra.mxu1 %v15764_v27  ;;  %9647 = vmatpush.bf16.msrb.mxu2 %v12276_v13  ;;  %v12244_v27 = vor.u32 %v16498_v18, %v12243_v41  ;;  %v15403_v13 = vld [vmem:[%s26306_s9 + $0x1c50] sm:$0xf]  ;;  %v12179_v41 = vld [vmem:[%s26306_s9 + $0x318] sm:$0xf]  ;;  %v14924_v18 = vor.u32 %v17169_v25, %v14923_v17  ;;  %v9151_v11 = vpop.f32.mrf.mxu0 }
 0x497   :  { %v17161_v48 = vld [vmem:[%s26306_s9 + $0x186c] sm:$0xf0]  ;;  %v16474_v17 = vld [vmem:[%s26306_s9 + $0x2f4] sm:$0xf0] }
 0x498   :  { %9404 = vmatpush.bf16.msra.mxu0 %v15468_v43  ;;  %v9111_v43 = vadd.f32 %v22169_v62, %v23967_v3  ;;  %v12180_v3 = vor.u32 %v16482_v54, %v12179_v41  ;;  %v17281_v10 = vld [vmem:[%s26306_s9 + $0x1c2c] sm:$0xf0]  ;;  %v12115_v11 = vld [vmem:[%s26306_s9 + $0x298] sm:$0xf] }
 0x499   :  { %9378 = vmatpush.bf16.msra.mxu3 %v14956_v31  ;;  %v15371_v31 = vld [vmem:[%s26306_s9 + $0x1c10] sm:$0xf] }
 0x49a   :  { %9833 = vmatpush.bf16.msra.mxu1 %v15732_v28  ;;  %9648 = vmatpush.bf16.msrb.mxu2 %v12244_v27  ;;  %v12212_v28 = vor.u32 %v16490_v38, %v12211_v50  ;;  %v12789_v27 = vld [vmem:[%s26306_s9 + $0x7f8] sm:$0xf0]  ;;  %v15404_v50 = vor.u32 %v17289_v57, %v15403_v13  ;;  %v9124_v62 = vadd.f32 %v9123_v23, %v9111_v43  ;;  %v12525_v13 = vld [vmem:[%s26306_s9 + $0x5f0] sm:$0xf0]  ;;  %v14859_v41 = vld [vmem:[%s26306_s9 + $0x1810] sm:$0xf] }
 0x49b   :  { %v15636_v38 = vor.u32 %v17346_v61, %v15635_v7  ;;  %v12792_v25 = vor.u32 %v16630_v34, %v12789_v27  ;;  %v12757_v57 = vld [vmem:[%s26306_s9 + $0x7b8] sm:$0xf0]  ;;  %v17153_v54 = vld [vmem:[%s26306_s9 + $0x182c] sm:$0xf0]  ;;  %v16437_v7 = vld [vmem:[%s26306_s9 + $0x1d4] sm:$0xf]  ;;  %v12148_v61 = vor.u32 %v16474_v17, %v12147_v5 }
 0x49c   :  { %9405 = vmatpush.bf16.msra.mxu0 %v15436_v45  ;;  %v16565_v45 = vld [vmem:[%s26306_s9 + $0x5d4] sm:$0xf] }
 0x49d   :  { %9379 = vmatpush.bf16.msra.mxu3 %v14924_v18  ;;  %v15372_v18 = vor.u32 %v17281_v10, %v15371_v31  ;;  %v12528_v34 = vor.u32 %v16565_v45, %v12525_v13  ;;  %v16557_v23 = vld [vmem:[%s26306_s9 + $0x594] sm:$0xf]  ;;  %v16458_v13 = vld [vmem:[%s26306_s9 + $0x274] sm:$0xf0] }
 0x49e   :  { %9834 = vmatpush.bf16.msra.mxu1 %v15700_v58  ;;  %v14891_v58 = vld [vmem:[%s26306_s9 + $0x1850] sm:$0xf]  ;;  %9649 = vmatpush.bf16.msrb.mxu2 %v12212_v28  ;;  %v16622_v28 = vld [vmem:[%s26306_s9 + $0x79c] sm:$0xf]  ;;  %v11981_v10 = vld [vmem:[%s26306_s9 + $0x1b0] sm:$0xf0] }
 0x49f   :  { %v14892_v59 = vor.u32 %v17161_v48, %v14891_v58  ;;  %v12760_v27 = vor.u32 %v16622_v28, %v12757_v57  ;;  %v14860_v58 = vor.u32 %v17153_v54, %v14859_v41  ;;  %v16466_v48 = vld [vmem:[%s26306_s9 + $0x2b4] sm:$0xf0]  ;;  %v16549_v28 = vld [vmem:[%s26306_s9 + $0x554] sm:$0xf]  ;;  %v16606_v41 = vld [vmem:[%s26306_s9 + $0x71c] sm:$0xf] }
 0x4a0   :  { %9406 = vmatpush.bf16.msra.mxu0 %v15404_v50  ;;  %v12493_v50 = vld [vmem:[%s26306_s9 + $0x5b0] sm:$0xf0]  ;;  %v12116_v5 = vor.u32 %v16466_v48, %v12115_v11  ;;  %v12693_v54 = vld [vmem:[%s26306_s9 + $0x738] sm:$0xf0]  ;;  %v16450_v11 = vld [vmem:[%s26306_s9 + $0x234] sm:$0xf0] }
 0x4a1   :  { %9380 = vmatpush.bf16.msra.mxu3 %v14892_v59  ;;  %v12496_v17 = vor.u32 %v16557_v23, %v12493_v50  ;;  %v24202_v59 = vpop.f32.mrf.mxu2  ;;  %v12429_v48 = vld [vmem:[%s26306_s9 + $0x530] sm:$0xf0]  ;;  %v13299_v23 = vld [vmem:[%s26306_s9 + $0xbd8] sm:$0xf] }
 0x4a2   :  { %9835 = vmatpush.bf16.msra.mxu1 %v15668_v47  ;;  %v9137_v47 = vadd.f32 %v23161_v19, %v9124_v62  ;;  %v12013_v19 = vld [vmem:[%s26306_s9 + $0x1f0] sm:$0xf0]  ;;  %9650 = vmatpush.bf16.msrb.mxu2 %v12180_v3  ;;  %v12725_v62 = vld [vmem:[%s26306_s9 + $0x778] sm:$0xf0]  ;;  %v9125_v3 = vpop.f32.mrf.mxu3 }
 0x4a3   :  { %v12016_v31 = vor.u32 %v16437_v7, %v12013_v19  ;;  %v11949_v7 = vld [vmem:[%s26306_s9 + $0x170] sm:$0xf0] }
 0x4a4   :  { %v24175_v43 = vadd.f32 %v24069_v46, %v9137_v47  ;;  %v16614_v46 = vld [vmem:[%s26306_s9 + $0x75c] sm:$0xf]  ;;  %9407 = vmatpush.bf16.msra.mxu0 %v15372_v18  ;;  %v12461_v47 = vld [vmem:[%s26306_s9 + $0x570] sm:$0xf0] }
 0x4a5   :  { %9381 = vmatpush.bf16.msra.mxu3 %v14860_v58  ;;  %v12728_v45 = vor.u32 %v16614_v46, %v12725_v62  ;;  %v16421_v18 = vld [vmem:[%s26306_s9 + $0x154] sm:$0xf]  ;;  %v16598_v46 = vld [vmem:[%s26306_s9 + $0x6dc] sm:$0xf] }
 0x4a6   :  { %9836 = vmatpush.bf16.msra.mxu1 %v15636_v38  ;;  %v16429_v38 = vld [vmem:[%s26306_s9 + $0x194] sm:$0xf]  ;;  %9651 = vmatpush.bf16.msrb.mxu2 %v12148_v61  ;;  %v12464_v61 = vor.u32 %v16549_v28, %v12461_v47  ;;  %v11952_v50 = vor.u32 %v16421_v18, %v11949_v7  ;;  %v12661_v62 = vld [vmem:[%s26306_s9 + $0x6f8] sm:$0xf0] }
 0x4a7   :  { %9408 = vmatmul.bf16.vlgmr.msra.gmra.mxu0 %v21064_v26  ;;  %v11984_v57 = vor.u32 %v16429_v38, %v11981_v10  ;;  %v16541_v58 = vld [vmem:[%s26306_s9 + $0x514] sm:$0xf]  ;;  %v24257_v10 = vpop.f32.mrf.mxu1  ;;  %v16590_v18 = vld [vmem:[%s26306_s9 + $0x69c] sm:$0xf] }
 0x4a8   :  { %9452 = vmatpush.bf16.msrb.mxu0 %v12528_v34  ;;  %v12051_v34 = vld [vmem:[%s26306_s9 + $0x218] sm:$0xf]  ;;  %9382 = vmatmul.bf16.vlgmr.msra.gmra.mxu3 %v20918_v63  ;;  %v16413_v3 = vld [vmem:[%s26306_s9 + $0x114] sm:$0xf]  ;;  %v12629_v7 = vld [vmem:[%s26306_s9 + $0x6b8] sm:$0xf0] }
 0x4a9   :  { %9837 = vmatmul.bf16.vlgmr.msra.gmra.mxu1 %v19463_v55  ;;  %9426 = vmatpush.bf16.msrb.mxu3 %v12016_v31  ;;  %v16762_v31 = vld [vmem:[%s26306_s9 + $0xbf4] sm:$0xf0]  ;;  %v11917_v38 = vld [vmem:[%s26306_s9 + $0x130] sm:$0xf0] }
 0x4aa   :  { %9881 = vmatpush.bf16.msrb.mxu1 %v12792_v25  ;;  %v12083_v25 = vld [vmem:[%s26306_s9 + $0x258] sm:$0xf]  ;;  %9652 = vmatpush.bf16.msrb.mxu2 %v12116_v5  ;;  %v12052_v5 = vor.u32 %v16450_v11, %v12051_v34  ;;  %v16533_v28 = vld [vmem:[%s26306_s9 + $0x4d4] sm:$0xf] }
 0x4ab   :  { %v12084_v19 = vor.u32 %v16458_v13, %v12083_v25  ;;  %v9398_v25 = vpop.f32.mrf.mxu2  ;;  %v12664_v13 = vor.u32 %v16598_v46, %v12661_v62  ;;  %v12397_v47 = vld [vmem:[%s26306_s9 + $0x4f0] sm:$0xf0]  ;;  %v16746_v46 = vld [vmem:[%s26306_s9 + $0xb74] sm:$0xf0]  ;;  %v16582_v62 = vld [vmem:[%s26306_s9 + $0x65c] sm:$0xf] }
 0x4ac   :  { %9453 = vmatpush.bf16.msrb.mxu0 %v12496_v17  ;;  %v12432_v17 = vor.u32 %v16541_v58, %v12429_v48  ;;  %v11885_v34 = vld [vmem:[%s26306_s9 + $0xf0] sm:$0xf0]  ;;  %v12400_v11 = vor.u32 %v16533_v28, %v12397_v47  ;;  %v12632_v58 = vor.u32 %v16590_v18, %v12629_v7  ;;  %v16574_v18 = vld [vmem:[%s26306_s9 + $0x61c] sm:$0xf] }
 0x4ad   :  { %9427 = vmatpush.bf16.msrb.mxu3 %v11984_v57  ;;  %v13267_v57 = vld [vmem:[%s26306_s9 + $0xb98] sm:$0xf]  ;;  %v16525_v48 = vld [vmem:[%s26306_s9 + $0x494] sm:$0xf]  ;;  %v12565_v7 = vld [vmem:[%s26306_s9 + $0x638] sm:$0xf0] }
 0x4ae   :  { %9882 = vmatpush.bf16.msrb.mxu1 %v12760_v27  ;;  %v12696_v27 = vor.u32 %v16606_v41, %v12693_v54  ;;  %9653 = vmatpush.bf16.msrb.mxu2 %v12084_v19  ;;  %v11920_v41 = vor.u32 %v16413_v3, %v11917_v38  ;;  %v16754_v54 = vld [vmem:[%s26306_s9 + $0xbb4] sm:$0xf0]  ;;  %v24277_v19 = vpop.f32.mrf.mxu0  ;;  %v12597_v3 = vld [vmem:[%s26306_s9 + $0x678] sm:$0xf0]  ;;  %v16397_v38 = vld [vmem:[%s26306_s9 + $0x94] sm:$0xf] }
 0x4af   :  { %v12600_v28 = vor.u32 %v16582_v62, %v12597_v3  ;;  %v12333_v47 = vld [vmem:[%s26306_s9 + $0x470] sm:$0xf0]  ;;  %v13171_v3 = vld [vmem:[%s26306_s9 + $0xad8] sm:$0xf] }
 0x4b0   :  { %9454 = vmatpush.bf16.msrb.mxu0 %v12464_v61  ;;  %v16405_v61 = vld [vmem:[%s26306_s9 + $0xd4] sm:$0xf] }
 0x4b1   :  { %9428 = vmatpush.bf16.msrb.mxu3 %v11952_v50  ;;  %v13235_v50 = vld [vmem:[%s26306_s9 + $0xb58] sm:$0xf]  ;;  %v12301_v62 = vld [vmem:[%s26306_s9 + $0x430] sm:$0xf0] }
 0x4b2   :  { %9883 = vmatpush.bf16.msrb.mxu1 %v12728_v45  ;;  %v13300_v45 = vor.u32 %v16762_v31, %v13299_v23  ;;  %9654 = vmatpush.bf16.msrb.mxu2 %v12052_v5  ;;  %v12365_v23 = vld [vmem:[%s26306_s9 + $0x4b0] sm:$0xf0]  ;;  %v11888_v31 = vor.u32 %v16405_v61, %v11885_v34  ;;  %v16886_v61 = vld [vmem:[%s26306_s9 + $0xfdc] sm:$0xf] }
 0x4b3   :  { %v11853_v5 = vld [vmem:[%s26306_s9 + $0xb0] sm:$0xf0]  ;;  %v12368_v25 = vor.u32 %v16525_v48, %v12365_v23  ;;  %v9175_v23 = vpop.f32.mrf.mxu3 }
 0x4b4   :  { %9455 = vmatpush.bf16.msrb.mxu0 %v12432_v17  ;;  %v9632_v17 = vpop.f32.mrf.mxu1  ;;  %v11821_v48 = vld [vmem:[%s26306_s9 + $0x70] sm:$0xf0] }
 0x4b5   :  { %9429 = vmatpush.bf16.msrb.mxu3 %v11920_v41  ;;  %9655 = vmatmul.bf16.vlgmr.msrb.gmra.mxu2 %v19442_v37  ;;  %v16738_v41 = vld [vmem:[%s26306_s9 + $0xb34] sm:$0xf0] }
 0x4b6   :  { %9884 = vmatpush.bf16.msrb.mxu1 %v12696_v27  ;;  %9699 = vmatpush.bf16.msra.mxu2 %v13300_v45  ;;  %v13268_v27 = vor.u32 %v16754_v54, %v13267_v57  ;;  %v16517_v45 = vld [vmem:[%s26306_s9 + $0x454] sm:$0xf]  ;;  %v13203_v57 = vld [vmem:[%s26306_s9 + $0xb18] sm:$0xf]  ;;  %v11856_v54 = vor.u32 %v16397_v38, %v11853_v5  ;;  %v9203_v34 = vpop.f32.mrf.mxu0 }
 0x4b7   :  { %v16730_v38 = vld [vmem:[%s26306_s9 + $0xaf4] sm:$0xf0] }
 0x4b8   :  { %9456 = vmatpush.bf16.msrb.mxu0 %v12400_v11  ;;  %v9163_v11 = vadd.f32 %v22383_v14, %v24175_v43  ;;  %v13204_v43 = vor.u32 %v16738_v41, %v13203_v57  ;;  %v16381_v57 = vld [vmem:[%s26306_s9 + $0x14] sm:$0xf] }
 0x4b9   :  { %9430 = vmatpush.bf16.msrb.mxu3 %v11888_v31  ;;  %v16509_v31 = vld [vmem:[%s26306_s9 + $0x414] sm:$0xf] }
 0x4ba   :  { %9885 = vmatpush.bf16.msrb.mxu1 %v12664_v13  ;;  %9700 = vmatpush.bf16.msra.mxu2 %v13268_v27  ;;  %v13236_v13 = vor.u32 %v16746_v46, %v13235_v50  ;;  %v13813_v27 = vld [vmem:[%s26306_s9 + $0xff8] sm:$0xf0]  ;;  %v12336_v50 = vor.u32 %v16517_v45, %v12333_v47  ;;  %v9176_v14 = vadd.f32 %v9175_v23, %v9163_v11  ;;  %v13549_v45 = vld [vmem:[%s26306_s9 + $0xdf0] sm:$0xf0]  ;;  %v13139_v11 = vld [vmem:[%s26306_s9 + $0xa98] sm:$0xf] }
 0x4bb   :  { %v12568_v46 = vor.u32 %v16574_v18, %v12565_v7  ;;  %v13816_v5 = vor.u32 %v16886_v61, %v13813_v27  ;;  %v13781_v47 = vld [vmem:[%s26306_s9 + $0xfb8] sm:$0xf0]  ;;  %v11789_v41 = vld [vmem:[%s26306_s9 + $0x30] sm:$0xf0]  ;;  %v13172_v61 = vor.u32 %v16730_v38, %v13171_v3 }
 0x4bc   :  { %9457 = vmatpush.bf16.msrb.mxu0 %v12368_v25  ;;  %v16821_v25 = vld [vmem:[%s26306_s9 + $0xdd4] sm:$0xf] }
 0x4bd   :  { %9431 = vmatpush.bf16.msrb.mxu3 %v11856_v54  ;;  %v12304_v54 = vor.u32 %v16509_v31, %v12301_v62  ;;  %v16693_v18 = vld [vmem:[%s26306_s9 + $0x9d4] sm:$0xf]  ;;  %v13552_v34 = vor.u32 %v16821_v25, %v13549_v45  ;;  %v16870_v31 = vld [vmem:[%s26306_s9 + $0xf5c] sm:$0xf]  ;;  %v16714_v25 = vld [vmem:[%s26306_s9 + $0xa74] sm:$0xf0] }
 0x4be   :  { %9886 = vmatpush.bf16.msrb.mxu1 %v12632_v58  ;;  %v16389_v58 = vld [vmem:[%s26306_s9 + $0x54] sm:$0xf]  ;;  %9701 = vmatpush.bf16.msra.mxu2 %v13236_v13  ;;  %v16878_v13 = vld [vmem:[%s26306_s9 + $0xf9c] sm:$0xf] }
 0x4bf   :  { %v11824_v17 = vor.u32 %v16389_v58, %v11821_v48  ;;  %v13784_v27 = vor.u32 %v16878_v13, %v13781_v47  ;;  %v11792_v58 = vor.u32 %v16381_v57, %v11789_v41  ;;  %v16722_v48 = vld [vmem:[%s26306_s9 + $0xab4] sm:$0xf0]  ;;  %v13517_v23 = vld [vmem:[%s26306_s9 + $0xdb0] sm:$0xf0]  ;;  %v16862_v47 = vld [vmem:[%s26306_s9 + $0xf1c] sm:$0xf] }
 0x4c0   :  { %9458 = vmatpush.bf16.msrb.mxu0 %v12336_v50  ;;  %v13005_v62 = vld [vmem:[%s26306_s9 + $0x9b0] sm:$0xf0]  ;;  %v13140_v3 = vor.u32 %v16722_v48, %v13139_v11  ;;  %v13717_v57 = vld [vmem:[%s26306_s9 + $0xf38] sm:$0xf0]  ;;  %v14323_v48 = vld [vmem:[%s26306_s9 + $0x13d8] sm:$0xf] }
 0x4c1   :  { %9432 = vmatpush.bf16.msrb.mxu3 %v11824_v17  ;;  %v24410_v17 = vpop.f32.mrf.mxu2  ;;  %v16805_v45 = vld [vmem:[%s26306_s9 + $0xd54] sm:$0xf]  ;;  %v13720_v11 = vor.u32 %v16862_v47, %v13717_v57  ;;  %v17010_v47 = vld [vmem:[%s26306_s9 + $0x13b4] sm:$0xf0]  ;;  %v16846_v57 = vld [vmem:[%s26306_s9 + $0xe9c] sm:$0xf] }
 0x4c2   :  { %9887 = vmatpush.bf16.msrb.mxu1 %v12600_v28  ;;  %v9189_v28 = vadd.f32 %v23369_v33, %v9176_v14  ;;  %v13037_v33 = vld [vmem:[%s26306_s9 + $0x9f0] sm:$0xf0]  ;;  %9702 = vmatpush.bf16.msra.mxu2 %v13204_v43  ;;  %v13749_v14 = vld [vmem:[%s26306_s9 + $0xf78] sm:$0xf0]  ;;  %v9177_v43 = vpop.f32.mrf.mxu3 }
 0x4c3   :  { %v13040_v50 = vor.u32 %v16693_v18, %v13037_v33  ;;  %v13485_v13 = vld [vmem:[%s26306_s9 + $0xd70] sm:$0xf0] }
 0x4c4   :  { %v24380_v7 = vadd.f32 %v24277_v19, %v9189_v28  ;;  %v16813_v19 = vld [vmem:[%s26306_s9 + $0xd94] sm:$0xf]  ;;  %9459 = vmatpush.bf16.msrb.mxu0 %v12304_v54  ;;  %v13488_v33 = vor.u32 %v16805_v45, %v13485_v13  ;;  %v14291_v13 = vld [vmem:[%s26306_s9 + $0x1398] sm:$0xf] }
 0x4c5   :  { %v13520_v38 = vor.u32 %v16813_v19, %v13517_v23  ;;  %9433 = vmatpush.bf16.msrb.mxu3 %v11792_v58  ;;  %v16677_v41 = vld [vmem:[%s26306_s9 + $0x954] sm:$0xf]  ;;  %v17018_v23 = vld [vmem:[%s26306_s9 + $0x13f4] sm:$0xf0] }
 0x4c6   :  { %9888 = vmatpush.bf16.msrb.mxu1 %v12568_v46  ;;  %v16685_v46 = vld [vmem:[%s26306_s9 + $0x994] sm:$0xf]  ;;  %9703 = vmatpush.bf16.msra.mxu2 %v13172_v61  ;;  %v13075_v61 = vld [vmem:[%s26306_s9 + $0xa18] sm:$0xf] }
 0x4c7   :  { %9460 = vmatmul.bf16.vlgmr.msrb.gmra.mxu0 %v19906_v2  ;;  %v13008_v28 = vor.u32 %v16685_v46, %v13005_v62  ;;  %v12973_v54 = vld [vmem:[%s26306_s9 + $0x970] sm:$0xf0]  ;;  %v24465_v46 = vpop.f32.mrf.mxu1 }
 0x4c8   :  { %9504 = vmatpush.bf16.msra.mxu0 %v13552_v34  ;;  %v16706_v34 = vld [vmem:[%s26306_s9 + $0xa34] sm:$0xf0]  ;;  %9434 = vmatmul.bf16.vlgmr.msrb.gmra.mxu3 %v20305_v20  ;;  %v13453_v58 = vld [vmem:[%s26306_s9 + $0xd30] sm:$0xf0]  ;;  %v12976_v19 = vor.u32 %v16677_v41, %v12973_v54  ;;  %v13653_v41 = vld [vmem:[%s26306_s9 + $0xeb8] sm:$0xf0]  ;;  %v24485_v54 = vpop.f32.mrf.mxu0 }
 0x4c9   :  { %9889 = vmatmul.bf16.vlgmr.msrb.gmra.mxu1 %v18896_v22  ;;  %v13752_v22 = vor.u32 %v16870_v31, %v13749_v14  ;;  %9478 = vmatpush.bf16.msra.mxu3 %v13040_v50  ;;  %v16854_v50 = vld [vmem:[%s26306_s9 + $0xedc] sm:$0xf]  ;;  %v16669_v14 = vld [vmem:[%s26306_s9 + $0x914] sm:$0xf]  ;;  %v13076_v62 = vor.u32 %v16706_v34, %v13075_v61  ;;  %v14292_v34 = vor.u32 %v17010_v47, %v14291_v13  ;;  %v16994_v47 = vld [vmem:[%s26306_s9 + $0x1334] sm:$0xf0] }
 0x4ca   :  { %9933 = vmatpush.bf16.msra.mxu1 %v13816_v5  ;;  %v13107_v5 = vld [vmem:[%s26306_s9 + $0xa58] sm:$0xf]  ;;  %9704 = vmatpush.bf16.msra.mxu2 %v13140_v3  ;;  %v13685_v31 = vld [vmem:[%s26306_s9 + $0xef8] sm:$0xf0]  ;;  %v12941_v43 = vld [vmem:[%s26306_s9 + $0x930] sm:$0xf0] }
 0x4cb   :  { %v13108_v18 = vor.u32 %v16714_v25, %v13107_v5  ;;  %v14324_v5 = vor.u32 %v17018_v23, %v14323_v48  ;;  %v16789_v25 = vld [vmem:[%s26306_s9 + $0xcd4] sm:$0xf]  ;;  %v14259_v48 = vld [vmem:[%s26306_s9 + $0x1358] sm:$0xf] }
 0x4cc   :  { %9505 = vmatpush.bf16.msra.mxu0 %v13520_v38  ;;  %v9450_v38 = vpop.f32.mrf.mxu2  ;;  %v13421_v45 = vld [vmem:[%s26306_s9 + $0xcf0] sm:$0xf0]  ;;  %v17002_v23 = vld [vmem:[%s26306_s9 + $0x1374] sm:$0xf0] }
 0x4cd   :  { %9479 = vmatpush.bf16.msra.mxu3 %v13008_v28  ;;  %v12944_v28 = vor.u32 %v16669_v14, %v12941_v43  ;;  %v13424_v61 = vor.u32 %v16789_v25, %v13421_v45  ;;  %v16653_v14 = vld [vmem:[%s26306_s9 + $0x894] sm:$0xf]  ;;  %v14260_v25 = vor.u32 %v17002_v23, %v14259_v48 }
 0x4ce   :  { %9934 = vmatpush.bf16.msra.mxu1 %v13784_v27  ;;  %v16797_v27 = vld [vmem:[%s26306_s9 + $0xd14] sm:$0xf]  ;;  %9705 = vmatpush.bf16.msra.mxu2 %v13108_v18 }
 0x4cf   :  { %v13456_v3 = vor.u32 %v16797_v27, %v13453_v58  ;;  %v16661_v18 = vld [vmem:[%s26306_s9 + $0x8d4] sm:$0xf] }
 0x4d0   :  { %9506 = vmatpush.bf16.msra.mxu0 %v13488_v33  ;;  %v12909_v33 = vld [vmem:[%s26306_s9 + $0x8f0] sm:$0xf0] }
 0x4d1   :  { %9480 = vmatpush.bf16.msra.mxu3 %v12976_v19  ;;  %v16781_v27 = vld [vmem:[%s26306_s9 + $0xc94] sm:$0xf]  ;;  %v12912_v19 = vor.u32 %v16661_v18, %v12909_v33  ;;  %v13589_v18 = vld [vmem:[%s26306_s9 + $0xe38] sm:$0xf0] }
 0x4d2   :  { %9935 = vmatpush.bf16.msra.mxu1 %v13752_v22  ;;  %v13688_v22 = vor.u32 %v16854_v50, %v13685_v31  ;;  %9706 = vmatpush.bf16.msra.mxu2 %v13076_v62  ;;  %v13389_v58 = vld [vmem:[%s26306_s9 + $0xcb0] sm:$0xf0]  ;;  %v16838_v50 = vld [vmem:[%s26306_s9 + $0xe5c] sm:$0xf]  ;;  %v9684_v62 = vpop.f32.mrf.mxu1 }
 0x4d3   :  { %v13621_v31 = vld [vmem:[%s26306_s9 + $0xe78] sm:$0xf0]  ;;  %v12877_v43 = vld [vmem:[%s26306_s9 + $0x8b0] sm:$0xf0]  ;;  %v16986_v62 = vld [vmem:[%s26306_s9 + $0x12f4] sm:$0xf0] }
 0x4d4   :  { %9507 = vmatpush.bf16.msra.mxu0 %v13456_v3  ;;  %v17476_v3 = vld [vmem:[%s26309_s10] sm:$0xff]  ;;  %v13624_v45 = vor.u32 %v16838_v50, %v13621_v31  ;;  %v13357_v13 = vld [vmem:[%s26306_s9 + $0xc70] sm:$0xf0]  ;;  %v17142_v33 = vld [vmem:[%s26306_s9 + $0x17dc] sm:$0xf] }
 0x4d5   :  { %9481 = vmatpush.bf16.msra.mxu3 %v12944_v28  ;;  %9707 = vmatmul.bf16.vlgmr.msra.gmra.mxu2 %v19597_v1  ;;  %v3254_v38 = vperm.slane %v17476_v3, 4  ;;  %v14227_v28 = vld [vmem:[%s26306_s9 + $0x1318] sm:$0xf] }
 0x4d6   :  { %9936 = vmatpush.bf16.msra.mxu1 %v13720_v11  ;;  %9751 = vmatpush.bf16.msrb.mxu2 %v14324_v5  ;;  %v13656_v11 = vor.u32 %v16846_v57, %v13653_v41  ;;  %v13392_v5 = vor.u32 %v16781_v27, %v13389_v58  ;;  %v12880_v57 = vor.u32 %v16653_v14, %v12877_v43  ;;  %v16830_v41 = vld [vmem:[%s26306_s9 + $0xe1c] sm:$0xf]  ;;  %v12845_v27 = vld [vmem:[%s26306_s9 + $0x870] sm:$0xf0]  ;;  %v9227_v58 = vpop.f32.mrf.mxu3  ;;  %v14195_v43 = vld [vmem:[%s26306_s9 + $0x12d8] sm:$0xf] }
 0x4d7   :  { %v9228_v23 = vadd.f32 %v9227_v58, %v3254_v38  ;;  %v14228_v50 = vor.u32 %v16994_v47, %v14227_v28  ;;  %v13592_v31 = vor.u32 %v16830_v41, %v13589_v18  ;;  %v13325_v14 = vld [vmem:[%s26306_s9 + $0xc30] sm:$0xf0]  ;;  %v14196_v18 = vor.u32 %v16986_v62, %v14195_v43  ;;  %v16978_v58 = vld [vmem:[%s26306_s9 + $0x12b4] sm:$0xf0] }
 0x4d8   :  { %9508 = vmatpush.bf16.msra.mxu0 %v13424_v61  ;;  %v9255_v61 = vpop.f32.mrf.mxu0  ;;  %v17077_v38 = vld [vmem:[%s26306_s9 + $0x15d4] sm:$0xf] }
 0x4d9   :  { %9482 = vmatpush.bf16.msra.mxu3 %v12912_v19  ;;  %v16765_v19 = vld [vmem:[%s26306_s9 + $0xc14] sm:$0xf]  ;;  %v14163_v61 = vld [vmem:[%s26306_s9 + $0x1298] sm:$0xf] }
 0x4da   :  { %9937 = vmatpush.bf16.msra.mxu1 %v13688_v22  ;;  %v16773_v22 = vld [vmem:[%s26306_s9 + $0xc54] sm:$0xf]  ;;  %9752 = vmatpush.bf16.msrb.mxu2 %v14292_v34  ;;  %v14837_v34 = vld [vmem:[%s26306_s9 + $0x17f8] sm:$0xf0]  ;;  %v14164_v62 = vor.u32 %v16978_v58, %v14163_v61  ;;  %v16962_v61 = vld [vmem:[%s26306_s9 + $0x1234] sm:$0xf0] }
 0x4db   :  { %v13360_v48 = vor.u32 %v16773_v22, %v13357_v13  ;;  %v14840_v3 = vor.u32 %v17142_v33, %v14837_v34  ;;  %v14573_v22 = vld [vmem:[%s26306_s9 + $0x15f0] sm:$0xf0]  ;;  %v14805_v13 = vld [vmem:[%s26306_s9 + $0x17b8] sm:$0xf0] }
 0x4dc   :  { %9509 = vmatpush.bf16.msra.mxu0 %v13392_v5  ;;  %v16637_v28 = vld [vmem:[%s26306_s9 + $0x814] sm:$0xf]  ;;  %v14576_v33 = vor.u32 %v17077_v38, %v14573_v22  ;;  %v24619_v38 = vpop.f32.mrf.mxu2  ;;  %v16970_v22 = vld [vmem:[%s26306_s9 + $0x1274] sm:$0xf0] }
 0x4dd   :  { %9483 = vmatpush.bf16.msra.mxu3 %v12880_v57  ;;  %v12813_v47 = vld [vmem:[%s26306_s9 + $0x830] sm:$0xf0]  ;;  %v13328_v57 = vor.u32 %v16765_v19, %v13325_v14 }
 0x4de   :  { %9938 = vmatpush.bf16.msra.mxu1 %v13656_v11  ;;  %v16645_v11 = vld [vmem:[%s26306_s9 + $0x854] sm:$0xf]  ;;  %9753 = vmatpush.bf16.msrb.mxu2 %v14260_v25  ;;  %v17134_v25 = vld [vmem:[%s26306_s9 + $0x179c] sm:$0xf] }
 0x4df   :  { %v12848_v5 = vor.u32 %v16645_v11, %v12845_v27  ;;  %v16949_v41 = vld [vmem:[%s26306_s9 + $0x11d4] sm:$0xf]  ;;  %v14808_v11 = vor.u32 %v17134_v25, %v14805_v13  ;;  %v12816_v27 = vor.u32 %v16637_v28, %v12813_v47  ;;  %v17118_v28 = vld [vmem:[%s26306_s9 + $0x171c] sm:$0xf] }
 0x4e0   :  { %9510 = vmatpush.bf16.msra.mxu0 %v13360_v48  ;;  %v17069_v48 = vld [vmem:[%s26306_s9 + $0x1594] sm:$0xf]  ;;  %v14741_v47 = vld [vmem:[%s26306_s9 + $0x1738] sm:$0xf0] }
 0x4e1   :  { %9484 = vmatpush.bf16.msra.mxu3 %v12848_v5  ;;  %v14541_v19 = vld [vmem:[%s26306_s9 + $0x15b0] sm:$0xf0]  ;;  %v14131_v5 = vld [vmem:[%s26306_s9 + $0x1258] sm:$0xf] }
 0x4e2   :  { %9939 = vmatpush.bf16.msra.mxu1 %v13624_v45  ;;  %v9241_v45 = vadd.f32 %v23577_v9, %v9228_v23  ;;  %v14061_v9 = vld [vmem:[%s26306_s9 + $0x11f0] sm:$0xf0]  ;;  %9754 = vmatpush.bf16.msrb.mxu2 %v14228_v50  ;;  %v14773_v50 = vld [vmem:[%s26306_s9 + $0x1778] sm:$0xf0] }
 0x4e3   :  { %v14064_v23 = vor.u32 %v16949_v41, %v14061_v9  ;;  %v16941_v14 = vld [vmem:[%s26306_s9 + $0x1194] sm:$0xf]  ;;  %v14132_v9 = vor.u32 %v16970_v22, %v14131_v5 }
 0x4e4   :  { %v24592_v34 = vadd.f32 %v24485_v54, %v9241_v45  ;;  %v17126_v54 = vld [vmem:[%s26306_s9 + $0x175c] sm:$0xf]  ;;  %9511 = vmatpush.bf16.msra.mxu0 %v13328_v57  ;;  %v14029_v43 = vld [vmem:[%s26306_s9 + $0x11b0] sm:$0xf0]  ;;  %v9502_v5 = vpop.f32.mrf.mxu2 }
 0x4e5   :  { %9485 = vmatpush.bf16.msra.mxu3 %v12816_v27  ;;  %v17061_v25 = vld [vmem:[%s26306_s9 + $0x1554] sm:$0xf]  ;;  %v14032_v13 = vor.u32 %v16941_v14, %v14029_v43 }
 0x4e6   :  { %9940 = vmatpush.bf16.msra.mxu1 %v13592_v31  ;;  %v9229_v31 = vpop.f32.mrf.mxu3  ;;  %9755 = vmatpush.bf16.msrb.mxu2 %v14196_v18  ;;  %v14509_v45 = vld [vmem:[%s26306_s9 + $0x1570] sm:$0xf0]  ;;  %v24674_v43 = vpop.f32.mrf.mxu1 }
 0x4e7   :  { %9512 = vmatmul.bf16.vlgmr.msra.gmra.mxu0 %v20278_v30  ;;  %v16933_v57 = vld [vmem:[%s26306_s9 + $0x1154] sm:$0xf]  ;;  %v14512_v18 = vor.u32 %v17061_v25, %v14509_v45 }
 0x4e8   :  { %9556 = vmatpush.bf16.msrb.mxu0 %v14576_v33  ;;  %v13997_v41 = vld [vmem:[%s26306_s9 + $0x1170] sm:$0xf0]  ;;  %v14099_v33 = vld [vmem:[%s26306_s9 + $0x1218] sm:$0xf]  ;;  %9486 = vmatmul.bf16.vlgmr.msra.gmra.mxu3 %v20518_v49 }
 0x4e9   :  { %9941 = vmatmul.bf16.vlgmr.msra.gmra.mxu1 %v19050_v53  ;;  %v14776_v53 = vor.u32 %v17126_v54, %v14773_v50  ;;  %9530 = vmatpush.bf16.msrb.mxu3 %v14064_v23  ;;  %v17053_v27 = vld [vmem:[%s26306_s9 + $0x1514] sm:$0xf]  ;;  %v17274_v23 = vld [vmem:[%s26306_s9 + $0x1bf4] sm:$0xf0]  ;;  %v17110_v54 = vld [vmem:[%s26306_s9 + $0x16dc] sm:$0xf] }
 0x4ea   :  { %9985 = vmatpush.bf16.msrb.mxu1 %v14840_v3  ;;  %v14544_v3 = vor.u32 %v17069_v48, %v14541_v19  ;;  %9756 = vmatpush.bf16.msrb.mxu2 %v14164_v62  ;;  %v14477_v58 = vld [vmem:[%s26306_s9 + $0x1530] sm:$0xf0]  ;;  %v15347_v48 = vld [vmem:[%s26306_s9 + $0x1bd8] sm:$0xf]  ;;  %v14000_v19 = vor.u32 %v16933_v57, %v13997_v41  ;;  %v14709_v50 = vld [vmem:[%s26306_s9 + $0x16f8] sm:$0xf0]  ;;  %v14100_v62 = vor.u32 %v16962_v61, %v14099_v33 }
 0x4eb   :  { %v16925_v31 = vld [vmem:[%s26306_s9 + $0x1114] sm:$0xf]  ;;  %v14712_v22 = vor.u32 %v17110_v54, %v14709_v50  ;;  %v17102_v57 = vld [vmem:[%s26306_s9 + $0x169c] sm:$0xf]  ;;  %v17258_v54 = vld [vmem:[%s26306_s9 + $0x1b74] sm:$0xf0] }
 0x4ec   :  { %9557 = vmatpush.bf16.msrb.mxu0 %v14544_v3  ;;  %v13965_v14 = vld [vmem:[%s26306_s9 + $0x1130] sm:$0xf0]  ;;  %v14480_v3 = vor.u32 %v17053_v27, %v14477_v58  ;;  %v14677_v41 = vld [vmem:[%s26306_s9 + $0x16b8] sm:$0xf0] }
 0x4ed   :  { %9531 = vmatpush.bf16.msrb.mxu3 %v14032_v13  ;;  %v17045_v25 = vld [vmem:[%s26306_s9 + $0x14d4] sm:$0xf]  ;;  %v15315_v13 = vld [vmem:[%s26306_s9 + $0x1b98] sm:$0xf]  ;;  %v14680_v27 = vor.u32 %v17102_v57, %v14677_v41  ;;  %v17094_v50 = vld [vmem:[%s26306_s9 + $0x165c] sm:$0xf] }
 0x4ee   :  { %9986 = vmatpush.bf16.msrb.mxu1 %v14808_v11  ;;  %v14744_v11 = vor.u32 %v17118_v28, %v14741_v47  ;;  %9757 = vmatpush.bf16.msrb.mxu2 %v14132_v9  ;;  %v14445_v45 = vld [vmem:[%s26306_s9 + $0x14f0] sm:$0xf0]  ;;  %v13968_v28 = vor.u32 %v16925_v31, %v13965_v14  ;;  %v17266_v47 = vld [vmem:[%s26306_s9 + $0x1bb4] sm:$0xf0]  ;;  %v24694_v9 = vpop.f32.mrf.mxu0  ;;  %v14645_v31 = vld [vmem:[%s26306_s9 + $0x1678] sm:$0xf0] }
 0x4ef   :  { %v13933_v33 = vld [vmem:[%s26306_s9 + $0x10f0] sm:$0xf0]  ;;  %v14448_v61 = vor.u32 %v17045_v25, %v14445_v45  ;;  %v14648_v25 = vor.u32 %v17094_v50, %v14645_v31  ;;  %v17086_v57 = vld [vmem:[%s26306_s9 + $0x161c] sm:$0xf]  ;;  %v15219_v31 = vld [vmem:[%s26306_s9 + $0x1ad8] sm:$0xf] }
 0x4f0   :  { %9558 = vmatpush.bf16.msrb.mxu0 %v14512_v18  ;;  %v16917_v18 = vld [vmem:[%s26306_s9 + $0x10d4] sm:$0xf]  ;;  %v14613_v41 = vld [vmem:[%s26306_s9 + $0x1638] sm:$0xf0] }
 0x4f1   :  { %9532 = vmatpush.bf16.msrb.mxu3 %v14000_v19  ;;  %v17037_v58 = vld [vmem:[%s26306_s9 + $0x1494] sm:$0xf]  ;;  %v15283_v19 = vld [vmem:[%s26306_s9 + $0x1b58] sm:$0xf] }
 0x4f2   :  { %9987 = vmatpush.bf16.msrb.mxu1 %v14776_v53  ;;  %v15348_v53 = vor.u32 %v17274_v23, %v15347_v48  ;;  %9758 = vmatpush.bf16.msrb.mxu2 %v14100_v62  ;;  %v14413_v48 = vld [vmem:[%s26306_s9 + $0x14b0] sm:$0xf0]  ;;  %v13936_v23 = vor.u32 %v16917_v18, %v13933_v33  ;;  %v17398_v18 = vld [vmem:[%s26306_s9 + $0x1fdc] sm:$0xf] }
 0x4f3   :  { %v16909_v14 = vld [vmem:[%s26306_s9 + $0x1094] sm:$0xf]  ;;  %v14416_v5 = vor.u32 %v17037_v58, %v14413_v48  ;;  %v9279_v48 = vpop.f32.mrf.mxu3 }
 0x4f4   :  { %9559 = vmatpush.bf16.msrb.mxu0 %v14480_v3  ;;  %v13901_v62 = vld [vmem:[%s26306_s9 + $0x10b0] sm:$0xf0]  ;;  %v9736_v3 = vpop.f32.mrf.mxu1 }
 0x4f5   :  { %9533 = vmatpush.bf16.msrb.mxu3 %v13968_v28  ;;  %9759 = vmatmul.bf16.vlgmr.msrb.gmra.mxu2 %v19809_v0  ;;  %v14381_v45 = vld [vmem:[%s26306_s9 + $0x1470] sm:$0xf0]  ;;  %v17250_v28 = vld [vmem:[%s26306_s9 + $0x1b34] sm:$0xf0] }
 0x4f6   :  { %9988 = vmatpush.bf16.msrb.mxu1 %v14744_v11  ;;  %9803 = vmatpush.bf16.msra.mxu2 %v15348_v53  ;;  %v15316_v11 = vor.u32 %v17266_v47, %v15315_v13  ;;  %v17029_v53 = vld [vmem:[%s26306_s9 + $0x1454] sm:$0xf]  ;;  %v15251_v13 = vld [vmem:[%s26306_s9 + $0x1b18] sm:$0xf]  ;;  %v13904_v47 = vor.u32 %v16909_v14, %v13901_v62  ;;  %v9307_v33 = vpop.f32.mrf.mxu0 }
 0x4f7   :  { %v13869_v58 = vld [vmem:[%s26306_s9 + $0x1070] sm:$0xf0]  ;;  %v17242_v14 = vld [vmem:[%s26306_s9 + $0x1af4] sm:$0xf0] }
 0x4f8   :  { %9560 = vmatpush.bf16.msrb.mxu0 %v14448_v61  ;;  %v9267_v61 = vadd.f32 %v22799_v52, %v24592_v34  ;;  %v15252_v34 = vor.u32 %v17250_v28, %v15251_v13  ;;  %v14349_v50 = vld [vmem:[%s26306_s9 + $0x1430] sm:$0xf0]  ;;  %v15187_v33 = vld [vmem:[%s26306_s9 + $0x1a98] sm:$0xf] }
 0x4f9   :  { %9534 = vmatpush.bf16.msrb.mxu3 %v13936_v23  ;;  %v17021_v23 = vld [vmem:[%s26306_s9 + $0x1414] sm:$0xf] }
 0x4fa   :  { %9989 = vmatpush.bf16.msrb.mxu1 %v14712_v22  ;;  %9804 = vmatpush.bf16.msra.mxu2 %v15316_v11  ;;  %v15284_v22 = vor.u32 %v17258_v54, %v15283_v19  ;;  %v15861_v11 = vld [vmem:[%s26306_s9 + $0x1ff8] sm:$0xf0]  ;;  %v14384_v19 = vor.u32 %v17029_v53, %v14381_v45  ;;  %v9280_v52 = vadd.f32 %v9279_v48, %v9267_v61  ;;  %v15597_v53 = vld [vmem:[%s26306_s9 + $0x1df0] sm:$0xf0] }
 0x4fb   :  { %v14616_v54 = vor.u32 %v17086_v57, %v14613_v41  ;;  %v15864_v62 = vor.u32 %v17398_v18, %v15861_v11  ;;  %v15829_v45 = vld [vmem:[%s26306_s9 + $0x1fb8] sm:$0xf0]  ;;  %v16893_v13 = vld [vmem:[%s26306_s9 + $0x1014] sm:$0xf]  ;;  %v15220_v41 = vor.u32 %v17242_v14, %v15219_v31 }
 0x4fc   :  { %9561 = vmatpush.bf16.msrb.mxu0 %v14416_v5  ;;  %v17333_v5 = vld [vmem:[%s26306_s9 + $0x1dd4] sm:$0xf] }
 0x4fd   :  { %9535 = vmatpush.bf16.msrb.mxu3 %v13904_v47  ;;  %v13837_v28 = vld [vmem:[%s26306_s9 + $0x1030] sm:$0xf0]  ;;  %v14352_v47 = vor.u32 %v17021_v23, %v14349_v50  ;;  %v15600_v18 = vor.u32 %v17333_v5, %v15597_v53  ;;  %v17226_v5 = vld [vmem:[%s26306_s9 + $0x1a74] sm:$0xf0] }
 0x4fe   :  { %9990 = vmatpush.bf16.msrb.mxu1 %v14680_v27  ;;  %v16901_v27 = vld [vmem:[%s26306_s9 + $0x1054] sm:$0xf]  ;;  %9805 = vmatpush.bf16.msra.mxu2 %v15284_v22  ;;  %v17390_v22 = vld [vmem:[%s26306_s9 + $0x1f9c] sm:$0xf] }
 0x4ff   :  { %v13872_v3 = vor.u32 %v16901_v27, %v13869_v58  ;;  %v17205_v57 = vld [vmem:[%s26306_s9 + $0x19d4] sm:$0xf]  ;;  %v15832_v11 = vor.u32 %v17390_v22, %v15829_v45  ;;  %v13840_v27 = vor.u32 %v16893_v13, %v13837_v28  ;;  %v17234_v58 = vld [vmem:[%s26306_s9 + $0x1ab4] sm:$0xf0]  ;;  %v17374_v45 = vld [vmem:[%s26306_s9 + $0x1f1c] sm:$0xf] }
 0x500   :  { %9562 = vmatpush.bf16.msrb.mxu0 %v14384_v19  ;;  %v17325_v48 = vld [vmem:[%s26306_s9 + $0x1d94] sm:$0xf]  ;;  %v15188_v31 = vor.u32 %v17234_v58, %v15187_v33  ;;  %v15765_v13 = vld [vmem:[%s26306_s9 + $0x1f38] sm:$0xf0] }
 0x501   :  { %9536 = vmatpush.bf16.msrb.mxu3 %v13872_v3  ;;  %v15565_v19 = vld [vmem:[%s26306_s9 + $0x1db0] sm:$0xf0]  ;;  %v24827_v3 = vpop.f32.mrf.mxu2  ;;  %v15768_v33 = vor.u32 %v17374_v45, %v15765_v13  ;;  %v16502_v58 = vld [vmem:[%s26306_s9 + $0x3dc] sm:$0xf] }
 0x502   :  { %9991 = vmatpush.bf16.msrb.mxu1 %v14648_v25  ;;  %v9293_v25 = vadd.f32 %v23786_v60, %v9280_v52  ;;  %v15085_v60 = vld [vmem:[%s26306_s9 + $0x19f0] sm:$0xf0]  ;;  %9806 = vmatpush.bf16.msra.mxu2 %v15252_v34  ;;  %v15797_v52 = vld [vmem:[%s26306_s9 + $0x1f78] sm:$0xf0]  ;;  %v9281_v34 = vpop.f32.mrf.mxu3  ;;  %v15568_v14 = vor.u32 %v17325_v48, %v15565_v19 }
 0x503   :  { %v15088_v23 = vor.u32 %v17205_v57, %v15085_v60  ;;  %v15053_v50 = vld [vmem:[%s26306_s9 + $0x19b0] sm:$0xf0]  ;;  %v12277_v19 = vld [vmem:[%s26306_s9 + $0x3f8] sm:$0xf0] }
 0x504   :  { %v24800_v61 = vadd.f32 %v24694_v9, %v9293_v25  ;;  %v17382_v9 = vld [vmem:[%s26306_s9 + $0x1f5c] sm:$0xf]  ;;  %9563 = vmatpush.bf16.msrb.mxu0 %v14352_v47  ;;  %v17317_v53 = vld [vmem:[%s26306_s9 + $0x1d54] sm:$0xf] }
 0x505   :  { %9537 = vmatpush.bf16.msrb.mxu3 %v13840_v27  ;;  %v15533_v22 = vld [vmem:[%s26306_s9 + $0x1d70] sm:$0xf0]  ;;  %v12245_v45 = vld [vmem:[%s26306_s9 + $0x3b8] sm:$0xf0] }
 0x506   :  { %9992 = vmatpush.bf16.msrb.mxu1 %v14616_v54  ;;  %v17197_v54 = vld [vmem:[%s26306_s9 + $0x1994] sm:$0xf]  ;;  %9807 = vmatpush.bf16.msra.mxu2 %v15220_v41  ;;  %v15536_v60 = vor.u32 %v17317_v53, %v15533_v22  ;;  %v15123_v41 = vld [vmem:[%s26306_s9 + $0x1a18] sm:$0xf]  ;;  %v16494_v22 = vld [vmem:[%s26306_s9 + $0x39c] sm:$0xf] }
 0x507   :  { %9564 = vmatmul.bf16.vlgmr.msrb.gmra.mxu0 %v20701_v15  ;;  %v15056_v25 = vor.u32 %v17197_v54, %v15053_v50  ;;  %v17189_v28 = vld [vmem:[%s26306_s9 + $0x1954] sm:$0xf]  ;;  %v24882_v54 = vpop.f32.mrf.mxu1  ;;  %v17358_v13 = vld [vmem:[%s26306_s9 + $0x1e9c] sm:$0xf] }
 0x508   :  { %9608 = vmatpush.bf16.msra.mxu0 %v15600_v18  ;;  %v15021_v47 = vld [vmem:[%s26306_s9 + $0x1970] sm:$0xf0]  ;;  %v17218_v18 = vld [vmem:[%s26306_s9 + $0x1a34] sm:$0xf0]  ;;  %9538 = vmatmul.bf16.vlgmr.msrb.gmra.mxu3 %v20734_v36 }
 0x509   :  { %9993 = vmatmul.bf16.vlgmr.msrb.gmra.mxu1 %v19203_v21  ;;  %v15800_v21 = vor.u32 %v17382_v9, %v15797_v52  ;;  %9582 = vmatpush.bf16.msra.mxu3 %v15088_v23  ;;  %v15501_v27 = vld [vmem:[%s26306_s9 + $0x1d30] sm:$0xf0]  ;;  %v15024_v48 = vor.u32 %v17189_v28, %v15021_v47  ;;  %v17366_v23 = vld [vmem:[%s26306_s9 + $0x1edc] sm:$0xf]  ;;  %v15124_v50 = vor.u32 %v17218_v18, %v15123_v41  ;;  %v24902_v47 = vpop.f32.mrf.mxu0 }
 0x50a   :  { %10037 = vmatpush.bf16.msra.mxu1 %v15864_v62  ;;  %v15155_v62 = vld [vmem:[%s26306_s9 + $0x1a58] sm:$0xf]  ;;  %9808 = vmatpush.bf16.msra.mxu2 %v15188_v31  ;;  %v15733_v9 = vld [vmem:[%s26306_s9 + $0x1ef8] sm:$0xf0]  ;;  %v17181_v52 = vld [vmem:[%s26306_s9 + $0x1914] sm:$0xf]  ;;  %v12248_v18 = vor.u32 %v16494_v22, %v12245_v45 }
 0x50b   :  { %v15156_v57 = vor.u32 %v17226_v5, %v15155_v62  ;;  %v14989_v34 = vld [vmem:[%s26306_s9 + $0x1930] sm:$0xf0]  ;;  %v12280_v62 = vor.u32 %v16502_v58, %v12277_v19  ;;  %v15701_v28 = vld [vmem:[%s26306_s9 + $0x1eb8] sm:$0xf0] }
 0x50c   :  { %9609 = vmatpush.bf16.msra.mxu0 %v15568_v14  ;;  %v9554_v14 = vpop.f32.mrf.mxu2  ;;  %v17301_v5 = vld [vmem:[%s26306_s9 + $0x1cd4] sm:$0xf]  ;;  %v16486_v58 = vld [vmem:[%s26306_s9 + $0x35c] sm:$0xf] }
 0x50d   :  { %9583 = vmatpush.bf16.msra.mxu3 %v15056_v25  ;;  %v15469_v53 = vld [vmem:[%s26306_s9 + $0x1cf0] sm:$0xf0]  ;;  %v14992_v25 = vor.u32 %v17181_v52, %v14989_v34  ;;  %v12213_v19 = vld [vmem:[%s26306_s9 + $0x378] sm:$0xf0] }
 0x50e   :  { %10038 = vmatpush.bf16.msra.mxu1 %v15832_v11  ;;  %v17309_v11 = vld [vmem:[%s26306_s9 + $0x1d14] sm:$0xf]  ;;  %9809 = vmatpush.bf16.msra.mxu2 %v15156_v57  ;;  %v15472_v41 = vor.u32 %v17301_v5, %v15469_v53  ;;  %v12216_v14 = vor.u32 %v16486_v58, %v12213_v19  ;;  %v16478_v53 = vld [vmem:[%s26306_s9 + $0x31c] sm:$0xf] }
 0x50f   :  { %v15504_v31 = vor.u32 %v17309_v11, %v15501_v27  ;;  %v17173_v57 = vld [vmem:[%s26306_s9 + $0x18d4] sm:$0xf]  ;;  %v17342_v45 = vld [vmem:[%s26306_s9 + $0x1e1c] sm:$0xf] }
 0x510   :  { %9610 = vmatpush.bf16.msra.mxu0 %v15536_v60  ;;  %v14957_v60 = vld [vmem:[%s26306_s9 + $0x18f0] sm:$0xf0]  ;;  %v16470_v19 = vld [vmem:[%s26306_s9 + $0x2dc] sm:$0xf] }
 0x511   :  { %9584 = vmatpush.bf16.msra.mxu3 %v15024_v48  ;;  %v17293_v11 = vld [vmem:[%s26306_s9 + $0x1c94] sm:$0xf]  ;;  %v14960_v48 = vor.u32 %v17173_v57, %v14957_v60  ;;  %v9319_v57 = vadd.f32 %v23008_v24, %v24800_v61 }
 0x512   :  { %10039 = vmatpush.bf16.msra.mxu1 %v15800_v21  ;;  %v15736_v21 = vor.u32 %v17366_v23, %v15733_v9  ;;  %9810 = vmatpush.bf16.msra.mxu2 %v15124_v50  ;;  %v15437_v27 = vld [vmem:[%s26306_s9 + $0x1cb0] sm:$0xf0]  ;;  %v17350_v23 = vld [vmem:[%s26306_s9 + $0x1e5c] sm:$0xf]  ;;  %v9788_v50 = vpop.f32.mrf.mxu1 }
 0x513   :  { %v15669_v9 = vld [vmem:[%s26306_s9 + $0x1e78] sm:$0xf0]  ;;  %v17165_v52 = vld [vmem:[%s26306_s9 + $0x1894] sm:$0xf] }
 0x514   :  { %9611 = vmatpush.bf16.msra.mxu0 %v15504_v31  ;;  %v14925_v34 = vld [vmem:[%s26306_s9 + $0x18b0] sm:$0xf0]  ;;  %v15440_v31 = vor.u32 %v17293_v11, %v15437_v27  ;;  %v17434_v11 = vld [vmem:[%s26310_s11 + $0xf8] sm:$0xff] }
 0x515   :  { %9585 = vmatpush.bf16.msra.mxu3 %v14992_v25  ;;  %9811 = vmatmul.bf16.vlgmr.msra.gmra.mxu2 %v19972_v40  ;;  %v15405_v5 = vld [vmem:[%s26306_s9 + $0x1c70] sm:$0xf0]  ;;  %v14928_v22 = vor.u32 %v17165_v52, %v14925_v34  ;;  %v12181_v25 = vld [vmem:[%s26306_s9 + $0x338] sm:$0xf0]  ;;  %v12531_v52 = vld [vmem:[%s26306_s9 + $0x5d8] sm:$0xf] }
 0x516   :  { %10040 = vmatpush.bf16.msra.mxu1 %v15768_v33  ;;  %9855 = vmatpush.bf16.msrb.mxu2 %v12280_v62  ;;  %v15704_v33 = vor.u32 %v17358_v13, %v15701_v28  ;;  %v15672_v62 = vor.u32 %v17350_v23, %v15669_v9  ;;  %v15637_v13 = vld [vmem:[%s26306_s9 + $0x1e38] sm:$0xf0]  ;;  %v9359_v28 = vpop.f32.mrf.mxu0  ;;  %v17157_v60 = vld [vmem:[%s26306_s9 + $0x1854] sm:$0xf]  ;;  %v12184_v58 = vor.u32 %v16478_v53, %v12181_v25  ;;  %v16570_v34 = vld [vmem:[%s26306_s9 + $0x5f4] sm:$0xf0] }
 0x517   :  { %v15640_v24 = vor.u32 %v17342_v45, %v15637_v13  ;;  %v17277_v61 = vld [vmem:[%s26306_s9 + $0x1c14] sm:$0xf]  ;;  %v12149_v9 = vld [vmem:[%s26306_s9 + $0x2f8] sm:$0xf0]  ;;  %v12532_v53 = vor.u32 %v16570_v34, %v12531_v52  ;;  %v16426_v52 = vld [vmem:[%s26306_s9 + $0x174] sm:$0xf0] }
 0x518   :  { %9612 = vmatpush.bf16.msra.mxu0 %v15472_v41  ;;  %v14893_v41 = vld [vmem:[%s26306_s9 + $0x1870] sm:$0xf0]  ;;  %v16462_v25 = vld [vmem:[%s26306_s9 + $0x29c] sm:$0xf] }
 0x519   :  { %9586 = vmatpush.bf16.msra.mxu3 %v14960_v48  ;;  %v15373_v48 = vld [vmem:[%s26306_s9 + $0x1c30] sm:$0xf0]  ;;  %v14896_v23 = vor.u32 %v17157_v60, %v14893_v41  ;;  %v12117_v28 = vld [vmem:[%s26306_s9 + $0x2b8] sm:$0xf0]  ;;  %v16562_v60 = vld [vmem:[%s26306_s9 + $0x5b4] sm:$0xf0] }
 0x51a   :  { %10041 = vmatpush.bf16.msra.mxu1 %v15736_v21  ;;  %9856 = vmatpush.bf16.msrb.mxu2 %v12248_v18  ;;  %v17285_v21 = vld [vmem:[%s26306_s9 + $0x1c54] sm:$0xf]  ;;  %v9331_v18 = vpop.f32.mrf.mxu3 }
 0x51b   :  { %v9332_v27 = vadd.f32 %v9331_v18, %v9319_v57  ;;  %v12499_v57 = vld [vmem:[%s26306_s9 + $0x598] sm:$0xf] }
 0x51c   :  { %9613 = vmatpush.bf16.msra.mxu0 %v15440_v31  ;;  %v17149_v31 = vld [vmem:[%s26306_s9 + $0x1814] sm:$0xf]  ;;  %v11987_v18 = vld [vmem:[%s26306_s9 + $0x198] sm:$0xf] }
 0x51d   :  { %9587 = vmatpush.bf16.msra.mxu3 %v14928_v22  ;;  %v9345_v50 = vadd.f32 %v23994_v51, %v9332_v27  ;;  %v12152_v51 = vor.u32 %v16470_v19, %v12149_v9  ;;  %v17433_v22 = vld [vmem:[%s26310_s11 + $0xf0] sm:$0xff]  ;;  %v12500_v27 = vor.u32 %v16562_v60, %v12499_v57  ;;  %v16554_v19 = vld [vmem:[%s26306_s9 + $0x574] sm:$0xf0] }
 0x51e   :  { %10042 = vmatpush.bf16.msra.mxu1 %v15704_v33  ;;  %v15408_v33 = vor.u32 %v17285_v21, %v15405_v5  ;;  %9857 = vmatpush.bf16.msrb.mxu2 %v12216_v14  ;;  %v14861_v14 = vld [vmem:[%s26306_s9 + $0x1830] sm:$0xf0]  ;;  %v12019_v21 = vld [vmem:[%s26306_s9 + $0x1d8] sm:$0xf] }
 0x51f   :  { %v16442_v5 = vld [vmem:[%s26306_s9 + $0x1f4] sm:$0xf0]  ;;  %v25002_v45 = vadd.f32 %v24902_v47, %v9345_v50  ;;  %v14864_v13 = vor.u32 %v17149_v31, %v14861_v14  ;;  %v17431_v31 = vld [vmem:[%s26310_s11 + $0xe0] sm:$0xff]  ;;  %v16446_v14 = vld [vmem:[%s26306_s9 + $0x21c] sm:$0xf] }
 0x520   :  { %9614 = vmatpush.bf16.msra.mxu0 %v15408_v33  ;;  %v12020_v41 = vor.u32 %v16442_v5, %v12019_v21  ;;  %v16434_v33 = vld [vmem:[%s26306_s9 + $0x1b4] sm:$0xf0] }
 0x521   :  { %9588 = vmatpush.bf16.msra.mxu3 %v14896_v23  ;;  %v11988_v23 = vor.u32 %v16434_v33, %v11987_v18  ;;  %v11955_v9 = vld [vmem:[%s26306_s9 + $0x158] sm:$0xf] }
 0x522   :  { %10043 = vmatpush.bf16.msra.mxu1 %v15672_v62  ;;  %v15376_v62 = vor.u32 %v17277_v61, %v15373_v48  ;;  %9858 = vmatpush.bf16.msrb.mxu2 %v12184_v58  ;;  %v9333_v47 = vpop.f32.mrf.mxu3  ;;  %v17432_v58 = vld [vmem:[%s26310_s11 + $0xe8] sm:$0xff]  ;;  %v12085_v61 = vld [vmem:[%s26306_s9 + $0x278] sm:$0xf0]  ;;  %v12467_v48 = vld [vmem:[%s26306_s9 + $0x558] sm:$0xf] }
 0x523   :  { %v12468_v50 = vor.u32 %v16554_v19, %v12467_v48  ;;  %v12435_v21 = vld [vmem:[%s26306_s9 + $0x518] sm:$0xf] }
 0x524   :  { %9615 = vmatpush.bf16.msra.mxu0 %v15376_v62  ;;  %v12053_v62 = vld [vmem:[%s26306_s9 + $0x238] sm:$0xf0]  ;;  %v16546_v5 = vld [vmem:[%s26306_s9 + $0x534] sm:$0xf0] }
 0x525   :  { %9589 = vmatpush.bf16.msra.mxu3 %v14864_v13  ;;  %v16418_v13 = vld [vmem:[%s26306_s9 + $0x134] sm:$0xf0]  ;;  %v12056_v57 = vor.u32 %v16446_v14, %v12053_v62  ;;  %v12436_v60 = vor.u32 %v16546_v5, %v12435_v21  ;;  %v16742_v14 = vld [vmem:[%s26306_s9 + $0xb5c] sm:$0xf] }
 0x526   :  { %10044 = vmatpush.bf16.msra.mxu1 %v15640_v24  ;;  %9859 = vmatpush.bf16.msrb.mxu2 %v12152_v51  ;;  %v25026_v24 = vpop.f32.mrf.mxu2  ;;  %v11956_v51 = vor.u32 %v16426_v52, %v11955_v9  ;;  %v17430_v18 = vld [vmem:[%s26310_s11 + $0xd8] sm:$0xff]  ;;  %v17429_v52 = vld [vmem:[%s26310_s11 + $0xd0] sm:$0xff] }
 0x527   :  { %9616 = vmatmul.bf16.vlgmr.msra.gmra.mxu0 %v21064_v26  ;;  %v12403_v33 = vld [vmem:[%s26306_s9 + $0x4d8] sm:$0xf]  ;;  %v13237_v62 = vld [vmem:[%s26306_s9 + $0xb78] sm:$0xf0] }
 0x528   :  { %9660 = vmatpush.bf16.msrb.mxu0 %v12532_v53  ;;  %9590 = vmatmul.bf16.vlgmr.msra.gmra.mxu3 %v20918_v63  ;;  %v16758_v53 = vld [vmem:[%s26306_s9 + $0xbdc] sm:$0xf]  ;;  %v11891_v48 = vld [vmem:[%s26306_s9 + $0xd8] sm:$0xf] }
 0x529   :  { %10045 = vmatmul.bf16.vlgmr.msra.gmra.mxu1 %v19463_v55  ;;  %v16454_v55 = vld [vmem:[%s26306_s9 + $0x25c] sm:$0xf]  ;;  %9634 = vmatpush.bf16.msrb.mxu3 %v12020_v41  ;;  %v16410_v19 = vld [vmem:[%s26306_s9 + $0xf4] sm:$0xf0] }
 0x52a   :  { %10621 = vmatpush.bf16.msrb.mxu1 %v17434_v11  ;;  %v12120_v11 = vor.u32 %v16462_v25, %v12117_v28  ;;  %v12088_v34 = vor.u32 %v16454_v55, %v12085_v61  ;;  %v11923_v25 = vld [vmem:[%s26306_s9 + $0x118] sm:$0xf]  ;;  %v25072_v28 = vpop.f32.mrf.mxu1  ;;  %v13269_v55 = vld [vmem:[%s26306_s9 + $0xbb8] sm:$0xf0]  ;;  %v9409_v61 = vpop.f32.mrf.mxu0 }
 0x52b   :  { %v11859_v21 = vld [vmem:[%s26306_s9 + $0x98] sm:$0xf] }
 0x52c   :  { %9860 = vmatpush.bf16.msrb.mxu2 %v12120_v11  ;;  %9661 = vmatpush.bf16.msrb.mxu0 %v12500_v27  ;;  %v16538_v11 = vld [vmem:[%s26306_s9 + $0x4f4] sm:$0xf0]  ;;  %v11924_v27 = vor.u32 %v16418_v13, %v11923_v25  ;;  %v13240_v25 = vor.u32 %v16742_v14, %v13237_v62 }
 0x52d   :  { %9635 = vmatpush.bf16.msrb.mxu3 %v11988_v23  ;;  %v12404_v23 = vor.u32 %v16538_v11, %v12403_v33  ;;  %v16402_v5 = vld [vmem:[%s26306_s9 + $0xb4] sm:$0xf0] }
 0x52e   :  { %10622 = vmatpush.bf16.msrb.mxu1 %v17433_v22  ;;  %v13301_v22 = vld [vmem:[%s26306_s9 + $0xbf8] sm:$0xf0]  ;;  %v9606_v41 = vpop.f32.mrf.mxu2  ;;  %v12339_v13 = vld [vmem:[%s26306_s9 + $0x458] sm:$0xf] }
 0x52f   :  { %v13304_v47 = vor.u32 %v16758_v53, %v13301_v22  ;;  %v16394_v33 = vld [vmem:[%s26306_s9 + $0x74] sm:$0xf0] }
 0x530   :  { %9861 = vmatpush.bf16.msrb.mxu2 %v12088_v34  ;;  %9662 = vmatpush.bf16.msrb.mxu0 %v12468_v50  ;;  %v12371_v34 = vld [vmem:[%s26306_s9 + $0x498] sm:$0xf] }
 0x531   :  { %9636 = vmatpush.bf16.msrb.mxu3 %v11956_v51  ;;  %v16530_v50 = vld [vmem:[%s26306_s9 + $0x4b4] sm:$0xf0]  ;;  %v9215_v51 = vadd.f32 %v22591_v12, %v24380_v7  ;;  %v11860_v12 = vor.u32 %v16402_v5, %v11859_v21  ;;  %v16734_v7 = vld [vmem:[%s26306_s9 + $0xb1c] sm:$0xf] }
 0x532   :  { %10623 = vmatpush.bf16.msrb.mxu1 %v17432_v58  ;;  %v16750_v58 = vld [vmem:[%s26306_s9 + $0xb9c] sm:$0xf]  ;;  %v9840_v53 = vpop.f32.mrf.mxu1  ;;  %v12372_v22 = vor.u32 %v16530_v50, %v12371_v34  ;;  %v9411_v41 = vpop.f32.mrf.mxu0  ;;  %v13555_v34 = vld [vmem:[%s26306_s9 + $0xdd8] sm:$0xf] }
 0x533   :  { %v13272_v9 = vor.u32 %v16750_v58, %v13269_v55  ;;  %v10053_v11 = vmax.f32 %v9215_v51, 0.0  ;;  %v17427_v55 = vld [vmem:[%s26310_s11 + $0xc0] sm:$0xff]  ;;  %v16826_v50 = vld [vmem:[%s26306_s9 + $0xdf4] sm:$0xf0] }
 0x534   :  { %9862 = vmatpush.bf16.msrb.mxu2 %v12056_v57  ;;  %9663 = vmatpush.bf16.msrb.mxu0 %v12436_v60  ;;  %v16522_v57 = vld [vmem:[%s26306_s9 + $0x474] sm:$0xf0]  ;;  %v13205_v60 = vld [vmem:[%s26306_s9 + $0xb38] sm:$0xf0] }
 0x535   :  { %9637 = vmatpush.bf16.msrb.mxu3 %v11924_v27  ;;  %v9383_v27 = vpop.f32.mrf.mxu3  ;;  %v12340_v58 = vor.u32 %v16522_v57, %v12339_v13  ;;  %v11795_v14 = vld [vmem:[%s26306_s9 + $0x18] sm:$0xf]  ;;  %v13141_v57 = vld [vmem:[%s26306_s9 + $0xab8] sm:$0xf0] }
 0x536   :  { %10624 = vmatpush.bf16.msrb.mxu1 %v17431_v31  ;;  %v11892_v31 = vor.u32 %v16410_v19, %v11891_v48  ;;  %v16514_v19 = vld [vmem:[%s26306_s9 + $0x434] sm:$0xf0] }
 0x537   :  { %9863 = vmatmul.bf16.vlgmr.msrb.gmra.mxu2 %v19442_v37  ;;  %v17428_v37 = vld [vmem:[%s26310_s11 + $0xc8] sm:$0xff]  ;;  %v16386_v62 = vld [vmem:[%s26306_s9 + $0x34] sm:$0xf0] }
 0x538   :  { %9907 = vmatpush.bf16.msra.mxu2 %v13304_v47  ;;  %9664 = vmatpush.bf16.msrb.mxu0 %v12404_v23  ;;  %v9371_v47 = vadd.f32 %v23216_v32, %v25002_v45  ;;  %v13208_v32 = vor.u32 %v16734_v7, %v13205_v60  ;;  %v12307_v45 = vld [vmem:[%s26306_s9 + $0x418] sm:$0xf]  ;;  %v16726_v23 = vld [vmem:[%s26306_s9 + $0xadc] sm:$0xf]  ;;  %v11796_v13 = vor.u32 %v16386_v62, %v11795_v14 }
 0x539   :  { %9638 = vmatpush.bf16.msrb.mxu3 %v11892_v31  ;;  %v12308_v21 = vor.u32 %v16514_v19, %v12307_v45  ;;  %v13043_v5 = vld [vmem:[%s26306_s9 + $0x9d8] sm:$0xf]  ;;  %v17014_v62 = vld [vmem:[%s26306_s9 + $0x13dc] sm:$0xf] }
 0x53a   :  { %10625 = vmatpush.bf16.msrb.mxu1 %v17430_v18  ;;  %v11827_v18 = vld [vmem:[%s26306_s9 + $0x58] sm:$0xf]  ;;  %v9384_v48 = vadd.f32 %v9383_v27, %v9371_v47  ;;  %v25199_v27 = vpop.f32.mrf.mxu2 }
 0x53b   :  { %v16698_v51 = vld [vmem:[%s26306_s9 + $0x9f4] sm:$0xf0] }
 0x53c   :  { %9908 = vmatpush.bf16.msra.mxu2 %v13272_v9  ;;  %9665 = vmatpush.bf16.msrb.mxu0 %v12372_v22  ;;  %v11828_v9 = vor.u32 %v16394_v33, %v11827_v18  ;;  %v9397_v31 = vadd.f32 %v24202_v59, %v9384_v48  ;;  %v13556_v22 = vor.u32 %v16826_v50, %v13555_v34  ;;  %v13011_v41 = vld [vmem:[%s26306_s9 + $0x998] sm:$0xf]  ;;  %v13077_v34 = vld [vmem:[%s26306_s9 + $0xa38] sm:$0xf0] }
 0x53d   :  { %9639 = vmatpush.bf16.msrb.mxu3 %v11860_v12  ;;  %v16818_v12 = vld [vmem:[%s26306_s9 + $0xdb4] sm:$0xf0]  ;;  %v13044_v7 = vor.u32 %v16698_v51, %v13043_v5  ;;  %v9385_v60 = vpop.f32.mrf.mxu3 }
 0x53e   :  { %10626 = vmatpush.bf16.msrb.mxu1 %v17429_v52  ;;  %v13173_v52 = vld [vmem:[%s26306_s9 + $0xaf8] sm:$0xf0]  ;;  %v25176_v53 = vadd.f32 %v9409_v61, %v9397_v31  ;;  %v13523_v61 = vld [vmem:[%s26306_s9 + $0xd98] sm:$0xf] }
 0x53f   :  { %v13176_v59 = vor.u32 %v16726_v23, %v13173_v52  ;;  %v16690_v47 = vld [vmem:[%s26306_s9 + $0x9b4] sm:$0xf0]  ;;  %v13524_v33 = vor.u32 %v16818_v12, %v13523_v61  ;;  %v16702_v52 = vld [vmem:[%s26306_s9 + $0xa1c] sm:$0xf] }
 0x540   :  { %9909 = vmatpush.bf16.msra.mxu2 %v13240_v25  ;;  %9666 = vmatpush.bf16.msrb.mxu0 %v12340_v58  ;;  %v16718_v25 = vld [vmem:[%s26306_s9 + $0xa9c] sm:$0xf]  ;;  %v16810_v48 = vld [vmem:[%s26306_s9 + $0xd74] sm:$0xf0] }
 0x541   :  { %9640 = vmatpush.bf16.msrb.mxu3 %v11828_v9  ;;  %v13144_v18 = vor.u32 %v16718_v25, %v13141_v57  ;;  %v13109_v58 = vld [vmem:[%s26306_s9 + $0xa78] sm:$0xf0]  ;;  %v12979_v45 = vld [vmem:[%s26306_s9 + $0x958] sm:$0xf] }
 0x542   :  { %10627 = vmatpush.bf16.msrb.mxu1 %v17428_v37  ;;  %v10061_v37 = vpack.c.bf16 %v10053_v11, %v10053_v11  ;;  %v16710_v11 = vld [vmem:[%s26306_s9 + $0xa5c] sm:$0xf]  ;;  %v16682_v19 = vld [vmem:[%s26306_s9 + $0x974] sm:$0xf0] }
 0x543   :  { %v13112_v23 = vor.u32 %v16710_v11, %v13109_v58  ;;  %v13459_v50 = vld [vmem:[%s26306_s9 + $0xd18] sm:$0xf]  ;;  %v12980_v14 = vor.u32 %v16682_v19, %v12979_v45  ;;  %v14293_v60 = vld [vmem:[%s26306_s9 + $0x13b8] sm:$0xf0] }
 0x544   :  { %9910 = vmatpush.bf16.msra.mxu2 %v13208_v32  ;;  %9667 = vmatpush.bf16.msrb.mxu0 %v12308_v21  ;;  %v13012_v32 = vor.u32 %v16690_v47, %v13011_v41  ;;  %v16802_v31 = vld [vmem:[%s26306_s9 + $0xd34] sm:$0xf0]  ;;  %v14325_v21 = vld [vmem:[%s26306_s9 + $0x13f8] sm:$0xf0]  ;;  %v9461_v41 = vpop.f32.mrf.mxu0 }
 0x545   :  { %9641 = vmatpush.bf16.msrb.mxu3 %v11796_v13  ;;  %v12947_v5 = vld [vmem:[%s26306_s9 + $0x918] sm:$0xf]  ;;  %v13460_v25 = vor.u32 %v16802_v31, %v13459_v50  ;;  %v14328_v13 = vor.u32 %v17014_v62, %v14325_v21  ;;  %v14261_v45 = vld [vmem:[%s26306_s9 + $0x1378] sm:$0xf0] }
 0x546   :  { %10628 = vmatpush.bf16.msrb.mxu1 %v17427_v55  ;;  %v13491_v55 = vld [vmem:[%s26306_s9 + $0xd58] sm:$0xf]  ;;  %v16990_v21 = vld [vmem:[%s26306_s9 + $0x131c] sm:$0xf] }
 0x547   :  { %9668 = vmatmul.bf16.vlgmr.msrb.gmra.mxu0 %v19906_v2  ;;  %v13492_v9 = vor.u32 %v16810_v48, %v13491_v55  ;;  %v16674_v51 = vld [vmem:[%s26306_s9 + $0x934] sm:$0xf0] }
 0x548   :  { %9911 = vmatpush.bf16.msra.mxu2 %v13176_v59  ;;  %9712 = vmatpush.bf16.msra.mxu0 %v13556_v22  ;;  %v25242_v59 = vpop.f32.mrf.mxu1  ;;  %v13080_v22 = vor.u32 %v16702_v52, %v13077_v34  ;;  %v13427_v57 = vld [vmem:[%s26306_s9 + $0xcd8] sm:$0xf]  ;;  %v12948_v12 = vor.u32 %v16674_v51, %v12947_v5  ;;  %v25284_v34 = vld [vmem:[%s26309_s10] sm:$0xff]  ;;  %v14229_v5 = vld [vmem:[%s26306_s9 + $0x1338] sm:$0xf0] }
 0x549   :  { %10629 = vmatmul.bf16.vlgmr.msrb.gmra.mxu1 %v10061_v37  ;;  %9686 = vmatpush.bf16.msra.mxu3 %v13044_v7  ;;  %v9658_v37 = vpop.f32.mrf.mxu2  ;;  %v16794_v61 = vld [vmem:[%s26306_s9 + $0xcf4] sm:$0xf0]  ;;  %v17006_v7 = vld [vmem:[%s26306_s9 + $0x139c] sm:$0xf]  ;;  %v3255_v50 = vperm.slane %v25284_v34, 5 }
 0x54a   :  { %9642 = vmatmul.bf16.vlgmr.msrb.gmra.mxu3 %v20305_v20  ;;  %v12915_v47 = vld [vmem:[%s26306_s9 + $0x8d8] sm:$0xf]  ;;  %v14296_v11 = vor.u32 %v17006_v7, %v14293_v60  ;;  %v16982_v60 = vld [vmem:[%s26306_s9 + $0x12dc] sm:$0xf] }
 0x54b   :  { %v13395_v58 = vld [vmem:[%s26306_s9 + $0xc98] sm:$0xf]  ;;  %v9435_v37 = vpop.f32.mrf.mxu3 }
 0x54c   :  { %9912 = vmatpush.bf16.msra.mxu2 %v13144_v18  ;;  %9713 = vmatpush.bf16.msra.mxu0 %v13524_v33  ;;  %v16666_v18 = vld [vmem:[%s26306_s9 + $0x8f4] sm:$0xf0]  ;;  %v13428_v33 = vor.u32 %v16794_v61, %v13427_v57  ;;  %v9463_v51 = vpop.f32.mrf.mxu0  ;;  %v9436_v57 = vadd.f32 %v9435_v37, %v3255_v50  ;;  %v14232_v61 = vor.u32 %v16990_v21, %v14229_v5 }
 0x54d   :  { %9687 = vmatpush.bf16.msra.mxu3 %v13012_v32  ;;  %v16786_v55 = vld [vmem:[%s26306_s9 + $0xcb4] sm:$0xf0]  ;;  %v12916_v48 = vor.u32 %v16666_v18, %v12915_v47  ;;  %v16998_v32 = vld [vmem:[%s26306_s9 + $0x135c] sm:$0xf] }
 0x54e   :  { %v12883_v19 = vld [vmem:[%s26306_s9 + $0x898] sm:$0xf]  ;;  %v13396_v52 = vor.u32 %v16786_v55, %v13395_v58  ;;  %v14197_v18 = vld [vmem:[%s26306_s9 + $0x12f8] sm:$0xf0]  ;;  %v9449_v58 = vadd.f32 %v24410_v17, %v9436_v57 }
 0x54f   :  { %v13363_v31 = vld [vmem:[%s26306_s9 + $0xc58] sm:$0xf]  ;;  %v14200_v17 = vor.u32 %v16982_v60, %v14197_v18 }
 0x550   :  { %9913 = vmatpush.bf16.msra.mxu2 %v13112_v23  ;;  %9714 = vmatpush.bf16.msra.mxu0 %v13492_v9  ;;  %v16658_v23 = vld [vmem:[%s26306_s9 + $0x8b4] sm:$0xf0]  ;;  %v9892_v9 = vpop.f32.mrf.mxu1 }
 0x551   :  { %9688 = vmatpush.bf16.msra.mxu3 %v12980_v14  ;;  %v16778_v14 = vld [vmem:[%s26306_s9 + $0xc74] sm:$0xf0]  ;;  %v12884_v62 = vor.u32 %v16658_v23, %v12883_v19  ;;  %v16974_v9 = vld [vmem:[%s26306_s9 + $0x129c] sm:$0xf] }
 0x552   :  { %v16770_v7 = vld [vmem:[%s26306_s9 + $0xc34] sm:$0xf0] }
 0x553   :  { %v12819_v55 = vld [vmem:[%s26306_s9 + $0x818] sm:$0xf]  ;;  %v9437_v21 = vpop.f32.mrf.mxu3 }
 0x554   :  { %9914 = vmatpush.bf16.msra.mxu2 %v13080_v22  ;;  %9715 = vmatpush.bf16.msra.mxu0 %v13460_v25  ;;  %v12851_v22 = vld [vmem:[%s26306_s9 + $0x858] sm:$0xf] }
 0x555   :  { %9689 = vmatpush.bf16.msra.mxu3 %v12948_v12  ;;  %v16650_v25 = vld [vmem:[%s26306_s9 + $0x874] sm:$0xf0] }
 0x556   :  { %v13331_v12 = vld [vmem:[%s26306_s9 + $0xc18] sm:$0xf]  ;;  %v12852_v47 = vor.u32 %v16650_v25, %v12851_v22  ;;  %v16966_v25 = vld [vmem:[%s26306_s9 + $0x125c] sm:$0xf] }
 0x557   :  { %9915 = vmatmul.bf16.vlgmr.msra.gmra.mxu2 %v19597_v1  ;;  %v14264_v1 = vor.u32 %v16998_v32, %v14261_v45  ;;  %v13332_v32 = vor.u32 %v16770_v7, %v13331_v12  ;;  %v14067_v45 = vld [vmem:[%s26306_s9 + $0x11d8] sm:$0xf] }
 0x558   :  { %9959 = vmatpush.bf16.msrb.mxu2 %v14328_v13  ;;  %9716 = vmatpush.bf16.msra.mxu0 %v13428_v33  ;;  %v13364_v13 = vor.u32 %v16778_v14, %v13363_v31  ;;  %v14579_v33 = vld [vmem:[%s26306_s9 + $0x15d8] sm:$0xf]  ;;  %v25359_v37 = vpop.f32.mrf.mxu2 }
 0x559   :  { %9690 = vmatpush.bf16.msra.mxu3 %v12916_v48  ;;  %v16642_v48 = vld [vmem:[%s26306_s9 + $0x834] sm:$0xf0] }
 0x55a   :  { %v16954_v19 = vld [vmem:[%s26306_s9 + $0x11f4] sm:$0xf0]  ;;  %v12820_v50 = vor.u32 %v16642_v48, %v12819_v55 }
 0x55b   :  { %v14547_v31 = vld [vmem:[%s26306_s9 + $0x1598] sm:$0xf] }
 0x55c   :  { %9960 = vmatpush.bf16.msrb.mxu2 %v14296_v11  ;;  %9717 = vmatpush.bf16.msra.mxu0 %v13396_v52  ;;  %v17082_v11 = vld [vmem:[%s26306_s9 + $0x15f4] sm:$0xf0]  ;;  %v25339_v52 = vadd.f32 %v9461_v41, %v9449_v58 }
 0x55d   :  { %9691 = vmatpush.bf16.msra.mxu3 %v12884_v62  ;;  %v14580_v23 = vor.u32 %v17082_v11, %v14579_v33  ;;  %v17074_v14 = vld [vmem:[%s26306_s9 + $0x15b4] sm:$0xf0]  ;;  %v14068_v62 = vor.u32 %v16954_v19, %v14067_v45  ;;  %v16958_v33 = vld [vmem:[%s26306_s9 + $0x121c] sm:$0xf] }
 0x55e   :  { %v14035_v41 = vld [vmem:[%s26306_s9 + $0x1198] sm:$0xf]  ;;  %v14548_v22 = vor.u32 %v17074_v14, %v14547_v31  ;;  %v14101_v11 = vld [vmem:[%s26306_s9 + $0x1238] sm:$0xf0] }
 0x55f   :  { %v16946_v5 = vld [vmem:[%s26306_s9 + $0x11b4] sm:$0xf0]  ;;  %v15349_v45 = vld [vmem:[%s26306_s9 + $0x1bf8] sm:$0xf0] }
 0x560   :  { %9961 = vmatpush.bf16.msrb.mxu2 %v14264_v1  ;;  %9718 = vmatpush.bf16.msra.mxu0 %v13364_v13  ;;  %v14165_v1 = vld [vmem:[%s26306_s9 + $0x12b8] sm:$0xf0]  ;;  %v14515_v57 = vld [vmem:[%s26306_s9 + $0x1558] sm:$0xf]  ;;  %v14036_v12 = vor.u32 %v16946_v5, %v14035_v41 }
 0x561   :  { %9692 = vmatpush.bf16.msra.mxu3 %v12852_v47  ;;  %v14168_v51 = vor.u32 %v16974_v9, %v14165_v1  ;;  %v14133_v13 = vld [vmem:[%s26306_s9 + $0x1278] sm:$0xf0]  ;;  %v14003_v7 = vld [vmem:[%s26306_s9 + $0x1158] sm:$0xf]  ;;  %v14104_v9 = vor.u32 %v16958_v33, %v14101_v11  ;;  %v9710_v1 = vpop.f32.mrf.mxu2 }
 0x562   :  { %v16938_v60 = vld [vmem:[%s26306_s9 + $0x1174] sm:$0xf0]  ;;  %v14136_v47 = vor.u32 %v16966_v25, %v14133_v13  ;;  %v17262_v41 = vld [vmem:[%s26306_s9 + $0x1b9c] sm:$0xf] }
 0x563   :  { %v14483_v58 = vld [vmem:[%s26306_s9 + $0x1518] sm:$0xf]  ;;  %v14004_v48 = vor.u32 %v16938_v60, %v14003_v7  ;;  %v15317_v5 = vld [vmem:[%s26306_s9 + $0x1bb8] sm:$0xf0] }
 0x564   :  { %9962 = vmatpush.bf16.msrb.mxu2 %v14232_v61  ;;  %9719 = vmatpush.bf16.msra.mxu0 %v13332_v32  ;;  %v17066_v61 = vld [vmem:[%s26306_s9 + $0x1574] sm:$0xf0]  ;;  %v17270_v32 = vld [vmem:[%s26306_s9 + $0x1bdc] sm:$0xf] }
 0x565   :  { %9693 = vmatpush.bf16.msra.mxu3 %v12820_v50  ;;  %v14516_v18 = vor.u32 %v17066_v61, %v14515_v57  ;;  %v17058_v55 = vld [vmem:[%s26306_s9 + $0x1534] sm:$0xf0]  ;;  %v15352_v31 = vor.u32 %v17270_v32, %v15349_v45  ;;  %v15320_v57 = vor.u32 %v17262_v41, %v15317_v5  ;;  %v17254_v60 = vld [vmem:[%s26306_s9 + $0x1b5c] sm:$0xf] }
 0x566   :  { %v13971_v19 = vld [vmem:[%s26306_s9 + $0x1118] sm:$0xf]  ;;  %v14484_v50 = vor.u32 %v17058_v55, %v14483_v58  ;;  %v17246_v45 = vld [vmem:[%s26306_s9 + $0x1b1c] sm:$0xf] }
 0x567   :  { %9720 = vmatmul.bf16.vlgmr.msra.gmra.mxu0 %v20278_v30  ;;  %v14451_v14 = vld [vmem:[%s26306_s9 + $0x14d8] sm:$0xf] }
 0x568   :  { %9963 = vmatpush.bf16.msrb.mxu2 %v14200_v17  ;;  %9764 = vmatpush.bf16.msrb.mxu0 %v14580_v23  ;;  %v16930_v17 = vld [vmem:[%s26306_s9 + $0x1134] sm:$0xf0]  ;;  %v25402_v23 = vpop.f32.mrf.mxu1 }
 0x569   :  { %9738 = vmatpush.bf16.msrb.mxu3 %v14068_v62  ;;  %v17050_v62 = vld [vmem:[%s26306_s9 + $0x14f4] sm:$0xf0]  ;;  %v13972_v21 = vor.u32 %v16930_v17, %v13971_v19  ;;  %v15253_v19 = vld [vmem:[%s26306_s9 + $0x1b38] sm:$0xf0] }
 0x56a   :  { %9694 = vmatmul.bf16.vlgmr.msra.gmra.mxu3 %v20518_v49  ;;  %v16922_v25 = vld [vmem:[%s26306_s9 + $0x10f4] sm:$0xf0]  ;;  %v14452_v13 = vor.u32 %v17050_v62, %v14451_v14 }
 0x56b   :  { %v14419_v61 = vld [vmem:[%s26306_s9 + $0x1498] sm:$0xf] }
 0x56c   :  { %9964 = vmatpush.bf16.msrb.mxu2 %v14168_v51  ;;  %9765 = vmatpush.bf16.msrb.mxu0 %v14548_v22  ;;  %v9513_v51 = vpop.f32.mrf.mxu0  ;;  %v13939_v22 = vld [vmem:[%s26306_s9 + $0x10d8] sm:$0xf] }
 0x56d   :  { %9739 = vmatpush.bf16.msrb.mxu3 %v14036_v12  ;;  %v17042_v12 = vld [vmem:[%s26306_s9 + $0x14b4] sm:$0xf0]  ;;  %v13940_v7 = vor.u32 %v16922_v25, %v13939_v22  ;;  %v15221_v22 = vld [vmem:[%s26306_s9 + $0x1af8] sm:$0xf0] }
 0x56e   :  { %v16914_v33 = vld [vmem:[%s26306_s9 + $0x10b4] sm:$0xf0]  ;;  %v14420_v58 = vor.u32 %v17042_v12, %v14419_v61 }
 0x56f   :  { %v16906_v1 = vld [vmem:[%s26306_s9 + $0x1074] sm:$0xf0] }
 0x570   :  { %9965 = vmatpush.bf16.msrb.mxu2 %v14136_v47  ;;  %9766 = vmatpush.bf16.msrb.mxu0 %v14516_v18  ;;  %v15285_v47 = vld [vmem:[%s26306_s9 + $0x1b78] sm:$0xf0]  ;;  %v13907_v18 = vld [vmem:[%s26306_s9 + $0x1098] sm:$0xf]  ;;  %v9944_v11 = vpop.f32.mrf.mxu1 }
 0x571   :  { %9740 = vmatpush.bf16.msrb.mxu3 %v14004_v48  ;;  %v15288_v55 = vor.u32 %v17254_v60, %v15285_v47  ;;  %v14387_v48 = vld [vmem:[%s26306_s9 + $0x1458] sm:$0xf]  ;;  %v13908_v32 = vor.u32 %v16914_v33, %v13907_v18  ;;  %v17230_v11 = vld [vmem:[%s26306_s9 + $0x1a9c] sm:$0xf] }
 0x572   :  { %v14355_v41 = vld [vmem:[%s26306_s9 + $0x1418] sm:$0xf] }
 0x573   :  { %v15603_v25 = vld [vmem:[%s26306_s9 + $0x1dd8] sm:$0xf] }
 0x574   :  { %9966 = vmatpush.bf16.msrb.mxu2 %v14104_v9  ;;  %9767 = vmatpush.bf16.msrb.mxu0 %v14484_v50  ;;  %v9515_v17 = vpop.f32.mrf.mxu0  ;;  %v9475_v9 = vadd.f32 %v23632_v6, %v25339_v52  ;;  %v13875_v50 = vld [vmem:[%s26306_s9 + $0x1058] sm:$0xf]  ;;  %v17238_v52 = vld [vmem:[%s26306_s9 + $0x1adc] sm:$0xf] }
 0x575   :  { %9741 = vmatpush.bf16.msrb.mxu3 %v13972_v21  ;;  %v15256_v21 = vor.u32 %v17246_v45, %v15253_v19  ;;  %v17026_v6 = vld [vmem:[%s26306_s9 + $0x1434] sm:$0xf0]  ;;  %v13876_v5 = vor.u32 %v16906_v1, %v13875_v50  ;;  %v17222_v50 = vld [vmem:[%s26306_s9 + $0x1a5c] sm:$0xf] }
 0x576   :  { %v13843_v61 = vld [vmem:[%s26306_s9 + $0x1018] sm:$0xf] }
 0x577   :  { %9967 = vmatmul.bf16.vlgmr.msrb.gmra.mxu2 %v19809_v0  ;;  %v17034_v0 = vld [vmem:[%s26306_s9 + $0x1474] sm:$0xf0] }
 0x578   :  { %10011 = vmatpush.bf16.msra.mxu2 %v15352_v31  ;;  %9768 = vmatpush.bf16.msrb.mxu0 %v14452_v13  ;;  %v9487_v31 = vpop.f32.mrf.mxu3  ;;  %v14388_v14 = vor.u32 %v17034_v0, %v14387_v48  ;;  %v17338_v13 = vld [vmem:[%s26306_s9 + $0x1df4] sm:$0xf0]  ;;  %v25515_v1 = vpop.f32.mrf.mxu2 }
 0x579   :  { %9742 = vmatpush.bf16.msrb.mxu3 %v13940_v7  ;;  %v9488_v62 = vadd.f32 %v9487_v31, %v9475_v9  ;;  %v16898_v12 = vld [vmem:[%s26306_s9 + $0x1034] sm:$0xf0]  ;;  %v14356_v7 = vor.u32 %v17026_v6, %v14355_v41  ;;  %v15604_v33 = vor.u32 %v17338_v13, %v15603_v25  ;;  %v15157_v31 = vld [vmem:[%s26306_s9 + $0x1a78] sm:$0xf0] }
 0x57a   :  { %v15091_v60 = vld [vmem:[%s26306_s9 + $0x19d8] sm:$0xf]  ;;  %v15125_v25 = vld [vmem:[%s26306_s9 + $0x1a38] sm:$0xf0] }
 0x57b   :  { %v17210_v47 = vld [vmem:[%s26306_s9 + $0x19f4] sm:$0xf0] }
 0x57c   :  { %10012 = vmatpush.bf16.msra.mxu2 %v15320_v57  ;;  %9769 = vmatpush.bf16.msrb.mxu0 %v14420_v58  ;;  %v9501_v57 = vadd.f32 %v24619_v38, %v9488_v62  ;;  %v15224_v38 = vor.u32 %v17238_v52, %v15221_v22  ;;  %v13844_v58 = vor.u32 %v16898_v12, %v13843_v61  ;;  %v15571_v48 = vld [vmem:[%s26306_s9 + $0x1d98] sm:$0xf]  ;;  %v17214_v22 = vld [vmem:[%s26306_s9 + $0x1a1c] sm:$0xf] }
 0x57d   :  { %9743 = vmatpush.bf16.msrb.mxu3 %v13908_v32  ;;  %v15092_v0 = vor.u32 %v17210_v47, %v15091_v60  ;;  %v15059_v45 = vld [vmem:[%s26306_s9 + $0x1998] sm:$0xf]  ;;  %v15160_v52 = vor.u32 %v17222_v50, %v15157_v31  ;;  %v15128_v47 = vor.u32 %v17214_v22, %v15125_v25 }
 0x57e   :  { %v25492_v18 = vadd.f32 %v9513_v51, %v9501_v57  ;;  %v17330_v51 = vld [vmem:[%s26306_s9 + $0x1db4] sm:$0xf0] }
 0x57f   :  { %v17202_v19 = vld [vmem:[%s26306_s9 + $0x19b4] sm:$0xf0]  ;;  %v15572_v9 = vor.u32 %v17330_v51, %v15571_v48 }
 0x580   :  { %10013 = vmatpush.bf16.msra.mxu2 %v15288_v55  ;;  %9770 = vmatpush.bf16.msrb.mxu0 %v14388_v14  ;;  %v15189_v55 = vld [vmem:[%s26306_s9 + $0x1ab8] sm:$0xf0]  ;;  %v9489_v32 = vpop.f32.mrf.mxu3  ;;  %v15539_v14 = vld [vmem:[%s26306_s9 + $0x1d58] sm:$0xf] }
 0x581   :  { %9744 = vmatpush.bf16.msrb.mxu3 %v13876_v5  ;;  %v15192_v17 = vor.u32 %v17230_v11, %v15189_v55  ;;  %v17322_v62 = vld [vmem:[%s26306_s9 + $0x1d74] sm:$0xf0] }
 0x582   :  { %v15027_v41 = vld [vmem:[%s26306_s9 + $0x1958] sm:$0xf]  ;;  %v15540_v5 = vor.u32 %v17322_v62, %v15539_v14 }
 0x583   :  { %v17194_v6 = vld [vmem:[%s26306_s9 + $0x1974] sm:$0xf0] }
 0x584   :  { %10014 = vmatpush.bf16.msra.mxu2 %v15256_v21  ;;  %9771 = vmatpush.bf16.msrb.mxu0 %v14356_v7  ;;  %v15060_v21 = vor.u32 %v17202_v19, %v15059_v45  ;;  %v15507_v13 = vld [vmem:[%s26306_s9 + $0x1d18] sm:$0xf]  ;;  %v15028_v61 = vor.u32 %v17194_v6, %v15027_v41  ;;  %v25563_v51 = vpop.f32.mrf.mxu0  ;;  %v17417_v19 = vld [vmem:[%s26310_s11 + $0x70] sm:$0xff]  ;;  %v17416_v41 = vld [vmem:[%s26310_s11 + $0x68] sm:$0xff] }
 0x585   :  { %9745 = vmatpush.bf16.msrb.mxu3 %v13844_v58  ;;  %v17314_v57 = vld [vmem:[%s26306_s9 + $0x1d34] sm:$0xf0] }
 0x586   :  { %v14995_v12 = vld [vmem:[%s26306_s9 + $0x1918] sm:$0xf]  ;;  %v25552_v60 = vpop.f32.mrf.mxu1 }
 0x587   :  { %9772 = vmatmul.bf16.vlgmr.msrb.gmra.mxu0 %v20701_v15  ;;  %v17186_v7 = vld [vmem:[%s26306_s9 + $0x1934] sm:$0xf0] }
 0x588   :  { %10015 = vmatpush.bf16.msra.mxu2 %v15224_v38  ;;  %9816 = vmatpush.bf16.msra.mxu0 %v15604_v33  ;;  %v15508_v38 = vor.u32 %v17314_v57, %v15507_v13  ;;  %v9762_v33 = vpop.f32.mrf.mxu2  ;;  %v17418_v11 = vld [vmem:[%s26310_s11 + $0x78] sm:$0xff]  ;;  %v14996_v48 = vor.u32 %v17186_v7, %v14995_v12 }
 0x589   :  { %9790 = vmatpush.bf16.msra.mxu3 %v15092_v0  ;;  %v15475_v58 = vld [vmem:[%s26306_s9 + $0x1cd8] sm:$0xf]  ;;  %v12533_v33 = vld [vmem:[%s26306_s9 + $0x5f8] sm:$0xf0] }
 0x58a   :  { %9746 = vmatmul.bf16.vlgmr.msrb.gmra.mxu3 %v20734_v36  ;;  %v17306_v55 = vld [vmem:[%s26306_s9 + $0x1cf4] sm:$0xf0] }
 0x58b   :  { %v14963_v0 = vld [vmem:[%s26306_s9 + $0x18d8] sm:$0xf]  ;;  %v15476_v45 = vor.u32 %v17306_v55, %v15475_v58  ;;  %v9539_v13 = vpop.f32.mrf.mxu3 }
 0x58c   :  { %10016 = vmatpush.bf16.msra.mxu2 %v15192_v17  ;;  %9817 = vmatpush.bf16.msra.mxu0 %v15572_v9  ;;  %v17178_v32 = vld [vmem:[%s26306_s9 + $0x18f4] sm:$0xf0] }
 0x58d   :  { %9791 = vmatpush.bf16.msra.mxu3 %v15060_v21  ;;  %v15443_v17 = vld [vmem:[%s26306_s9 + $0x1c98] sm:$0xf]  ;;  %v14964_v50 = vor.u32 %v17178_v32, %v14963_v0  ;;  %v12021_v0 = vld [vmem:[%s26306_s9 + $0x1f8] sm:$0xf0] }
 0x58e   :  { %v17298_v9 = vld [vmem:[%s26306_s9 + $0x1cb4] sm:$0xf0]  ;;  %v9996_v62 = vpop.f32.mrf.mxu1 }
 0x58f   :  { %v14931_v31 = vld [vmem:[%s26306_s9 + $0x1898] sm:$0xf]  ;;  %v15444_v21 = vor.u32 %v17298_v9, %v15443_v17  ;;  %v16558_v17 = vld [vmem:[%s26306_s9 + $0x59c] sm:$0xf] }
 0x590   :  { %10017 = vmatpush.bf16.msra.mxu2 %v15160_v52  ;;  %9818 = vmatpush.bf16.msra.mxu0 %v15540_v5  ;;  %v17170_v14 = vld [vmem:[%s26306_s9 + $0x18b4] sm:$0xf0]  ;;  %v9567_v5 = vpop.f32.mrf.mxu0  ;;  %v12501_v9 = vld [vmem:[%s26306_s9 + $0x5b8] sm:$0xf0] }
 0x591   :  { %9792 = vmatpush.bf16.msra.mxu3 %v15028_v61  ;;  %v17290_v6 = vld [vmem:[%s26306_s9 + $0x1c74] sm:$0xf0]  ;;  %v14932_v52 = vor.u32 %v17170_v14, %v14931_v31  ;;  %v17415_v61 = vld [vmem:[%s26310_s11 + $0x60] sm:$0xff]  ;;  %v16430_v14 = vld [vmem:[%s26306_s9 + $0x19c] sm:$0xf] }
 0x592   :  { %v14899_v22 = vld [vmem:[%s26306_s9 + $0x1858] sm:$0xf]  ;;  %v11989_v62 = vld [vmem:[%s26306_s9 + $0x1b8] sm:$0xf0] }
 0x593   :  { %v17162_v25 = vld [vmem:[%s26306_s9 + $0x1874] sm:$0xf0]  ;;  %v9541_v31 = vpop.f32.mrf.mxu3  ;;  %v11992_v5 = vor.u32 %v16430_v14, %v11989_v62  ;;  %v17449_v62 = vld [vmem:[%s26310_s11 + $0x170] sm:$0xff] }
 0x594   :  { %10018 = vmatpush.bf16.msra.mxu2 %v15128_v47  ;;  %9819 = vmatpush.bf16.msra.mxu0 %v15508_v38  ;;  %v15379_v12 = vld [vmem:[%s26306_s9 + $0x1c18] sm:$0xf]  ;;  %v14900_v47 = vor.u32 %v17162_v25, %v14899_v22  ;;  %v16566_v38 = vld [vmem:[%s26306_s9 + $0x5dc] sm:$0xf] }
 0x595   :  { %9793 = vmatpush.bf16.msra.mxu3 %v14996_v48  ;;  %v17282_v7 = vld [vmem:[%s26306_s9 + $0x1c34] sm:$0xf0]  ;;  %v16438_v48 = vld [vmem:[%s26306_s9 + $0x1dc] sm:$0xf] }
 0x596   :  { %v17154_v58 = vld [vmem:[%s26306_s9 + $0x1834] sm:$0xf0]  ;;  %v15380_v55 = vor.u32 %v17282_v7, %v15379_v12  ;;  %v16422_v22 = vld [vmem:[%s26306_s9 + $0x15c] sm:$0xf]  ;;  %v8799_v12 = vadd.f32 %v20951_v44, %v22714_v42 }
 0x597   :  { %10019 = vmatmul.bf16.vlgmr.msra.gmra.mxu2 %v19972_v40  ;;  %v15411_v40 = vld [vmem:[%s26306_s9 + $0x1c58] sm:$0xf]  ;;  %v11957_v25 = vld [vmem:[%s26306_s9 + $0x178] sm:$0xf0] }
 0x598   :  { %10595 = vmatpush.bf16.msrb.mxu2 %v17418_v11  ;;  %9820 = vmatpush.bf16.msra.mxu0 %v15476_v45  ;;  %v15412_v57 = vor.u32 %v17290_v6, %v15411_v40  ;;  %v14867_v11 = vld [vmem:[%s26306_s9 + $0x1818] sm:$0xf]  ;;  %v12536_v45 = vor.u32 %v16566_v38, %v12533_v33  ;;  %v25647_v40 = vpop.f32.mrf.mxu2  ;;  %v16550_v6 = vld [vmem:[%s26306_s9 + $0x55c] sm:$0xf]  ;;  %v9527_v38 = vadd.f32 %v23841_v39, %v25492_v18  ;;  %v10051_v18 = vmax.f32 %v8799_v12, 0.0 }
 0x599   :  { %9794 = vmatpush.bf16.msra.mxu3 %v14964_v50  ;;  %v17414_v32 = vld [vmem:[%s26310_s11 + $0x58] sm:$0xff]  ;;  %v12024_v50 = vor.u32 %v16438_v48, %v12021_v0  ;;  %v11960_v33 = vor.u32 %v16422_v22, %v11957_v25 }
 0x59a   :  { %v16542_v7 = vld [vmem:[%s26306_s9 + $0x51c] sm:$0xf]  ;;  %v9540_v42 = vadd.f32 %v9539_v13, %v9527_v38  ;;  %v10059_v14 = vpack.c.bf16 %v10051_v18, %v10051_v18 }
 0x59b   :  { %v11925_v44 = vld [vmem:[%s26306_s9 + $0x138] sm:$0xf0] }
 0x59c   :  { %10596 = vmatpush.bf16.msrb.mxu2 %v17417_v19  ;;  %9821 = vmatpush.bf16.msra.mxu0 %v15444_v21  ;;  %v14868_v19 = vor.u32 %v17154_v58, %v14867_v11  ;;  %v17413_v21 = vld [vmem:[%s26310_s11 + $0x50] sm:$0xff]  ;;  %v16414_v11 = vld [vmem:[%s26306_s9 + $0x11c] sm:$0xf] }
 0x59d   :  { %9795 = vmatpush.bf16.msra.mxu3 %v14932_v52  ;;  %v12469_v52 = vld [vmem:[%s26306_s9 + $0x578] sm:$0xf0] }
 0x59e   :  { %v17450_v0 = vld [vmem:[%s26310_s11 + $0x178] sm:$0xff] }
 0x59f   :  { %v12405_v13 = vld [vmem:[%s26306_s9 + $0x4f8] sm:$0xf0] }
 0x5a0   :  { %10597 = vmatpush.bf16.msrb.mxu2 %v17416_v41  ;;  %9822 = vmatpush.bf16.msra.mxu0 %v15412_v57  ;;  %v12504_v41 = vor.u32 %v16558_v17, %v12501_v9  ;;  %v17412_v57 = vld [vmem:[%s26310_s11 + $0x48] sm:$0xff]  ;;  %v9814_v48 = vpop.f32.mrf.mxu2  ;;  %v16406_v17 = vld [vmem:[%s26306_s9 + $0xdc] sm:$0xf] }
 0x5a1   :  { %9796 = vmatpush.bf16.msra.mxu3 %v14900_v47  ;;  %v12437_v47 = vld [vmem:[%s26306_s9 + $0x538] sm:$0xf0] }
 0x5a2   :  { %v12440_v39 = vor.u32 %v16542_v7, %v12437_v47  ;;  %v11893_v9 = vld [vmem:[%s26306_s9 + $0xf8] sm:$0xf0] }
 0x5a3   :  { %v12341_v12 = vld [vmem:[%s26306_s9 + $0x478] sm:$0xf0] }
 0x5a4   :  { %10598 = vmatpush.bf16.msrb.mxu2 %v17415_v61  ;;  %9823 = vmatpush.bf16.msra.mxu0 %v15380_v55  ;;  %v12472_v61 = vor.u32 %v16550_v6, %v12469_v52  ;;  %v17411_v55 = vld [vmem:[%s26310_s11 + $0x40] sm:$0xff]  ;;  %v11896_v6 = vor.u32 %v16406_v17, %v11893_v9  ;;  %v11861_v52 = vld [vmem:[%s26306_s9 + $0xb8] sm:$0xf0] }
 0x5a5   :  { %9797 = vmatpush.bf16.msra.mxu3 %v14868_v19  ;;  %v25696_v19 = vpop.f32.mrf.mxu0  ;;  %v11829_v38 = vld [vmem:[%s26306_s9 + $0x78] sm:$0xf0] }
 0x5a6   :  { %v25682_v58 = vpop.f32.mrf.mxu1  ;;  %v16694_v17 = vld [vmem:[%s26306_s9 + $0x9dc] sm:$0xf] }
 0x5a7   :  { %9824 = vmatmul.bf16.vlgmr.msra.gmra.mxu0 %v21064_v26  ;;  %v13045_v9 = vld [vmem:[%s26306_s9 + $0x9f8] sm:$0xf0] }
 0x5a8   :  { %10599 = vmatpush.bf16.msrb.mxu2 %v17414_v32  ;;  %9868 = vmatpush.bf16.msrb.mxu0 %v12536_v45  ;;  %v16534_v32 = vld [vmem:[%s26306_s9 + $0x4dc] sm:$0xf]  ;;  %v11928_v45 = vor.u32 %v16414_v11, %v11925_v44 }
 0x5a9   :  { %9842 = vmatpush.bf16.msrb.mxu3 %v12024_v50  ;;  %v9553_v50 = vadd.f32 %v24827_v3, %v9540_v42  ;;  %v12408_v31 = vor.u32 %v16534_v32, %v12405_v13  ;;  %v16398_v3 = vld [vmem:[%s26306_s9 + $0x9c] sm:$0xf]  ;;  %v17447_v42 = vld [vmem:[%s26310_s11 + $0x160] sm:$0xff] }
 0x5aa   :  { %9798 = vmatmul.bf16.vlgmr.msra.gmra.mxu3 %v20918_v63  ;;  %v11864_v7 = vor.u32 %v16398_v3, %v11861_v52  ;;  %v16382_v32 = vld [vmem:[%s26306_s9 + $0x1c] sm:$0xf] }
 0x5ab   :  { %v9566_v22 = vadd.f32 %v25563_v51, %v9553_v50  ;;  %v16390_v51 = vld [vmem:[%s26306_s9 + $0x5c] sm:$0xf]  ;;  %v9591_v11 = vpop.f32.mrf.mxu3 }
 0x5ac   :  { %10600 = vmatpush.bf16.msrb.mxu2 %v17413_v21  ;;  %9869 = vmatpush.bf16.msrb.mxu0 %v12504_v41  ;;  %v16526_v21 = vld [vmem:[%s26306_s9 + $0x49c] sm:$0xf]  ;;  %v11832_v48 = vor.u32 %v16390_v51, %v11829_v38  ;;  %v17444_v51 = vld [vmem:[%s26310_s11 + $0x148] sm:$0xff] }
 0x5ad   :  { %9843 = vmatpush.bf16.msrb.mxu3 %v11992_v5  ;;  %v12373_v41 = vld [vmem:[%s26306_s9 + $0x4b8] sm:$0xf0]  ;;  %v9619_v47 = vpop.f32.mrf.mxu0 }
 0x5ae   :  { %v10048_v5 = vpop.f32.mrf.mxu1  ;;  %v12376_v25 = vor.u32 %v16526_v21, %v12373_v41  ;;  %v11797_v13 = vld [vmem:[%s26306_s9 + $0x38] sm:$0xf0] }
 0x5af   :  { %v17446_v50 = vld [vmem:[%s26310_s11 + $0x158] sm:$0xff]  ;;  %v17445_v5 = vld [vmem:[%s26310_s11 + $0x150] sm:$0xff] }
 0x5b0   :  { %10601 = vmatpush.bf16.msrb.mxu2 %v17412_v57  ;;  %9870 = vmatpush.bf16.msrb.mxu0 %v12472_v61  ;;  %v17448_v57 = vld [vmem:[%s26310_s11 + $0x168] sm:$0xff]  ;;  %v16518_v61 = vld [vmem:[%s26306_s9 + $0x45c] sm:$0xf] }
 0x5b1   :  { %9844 = vmatpush.bf16.msrb.mxu3 %v11960_v33  ;;  %v9579_v33 = vadd.f32 %v24049_v35, %v9566_v22  ;;  %v12344_v44 = vor.u32 %v16518_v61, %v12341_v12  ;;  %v16822_v35 = vld [vmem:[%s26306_s9 + $0xddc] sm:$0xf] }
 0x5b2   :  { %v16814_v21 = vld [vmem:[%s26306_s9 + $0xd9c] sm:$0xf] }
 0x5b3   :  { %v9592_v18 = vadd.f32 %v9591_v11, %v9579_v33  ;;  %v13525_v41 = vld [vmem:[%s26306_s9 + $0xdb8] sm:$0xf0]  ;;  %v9593_v3 = vpop.f32.mrf.mxu3 }
 0x5b4   :  { %10602 = vmatpush.bf16.msrb.mxu2 %v17411_v55  ;;  %9871 = vmatpush.bf16.msrb.mxu0 %v12440_v39  ;;  %v16510_v55 = vld [vmem:[%s26306_s9 + $0x41c] sm:$0xf]  ;;  %v13528_v22 = vor.u32 %v16814_v21, %v13525_v41 }
 0x5b5   :  { %9845 = vmatpush.bf16.msrb.mxu3 %v11928_v45  ;;  %v12309_v39 = vld [vmem:[%s26306_s9 + $0x438] sm:$0xf0] }
 0x5b6   :  { %v12312_v45 = vor.u32 %v16510_v55, %v12309_v39  ;;  %v16686_v52 = vld [vmem:[%s26306_s9 + $0x99c] sm:$0xf] }
 0x5b7   :  { %10603 = vmatmul.bf16.vlgmr.msrb.gmra.mxu2 %v10059_v14  ;;  %v9605_v14 = vadd.f32 %v25026_v24, %v9592_v18  ;;  %v13013_v24 = vld [vmem:[%s26306_s9 + $0x9b8] sm:$0xf0] }
 0x5b8   :  { %10647 = vmatpush.bf16.msra.mxu2 %v17450_v0  ;;  %9872 = vmatpush.bf16.msrb.mxu0 %v12408_v31  ;;  %v13557_v0 = vld [vmem:[%s26306_s9 + $0xdf8] sm:$0xf0] }
 0x5b9   :  { %9846 = vmatpush.bf16.msrb.mxu3 %v11896_v6  ;;  %v13560_v31 = vor.u32 %v16822_v35, %v13557_v0  ;;  %v13048_v6 = vor.u32 %v16694_v17, %v13045_v9  ;;  %v16806_v61 = vld [vmem:[%s26306_s9 + $0xd5c] sm:$0xf] }
 0x5ba   :  { %v13493_v12 = vld [vmem:[%s26306_s9 + $0xd78] sm:$0xf0] }
 0x5bb   :  { %v16678_v47 = vld [vmem:[%s26306_s9 + $0x95c] sm:$0xf]  ;;  %v13496_v38 = vor.u32 %v16806_v61, %v13493_v12 }
 0x5bc   :  { %10648 = vmatpush.bf16.msra.mxu2 %v17449_v62  ;;  %9873 = vmatpush.bf16.msrb.mxu0 %v12376_v25  ;;  %v11800_v62 = vor.u32 %v16382_v32, %v11797_v13  ;;  %v9618_v25 = vadd.f32 %v25696_v19, %v9605_v14  ;;  %v12981_v19 = vld [vmem:[%s26306_s9 + $0x978] sm:$0xf0] }
 0x5bd   :  { %9847 = vmatpush.bf16.msrb.mxu3 %v11864_v7  ;;  %v13016_v7 = vor.u32 %v16686_v52, %v13013_v24  ;;  %v13461_v11 = vld [vmem:[%s26306_s9 + $0xd38] sm:$0xf0]  ;;  %v3256_v52 = vperm.slane %v25284_v34, 6 }
 0x5be   :  { %v9631_v33 = vadd.f32 %v24257_v10, %v9618_v25  ;;  %v12949_v10 = vld [vmem:[%s26306_s9 + $0x938] sm:$0xf0] }
 0x5bf   :  { %v16790_v35 = vld [vmem:[%s26306_s9 + $0xcdc] sm:$0xf] }
 0x5c0   :  { %10649 = vmatpush.bf16.msra.mxu2 %v17448_v57  ;;  %9874 = vmatpush.bf16.msrb.mxu0 %v12344_v44  ;;  %v25784_v57 = vpop.f32.mrf.mxu2  ;;  %v12984_v44 = vor.u32 %v16678_v47, %v12981_v19  ;;  %v10055_v18 = vmax.f32 %v9631_v33, 0.0  ;;  %v13429_v0 = vld [vmem:[%s26306_s9 + $0xcf8] sm:$0xf0] }
 0x5c1   :  { %9848 = vmatpush.bf16.msrb.mxu3 %v11832_v48  ;;  %v12917_v17 = vld [vmem:[%s26306_s9 + $0x8f8] sm:$0xf0]  ;;  %v13432_v9 = vor.u32 %v16790_v35, %v13429_v0 }
 0x5c2   :  { %v13397_v14 = vld [vmem:[%s26306_s9 + $0xcb8] sm:$0xf0] }
 0x5c3   :  { %v16654_v21 = vld [vmem:[%s26306_s9 + $0x89c] sm:$0xf] }
 0x5c4   :  { %10650 = vmatpush.bf16.msra.mxu2 %v17447_v42  ;;  %9875 = vmatpush.bf16.msrb.mxu0 %v12312_v45  ;;  %v16670_v42 = vld [vmem:[%s26306_s9 + $0x91c] sm:$0xf]  ;;  %v9669_v13 = vpop.f32.mrf.mxu0 }
 0x5c5   :  { %9849 = vmatpush.bf16.msrb.mxu3 %v11800_v62  ;;  %v12952_v32 = vor.u32 %v16670_v42, %v12949_v10  ;;  %v16662_v45 = vld [vmem:[%s26306_s9 + $0x8dc] sm:$0xf] }
 0x5c6   :  { %v25816_v55 = vpop.f32.mrf.mxu1  ;;  %v12920_v62 = vor.u32 %v16662_v45, %v12917_v17  ;;  %v12885_v41 = vld [vmem:[%s26306_s9 + $0x8b8] sm:$0xf0] }
 0x5c7   :  { %9876 = vmatmul.bf16.vlgmr.msrb.gmra.mxu0 %v19906_v2  ;;  %v16798_v2 = vld [vmem:[%s26306_s9 + $0xd1c] sm:$0xf] }
 0x5c8   :  { %10651 = vmatpush.bf16.msra.mxu2 %v17446_v50  ;;  %9920 = vmatpush.bf16.msra.mxu0 %v13560_v31  ;;  %v13464_v39 = vor.u32 %v16798_v2, %v13461_v11  ;;  %v9866_v48 = vpop.f32.mrf.mxu2  ;;  %v10063_v50 = vpack.c.bf16 %v10055_v18, %v10055_v18  ;;  %v16782_v31 = vld [vmem:[%s26306_s9 + $0xc9c] sm:$0xf] }
 0x5c9   :  { %9894 = vmatpush.bf16.msra.mxu3 %v13048_v6  ;;  %v13400_v3 = vor.u32 %v16782_v31, %v13397_v14  ;;  %v16774_v24 = vld [vmem:[%s26306_s9 + $0xc5c] sm:$0xf] }
 0x5ca   :  { %9850 = vmatmul.bf16.vlgmr.msrb.gmra.mxu3 %v20305_v20  ;;  %v17443_v20 = vld [vmem:[%s26310_s11 + $0x140] sm:$0xff]  ;;  %v16646_v61 = vld [vmem:[%s26306_s9 + $0x85c] sm:$0xf] }
 0x5cb   :  { %v12853_v12 = vld [vmem:[%s26306_s9 + $0x878] sm:$0xf0] }
 0x5cc   :  { %10652 = vmatpush.bf16.msra.mxu2 %v17445_v5  ;;  %9921 = vmatpush.bf16.msra.mxu0 %v13528_v22  ;;  %v13365_v5 = vld [vmem:[%s26306_s9 + $0xc78] sm:$0xf0]  ;;  %v12888_v22 = vor.u32 %v16654_v21, %v12885_v41  ;;  %v9671_v25 = vpop.f32.mrf.mxu0 }
 0x5cd   :  { %9895 = vmatpush.bf16.msra.mxu3 %v13016_v7  ;;  %v9643_v34 = vpop.f32.mrf.mxu3  ;;  %v13368_v7 = vor.u32 %v16774_v24, %v13365_v5  ;;  %v16766_v19 = vld [vmem:[%s26306_s9 + $0xc1c] sm:$0xf] }
 0x5ce   :  { %v10632_v6 = vpop.f32.mrf.mxu1  ;;  %v9644_v47 = vadd.f32 %v9643_v34, %v3256_v52  ;;  %v17078_v33 = vld [vmem:[%s26306_s9 + $0x15dc] sm:$0xf] }
 0x5cf   :  { %v14581_v2 = vld [vmem:[%s26306_s9 + $0x15f8] sm:$0xf0] }
 0x5d0   :  { %10653 = vmatpush.bf16.msra.mxu2 %v17444_v51  ;;  %9922 = vmatpush.bf16.msra.mxu0 %v13496_v38  ;;  %v13333_v51 = vld [vmem:[%s26306_s9 + $0xc38] sm:$0xf0]  ;;  %v12856_v38 = vor.u32 %v16646_v61, %v12853_v12  ;;  %v9657_v11 = vadd.f32 %v25199_v27, %v9644_v47  ;;  %v14584_v18 = vor.u32 %v17078_v33, %v14581_v2 }
 0x5d1   :  { %9896 = vmatpush.bf16.msra.mxu3 %v12984_v44  ;;  %v16638_v44 = vld [vmem:[%s26306_s9 + $0x81c] sm:$0xf]  ;;  %v13336_v10 = vor.u32 %v16766_v19, %v13333_v51 }
 0x5d2   :  { %v12821_v42 = vld [vmem:[%s26306_s9 + $0x838] sm:$0xf0]  ;;  %v9670_v27 = vadd.f32 %v9669_v13, %v9657_v11 }
 0x5d3   :  { %v12824_v48 = vor.u32 %v16638_v44, %v12821_v42  ;;  %v17070_v35 = vld [vmem:[%s26306_s9 + $0x159c] sm:$0xf] }
 0x5d4   :  { %10654 = vmatpush.bf16.msra.mxu2 %v17443_v20  ;;  %9923 = vmatpush.bf16.msra.mxu0 %v13464_v39  ;;  %v16950_v20 = vld [vmem:[%s26306_s9 + $0x11dc] sm:$0xf] }
 0x5d5   :  { %9897 = vmatpush.bf16.msra.mxu3 %v12952_v32  ;;  %v14069_v39 = vld [vmem:[%s26306_s9 + $0x11f8] sm:$0xf0]  ;;  %v9645_v45 = vpop.f32.mrf.mxu3 }
 0x5d6   :  { %v14549_v0 = vld [vmem:[%s26306_s9 + $0x15b8] sm:$0xf0]  ;;  %v14072_v32 = vor.u32 %v16950_v20, %v14069_v39 }
 0x5d7   :  { %10655 = vmatmul.bf16.vlgmr.msra.gmra.mxu2 %v10063_v50  ;;  %v16942_v17 = vld [vmem:[%s26306_s9 + $0x119c] sm:$0xf] }
 0x5d8   :  { %9924 = vmatpush.bf16.msra.mxu0 %v13432_v9  ;;  %v14037_v13 = vld [vmem:[%s26306_s9 + $0x11b8] sm:$0xf0]  ;;  %v14552_v9 = vor.u32 %v17070_v35, %v14549_v0 }
 0x5d9   :  { %9898 = vmatpush.bf16.msra.mxu3 %v12920_v62  ;;  %v17062_v31 = vld [vmem:[%s26306_s9 + $0x155c] sm:$0xf]  ;;  %v14040_v62 = vor.u32 %v16942_v17, %v14037_v13 }
 0x5da   :  { %v25895_v50 = vpop.f32.mrf.mxu2  ;;  %v14517_v14 = vld [vmem:[%s26306_s9 + $0x1578] sm:$0xf0] }
 0x5db   :  { %v16934_v21 = vld [vmem:[%s26306_s9 + $0x115c] sm:$0xf]  ;;  %v14520_v6 = vor.u32 %v17062_v31, %v14517_v14 }
 0x5dc   :  { %9925 = vmatpush.bf16.msra.mxu0 %v13400_v3  ;;  %v14005_v41 = vld [vmem:[%s26306_s9 + $0x1178] sm:$0xf0] }
 0x5dd   :  { %9899 = vmatpush.bf16.msra.mxu3 %v12888_v22  ;;  %v17054_v3 = vld [vmem:[%s26306_s9 + $0x151c] sm:$0xf]  ;;  %v14008_v52 = vor.u32 %v16934_v21, %v14005_v41 }
 0x5de   :  { %v16926_v24 = vld [vmem:[%s26306_s9 + $0x111c] sm:$0xf] }
 0x5df   :  { %v13973_v5 = vld [vmem:[%s26306_s9 + $0x1138] sm:$0xf0] }
 0x5e0   :  { %9926 = vmatpush.bf16.msra.mxu0 %v13368_v7  ;;  %v17046_v25 = vld [vmem:[%s26306_s9 + $0x14dc] sm:$0xf]  ;;  %v13976_v12 = vor.u32 %v16926_v24, %v13973_v5 }
 0x5e1   :  { %9900 = vmatpush.bf16.msra.mxu3 %v12856_v38  ;;  %v14453_v61 = vld [vmem:[%s26306_s9 + $0x14f8] sm:$0xf0] }
 0x5e2   :  { %v9918_v22 = vpop.f32.mrf.mxu2  ;;  %v16918_v7 = vld [vmem:[%s26306_s9 + $0x10dc] sm:$0xf]  ;;  %v14456_v19 = vor.u32 %v17046_v25, %v14453_v61 }
 0x5e3   :  { %v13941_v47 = vld [vmem:[%s26306_s9 + $0x10f8] sm:$0xf0] }
 0x5e4   :  { %9927 = vmatpush.bf16.msra.mxu0 %v13336_v10  ;;  %v9721_v34 = vpop.f32.mrf.mxu0  ;;  %v17038_v51 = vld [vmem:[%s26306_s9 + $0x149c] sm:$0xf]  ;;  %v13944_v33 = vor.u32 %v16918_v7, %v13941_v47 }
 0x5e5   :  { %9901 = vmatpush.bf16.msra.mxu3 %v12824_v48  ;;  %v14421_v38 = vld [vmem:[%s26306_s9 + $0x14b8] sm:$0xf0] }
 0x5e6   :  { %v16910_v2 = vld [vmem:[%s26306_s9 + $0x109c] sm:$0xf]  ;;  %v14424_v44 = vor.u32 %v17038_v51, %v14421_v38 }
 0x5e7   :  { %9928 = vmatmul.bf16.vlgmr.msra.gmra.mxu0 %v20278_v30  ;;  %v14485_v30 = vld [vmem:[%s26306_s9 + $0x1538] sm:$0xf0] }
 0x5e8   :  { %9972 = vmatpush.bf16.msrb.mxu0 %v14584_v18  ;;  %9902 = vmatmul.bf16.vlgmr.msra.gmra.mxu3 %v20518_v49  ;;  %v14488_v49 = vor.u32 %v17054_v3, %v14485_v30  ;;  %v13909_v11 = vld [vmem:[%s26306_s9 + $0x10b8] sm:$0xf0]  ;;  %v9683_v18 = vadd.f32 %v24465_v46, %v9670_v27 }
 0x5e9   :  { %9946 = vmatpush.bf16.msrb.mxu3 %v14072_v32  ;;  %v17030_v42 = vld [vmem:[%s26306_s9 + $0x145c] sm:$0xf]  ;;  %v13912_v20 = vor.u32 %v16910_v2, %v13909_v11 }
 0x5ea   :  { %v14389_v10 = vld [vmem:[%s26306_s9 + $0x1478] sm:$0xf0] }
 0x5eb   :  { %v16902_v48 = vld [vmem:[%s26306_s9 + $0x105c] sm:$0xf]  ;;  %v14392_v32 = vor.u32 %v17030_v42, %v14389_v10 }
 0x5ec   :  { %9973 = vmatpush.bf16.msrb.mxu0 %v14552_v9  ;;  %v9723_v39 = vpop.f32.mrf.mxu0  ;;  %v13877_v35 = vld [vmem:[%s26306_s9 + $0x1078] sm:$0xf0] }
 0x5ed   :  { %9947 = vmatpush.bf16.msrb.mxu3 %v14040_v62  ;;  %v9695_v0 = vpop.f32.mrf.mxu3  ;;  %v17022_v17 = vld [vmem:[%s26306_s9 + $0x141c] sm:$0xf]  ;;  %v13880_v27 = vor.u32 %v16902_v48, %v13877_v35 }
 0x5ee   :  { %v9696_v45 = vadd.f32 %v9695_v0, %v9683_v18  ;;  %v14357_v46 = vld [vmem:[%s26306_s9 + $0x1438] sm:$0xf0] }
 0x5ef   :  { %v17334_v13 = vld [vmem:[%s26306_s9 + $0x1ddc] sm:$0xf]  ;;  %v14360_v21 = vor.u32 %v17022_v17, %v14357_v46 }
 0x5f0   :  { %9974 = vmatpush.bf16.msrb.mxu0 %v14520_v6  ;;  %v15605_v9 = vld [vmem:[%s26306_s9 + $0x1df8] sm:$0xf0]  ;;  %v9709_v31 = vadd.f32 %v25359_v37, %v9696_v45 }
 0x5f1   :  { %9948 = vmatpush.bf16.msrb.mxu3 %v14008_v52  ;;  %v16894_v14 = vld [vmem:[%s26306_s9 + $0x101c] sm:$0xf]  ;;  %v15608_v3 = vor.u32 %v17334_v13, %v15605_v9 }
 0x5f2   :  { %v13845_v62 = vld [vmem:[%s26306_s9 + $0x1038] sm:$0xf0]  ;;  %v25985_v37 = vadd.f32 %v9721_v34, %v9709_v31 }
 0x5f3   :  { %v17206_v41 = vld [vmem:[%s26306_s9 + $0x19dc] sm:$0xf]  ;;  %v13848_v30 = vor.u32 %v16894_v14, %v13845_v62 }
 0x5f4   :  { %9975 = vmatpush.bf16.msrb.mxu0 %v14488_v49  ;;  %v15093_v6 = vld [vmem:[%s26306_s9 + $0x19f8] sm:$0xf0] }
 0x5f5   :  { %9949 = vmatpush.bf16.msrb.mxu3 %v13976_v12  ;;  %v17326_v52 = vld [vmem:[%s26306_s9 + $0x1d9c] sm:$0xf]  ;;  %v15096_v5 = vor.u32 %v17206_v41, %v15093_v6  ;;  %v9697_v49 = vpop.f32.mrf.mxu3 }
 0x5f6   :  { %v15573_v24 = vld [vmem:[%s26306_s9 + $0x1db8] sm:$0xf0] }
 0x5f7   :  { %v17198_v22 = vld [vmem:[%s26306_s9 + $0x199c] sm:$0xf]  ;;  %v15576_v61 = vor.u32 %v17326_v52, %v15573_v24 }
 0x5f8   :  { %9976 = vmatpush.bf16.msrb.mxu0 %v14456_v19  ;;  %v15061_v25 = vld [vmem:[%s26306_s9 + $0x19b8] sm:$0xf0] }
 0x5f9   :  { %9950 = vmatpush.bf16.msrb.mxu3 %v13944_v33  ;;  %v17318_v34 = vld [vmem:[%s26306_s9 + $0x1d5c] sm:$0xf]  ;;  %v15064_v47 = vor.u32 %v17198_v22, %v15061_v25 }
 0x5fa   :  { %v25999_v12 = vpop.f32.mrf.mxu2  ;;  %v15541_v7 = vld [vmem:[%s26306_s9 + $0x1d78] sm:$0xf0] }
 0x5fb   :  { %v17190_v19 = vld [vmem:[%s26306_s9 + $0x195c] sm:$0xf]  ;;  %v15544_v38 = vor.u32 %v17318_v34, %v15541_v7 }
 0x5fc   :  { %9977 = vmatpush.bf16.msrb.mxu0 %v14424_v44  ;;  %v15029_v51 = vld [vmem:[%s26306_s9 + $0x1978] sm:$0xf0] }
 0x5fd   :  { %9951 = vmatpush.bf16.msrb.mxu3 %v13912_v20  ;;  %v17310_v33 = vld [vmem:[%s26306_s9 + $0x1d1c] sm:$0xf]  ;;  %v15032_v2 = vor.u32 %v17190_v19, %v15029_v51  ;;  %v17409_v51 = vld [vmem:[%s26310_s11 + $0x30] sm:$0xff] }
 0x5fe   :  { %v17182_v11 = vld [vmem:[%s26306_s9 + $0x191c] sm:$0xf] }
 0x5ff   :  { %v14997_v44 = vld [vmem:[%s26306_s9 + $0x1938] sm:$0xf0] }
 0x600   :  { %9978 = vmatpush.bf16.msrb.mxu0 %v14392_v32  ;;  %v17302_v10 = vld [vmem:[%s26306_s9 + $0x1cdc] sm:$0xf]  ;;  %v15000_v39 = vor.u32 %v17182_v11, %v14997_v44 }
 0x601   :  { %9952 = vmatpush.bf16.msrb.mxu3 %v13880_v27  ;;  %v15477_v20 = vld [vmem:[%s26306_s9 + $0x1cf8] sm:$0xf0] }
 0x602   :  { %v9970_v42 = vpop.f32.mrf.mxu2  ;;  %v17174_v48 = vld [vmem:[%s26306_s9 + $0x18dc] sm:$0xf]  ;;  %v15480_v0 = vor.u32 %v17302_v10, %v15477_v20 }
 0x603   :  { %v14965_v35 = vld [vmem:[%s26306_s9 + $0x18f8] sm:$0xf0]  ;;  %v17405_v42 = vld [vmem:[%s26310_s11 + $0x10] sm:$0xff] }
 0x604   :  { %9979 = vmatpush.bf16.msrb.mxu0 %v14360_v21  ;;  %v26033_v18 = vpop.f32.mrf.mxu0  ;;  %v17294_v32 = vld [vmem:[%s26306_s9 + $0x1c9c] sm:$0xf]  ;;  %v14968_v17 = vor.u32 %v17174_v48, %v14965_v35  ;;  %v9007_v48 = vadd.f32 %v21755_v29, %v23547_v16  ;;  %v9735_v35 = vadd.f32 %v24674_v43, %v25985_v37  ;;  %v17403_v16 = vld [vmem:[%s26310_s11] sm:$0xff] }
 0x605   :  { %9953 = vmatpush.bf16.msrb.mxu3 %v13848_v30  ;;  %v15445_v45 = vld [vmem:[%s26306_s9 + $0x1cb8] sm:$0xf0] }
 0x606   :  { %v17166_v46 = vld [vmem:[%s26306_s9 + $0x189c] sm:$0xf]  ;;  %v15448_v13 = vor.u32 %v17294_v32, %v15445_v45  ;;  %v8591_v32 = vadd.f32 %v20370_v4, %v21969_v56 }
 0x607   :  { %9980 = vmatmul.bf16.vlgmr.msrb.gmra.mxu0 %v20701_v15  ;;  %v15509_v15 = vld [vmem:[%s26306_s9 + $0x1d38] sm:$0xf0] }
 0x608   :  { %10024 = vmatpush.bf16.msra.mxu0 %v15608_v3  ;;  %9954 = vmatmul.bf16.vlgmr.msrb.gmra.mxu3 %v20734_v36  ;;  %v15512_v36 = vor.u32 %v17310_v33, %v15509_v15  ;;  %v14933_v27 = vld [vmem:[%s26306_s9 + $0x18b8] sm:$0xf0]  ;;  %v17408_v33 = vld [vmem:[%s26310_s11 + $0x28] sm:$0xff]  ;;  %v10050_v43 = vmax.f32 %v8591_v32, 0.0  ;;  %v17463_v32 = vld [vmem:[%s26310_s11 + $0x1e0] sm:$0xff] }
 0x609   :  { %9998 = vmatpush.bf16.msra.mxu3 %v15096_v5  ;;  %v17286_v9 = vld [vmem:[%s26306_s9 + $0x1c5c] sm:$0xf]  ;;  %v14936_v14 = vor.u32 %v17166_v46, %v14933_v27  ;;  %v10052_v46 = vmax.f32 %v9007_v48, 0.0  ;;  %v17478_v48 = vld [vmem:[%s26309_s10] sm:$0xff] }
 0x60a   :  { %v15413_v31 = vld [vmem:[%s26306_s9 + $0x1c78] sm:$0xf0] }
 0x60b   :  { %v17158_v21 = vld [vmem:[%s26306_s9 + $0x185c] sm:$0xf]  ;;  %v15416_v3 = vor.u32 %v17286_v9, %v15413_v31  ;;  %v10060_v27 = vpack.c.bf16 %v10052_v46, %v10052_v46  ;;  %v10058_v31 = vpack.c.bf16 %v10050_v43, %v10050_v43 }
 0x60c   :  { %10025 = vmatpush.bf16.msra.mxu0 %v15576_v61  ;;  %v9775_v62 = vpop.f32.mrf.mxu0  ;;  %v14901_v41 = vld [vmem:[%s26306_s9 + $0x1878] sm:$0xf0] }
 0x60d   :  { %9999 = vmatpush.bf16.msra.mxu3 %v15064_v47  ;;  %v9747_v6 = vpop.f32.mrf.mxu3  ;;  %v17278_v30 = vld [vmem:[%s26306_s9 + $0x1c1c] sm:$0xf]  ;;  %v14904_v24 = vor.u32 %v17158_v21, %v14901_v41  ;;  %v17425_v47 = vld [vmem:[%s26310_s11 + $0xb0] sm:$0xff]  ;;  %v17456_v62 = vld [vmem:[%s26310_s11 + $0x1a8] sm:$0xff] }
 0x60e   :  { %v15381_v52 = vld [vmem:[%s26306_s9 + $0x1c38] sm:$0xf0]  ;;  %v9748_v45 = vadd.f32 %v9747_v6, %v9735_v35  ;;  %v17440_v21 = vld [vmem:[%s26310_s11 + $0x128] sm:$0xff]  ;;  %v17455_v6 = vld [vmem:[%s26310_s11 + $0x1a0] sm:$0xff]  ;;  %v3257_v35 = vperm.slane %v17478_v48, 7 }
 0x60f   :  { %v17150_v5 = vld [vmem:[%s26306_s9 + $0x181c] sm:$0xf]  ;;  %v15384_v22 = vor.u32 %v17278_v30, %v15381_v52  ;;  %v17439_v30 = vld [vmem:[%s26310_s11 + $0x120] sm:$0xff]  ;;  %v10689_v48 = vld [vmem:[%s26312_s13 + $0x10] sm:$0xff] }
 0x610   :  { %10026 = vmatpush.bf16.msra.mxu0 %v15544_v38  ;;  %v14869_v49 = vld [vmem:[%s26306_s9 + $0x1838] sm:$0xf0]  ;;  %v17424_v38 = vld [vmem:[%s26310_s11 + $0xa8] sm:$0xff]  ;;  %v9761_v56 = vadd.f32 %v25515_v1, %v9748_v45 }
 0x611   :  { %10000 = vmatpush.bf16.msra.mxu3 %v15032_v2  ;;  %v17426_v25 = vld [vmem:[%s26310_s11 + $0xb8] sm:$0xff]  ;;  %v14872_v61 = vor.u32 %v17150_v5, %v14869_v49  ;;  %v17453_v49 = vld [vmem:[%s26310_s11 + $0x190] sm:$0xff] }
 0x612   :  { %v17410_v34 = vld [vmem:[%s26310_s11 + $0x38] sm:$0xff]  ;;  %v9774_v1 = vadd.f32 %v26033_v18, %v9761_v56 }
 0x613   :  { %v17422_v11 = vld [vmem:[%s26310_s11 + $0x98] sm:$0xff] }
 0x614   :  { %10027 = vmatpush.bf16.msra.mxu0 %v15512_v36  ;;  %v17406_v44 = vld [vmem:[%s26310_s11 + $0x18] sm:$0xff]  ;;  %v17421_v36 = vld [vmem:[%s26310_s11 + $0x90] sm:$0xff]  ;;  %v9787_v41 = vadd.f32 %v24882_v54, %v9774_v1 }
 0x615   :  { %10001 = vmatpush.bf16.msra.mxu3 %v15000_v39  ;;  %v9749_v7 = vpop.f32.mrf.mxu3  ;;  %v17420_v39 = vld [vmem:[%s26310_s11 + $0x88] sm:$0xff]  ;;  %v17458_v29 = vld [vmem:[%s26310_s11 + $0x1b8] sm:$0xff] }
 0x616   :  { %v17442_v4 = vld [vmem:[%s26310_s11 + $0x138] sm:$0xff] }
 0x617   :  { %v17438_v5 = vld [vmem:[%s26310_s11 + $0x118] sm:$0xff] }
 0x618   :  { %10028 = vmatpush.bf16.msra.mxu0 %v15480_v0  ;;  %v17404_v0 = vld [vmem:[%s26310_s11 + $0x8] sm:$0xff]  ;;  %v17462_v45 = vld [vmem:[%s26310_s11 + $0x1d8] sm:$0xff] }
 0x619   :  { %10002 = vmatpush.bf16.msra.mxu3 %v14968_v17  ;;  %v17419_v17 = vld [vmem:[%s26310_s11 + $0x80] sm:$0xff] }
 0x61a   :  { %v26086_v19 = vpop.f32.mrf.mxu2 }
 0x61c   :  { %10029 = vmatpush.bf16.msra.mxu0 %v15448_v13  ;;  %v17457_v13 = vld [vmem:[%s26310_s11 + $0x1b0] sm:$0xff] }
 0x61d   :  { %10003 = vmatpush.bf16.msra.mxu3 %v14936_v14  ;;  %v17441_v14 = vld [vmem:[%s26310_s11 + $0x130] sm:$0xff] }
 0x620   :  { %10030 = vmatpush.bf16.msra.mxu0 %v15416_v3 }
 0x621   :  { %10004 = vmatpush.bf16.msra.mxu3 %v14904_v24  ;;  %v17454_v24 = vld [vmem:[%s26310_s11 + $0x198] sm:$0xff] }
 0x622   :  { %v10022_v15 = vpop.f32.mrf.mxu2 }
 0x624   :  { %10031 = vmatpush.bf16.msra.mxu0 %v15384_v22  ;;  %v9825_v2 = vpop.f32.mrf.mxu0 }
 0x625   :  { %10005 = vmatpush.bf16.msra.mxu3 %v14872_v61 }
 0x627   :  { %10032 = vmatmul.bf16.vlgmr.msra.gmra.mxu0 %v21064_v26  ;;  %v17423_v26 = vld [vmem:[%s26310_s11 + $0xa0] sm:$0xff] }
 0x628   :  { %10608 = vmatpush.bf16.msrb.mxu0 %v17426_v25  ;;  %10006 = vmatmul.bf16.vlgmr.msra.gmra.mxu3 %v20918_v63  ;;  %v17407_v63 = vld [vmem:[%s26310_s11 + $0x20] sm:$0xff]  ;;  %v17437_v25 = vld [vmem:[%s26310_s11 + $0x110] sm:$0xff] }
 0x629   :  { %10582 = vmatpush.bf16.msrb.mxu3 %v17410_v34 }
 0x62c   :  { %10609 = vmatpush.bf16.msrb.mxu0 %v17425_v47  ;;  %v9827_v10 = vpop.f32.mrf.mxu0  ;;  %v17436_v47 = vld [vmem:[%s26310_s11 + $0x108] sm:$0xff] }
 0x62d   :  { %10583 = vmatpush.bf16.msrb.mxu3 %v17409_v51  ;;  %v9799_v20 = vpop.f32.mrf.mxu3  ;;  %v9423_v51 = vadd.f32 %v23424_v8, %v25176_v53  ;;  %v17465_v10 = vld [vmem:[%s26310_s11 + $0x1f0] sm:$0xff] }
 0x62e   :  { %v9800_v3 = vadd.f32 %v9799_v20, %v9787_v41 }
 0x630   :  { %10610 = vmatpush.bf16.msrb.mxu0 %v17424_v38  ;;  %v9813_v54 = vadd.f32 %v25647_v40, %v9800_v3  ;;  %v17452_v40 = vld [vmem:[%s26310_s11 + $0x188] sm:$0xff]  ;;  %v17451_v38 = vld [vmem:[%s26310_s11 + $0x180] sm:$0xff] }
 0x631   :  { %10584 = vmatpush.bf16.msrb.mxu3 %v17408_v33 }
 0x632   :  { %v9826_v22 = vadd.f32 %v9825_v2, %v9813_v54 }
 0x634   :  { %10611 = vmatpush.bf16.msrb.mxu0 %v17423_v26  ;;  %v9839_v7 = vadd.f32 %v25072_v28, %v9826_v22  ;;  %v17435_v26 = vld [vmem:[%s26310_s11 + $0x100] sm:$0xff]  ;;  %v10054_v28 = vmax.f32 %v9423_v51, 0.0  ;;  %v10697_v51 = vld [vmem:[%s26312_s13 + $0x50] sm:$0xff] }
 0x635   :  { %10585 = vmatpush.bf16.msrb.mxu3 %v17407_v63  ;;  %v9801_v37 = vpop.f32.mrf.mxu3 }
 0x636   :  { %v10056_v33 = vmax.f32 %v9839_v7, 0.0 }
 0x638   :  { %10612 = vmatpush.bf16.msrb.mxu0 %v17422_v11  ;;  %v10064_v63 = vpack.c.bf16 %v10056_v33, %v10056_v33  ;;  %v10062_v11 = vpack.c.bf16 %v10054_v28, %v10054_v28  ;;  %v10695_v33 = vld [vmem:[%s26312_s13 + $0x40] sm:$0xff] }
 0x639   :  { %10586 = vmatpush.bf16.msrb.mxu3 %v17406_v44 }
 0x63a   :  { %v26145_v9 = vpop.f32.mrf.mxu2 }
 0x63c   :  { %10613 = vmatpush.bf16.msrb.mxu0 %v17421_v36 }
 0x63d   :  { %10587 = vmatpush.bf16.msrb.mxu3 %v17405_v42  ;;  %v17466_v42 = vld [vmem:[%s26310_s11 + $0x1f8] sm:$0xff] }
 0x63e   :  { %10673 = vmatpush.bf16.msra.mxu1 %v17466_v42 }
 0x640   :  { %10614 = vmatpush.bf16.msrb.mxu0 %v17420_v39  ;;  %v17464_v39 = vld [vmem:[%s26310_s11 + $0x1e8] sm:$0xff] }
 0x641   :  { %10588 = vmatpush.bf16.msrb.mxu3 %v17404_v0 }
 0x642   :  { %v10606_v18 = vpop.f32.mrf.mxu2  ;;  %10674 = vmatpush.bf16.msra.mxu1 %v17465_v10 }
 0x644   :  { %10615 = vmatpush.bf16.msrb.mxu0 %v17419_v17  ;;  %v9877_v52 = vpop.f32.mrf.mxu0 }
 0x645   :  { %10589 = vmatpush.bf16.msrb.mxu3 %v17403_v16  ;;  %v17461_v16 = vld [vmem:[%s26310_s11 + $0x1d0] sm:$0xff] }
 0x646   :  { %10675 = vmatpush.bf16.msra.mxu1 %v17464_v39 }
 0x647   :  { %10616 = vmatmul.bf16.vlgmr.msrb.gmra.mxu0 %v10060_v27  ;;  %v17460_v27 = vld [vmem:[%s26310_s11 + $0x1c8] sm:$0xff] }
 0x648   :  { %10660 = vmatpush.bf16.msra.mxu0 %v17458_v29  ;;  %10590 = vmatmul.bf16.vlgmr.msrb.gmra.mxu3 %v10058_v31 }
 0x649   :  { %10634 = vmatpush.bf16.msra.mxu3 %v17442_v4 }
 0x64a   :  { %10676 = vmatpush.bf16.msra.mxu1 %v17463_v32 }
 0x64c   :  { %10661 = vmatpush.bf16.msra.mxu0 %v17457_v13  ;;  %v9879_v61 = vpop.f32.mrf.mxu0  ;;  %v17459_v13 = vld [vmem:[%s26310_s11 + $0x1c0] sm:$0xff] }
 0x64d   :  { %10635 = vmatpush.bf16.msra.mxu3 %v17441_v14  ;;  %v9851_v34 = vpop.f32.mrf.mxu3 }
 0x64e   :  { %v9852_v0 = vadd.f32 %v9851_v34, %v3257_v35  ;;  %10677 = vmatpush.bf16.msra.mxu1 %v17462_v45  ;;  %v10688_v35 = vld [vmem:[%s26312_s13 + $0x8] sm:$0xff] }
 0x650   :  { %10662 = vmatpush.bf16.msra.mxu0 %v17456_v62  ;;  %v9865_v17 = vadd.f32 %v25784_v57, %v9852_v0 }
 0x651   :  { %10636 = vmatpush.bf16.msra.mxu3 %v17440_v21 }
 0x652   :  { %v9878_v29 = vadd.f32 %v9877_v52, %v9865_v17  ;;  %10678 = vmatpush.bf16.msra.mxu1 %v17461_v16  ;;  %v10723_v17 = vld [vmem:[%s26313_s14] sm:$0x7] }
 0x653   :  { %v10731_v16 = vperm.slane %v10723_v17, 2 }
 0x654   :  { %10663 = vmatpush.bf16.msra.mxu0 %v17455_v6  ;;  %v9891_v43 = vadd.f32 %v25242_v59, %v9878_v29  ;;  %v10727_v29 = vperm.slane %v10723_v17, 1 }
 0x655   :  { %10637 = vmatpush.bf16.msra.mxu3 %v17439_v30  ;;  %v9853_v15 = vpop.f32.mrf.mxu3 }
 0x656   :  { %10679 = vmatpush.bf16.msra.mxu1 %v17460_v27  ;;  %v10693_v15 = vld [vmem:[%s26312_s13 + $0x30] sm:$0xff] }
 0x658   :  { %10664 = vmatpush.bf16.msra.mxu0 %v17454_v24 }
 0x659   :  { %10638 = vmatpush.bf16.msra.mxu3 %v17438_v5 }
 0x65a   :  { %v26192_v2 = vpop.f32.mrf.mxu2  ;;  %10680 = vmatpush.bf16.msra.mxu1 %v17459_v13 }
 0x65c   :  { %10665 = vmatpush.bf16.msra.mxu0 %v17453_v49 }
 0x65d   :  { %10639 = vmatpush.bf16.msra.mxu3 %v17437_v25 }
 0x660   :  { %10666 = vmatpush.bf16.msra.mxu0 %v17452_v40  ;;  %v10700_v40 = vld [vmem:[%s26312_s13 + $0x68] sm:$0xff] }
 0x661   :  { %10640 = vmatpush.bf16.msra.mxu3 %v17436_v47  ;;  %v10698_v47 = vld [vmem:[%s26312_s13 + $0x58] sm:$0xff] }
 0x662   :  { %v10658_v8 = vpop.f32.mrf.mxu2 }
 0x663   :  { %v10690_v8 = vld [vmem:[%s26312_s13 + $0x18] sm:$0xff] }
 0x664   :  { %10667 = vmatpush.bf16.msra.mxu0 %v17451_v38  ;;  %v9929_v53 = vpop.f32.mrf.mxu0  ;;  %v10696_v38 = vld [vmem:[%s26312_s13 + $0x48] sm:$0xff] }
 0x665   :  { %10641 = vmatpush.bf16.msra.mxu3 %v17435_v26  ;;  %v10694_v26 = vld [vmem:[%s26312_s13 + $0x38] sm:$0xff] }
 0x667   :  { %10668 = vmatmul.bf16.vlgmr.msra.gmra.mxu0 %v10064_v63  ;;  %v10692_v63 = vld [vmem:[%s26312_s13 + $0x28] sm:$0xff] }
 0x668   :  { %10642 = vmatmul.bf16.vlgmr.msra.gmra.mxu3 %v10062_v11  ;;  %v10691_v11 = vld [vmem:[%s26312_s13 + $0x20] sm:$0xff] }
 0x66b   :  { %v9903_v36 = vpop.f32.mrf.mxu3 }
 0x66c   :  { %v9931_v44 = vpop.f32.mrf.mxu0  ;;  %v9904_v37 = vadd.f32 %v9903_v36, %v9891_v43 }
 0x66e   :  { %v9917_v57 = vadd.f32 %v25895_v50, %v9904_v37 }
 0x670   :  { %v9930_v14 = vadd.f32 %v9929_v53, %v9917_v57 }
 0x672   :  { %v9943_v59 = vadd.f32 %v25402_v23, %v9930_v14 }
 0x673   :  { %v9905_v20 = vpop.f32.mrf.mxu3 }
 0x684   :  { %v9981_v46 = vpop.f32.mrf.mxu0 }
 0x68b   :  { %v9955_v56 = vpop.f32.mrf.mxu3 }
 0x68c   :  { %v9983_v4 = vpop.f32.mrf.mxu0  ;;  %v9956_v1 = vadd.f32 %v9955_v56, %v9943_v59 }
 0x68e   :  { %v9969_v62 = vadd.f32 %v25999_v12, %v9956_v1  ;;  %v17470_v12 = vld [vmem:[%s26311_s12] ss:$0 sm:$0xff] }
 0x690   :  { %v9982_v41 = vadd.f32 %v9981_v46, %v9969_v62  ;;  %v10724_v46 = vperm.slane %v10723_v17, 0 }
 0x692   :  { %v9995_v6 = vadd.f32 %v25552_v60, %v9982_v41 }
 0x693   :  { %v9957_v31 = vpop.f32.mrf.mxu3 }
 0x6a4   :  { %v10033_v21 = vpop.f32.mrf.mxu0 }
 0x6ab   :  { %v10007_v18 = vpop.f32.mrf.mxu3 }
 0x6ac   :  { %v10035_v3 = vpop.f32.mrf.mxu0  ;;  %v10008_v30 = vadd.f32 %v10007_v18, %v9995_v6 }
 0x6ae   :  { %v10021_v50 = vadd.f32 %v26086_v19, %v10008_v30  ;;  %v10702_v19 = vld [vmem:[%s26312_s13 + $0x78] sm:$0xff] }
 0x6af   :  { %10703 = vmatpush.msrb.mxu3 %v10702_v19 }
 0x6b0   :  { %v10034_v52 = vadd.f32 %v10033_v21, %v10021_v50 }
 0x6b2   :  { %v10047_v24 = vadd.f32 %v25682_v58, %v10034_v52  ;;  %v10701_v58 = vld [vmem:[%s26312_s13 + $0x70] sm:$0xff] }
 0x6b3   :  { %v10009_v54 = vpop.f32.mrf.mxu3  ;;  %10704 = vmatpush.msrb.mxu3 %v10701_v58 }
 0x6b4   :  { %v10057_v5 = vmax.f32 %v10047_v24, 0.0 }
 0x6b5   :  { %10705 = vmatpush.msrb.mxu3 %v10700_v40 }
 0x6b6   :  { %v10065_v49 = vpack.c.bf16 %v10057_v5, %v10057_v5 }
 0x6b8   :  { %10681 = vmatmul.bf16.vlgmr.msra.gmra.mxu1 %v10065_v49 }
 0x6c4   :  { %v10617_v23 = vpop.f32.mrf.mxu0 }
 0x6cb   :  { %v10591_v25 = vpop.f32.mrf.mxu3 }
 0x6cc   :  { %v10619_v22 = vpop.f32.mrf.mxu0  ;;  %v10592_v60 = vadd.f32 %v17470_v12, %v10591_v25 }
 0x6ce   :  { %v10605_v61 = vadd.f32 %v26145_v9, %v10592_v60  ;;  %v10699_v9 = vld [vmem:[%s26312_s13 + $0x60] sm:$0xff] }
 0x6cf   :  { %10706 = vmatpush.msrb.mxu3 %v10699_v9 }
 0x6d0   :  { %v10618_v34 = vadd.f32 %v10617_v23, %v10605_v61 }
 0x6d1   :  { %10707 = vmatpush.msrb.mxu3 %v10698_v47 }
 0x6d2   :  { %v10631_v53 = vadd.f32 %v25816_v55, %v10618_v34  ;;  %v10687_v55 = vld [vmem:[%s26312_s13] sm:$0xff] }
 0x6d3   :  { %v10593_v7 = vpop.f32.mrf.mxu3  ;;  %10708 = vmatpush.msrb.mxu3 %v10697_v51 }
 0x6d5   :  { %10709 = vmatpush.msrb.mxu3 %v10696_v38 }
 0x6d7   :  { %10710 = vmatpush.msrb.mxu3 %v10695_v33 }
 0x6d9   :  { %10711 = vmatpush.msrb.mxu3 %v10694_v26 }
 0x6db   :  { %10712 = vmatpush.msrb.mxu3 %v10693_v15 }
 0x6dd   :  { %10713 = vmatpush.msrb.mxu3 %v10692_v63 }
 0x6df   :  { %10714 = vmatpush.msrb.mxu3 %v10691_v11 }
 0x6e1   :  { %10715 = vmatpush.msrb.mxu3 %v10690_v8 }
 0x6e3   :  { %10716 = vmatpush.msrb.mxu3 %v10689_v48 }
 0x6e4   :  { %v10669_v28 = vpop.f32.mrf.mxu0 }
 0x6e5   :  { %10717 = vmatpush.msrb.mxu3 %v10688_v35 }
 0x6e7   :  { %10718 = vmatpush.msrb.mxu3 %v10687_v55 }
 0x6eb   :  { %v10643_v36 = vpop.f32.mrf.mxu3 }
 0x6ec   :  { %v10671_v44 = vpop.f32.mrf.mxu0  ;;  %v10644_v42 = vadd.f32 %v10643_v36, %v10631_v53 }
 0x6ee   :  { %v10657_v10 = vadd.f32 %v26192_v2, %v10644_v42 }
 0x6f0   :  { %v10670_v20 = vadd.f32 %v10669_v28, %v10657_v10 }
 0x6f3   :  { %v10645_v39 = vpop.f32.mrf.mxu3 }
 0x735   :  { %v10682_v0 = vpop.f32.mrf.mxu1 }
 0x736   :  { %v10683_v32 = vadd.f32 %v10682_v0, %v10670_v20 }
 0x738   :  { %v10686_v2 = vmax.f32 %v10683_v32, 0.0 }
 0x73a   :  { %10719 = vmatmul.f32.vlgmr.msrb.gmra.mxu3 %v10686_v2 }
 0x73d   :  { %v10684_v45 = vpop.f32.mrf.mxu1 }
 0x7bd   :  { %v10720_v43 = vpop.f32.mrf.mxu3 }
 0x7be   :  { %v10725_v4 = vadd.f32 %v10724_v46, %v10720_v43  ;;  %v10728_v56 = vadd.f32 %v10727_v29, %v10720_v43  ;;  %v10732_v37 = vadd.f32 %v10731_v16, %v10720_v43 }
 0x7c0   :  { %10726 = vst.msk [vmem:[%s26314_s16] sm:$0xff] %vm200_vm2, %v10725_v4 }
 0x7c1   :  { %16121 = vst.msk [vmem:[%s26314_s16 + $0x8] sm:$0xff] %vm200_vm2, %v10728_v56 }
 0x7c2   :  { %16122 = vst.msk [vmem:[%s26314_s16 + $0x10] sm:$0xff] %vm200_vm2, %v10732_v37 }

</bundles_post_ra>
